<compile_context>
chip_gen: v7x
topology: tpu7x:2x2x1
jax: 0.10.0
libtpu: 0.0.40
codegen_flags: <defaults>
</compile_context>

<pallas_src>
import jax
import jax.numpy as jnp
from jax.experimental import pallas as pl
from jax.experimental.pallas import tpu as pltpu

IN_FC = 512 * 2     # 1024
HALF = IN_FC // 2   # 512
EPS = 1e-5          # nn.InstanceNorm1d default eps


def distance_g_kernel(m_ref, s_ref,
                      w1a_ref, w1b_ref, b1_ref,
                      w2_ref, b2_ref,
                      w3_ref, b3_ref,
                      wo_ref, bo_ref,
                      out_ref):
    """Fused MLP for one batch tile.  Weights are bf16 and VMEM-resident."""

    def norm_relu(y):
        # InstanceNorm1d on (TB, F): per-row normalization over features,
        # biased variance, no affine.  One-pass moments (var = E[y^2] - mu^2),
        # clamped at 0 for numerical safety.  Done in f32 (v5e VPU has no bf16).
        mu = jnp.mean(y, axis=-1, keepdims=True)
        ms = jnp.mean(y * y, axis=-1, keepdims=True)
        var = jnp.maximum(ms - mu * mu, 0.0)
        yn = (y - mu) * jax.lax.rsqrt(var + EPS)
        return jnp.maximum(yn, 0.0)

    # Activations arrive as f32 and are cast to bf16 on the VPU (no wrapper op).
    m_bf = m_ref[...].astype(jnp.bfloat16)                       # (TB, 512)
    s_bf = s_ref[...].astype(jnp.bfloat16)                       # (TB, 512)

    # Layer 1 -- folded concat: cat([m, s]) @ W1 == m @ W1[:512] + s @ W1[512:]
    y1 = (jnp.dot(m_bf, w1a_ref[...], preferred_element_type=jnp.float32)
          + jnp.dot(s_bf, w1b_ref[...], preferred_element_type=jnp.float32)
          + b1_ref[...])
    h = norm_relu(y1).astype(jnp.bfloat16)                       # (TB, 1024)

    # Layer 2
    y2 = jnp.dot(h, w2_ref[...], preferred_element_type=jnp.float32) + b2_ref[...]
    h = norm_relu(y2).astype(jnp.bfloat16)                       # (TB, 1024)

    # Layer 3
    y3 = jnp.dot(h, w3_ref[...], preferred_element_type=jnp.float32) + b3_ref[...]
    h3 = norm_relu(y3)                                           # (TB, 512) f32

    # Output layer + sigmoid.  N=1 matmul would use 1/256 of the MXU, so do it
    # on the VPU (broadcast mul) + XLU (lane reduce) instead; both have slack.
    logits = jnp.sum(h3 * wo_ref[...], axis=-1, keepdims=True) + bo_ref[...]
    out_ref[...] = jax.nn.sigmoid(logits)                        # (TB, 1)


def init_params(key):
    """kaiming_normal_ (fan_in, gain=sqrt(2)) weights, zero biases.

    Hidden-layer weights are stored pre-transposed as (in, out) bf16 (halves
    the dominant weight-DMA bytes); W1 is split into its two 512-row halves so
    the input concat folds into layer 1.  The tiny output layer is kept as an
    f32 row vector (1, 512) for the VPU reduce.  Biases are f32.
    """
    # TODO(synk): int8 (v5e/v6e) or fp8-e4m3 (v7x) weight quantization with
    # per-channel scales would halve the weight-DMA bytes again; not applied
    # here to keep a single portable kernel and bf16-level fidelity.
    dims = [(IN_FC, IN_FC), (IN_FC, IN_FC), (IN_FC, HALF)]
    ws, bs = [], []
    for (fan_in, fan_out) in dims:
        key, sub = jax.random.split(key)
        std = jnp.sqrt(2.0 / fan_in)                 # kaiming_normal_, fan_in
        w = jax.random.normal(sub, (fan_in, fan_out), dtype=jnp.float32) * std
        ws.append(w.astype(jnp.bfloat16))
        bs.append(jnp.zeros((1, fan_out), dtype=jnp.float32))
    w1, w2, w3 = ws
    b1, b2, b3 = bs
    w1a, w1b = w1[:HALF, :], w1[HALF:, :]            # fold the concat into layer 1

    key, sub = jax.random.split(key)
    std_o = jnp.sqrt(2.0 / HALF)
    wo = (jax.random.normal(sub, (1, HALF), dtype=jnp.float32) * std_o)  # f32 row
    bo = jnp.zeros((1, 1), dtype=jnp.float32)
    return (w1a, w1b, b1, w2, b2, w3, b3, wo, bo)


def distance_g_forward(m, s, params, *, tb=256):
    """m, s: (B, 512, 1, 1).  Returns sigmoid logits (B, 1) float32."""
    b, c = m.shape[0], m.shape[1]
    assert c == HALF, f"Distance_G expects channel dim {HALF}, got {c}"
    # Keep activations f32: the bf16 cast happens inside the kernel (VPU).
    m2 = m.reshape(b, c).astype(jnp.float32)
    s2 = s.reshape(b, c).astype(jnp.float32)
    w1a, w1b, b1, w2, b2, w3, b3, wo, bo = params

    # Batch tiling: only split the grid when B is large enough to be
    # compute-bound; at small B the kernel is weight-DMA bound and splitting
    # merely duplicates the ~5 MiB weight stream across TensorCores (v7x).
    if b >= 512 and b > tb:
        tb = max(256, (min(tb, b) // 256) * 256)     # multiple of 256 (bf16/MXU)
    else:
        tb = b
    grid = (pl.cdiv(b, tb),)

    def row_spec(feat):
        return pl.BlockSpec((tb, feat), lambda i: (i, 0))

    def resident_spec(arr):
        # Constant block index -> fetched from HBM once per call and kept
        # VMEM-resident.  Buffered(1): no pointless double buffer (saves ~5 MiB
        # VMEM -- matters on v7x's 64 MiB per-TC VMEM).
        return pl.BlockSpec(arr.shape, lambda i: (0, 0),
                            pipeline_mode=pl.Buffered(1))

    grid_spec = pltpu.PrefetchScalarGridSpec(
        num_scalar_prefetch=0,
        grid=grid,
        in_specs=[
            row_spec(c),                 # m   (TB, 512) f32
            row_spec(c),                 # s   (TB, 512) f32
            resident_spec(w1a), resident_spec(w1b), resident_spec(b1),
            resident_spec(w2), resident_spec(b2),
            resident_spec(w3), resident_spec(b3),
            resident_spec(wo), resident_spec(bo),
        ],
        out_specs=pl.BlockSpec((tb, 1), lambda i: (i, 0)),
    )

    weight_bytes = sum(int(p.size) * p.dtype.itemsize for p in params)
    macs = b * (IN_FC * IN_FC + IN_FC * IN_FC + IN_FC * HALF + HALF)
    cost = pl.CostEstimate(
        flops=2 * macs,
        transcendentals=4 * b,                       # 3x rsqrt + sigmoid per row
        bytes_accessed=weight_bytes + b * (2 * c * 4 + 4),
    )

    return pl.pallas_call(
        distance_g_kernel,
        out_shape=jax.ShapeDtypeStruct((b, 1), jnp.float32),
        grid_spec=grid_spec,
        compiler_params=pltpu.CompilerParams(
            dimension_semantics=("parallel",),
            vmem_limit_bytes=32 * 1024 * 1024,
        ),
        cost_estimate=cost,
    )(m2, s2, w1a, w1b, b1, w2, b2, w3, b3, wo, bo)

    # TODO(synk): when the same weights are reused across many tiny-batch
    # calls, a cross-pallas_call weight-prefetch (P10) or request batching is
    # the only order-of-magnitude lever; out of scope for a single kernel.


def _reference_forward(m, s, params):
    """Pure-JAX reference mirroring the kernel's bf16-matmul / f32-accumulate math."""
    b, c = m.shape[0], m.shape[1]
    w1a, w1b, b1, w2, b2, w3, b3, wo, bo = params
    mm = m.reshape(b, c).astype(jnp.bfloat16)
    ss = s.reshape(b, c).astype(jnp.bfloat16)

    def norm_relu(y):
        mu = jnp.mean(y, axis=-1, keepdims=True)
        ms = jnp.mean(y * y, axis=-1, keepdims=True)
        var = jnp.maximum(ms - mu * mu, 0.0)
        return jnp.maximum((y - mu) * jax.lax.rsqrt(var + EPS), 0.0)

    y1 = (jnp.dot(mm, w1a, preferred_element_type=jnp.float32)
          + jnp.dot(ss, w1b, preferred_element_type=jnp.float32) + b1)
    h = norm_relu(y1).astype(jnp.bfloat16)
    y2 = jnp.dot(h, w2, preferred_element_type=jnp.float32) + b2
    h = norm_relu(y2).astype(jnp.bfloat16)
    y3 = jnp.dot(h, w3, preferred_element_type=jnp.float32) + b3
    h3 = norm_relu(y3)
    logits = jnp.sum(h3 * wo, axis=-1, keepdims=True) + bo
    return jax.nn.sigmoid(logits)


if __name__ == "__main__":
    key = jax.random.PRNGKey(0)
    k_m, k_s, k_p = jax.random.split(key, 3)

    # Forward requires m.view(b, c) -> spatial dims are 1x1 and c = 512.
    B, C = 2, 512
    m = jax.random.normal(k_m, (B, C, 1, 1), dtype=jnp.float32)
    s = jax.random.normal(k_s, (B, C, 1, 1), dtype=jnp.float32)

    params = init_params(k_p)

    out = distance_g_forward(m, s, params)
    out = jax.block_until_ready(out)

    ref = _reference_forward(m, s, params)
    assert out.shape == (B, 1)
    assert bool(jnp.all(jnp.isfinite(out)))
    assert jnp.allclose(out, ref, atol=2e-3, rtol=2e-3)

    # TODO(synk): Dropout is modeled as identity (eval-mode forward); training-
    # mode stochastic dropout would use pltpu.prng_seed + pltpu.stateful_bernoulli.
    print("KERNEL_OK")
</pallas_src>

<mosaic_0001>
module attributes {stable_mosaic.version = 11 : i64} {
  func.func @distance_g_kernel(%arg0: i32, %arg1: memref<2x512xf32, #tpu.memory_space<vmem>>, %arg2: memref<2x512xf32, #tpu.memory_space<vmem>>, %arg3: memref<512x1024xbf16, #tpu.memory_space<vmem>>, %arg4: memref<512x1024xbf16, #tpu.memory_space<vmem>>, %arg5: memref<1x1024xf32, #tpu.memory_space<vmem>>, %arg6: memref<1024x1024xbf16, #tpu.memory_space<vmem>>, %arg7: memref<1x1024xf32, #tpu.memory_space<vmem>>, %arg8: memref<1024x512xbf16, #tpu.memory_space<vmem>>, %arg9: memref<1x512xf32, #tpu.memory_space<vmem>>, %arg10: memref<1x512xf32, #tpu.memory_space<vmem>>, %arg11: memref<1x1xf32, #tpu.memory_space<vmem>>, %arg12: memref<2x1xf32, #tpu.memory_space<vmem>>) attributes {dimension_semantics = [#tpu.dimension_semantics<parallel>], iteration_bounds = array<i64: 1>, scalar_prefetch = 0 : i64, scratch_operands = 0 : i64, tpu.core_type = #tpu.core_type<tc>, window_params = [{transform_indices = @transform_0, window_bounds = array<i64: 2, 512>}, {transform_indices = @transform_1, window_bounds = array<i64: 2, 512>}, {pipeline_mode = #tpu.pipeline_mode<synchronous>, transform_indices = @transform_2, window_bounds = array<i64: 512, 1024>}, {pipeline_mode = #tpu.pipeline_mode<synchronous>, transform_indices = @transform_3, window_bounds = array<i64: 512, 1024>}, {pipeline_mode = #tpu.pipeline_mode<synchronous>, transform_indices = @transform_4, window_bounds = array<i64: 1, 1024>}, {pipeline_mode = #tpu.pipeline_mode<synchronous>, transform_indices = @transform_5, window_bounds = array<i64: 1024, 1024>}, {pipeline_mode = #tpu.pipeline_mode<synchronous>, transform_indices = @transform_6, window_bounds = array<i64: 1, 1024>}, {pipeline_mode = #tpu.pipeline_mode<synchronous>, transform_indices = @transform_7, window_bounds = array<i64: 1024, 512>}, {pipeline_mode = #tpu.pipeline_mode<synchronous>, transform_indices = @transform_8, window_bounds = array<i64: 1, 512>}, {pipeline_mode = #tpu.pipeline_mode<synchronous>, transform_indices = @transform_9, window_bounds = array<i64: 1, 512>}, {pipeline_mode = #tpu.pipeline_mode<synchronous>, transform_indices = @transform_10, window_bounds = array<i64: 1, 1>}, {transform_indices = @transform_11, window_bounds = array<i64: 2, 1>}]} {
    %c0 = arith.constant 0 : index
    %c0_0 = arith.constant 0 : index
    %0 = vector.load %arg1[%c0, %c0_0] : memref<2x512xf32, #tpu.memory_space<vmem>>, vector<2x512xf32>
    %1 = arith.truncf %0 : vector<2x512xf32> to vector<2x512xbf16>
    %c0_1 = arith.constant 0 : index
    %c0_2 = arith.constant 0 : index
    %2 = vector.load %arg2[%c0_1, %c0_2] : memref<2x512xf32, #tpu.memory_space<vmem>>, vector<2x512xf32>
    %3 = arith.truncf %2 : vector<2x512xf32> to vector<2x512xbf16>
    %c0_3 = arith.constant 0 : index
    %c0_4 = arith.constant 0 : index
    %4 = vector.load %arg3[%c0_3, %c0_4] : memref<512x1024xbf16, #tpu.memory_space<vmem>>, vector<512x1024xbf16>
    %cst = arith.constant dense<0.000000e+00> : vector<2x1024xf32>
    %5 = tpu.matmul %1, %4, %cst {dimension_numbers = #tpu.dot_dimension_numbers<[1], [0], [0], [1], [0, 0, 1, 1], [], []>} : vector<2x512xbf16>, vector<512x1024xbf16>, vector<2x1024xf32> -> vector<2x1024xf32>
    %c0_5 = arith.constant 0 : index
    %c0_6 = arith.constant 0 : index
    %6 = vector.load %arg4[%c0_5, %c0_6] : memref<512x1024xbf16, #tpu.memory_space<vmem>>, vector<512x1024xbf16>
    %cst_7 = arith.constant dense<0.000000e+00> : vector<2x1024xf32>
    %7 = tpu.matmul %3, %6, %cst_7 {dimension_numbers = #tpu.dot_dimension_numbers<[1], [0], [0], [1], [0, 0, 1, 1], [], []>} : vector<2x512xbf16>, vector<512x1024xbf16>, vector<2x1024xf32> -> vector<2x1024xf32>
    %8 = arith.addf %5, %7 : vector<2x1024xf32>
    %c0_8 = arith.constant 0 : index
    %c0_9 = arith.constant 0 : index
    %9 = vector.load %arg5[%c0_8, %c0_9] : memref<1x1024xf32, #tpu.memory_space<vmem>>, vector<1x1024xf32>
    %10 = vector.broadcast %9 : vector<1x1024xf32> to vector<2x1024xf32>
    %11 = arith.addf %8, %10 : vector<2x1024xf32>
    %cst_10 = arith.constant dense<0.000000e+00> : vector<2xf32>
    %12 = vector.multi_reduction <add>, %11, %cst_10 [1] : vector<2x1024xf32> to vector<2xf32>
    %13 = vector.shape_cast %12 : vector<2xf32> to vector<2x1xf32>
    %cst_11 = arith.constant 1.024000e+03 : f32
    %14 = vector.broadcast %cst_11 : f32 to vector<2x1xf32>
    %15 = arith.divf %13, %14 : vector<2x1xf32>
    %16 = arith.mulf %11, %11 : vector<2x1024xf32>
    %cst_12 = arith.constant dense<0.000000e+00> : vector<2xf32>
    %17 = vector.multi_reduction <add>, %16, %cst_12 [1] : vector<2x1024xf32> to vector<2xf32>
    %18 = vector.shape_cast %17 : vector<2xf32> to vector<2x1xf32>
    %cst_13 = arith.constant 1.024000e+03 : f32
    %19 = vector.broadcast %cst_13 : f32 to vector<2x1xf32>
    %20 = arith.divf %18, %19 : vector<2x1xf32>
    %21 = arith.mulf %15, %15 : vector<2x1xf32>
    %22 = arith.subf %20, %21 : vector<2x1xf32>
    %cst_14 = arith.constant 0.000000e+00 : f32
    %23 = vector.broadcast %cst_14 : f32 to vector<2x1xf32>
    %24 = arith.maximumf %22, %23 : vector<2x1xf32>
    %25 = vector.broadcast %15 : vector<2x1xf32> to vector<2x1024xf32>
    %26 = arith.subf %11, %25 : vector<2x1024xf32>
    %cst_15 = arith.constant 9.99999974E-6 : f32
    %27 = vector.broadcast %cst_15 : f32 to vector<2x1xf32>
    %28 = arith.addf %24, %27 : vector<2x1xf32>
    %29 = math.rsqrt %28 : vector<2x1xf32>
    %30 = vector.broadcast %29 : vector<2x1xf32> to vector<2x1024xf32>
    %31 = arith.mulf %26, %30 : vector<2x1024xf32>
    %cst_16 = arith.constant 0.000000e+00 : f32
    %32 = vector.broadcast %cst_16 : f32 to vector<2x1024xf32>
    %33 = arith.maximumf %31, %32 : vector<2x1024xf32>
    %34 = arith.truncf %33 : vector<2x1024xf32> to vector<2x1024xbf16>
    %c0_17 = arith.constant 0 : index
    %c0_18 = arith.constant 0 : index
    %35 = vector.load %arg6[%c0_17, %c0_18] : memref<1024x1024xbf16, #tpu.memory_space<vmem>>, vector<1024x1024xbf16>
    %cst_19 = arith.constant dense<0.000000e+00> : vector<2x1024xf32>
    %36 = tpu.matmul %34, %35, %cst_19 {dimension_numbers = #tpu.dot_dimension_numbers<[1], [0], [0], [1], [0, 0, 1, 1], [], []>} : vector<2x1024xbf16>, vector<1024x1024xbf16>, vector<2x1024xf32> -> vector<2x1024xf32>
    %c0_20 = arith.constant 0 : index
    %c0_21 = arith.constant 0 : index
    %37 = vector.load %arg7[%c0_20, %c0_21] : memref<1x1024xf32, #tpu.memory_space<vmem>>, vector<1x1024xf32>
    %38 = vector.broadcast %37 : vector<1x1024xf32> to vector<2x1024xf32>
    %39 = arith.addf %36, %38 : vector<2x1024xf32>
    %cst_22 = arith.constant dense<0.000000e+00> : vector<2xf32>
    %40 = vector.multi_reduction <add>, %39, %cst_22 [1] : vector<2x1024xf32> to vector<2xf32>
    %41 = vector.shape_cast %40 : vector<2xf32> to vector<2x1xf32>
    %cst_23 = arith.constant 1.024000e+03 : f32
    %42 = vector.broadcast %cst_23 : f32 to vector<2x1xf32>
    %43 = arith.divf %41, %42 : vector<2x1xf32>
    %44 = arith.mulf %39, %39 : vector<2x1024xf32>
    %cst_24 = arith.constant dense<0.000000e+00> : vector<2xf32>
    %45 = vector.multi_reduction <add>, %44, %cst_24 [1] : vector<2x1024xf32> to vector<2xf32>
    %46 = vector.shape_cast %45 : vector<2xf32> to vector<2x1xf32>
    %cst_25 = arith.constant 1.024000e+03 : f32
    %47 = vector.broadcast %cst_25 : f32 to vector<2x1xf32>
    %48 = arith.divf %46, %47 : vector<2x1xf32>
    %49 = arith.mulf %43, %43 : vector<2x1xf32>
    %50 = arith.subf %48, %49 : vector<2x1xf32>
    %cst_26 = arith.constant 0.000000e+00 : f32
    %51 = vector.broadcast %cst_26 : f32 to vector<2x1xf32>
    %52 = arith.maximumf %50, %51 : vector<2x1xf32>
    %53 = vector.broadcast %43 : vector<2x1xf32> to vector<2x1024xf32>
    %54 = arith.subf %39, %53 : vector<2x1024xf32>
    %cst_27 = arith.constant 9.99999974E-6 : f32
    %55 = vector.broadcast %cst_27 : f32 to vector<2x1xf32>
    %56 = arith.addf %52, %55 : vector<2x1xf32>
    %57 = math.rsqrt %56 : vector<2x1xf32>
    %58 = vector.broadcast %57 : vector<2x1xf32> to vector<2x1024xf32>
    %59 = arith.mulf %54, %58 : vector<2x1024xf32>
    %cst_28 = arith.constant 0.000000e+00 : f32
    %60 = vector.broadcast %cst_28 : f32 to vector<2x1024xf32>
    %61 = arith.maximumf %59, %60 : vector<2x1024xf32>
    %62 = arith.truncf %61 : vector<2x1024xf32> to vector<2x1024xbf16>
    %c0_29 = arith.constant 0 : index
    %c0_30 = arith.constant 0 : index
    %63 = vector.load %arg8[%c0_29, %c0_30] : memref<1024x512xbf16, #tpu.memory_space<vmem>>, vector<1024x512xbf16>
    %cst_31 = arith.constant dense<0.000000e+00> : vector<2x512xf32>
    %64 = tpu.matmul %62, %63, %cst_31 {dimension_numbers = #tpu.dot_dimension_numbers<[1], [0], [0], [1], [0, 0, 1, 1], [], []>} : vector<2x1024xbf16>, vector<1024x512xbf16>, vector<2x512xf32> -> vector<2x512xf32>
    %c0_32 = arith.constant 0 : index
    %c0_33 = arith.constant 0 : index
    %65 = vector.load %arg9[%c0_32, %c0_33] : memref<1x512xf32, #tpu.memory_space<vmem>>, vector<1x512xf32>
    %66 = vector.broadcast %65 : vector<1x512xf32> to vector<2x512xf32>
    %67 = arith.addf %64, %66 : vector<2x512xf32>
    %cst_34 = arith.constant dense<0.000000e+00> : vector<2xf32>
    %68 = vector.multi_reduction <add>, %67, %cst_34 [1] : vector<2x512xf32> to vector<2xf32>
    %69 = vector.shape_cast %68 : vector<2xf32> to vector<2x1xf32>
    %cst_35 = arith.constant 5.120000e+02 : f32
    %70 = vector.broadcast %cst_35 : f32 to vector<2x1xf32>
    %71 = arith.divf %69, %70 : vector<2x1xf32>
    %72 = arith.mulf %67, %67 : vector<2x512xf32>
    %cst_36 = arith.constant dense<0.000000e+00> : vector<2xf32>
    %73 = vector.multi_reduction <add>, %72, %cst_36 [1] : vector<2x512xf32> to vector<2xf32>
    %74 = vector.shape_cast %73 : vector<2xf32> to vector<2x1xf32>
    %cst_37 = arith.constant 5.120000e+02 : f32
    %75 = vector.broadcast %cst_37 : f32 to vector<2x1xf32>
    %76 = arith.divf %74, %75 : vector<2x1xf32>
    %77 = arith.mulf %71, %71 : vector<2x1xf32>
    %78 = arith.subf %76, %77 : vector<2x1xf32>
    %cst_38 = arith.constant 0.000000e+00 : f32
    %79 = vector.broadcast %cst_38 : f32 to vector<2x1xf32>
    %80 = arith.maximumf %78, %79 : vector<2x1xf32>
    %81 = vector.broadcast %71 : vector<2x1xf32> to vector<2x512xf32>
    %82 = arith.subf %67, %81 : vector<2x512xf32>
    %cst_39 = arith.constant 9.99999974E-6 : f32
    %83 = vector.broadcast %cst_39 : f32 to vector<2x1xf32>
    %84 = arith.addf %80, %83 : vector<2x1xf32>
    %85 = math.rsqrt %84 : vector<2x1xf32>
    %86 = vector.broadcast %85 : vector<2x1xf32> to vector<2x512xf32>
    %87 = arith.mulf %82, %86 : vector<2x512xf32>
    %cst_40 = arith.constant 0.000000e+00 : f32
    %88 = vector.broadcast %cst_40 : f32 to vector<2x512xf32>
    %89 = arith.maximumf %87, %88 : vector<2x512xf32>
    %c0_41 = arith.constant 0 : index
    %c0_42 = arith.constant 0 : index
    %90 = vector.load %arg10[%c0_41, %c0_42] : memref<1x512xf32, #tpu.memory_space<vmem>>, vector<1x512xf32>
    %91 = vector.broadcast %90 : vector<1x512xf32> to vector<2x512xf32>
    %92 = arith.mulf %89, %91 : vector<2x512xf32>
    %cst_43 = arith.constant dense<0.000000e+00> : vector<2xf32>
    %93 = vector.multi_reduction <add>, %92, %cst_43 [1] : vector<2x512xf32> to vector<2xf32>
    %94 = vector.shape_cast %93 : vector<2xf32> to vector<2x1xf32>
    %c0_44 = arith.constant 0 : index
    %c0_45 = arith.constant 0 : index
    %95 = vector.load %arg11[%c0_44, %c0_45] : memref<1x1xf32, #tpu.memory_space<vmem>>, vector<1x1xf32>
    %96 = vector.broadcast %95 : vector<1x1xf32> to vector<2x1xf32>
    %97 = arith.addf %94, %96 : vector<2x1xf32>
    %98 = arith.negf %97 : vector<2x1xf32>
    %99 = math.exp %98 : vector<2x1xf32>
    %cst_46 = arith.constant 1.000000e+00 : f32
    %100 = vector.broadcast %cst_46 : f32 to vector<2x1xf32>
    %101 = arith.addf %100, %99 : vector<2x1xf32>
    %102 = arith.divf %100, %101 : vector<2x1xf32>
    %c0_47 = arith.constant 0 : index
    %c0_48 = arith.constant 0 : index
    %103 = vector.load %arg12[%c0_47, %c0_48] : memref<2x1xf32, #tpu.memory_space<vmem>>, vector<2x1xf32>
    tpu.vector_store %arg12[%c0_47, %c0_48], %102 {strides = array<i32>} : memref<2x1xf32, #tpu.memory_space<vmem>>, vector<2x1xf32>,
    return
  }
  func.func @transform_0(%arg0: i32) -> (i32, i32) {
    %c0_i32 = arith.constant 0 : i32
    %c0_i32_0 = arith.constant 0 : i32
    return %arg0, %c0_i32 : i32, i32
  }
  func.func @transform_1(%arg0: i32) -> (i32, i32) {
    %c0_i32 = arith.constant 0 : i32
    %c0_i32_0 = arith.constant 0 : i32
    return %arg0, %c0_i32 : i32, i32
  }
  func.func @transform_2(%arg0: i32) -> (i32, i32) {
    %c0_i32 = arith.constant 0 : i32
    %c0_i32_0 = arith.constant 0 : i32
    %c0_i32_1 = arith.constant 0 : i32
    return %c0_i32, %c0_i32_0 : i32, i32
  }
  func.func @transform_3(%arg0: i32) -> (i32, i32) {
    %c0_i32 = arith.constant 0 : i32
    %c0_i32_0 = arith.constant 0 : i32
    %c0_i32_1 = arith.constant 0 : i32
    return %c0_i32, %c0_i32_0 : i32, i32
  }
  func.func @transform_4(%arg0: i32) -> (i32, i32) {
    %c0_i32 = arith.constant 0 : i32
    %c0_i32_0 = arith.constant 0 : i32
    %c0_i32_1 = arith.constant 0 : i32
    return %c0_i32, %c0_i32_0 : i32, i32
  }
  func.func @transform_5(%arg0: i32) -> (i32, i32) {
    %c0_i32 = arith.constant 0 : i32
    %c0_i32_0 = arith.constant 0 : i32
    %c0_i32_1 = arith.constant 0 : i32
    return %c0_i32, %c0_i32_0 : i32, i32
  }
  func.func @transform_6(%arg0: i32) -> (i32, i32) {
    %c0_i32 = arith.constant 0 : i32
    %c0_i32_0 = arith.constant 0 : i32
    %c0_i32_1 = arith.constant 0 : i32
    return %c0_i32, %c0_i32_0 : i32, i32
  }
  func.func @transform_7(%arg0: i32) -> (i32, i32) {
    %c0_i32 = arith.constant 0 : i32
    %c0_i32_0 = arith.constant 0 : i32
    %c0_i32_1 = arith.constant 0 : i32
    return %c0_i32, %c0_i32_0 : i32, i32
  }
  func.func @transform_8(%arg0: i32) -> (i32, i32) {
    %c0_i32 = arith.constant 0 : i32
    %c0_i32_0 = arith.constant 0 : i32
    %c0_i32_1 = arith.constant 0 : i32
    return %c0_i32, %c0_i32_0 : i32, i32
  }
  func.func @transform_9(%arg0: i32) -> (i32, i32) {
    %c0_i32 = arith.constant 0 : i32
    %c0_i32_0 = arith.constant 0 : i32
    %c0_i32_1 = arith.constant 0 : i32
    return %c0_i32, %c0_i32_0 : i32, i32
  }
  func.func @transform_10(%arg0: i32) -> (i32, i32) {
    %c0_i32 = arith.constant 0 : i32
    %c0_i32_0 = arith.constant 0 : i32
    %c0_i32_1 = arith.constant 0 : i32
    return %c0_i32, %c0_i32_0 : i32, i32
  }
  func.func @transform_11(%arg0: i32) -> (i32, i32) {
    %c0_i32 = arith.constant 0 : i32
    %c0_i32_0 = arith.constant 0 : i32
    return %arg0, %c0_i32 : i32, i32
  }
}

</mosaic_0001>

<bundles_post_ra>
// kernel: tpu_custom_call.1
= control target key start
LH: loop header
LB: loop body
LE: loop exit
PB: predicated region body
PF: predicated region fallthrough
CT: control target
= control target key end

     0   :  { %s12540_s0 = inlined_call_operand.hbm [shape: f32[2,512], index: 0, kind: input, shape index: {}]   ;;  %s12541_s1 = inlined_call_operand.hbm [shape: f32[2,512], index: 1, kind: input, shape index: {}]   ;;  %s12542_s2 = inlined_call_operand.hbm [shape: bf16[512,1024], index: 2, kind: input, shape index: {}]   ;;  %s12543_s3 = inlined_call_operand.hbm [shape: bf16[512,1024], index: 3, kind: input, shape index: {}]   ;;  %s12544_s4 = inlined_call_operand.hbm [shape: f32[1,1024], index: 4, kind: input, shape index: {}]   ;;  %s12545_s5 = inlined_call_operand.hbm [shape: bf16[1024,1024], index: 5, kind: input, shape index: {}]   ;;  %s12546_s6 = inlined_call_operand.hbm [shape: f32[1,1024], index: 6, kind: input, shape index: {}]   ;;  %s12547_s7 = inlined_call_operand.hbm [shape: bf16[1024,512], index: 7, kind: input, shape index: {}]   ;;  %s12548_s8 = inlined_call_operand.hbm [shape: f32[1,512], index: 8, kind: input, shape index: {}]   ;;  %s12549_s9 = inlined_call_operand.hbm [shape: f32[1,512], index: 9, kind: input, shape index: {}]   ;;  %s12550_s10 = inlined_call_operand.<no memory space> [shape: f32[1,1], index: 10, kind: input, shape index: {}]   ;;  %s12551_s11 = inlined_call_operand.vmem [shape: f32[2,1], index: 11, kind: output, shape index: {}]  }
   0x1   :  { %v16_v0 = vstv %s12550_s10 }
   0x2   :  { %17 = vst [vmem:[#allocation2] sm:$0x1] %v16_v0 }
   0x3   :  { %18 = vsyncpa [#allocation4], 0 }
   0x4   :  { %19 = vsyncpa [#allocation6], 0 }
   0x5   :  { %20 = vsyncpa [#allocation9], 0 }
   0x6   :  { %21 = vsyncpa [#allocation12], 0 }
   0x7   :  { %22 = vsyncpa [#allocation15], 0 }
   0x8   :  { %23 = vsyncpa [#allocation18], 0  ;;  %s11928_s19 = smov [#allocation5]   ;;  %s11696_s23 = scalar_lea.hbm %s12541_s1, 128 }
   0x9   :  { %s40_s20 = sshll.u32 %s11928_s19, 4  ;;  %p11697_p0 = scmp.ne.s32.totalorder %s12541_s1, %s11696_s23  ;;  %s41_s20 = int_to_ptr.vmem [resolvable:$true] %s40_s20 }
   0xa   :  { %p11700_p1 = scmp.lt.u32.totalorder %s11696_s23, %s12541_s1 }
   0xc   :  { %p11702_p2 = pnand %p11700_p1, %p11697_p0 }
   0xe   :  { %11705 = shalt.err (!%p11702_p2)
}
   0xf   :  { %s11706_s27 = scalar_lea.vmem %s41_s20, 128  ;;  %p11711_p4 = scmp.lt.s32.totalorder %s41_s20, %s41_s20 }
  0x10   :  { %p11707_p3 = scmp.ne.s32.totalorder %s41_s20, %s11706_s27  ;;  %p11712_p5 = scmp.lt.s32.totalorder %s11706_s27, %s11706_s27 }
  0x12   :  { %p11713_p6 = por %p11712_p5, %p11711_p4 }
  0x14   :  { %p11714_p7 = pnand %p11713_p6, %p11707_p3 }
  0x16   :  { %11717 = shalt.err (!%p11714_p7)
}
  0x17   :  { %43 = dma.hbm_to_vmem [thread:$0]  %s12541_s1, 128, %s41_s20, [#allocation6]  }
  0x18   :  { %s11929_s30 = smov [#allocation8]   ;;  %s11930_s13 = smov [#allocation11]  }
  0x19   :  { %s61_s12 = sshll.u32 %s11929_s30, 4  ;;  %s83_s14 = sshll.u32 %s11930_s13, 4  ;;  %s62_s12 = int_to_ptr.vmem [resolvable:$true] %s61_s12  ;;  %s84_s14 = int_to_ptr.vmem [resolvable:$true] %s83_s14 }
  0x1a   :  { %s11718_s17 = scalar_lea.hbm %s12543_s3, 32768 }
  0x1b   :  { %p11719_p8 = scmp.ne.s32.totalorder %s12543_s3, %s11718_s17  ;;  %p11722_p9 = scmp.lt.u32.totalorder %s11718_s17, %s12543_s3 }
  0x1d   :  { %p11724_p10 = pnand %p11722_p9, %p11719_p8 }
  0x1f   :  { %11727 = shalt.err (!%p11724_p10)
}
  0x20   :  { %s11728_s1 = scalar_lea.vmem %s62_s12, 32768  ;;  %p11733_p12 = scmp.lt.s32.totalorder %s62_s12, %s62_s12 }
  0x21   :  { %p11729_p11 = scmp.ne.s32.totalorder %s62_s12, %s11728_s1  ;;  %p11734_p13 = scmp.lt.s32.totalorder %s11728_s1, %s11728_s1 }
  0x23   :  { %p11735_p0 = por %p11734_p13, %p11733_p12 }
  0x25   :  { %p11736_p1 = pnand %p11735_p0, %p11729_p11 }
  0x27   :  { %11739 = shalt.err (!%p11736_p1)
}
  0x28   :  { %s11931_s20 = smov 512   ;;  %s11932_s23 = smov 32  }
  0x29   :  { %67 = dma.hbm_to_vmem [thread:$0]  %s12543_s3, 32768, %s62_s12, [#allocation9], %s11931_s20, %s11931_s20, %s11932_s23  }
  0x2a   :  { %s11740_s27 = scalar_lea.hbm %s12545_s5, 65536 }
  0x2b   :  { %p11741_p2 = scmp.ne.s32.totalorder %s12545_s5, %s11740_s27  ;;  %p11744_p3 = scmp.lt.u32.totalorder %s11740_s27, %s12545_s5 }
  0x2d   :  { %p11746_p4 = pnand %p11744_p3, %p11741_p2 }
  0x2f   :  { %11749 = shalt.err (!%p11746_p4)
}
  0x30   :  { %s11750_s15 = scalar_lea.vmem %s84_s14, 65536  ;;  %p11755_p6 = scmp.lt.s32.totalorder %s84_s14, %s84_s14 }
  0x31   :  { %p11751_p5 = scmp.ne.s32.totalorder %s84_s14, %s11750_s15  ;;  %p11756_p7 = scmp.lt.s32.totalorder %s11750_s15, %s11750_s15 }
  0x33   :  { %p11757_p8 = por %p11756_p7, %p11755_p6 }
  0x35   :  { %p11758_p9 = pnand %p11757_p8, %p11751_p5 }
  0x37   :  { %11761 = shalt.err (!%p11758_p9)
}
  0x38   :  { %89 = dma.hbm_to_vmem [thread:$0]  %s12545_s5, 65536, %s84_s14, [#allocation12], %s11931_s20, %s11931_s20, %s11932_s23  }
  0x39   :  { %s11933_s16 = smov [#allocation14]   ;;  %s11762_s21 = scalar_lea.hbm %s12547_s7, 32768 }
  0x3a   :  { %s105_s17 = sshll.u32 %s11933_s16, 4  ;;  %p11763_p10 = scmp.ne.s32.totalorder %s12547_s7, %s11762_s21  ;;  %s106_s17 = int_to_ptr.vmem [resolvable:$true] %s105_s17 }
  0x3b   :  { %p11766_p11 = scmp.lt.u32.totalorder %s11762_s21, %s12547_s7 }
  0x3d   :  { %p11768_p12 = pnand %p11766_p11, %p11763_p10 }
  0x3f   :  { %11771 = shalt.err (!%p11768_p12)
}
  0x40   :  { %s11772_s26 = scalar_lea.vmem %s106_s17, 32768  ;;  %p11777_p0 = scmp.lt.s32.totalorder %s106_s17, %s106_s17 }
  0x41   :  { %p11773_p13 = scmp.ne.s32.totalorder %s106_s17, %s11772_s26  ;;  %p11778_p1 = scmp.lt.s32.totalorder %s11772_s26, %s11772_s26 }
  0x43   :  { %p11779_p2 = por %p11778_p1, %p11777_p0 }
  0x45   :  { %p11780_p3 = pnand %p11779_p2, %p11773_p13 }
  0x47   :  { %11783 = shalt.err (!%p11780_p3)
}
  0x48   :  { %s11934_s5 = smov 256   ;;  %s11935_s14 = smov 16  }
  0x49   :  { %111 = dma.hbm_to_vmem [thread:$0]  %s12547_s7, 32768, %s106_s17, [#allocation15], %s11934_s5, %s11934_s5, %s11935_s14  }
  0x4a   :  { %s11936_s28 = smov [#allocation3]   ;;  %s11937_s30 = smov [#allocation7]  }
  0x4b   :  { %s30_s29 = sshll.u32 %s11936_s28, 4  ;;  %s49_s13 = sshll.u32 %s11937_s30, 4  ;;  %s31_s29 = int_to_ptr.vmem [resolvable:$true] %s30_s29  ;;  %s12060_s13 = int_to_ptr.vmem [resolvable:$true] %s49_s13 }
  0x4c   :  { %s11784_s12 = scalar_lea.hbm %s12540_s0, 128 }
  0x4d   :  { %p11785_p4 = scmp.ne.s32.totalorder %s12540_s0, %s11784_s12  ;;  %p11788_p5 = scmp.lt.u32.totalorder %s11784_s12, %s12540_s0 }
  0x4f   :  { %p11790_p6 = pnand %p11788_p5, %p11785_p4 }
  0x51   :  { %11793 = shalt.err (!%p11790_p6)
}
  0x52   :  { %s11794_s7 = scalar_lea.vmem %s31_s29, 128  ;;  %p11799_p8 = scmp.lt.s32.totalorder %s31_s29, %s31_s29 }
  0x53   :  { %p11795_p7 = scmp.ne.s32.totalorder %s31_s29, %s11794_s7  ;;  %p11800_p9 = scmp.lt.s32.totalorder %s11794_s7, %s11794_s7 }
  0x55   :  { %p11801_p10 = por %p11800_p9, %p11799_p8 }
  0x57   :  { %p11802_p11 = pnand %p11801_p10, %p11795_p7 }
  0x59   :  { %11805 = shalt.err (!%p11802_p11)
}
  0x5a   :  { %33 = dma.hbm_to_vmem [thread:$0]  %s12540_s0, 128, %s31_s29, [#allocation4]  }
  0x5b   :  { %s11806_s25 = scalar_lea.hbm %s12542_s2, 32768 }
  0x5c   :  { %p11807_p12 = scmp.ne.s32.totalorder %s12542_s2, %s11806_s25  ;;  %p11810_p13 = scmp.lt.u32.totalorder %s11806_s25, %s12542_s2 }
  0x5e   :  { %p11812_p0 = pnand %p11810_p13, %p11807_p12 }
  0x60   :  { %11815 = shalt.err (!%p11812_p0)
}
  0x61   :  { %s11816_s27 = scalar_lea.vmem %s12060_s13, 32768  ;;  %p11821_p2 = scmp.lt.s32.totalorder %s12060_s13, %s12060_s13 }
  0x62   :  { %p11817_p1 = scmp.ne.s32.totalorder %s12060_s13, %s11816_s27  ;;  %p11822_p3 = scmp.lt.s32.totalorder %s11816_s27, %s11816_s27 }
  0x64   :  { %p11823_p4 = por %p11822_p3, %p11821_p2 }
  0x66   :  { %p11824_p5 = pnand %p11823_p4, %p11817_p1 }
  0x68   :  { %11827 = shalt.err (!%p11824_p5)
}
  0x69   :  { %55 = dma.hbm_to_vmem [thread:$0]  %s12542_s2, 32768, %s12060_s13, [#allocation6], %s11931_s20, %s11931_s20, %s11932_s23  }
  0x6a   :  { %s11938_s29 = smov [#allocation10]   ;;  %s11939_s15 = smov [#allocation13]  }
  0x6b   :  { %s74_s30 = sshll.u32 %s11938_s29, 4  ;;  %s96_s3 = sshll.u32 %s11939_s15, 4  ;;  %s75_s30 = int_to_ptr.vmem [resolvable:$true] %s74_s30  ;;  %s97_s3 = int_to_ptr.vmem [resolvable:$true] %s96_s3 }
  0x6c   :  { %s11828_s18 = scalar_lea.hbm %s12544_s4, 128 }
  0x6d   :  { %p11829_p6 = scmp.ne.s32.totalorder %s12544_s4, %s11828_s18  ;;  %p11832_p7 = scmp.lt.u32.totalorder %s11828_s18, %s12544_s4 }
  0x6f   :  { %p11834_p8 = pnand %p11832_p7, %p11829_p6 }
  0x71   :  { %11837 = shalt.err (!%p11834_p8)
}
  0x72   :  { %s11838_s2 = scalar_lea.vmem %s75_s30, 128  ;;  %p11843_p10 = scmp.lt.s32.totalorder %s75_s30, %s75_s30 }
  0x73   :  { %p11839_p9 = scmp.ne.s32.totalorder %s75_s30, %s11838_s2  ;;  %p11844_p11 = scmp.lt.s32.totalorder %s11838_s2, %s11838_s2 }
  0x75   :  { %p11845_p12 = por %p11844_p11, %p11843_p10 }
  0x77   :  { %p11846_p13 = pnand %p11845_p12, %p11839_p9 }
  0x79   :  { %11849 = shalt.err (!%p11846_p13)
}
  0x7a   :  { %77 = dma.hbm_to_vmem [thread:$0]  %s12544_s4, 128, %s75_s30, [#allocation9]  }
  0x7b   :  { %s11850_s1 = scalar_lea.hbm %s12546_s6, 128 }
  0x7c   :  { %p11851_p0 = scmp.ne.s32.totalorder %s12546_s6, %s11850_s1  ;;  %p11854_p1 = scmp.lt.u32.totalorder %s11850_s1, %s12546_s6 }
  0x7e   :  { %p11856_p2 = pnand %p11854_p1, %p11851_p0 }
  0x80   :  { %11859 = shalt.err (!%p11856_p2)
}
  0x81   :  { %s11860_s14 = scalar_lea.vmem %s97_s3, 128  ;;  %p11865_p4 = scmp.lt.s32.totalorder %s97_s3, %s97_s3 }
  0x82   :  { %p11861_p3 = scmp.ne.s32.totalorder %s97_s3, %s11860_s14  ;;  %p11866_p5 = scmp.lt.s32.totalorder %s11860_s14, %s11860_s14 }
  0x84   :  { %p11867_p6 = por %p11866_p5, %p11865_p4 }
  0x86   :  { %p11868_p7 = pnand %p11867_p6, %p11861_p3 }
  0x88   :  { %11871 = shalt.err (!%p11868_p7)
}
  0x89   :  { %99 = dma.hbm_to_vmem [thread:$0]  %s12546_s6, 128, %s97_s3, [#allocation12]  }
  0x8a   :  { %s11940_s27 = smov [#allocation16]   ;;  %s11941_s28 = smov [#allocation17]  }
  0x8b   :  { %s118_s0 = sshll.u32 %s11940_s27, 4  ;;  %s128_s29 = sshll.u32 %s11941_s28, 4  ;;  %s119_s0 = int_to_ptr.vmem [resolvable:$true] %s118_s0  ;;  %s129_s29 = int_to_ptr.vmem [resolvable:$true] %s128_s29 }
  0x8c   :  { %s11872_s12 = scalar_lea.hbm %s12548_s8, 64 }
  0x8d   :  { %p11873_p8 = scmp.ne.s32.totalorder %s12548_s8, %s11872_s12  ;;  %p11876_p9 = scmp.lt.u32.totalorder %s11872_s12, %s12548_s8 }
  0x8f   :  { %p11878_p10 = pnand %p11876_p9, %p11873_p8 }
  0x91   :  { %11881 = shalt.err (!%p11878_p10)
}
  0x92   :  { %s11882_s6 = scalar_lea.vmem %s119_s0, 64  ;;  %p11887_p12 = scmp.lt.s32.totalorder %s119_s0, %s119_s0 }
  0x93   :  { %p11883_p11 = scmp.ne.s32.totalorder %s119_s0, %s11882_s6  ;;  %p11888_p13 = scmp.lt.s32.totalorder %s11882_s6, %s11882_s6 }
  0x95   :  { %p11889_p0 = por %p11888_p13, %p11887_p12 }
  0x97   :  { %p11890_p1 = pnand %p11889_p0, %p11883_p11 }
  0x99   :  { %11893 = shalt.err (!%p11890_p1)
}
  0x9a   :  { %121 = dma.hbm_to_vmem [thread:$0]  %s12548_s8, 64, %s119_s0, [#allocation15]  }
  0x9b   :  { %s11894_s20 = scalar_lea.hbm %s12549_s9, 64 }
  0x9c   :  { %p11895_p2 = scmp.ne.s32.totalorder %s12549_s9, %s11894_s20  ;;  %p11898_p3 = scmp.lt.u32.totalorder %s11894_s20, %s12549_s9 }
  0x9e   :  { %p11900_p4 = pnand %p11898_p3, %p11895_p2 }
  0xa0   :  { %11903 = shalt.err (!%p11900_p4)
}
  0xa1   :  { %s11904_s24 = scalar_lea.vmem %s129_s29, 64  ;;  %p11909_p6 = scmp.lt.s32.totalorder %s129_s29, %s129_s29 }
  0xa2   :  { %p11905_p5 = scmp.ne.s32.totalorder %s129_s29, %s11904_s24  ;;  %p11910_p7 = scmp.lt.s32.totalorder %s11904_s24, %s11904_s24 }
  0xa4   :  { %p11911_p8 = por %p11910_p7, %p11909_p6 }
  0xa6   :  { %p11912_p9 = pnand %p11911_p8, %p11905_p5 }
  0xa8   :  { %11915 = shalt.err (!%p11912_p9)
}
  0xa9   :  { %131 = dma.hbm_to_vmem [thread:$0]  %s12549_s9, 64, %s129_s29, [#allocation18]  }
  0xaa   :  { %11916 = dma.done.wait [#allocation4], 128  }
  0xab   :  { %11917 = vsyncadd [#allocation4], 4294967168 }
  0xac   :  { %11918 = dma.done.wait [#allocation6], 32896  }
  0xad   :  { %11919 = vsyncadd [#allocation6], 4294934400 }
  0xae   :  { %11920 = dma.done.wait [#allocation9], 32896  }
  0xaf   :  { %11921 = vsyncadd [#allocation9], 4294934400 }
  0xb0   :  { %11922 = dma.done.wait [#allocation12], 65664  }
  0xb1   :  { %11923 = vsyncadd [#allocation12], 4294901632 }
  0xb2   :  { %11924 = dma.done.wait [#allocation15], 32832  }
  0xb3   :  { %11925 = vsyncadd [#allocation15], 4294934464 }
  0xb4   :  { %11926 = dma.done.wait [#allocation18], 64  }
  0xb5   :  { %11927 = vsyncadd [#allocation18], 4294967232  ;;  %v474_v1 = vld [vmem:[#allocation8] sm:$0xff]  ;;  %v11942_v33 = vmov 1983009808   ;;  %v170_v35 = vlaneseq  ;;  %v191_v60 = vld [vmem:[#allocation5] sm:$0xff] }
  0xb6   :  { %v478_v2 = vld [vmem:[#allocation8 + $0x20] sm:$0xff]  ;;  %v168_v34 = vunpack.c.l.s4 %v11942_v33  ;;  %vm3996_vm0 = vcmask 1041408   ;;  %vm9907_vm1 = vcmask 1024  }
  0xb7   :  { %v602_v3 = vld [vmem:[#allocation8 + $0x400] sm:$0xff]  ;;  %v9920_v4 = vcombine.high %v474_v1, %v478_v2  ;;  %v9919_v6 = vcombine.low %v474_v1, %v478_v2  ;;  %v12142_v45 = vshrl.u32 %v170_v35, 7  ;;  %v193_v1 = vcombine.high %v191_v60, %v191_v60 }
  0xb8   :  { %v606_v5 = vld [vmem:[#allocation8 + $0x420] sm:$0xff]  ;;  %v169_v44 = vunpack.c.0.s8 %v168_v34 }
  0xb9   :  { %v482_v7 = vld [vmem:[#allocation8 + $0x40] sm:$0xff]  ;;  %v10048_v9 = vcombine.high %v602_v3, %v606_v5  ;;  %v10047_v10 = vcombine.low %v602_v3, %v606_v5  ;;  %2010 = vmatprep.subr.bf16.mxu0 %v9920_v4 }
  0xba   :  { %v486_v8 = vld [vmem:[#allocation8 + $0x60] sm:$0xff]  ;;  %2011 = vmatpush1.bf16.msra.mxu0 %v9919_v6  ;;  %v12145_v54 = vsub.s32 %v169_v44, %v12142_v45 }
  0xbb   :  { %v9928_v11 = vcombine.high %v482_v7, %v486_v8  ;;  %v610_v12 = vld [vmem:[#allocation8 + $0x440] sm:$0xff]  ;;  %2051 = vmatprep.subr.bf16.mxu1 %v10048_v9  ;;  %v9927_v19 = vcombine.low %v482_v7, %v486_v8 }
  0xbc   :  { %v614_v13 = vld [vmem:[#allocation8 + $0x460] sm:$0xff]  ;;  %2052 = vmatpush1.bf16.msra.mxu1 %v10047_v10  ;;  %v12148_v0 = vrot.slane %v191_v60, %v12145_v54  ;;  %v12153_v6 = vrot.slane %v193_v1, %v12145_v54 }
  0xbd   :  { %v490_v14 = vld [vmem:[#allocation8 + $0x80] sm:$0xff]  ;;  %v10056_v15 = vcombine.high %v610_v12, %v614_v13  ;;  %2012 = vmatprep.subr.bf16.mxu0 %v9928_v11  ;;  %v10055_v20 = vcombine.low %v610_v12, %v614_v13 }
  0xbe   :  { %v494_v16 = vld [vmem:[#allocation8 + $0xa0] sm:$0xff]  ;;  %2013 = vmatpush1.bf16.msra.mxu0 %v9927_v19  ;;  %v208_v5 = vcombine.high %v12148_v0, %v12148_v0  ;;  %v209_v13 = vcombine.high %v12153_v6, %v12153_v6 }
  0xbf   :  { %v618_v17 = vld [vmem:[#allocation8 + $0x480] sm:$0xff]  ;;  %v9936_v21 = vcombine.high %v490_v14, %v494_v16  ;;  %2053 = vmatprep.subr.bf16.mxu1 %v10056_v15  ;;  %v9935_v27 = vcombine.low %v490_v14, %v494_v16 }
  0xc0   :  { %v622_v18 = vld [vmem:[#allocation8 + $0x4a0] sm:$0xff]  ;;  %2054 = vmatpush1.bf16.msra.mxu1 %v10055_v20  ;;  %v12155_v12 = vpack.c.bf16 %v208_v5, %v208_v5 }
  0xc1   :  { %v10064_v22 = vcombine.high %v618_v17, %v622_v18  ;;  %v498_v23 = vld [vmem:[#allocation8 + $0xc0] sm:$0xff]  ;;  %2014 = vmatprep.subr.bf16.mxu0 %v9936_v21  ;;  %v10063_v28 = vcombine.low %v618_v17, %v622_v18  ;;  %v12160_v17 = vpack.c.bf16 %v209_v13, %v209_v13 }
  0xc2   :  { %v502_v24 = vld [vmem:[#allocation8 + $0xe0] sm:$0xff]  ;;  %2015 = vmatpush1.bf16.msra.mxu0 %v9935_v27  ;;  %2042 = vmatprep.mubr.bf16.mxu0 %v12155_v12 }
  0xc3   :  { %v626_v25 = vld [vmem:[#allocation8 + $0x4c0] sm:$0xff]  ;;  %v9944_v29 = vcombine.high %v498_v23, %v502_v24  ;;  %2055 = vmatprep.subr.bf16.mxu1 %v10064_v22  ;;  %v9943_v38 = vcombine.low %v498_v23, %v502_v24  ;;  %2083 = vmatprep.mubr.bf16.mxu1 %v12160_v17 }
  0xc4   :  { %v630_v26 = vld [vmem:[#allocation8 + $0x4e0] sm:$0xff]  ;;  %2056 = vmatpush1.bf16.msra.mxu1 %v10063_v28 }
  0xc5   :  { %v10072_v30 = vcombine.high %v626_v25, %v630_v26  ;;  %v506_v31 = vld [vmem:[#allocation8 + $0x100] sm:$0xff]  ;;  %2016 = vmatprep.subr.bf16.mxu0 %v9944_v29  ;;  %v10071_v39 = vcombine.low %v626_v25, %v630_v26 }
  0xc6   :  { %v510_v32 = vld [vmem:[#allocation8 + $0x120] sm:$0xff]  ;;  %2017 = vmatpush1.bf16.msra.mxu0 %v9943_v38 }
  0xc7   :  { %v634_v36 = vld [vmem:[#allocation8 + $0x500] sm:$0xff]  ;;  %v9952_v40 = vcombine.high %v506_v31, %v510_v32  ;;  %2057 = vmatprep.subr.bf16.mxu1 %v10072_v30  ;;  %v9951_v48 = vcombine.low %v506_v31, %v510_v32 }
  0xc8   :  { %v638_v37 = vld [vmem:[#allocation8 + $0x520] sm:$0xff]  ;;  %2058 = vmatpush1.bf16.msra.mxu1 %v10071_v39 }
  0xc9   :  { %v10080_v41 = vcombine.high %v634_v36, %v638_v37  ;;  %v514_v42 = vld [vmem:[#allocation8 + $0x140] sm:$0xff]  ;;  %2018 = vmatprep.subr.bf16.mxu0 %v9952_v40  ;;  %v10079_v49 = vcombine.low %v634_v36, %v638_v37 }
  0xca   :  { %v518_v43 = vld [vmem:[#allocation8 + $0x160] sm:$0xff]  ;;  %2019 = vmatpush1.bf16.msra.mxu0 %v9951_v48 }
  0xcb   :  { %v642_v46 = vld [vmem:[#allocation8 + $0x540] sm:$0xff]  ;;  %v9960_v50 = vcombine.high %v514_v42, %v518_v43  ;;  %2059 = vmatprep.subr.bf16.mxu1 %v10080_v41  ;;  %v9959_v57 = vcombine.low %v514_v42, %v518_v43 }
  0xcc   :  { %v646_v47 = vld [vmem:[#allocation8 + $0x560] sm:$0xff]  ;;  %2060 = vmatpush1.bf16.msra.mxu1 %v10079_v49 }
  0xcd   :  { %v10088_v51 = vcombine.high %v642_v46, %v646_v47  ;;  %v522_v52 = vld [vmem:[#allocation8 + $0x180] sm:$0xff]  ;;  %2020 = vmatprep.subr.bf16.mxu0 %v9960_v50  ;;  %v10087_v58 = vcombine.low %v642_v46, %v646_v47 }
  0xce   :  { %v526_v53 = vld [vmem:[#allocation8 + $0x1a0] sm:$0xff]  ;;  %2021 = vmatpush1.bf16.msra.mxu0 %v9959_v57 }
  0xcf   :  { %v650_v55 = vld [vmem:[#allocation8 + $0x580] sm:$0xff]  ;;  %v9968_v59 = vcombine.high %v522_v52, %v526_v53  ;;  %2061 = vmatprep.subr.bf16.mxu1 %v10088_v51  ;;  %v9967_v4 = vcombine.low %v522_v52, %v526_v53 }
  0xd0   :  { %v654_v56 = vld [vmem:[#allocation8 + $0x5a0] sm:$0xff]  ;;  %2062 = vmatpush1.bf16.msra.mxu1 %v10087_v58 }
  0xd1   :  { %v10096_v61 = vcombine.high %v650_v55, %v654_v56  ;;  %v530_v62 = vld [vmem:[#allocation8 + $0x1c0] sm:$0xff]  ;;  %2022 = vmatprep.subr.bf16.mxu0 %v9968_v59  ;;  %v10095_v7 = vcombine.low %v650_v55, %v654_v56 }
  0xd2   :  { %v534_v63 = vld [vmem:[#allocation8 + $0x1e0] sm:$0xff]  ;;  %2023 = vmatpush1.bf16.msra.mxu0 %v9967_v4 }
  0xd3   :  { %v658_v2 = vld [vmem:[#allocation8 + $0x5c0] sm:$0xff]  ;;  %v9976_v8 = vcombine.high %v530_v62, %v534_v63  ;;  %2063 = vmatprep.subr.bf16.mxu1 %v10096_v61  ;;  %v9975_v16 = vcombine.low %v530_v62, %v534_v63 }
  0xd4   :  { %v662_v3 = vld [vmem:[#allocation8 + $0x5e0] sm:$0xff]  ;;  %2064 = vmatpush1.bf16.msra.mxu1 %v10095_v7 }
  0xd5   :  { %v10104_v9 = vcombine.high %v658_v2, %v662_v3  ;;  %v538_v10 = vld [vmem:[#allocation8 + $0x200] sm:$0xff]  ;;  %2024 = vmatprep.subr.bf16.mxu0 %v9976_v8  ;;  %v10103_v18 = vcombine.low %v658_v2, %v662_v3 }
  0xd6   :  { %v542_v11 = vld [vmem:[#allocation8 + $0x220] sm:$0xff]  ;;  %2025 = vmatpush1.bf16.msra.mxu0 %v9975_v16 }
  0xd7   :  { %v666_v14 = vld [vmem:[#allocation8 + $0x600] sm:$0xff]  ;;  %v9984_v19 = vcombine.high %v538_v10, %v542_v11  ;;  %2065 = vmatprep.subr.bf16.mxu1 %v10104_v9  ;;  %v9983_v25 = vcombine.low %v538_v10, %v542_v11 }
  0xd8   :  { %v670_v15 = vld [vmem:[#allocation8 + $0x620] sm:$0xff]  ;;  %2066 = vmatpush1.bf16.msra.mxu1 %v10103_v18 }
  0xd9   :  { %v10112_v20 = vcombine.high %v666_v14, %v670_v15  ;;  %v546_v21 = vld [vmem:[#allocation8 + $0x240] sm:$0xff]  ;;  %2026 = vmatprep.subr.bf16.mxu0 %v9984_v19  ;;  %v10111_v26 = vcombine.low %v666_v14, %v670_v15  ;;  %v475_v19 = vld [vmem:[#allocation8 + $0x8] sm:$0xff] }
  0xda   :  { %v550_v22 = vld [vmem:[#allocation8 + $0x260] sm:$0xff]  ;;  %2027 = vmatpush1.bf16.msra.mxu0 %v9983_v25 }
  0xdb   :  { %v674_v23 = vld [vmem:[#allocation8 + $0x640] sm:$0xff]  ;;  %v9992_v27 = vcombine.high %v546_v21, %v550_v22  ;;  %2067 = vmatprep.subr.bf16.mxu1 %v10112_v20  ;;  %v9991_v33 = vcombine.low %v546_v21, %v550_v22  ;;  %v479_v20 = vld [vmem:[#allocation8 + $0x28] sm:$0xff] }
  0xdc   :  { %v678_v24 = vld [vmem:[#allocation8 + $0x660] sm:$0xff]  ;;  %2068 = vmatpush1.bf16.msra.mxu1 %v10111_v26  ;;  %v603_v21 = vld [vmem:[#allocation8 + $0x408] sm:$0xff]  ;;  %v9922_v25 = vcombine.high %v475_v19, %v479_v20 }
  0xdd   :  { %v10120_v28 = vcombine.high %v674_v23, %v678_v24  ;;  %v554_v29 = vld [vmem:[#allocation8 + $0x280] sm:$0xff]  ;;  %2028 = vmatprep.subr.bf16.mxu0 %v9992_v27  ;;  %v10119_v34 = vcombine.low %v674_v23, %v678_v24  ;;  %v607_v22 = vld [vmem:[#allocation8 + $0x428] sm:$0xff] }
  0xde   :  { %v558_v30 = vld [vmem:[#allocation8 + $0x2a0] sm:$0xff]  ;;  %2029 = vmatpush1.bf16.msra.mxu0 %v9991_v33  ;;  %v10050_v26 = vcombine.high %v603_v21, %v607_v22  ;;  %v483_v27 = vld [vmem:[#allocation8 + $0x48] sm:$0xff]  ;;  %v9921_v33 = vcombine.low %v475_v19, %v479_v20 }
  0xdf   :  { %v682_v31 = vld [vmem:[#allocation8 + $0x680] sm:$0xff]  ;;  %v10000_v35 = vcombine.high %v554_v29, %v558_v30  ;;  %2069 = vmatprep.subr.bf16.mxu1 %v10120_v28  ;;  %v9999_v41 = vcombine.low %v554_v29, %v558_v30  ;;  %v487_v28 = vld [vmem:[#allocation8 + $0x68] sm:$0xff]  ;;  %v12165_v29 = vpack.c.bf16 %v12148_v0, %v12148_v0 }
  0xe0   :  { %v686_v32 = vld [vmem:[#allocation8 + $0x6a0] sm:$0xff]  ;;  %2070 = vmatpush1.bf16.msra.mxu1 %v10119_v34  ;;  %v611_v30 = vld [vmem:[#allocation8 + $0x448] sm:$0xff]  ;;  %v10049_v34 = vcombine.low %v603_v21, %v607_v22  ;;  %v9929_v0 = vcombine.low %v483_v27, %v487_v28 }
  0xe1   :  { %v10128_v36 = vcombine.high %v682_v31, %v686_v32  ;;  %v562_v37 = vld [vmem:[#allocation8 + $0x2c0] sm:$0xff]  ;;  %2030 = vmatprep.subr.bf16.mxu0 %v10000_v35  ;;  %v10127_v42 = vcombine.low %v682_v31, %v686_v32  ;;  %v615_v31 = vld [vmem:[#allocation8 + $0x468] sm:$0xff]  ;;  %v12169_v32 = vpack.c.bf16 %v12153_v6, %v12153_v6  ;;  %v9930_v35 = vcombine.high %v483_v27, %v487_v28 }
  0xe2   :  { %v566_v38 = vld [vmem:[#allocation8 + $0x2e0] sm:$0xff]  ;;  %2031 = vmatpush1.bf16.msra.mxu0 %v9999_v41  ;;  %v10057_v6 = vcombine.low %v611_v30, %v615_v31  ;;  %v663_v20 = vld [vmem:[#allocation8 + $0x5e8] sm:$0xff] }
  0xe3   :  { %v690_v39 = vld [vmem:[#allocation8 + $0x6c0] sm:$0xff]  ;;  %v10008_v43 = vcombine.high %v562_v37, %v566_v38  ;;  %2071 = vmatprep.subr.bf16.mxu1 %v10128_v36  ;;  %v10007_v50 = vcombine.low %v562_v37, %v566_v38  ;;  %v491_v36 = vld [vmem:[#allocation8 + $0x88] sm:$0xff] }
  0xe4   :  { %v694_v40 = vld [vmem:[#allocation8 + $0x6e0] sm:$0xff]  ;;  %2072 = vmatpush1.bf16.msra.mxu1 %v10127_v42  ;;  %v495_v37 = vld [vmem:[#allocation8 + $0xa8] sm:$0xff] }
  0xe5   :  { %v10136_v44 = vcombine.high %v690_v39, %v694_v40  ;;  %v570_v46 = vld [vmem:[#allocation8 + $0x300] sm:$0xff]  ;;  %2032 = vmatprep.subr.bf16.mxu0 %v10008_v43  ;;  %v10135_v51 = vcombine.low %v690_v39, %v694_v40  ;;  %v619_v38 = vld [vmem:[#allocation8 + $0x488] sm:$0xff]  ;;  %v10058_v39 = vcombine.high %v611_v30, %v615_v31  ;;  %v9938_v41 = vcombine.high %v491_v36, %v495_v37 }
  0xe6   :  { %v574_v47 = vld [vmem:[#allocation8 + $0x320] sm:$0xff]  ;;  %2033 = vmatpush1.bf16.msra.mxu0 %v10007_v50  ;;  %v623_v40 = vld [vmem:[#allocation8 + $0x4a8] sm:$0xff] }
  0xe7   :  { %v698_v48 = vld [vmem:[#allocation8 + $0x700] sm:$0xff]  ;;  %v10016_v52 = vcombine.high %v570_v46, %v574_v47  ;;  %2073 = vmatprep.subr.bf16.mxu1 %v10136_v44  ;;  %v10015_v59 = vcombine.low %v570_v46, %v574_v47  ;;  %v499_v42 = vld [vmem:[#allocation8 + $0xc8] sm:$0xff]  ;;  %v10066_v46 = vcombine.high %v619_v38, %v623_v40 }
  0xe8   :  { %v702_v49 = vld [vmem:[#allocation8 + $0x720] sm:$0xff]  ;;  %2074 = vmatpush1.bf16.msra.mxu1 %v10135_v51  ;;  %v503_v43 = vld [vmem:[#allocation8 + $0xe8] sm:$0xff] }
  0xe9   :  { %v10144_v53 = vcombine.high %v698_v48, %v702_v49  ;;  %v578_v55 = vld [vmem:[#allocation8 + $0x340] sm:$0xff]  ;;  %2034 = vmatprep.subr.bf16.mxu0 %v10016_v52  ;;  %v10143_v60 = vcombine.low %v698_v48, %v702_v49  ;;  %v627_v44 = vld [vmem:[#allocation8 + $0x4c8] sm:$0xff]  ;;  %v9937_v48 = vcombine.low %v491_v36, %v495_v37  ;;  %v10065_v49 = vcombine.low %v619_v38, %v623_v40 }
  0xea   :  { %v582_v56 = vld [vmem:[#allocation8 + $0x360] sm:$0xff]  ;;  %2035 = vmatpush1.bf16.msra.mxu0 %v10015_v59  ;;  %v631_v47 = vld [vmem:[#allocation8 + $0x4e8] sm:$0xff]  ;;  %v9946_v50 = vcombine.high %v499_v42, %v503_v43 }
  0xeb   :  { %v706_v57 = vld [vmem:[#allocation8 + $0x740] sm:$0xff]  ;;  %v10024_v61 = vcombine.high %v578_v55, %v582_v56  ;;  %2075 = vmatprep.subr.bf16.mxu1 %v10144_v53  ;;  %v10023_v4 = vcombine.low %v578_v55, %v582_v56  ;;  %v507_v51 = vld [vmem:[#allocation8 + $0x108] sm:$0xff]  ;;  %v10074_v55 = vcombine.high %v627_v44, %v631_v47 }
  0xec   :  { %v710_v58 = vld [vmem:[#allocation8 + $0x760] sm:$0xff]  ;;  %2076 = vmatpush1.bf16.msra.mxu1 %v10143_v60  ;;  %v511_v52 = vld [vmem:[#allocation8 + $0x128] sm:$0xff] }
  0xed   :  { %v10152_v62 = vcombine.high %v706_v57, %v710_v58  ;;  %v586_v63 = vld [vmem:[#allocation8 + $0x380] sm:$0xff]  ;;  %2036 = vmatprep.subr.bf16.mxu0 %v10024_v61  ;;  %v10151_v5 = vcombine.low %v706_v57, %v710_v58  ;;  %v635_v53 = vld [vmem:[#allocation8 + $0x508] sm:$0xff]  ;;  %v9945_v57 = vcombine.low %v499_v42, %v503_v43  ;;  %v10073_v58 = vcombine.low %v627_v44, %v631_v47 }
  0xee   :  { %v590_v1 = vld [vmem:[#allocation8 + $0x3a0] sm:$0xff]  ;;  %2037 = vmatpush1.bf16.msra.mxu0 %v10023_v4  ;;  %v639_v56 = vld [vmem:[#allocation8 + $0x528] sm:$0xff]  ;;  %v9954_v59 = vcombine.high %v507_v51, %v511_v52 }
  0xef   :  { %v714_v2 = vld [vmem:[#allocation8 + $0x780] sm:$0xff]  ;;  %v10032_v7 = vcombine.high %v586_v63, %v590_v1  ;;  %2077 = vmatprep.subr.bf16.mxu1 %v10152_v62  ;;  %v10031_v14 = vcombine.low %v586_v63, %v590_v1  ;;  %v515_v60 = vld [vmem:[#allocation8 + $0x148] sm:$0xff]  ;;  %v10082_v63 = vcombine.high %v635_v53, %v639_v56 }
  0xf0   :  { %v718_v3 = vld [vmem:[#allocation8 + $0x7a0] sm:$0xff]  ;;  %2078 = vmatpush1.bf16.msra.mxu1 %v10151_v5  ;;  %v519_v61 = vld [vmem:[#allocation8 + $0x168] sm:$0xff] }
  0xf1   :  { %v10160_v8 = vcombine.high %v714_v2, %v718_v3  ;;  %v594_v9 = vld [vmem:[#allocation8 + $0x3c0] sm:$0xff]  ;;  %2038 = vmatprep.subr.bf16.mxu0 %v10032_v7  ;;  %v10159_v15 = vcombine.low %v714_v2, %v718_v3  ;;  %v643_v62 = vld [vmem:[#allocation8 + $0x548] sm:$0xff]  ;;  %v9953_v2 = vcombine.low %v507_v51, %v511_v52  ;;  %v10081_v3 = vcombine.low %v635_v53, %v639_v56 }
  0xf2   :  { %v598_v10 = vld [vmem:[#allocation8 + $0x3e0] sm:$0xff]  ;;  %2039 = vmatpush1.bf16.msra.mxu0 %v10031_v14  ;;  %v647_v1 = vld [vmem:[#allocation8 + $0x568] sm:$0xff]  ;;  %v9962_v4 = vcombine.high %v515_v60, %v519_v61 }
  0xf3   :  { %v722_v11 = vld [vmem:[#allocation8 + $0x7c0] sm:$0xff]  ;;  %v10040_v16 = vcombine.high %v594_v9, %v598_v10  ;;  %2079 = vmatprep.subr.bf16.mxu1 %v10160_v8  ;;  %v10039_v23 = vcombine.low %v594_v9, %v598_v10  ;;  %v523_v5 = vld [vmem:[#allocation8 + $0x188] sm:$0xff]  ;;  %v10090_v9 = vcombine.high %v643_v62, %v647_v1 }
  0xf4   :  { %v726_v13 = vld [vmem:[#allocation8 + $0x7e0] sm:$0xff]  ;;  %2080 = vmatpush1.bf16.msra.mxu1 %v10159_v15  ;;  %v527_v7 = vld [vmem:[#allocation8 + $0x1a8] sm:$0xff] }
  0xf5   :  { %v10168_v18 = vcombine.high %v722_v11, %v726_v13  ;;  %2040 = vmatprep.subr.bf16.mxu0 %v10040_v16  ;;  %v10167_v24 = vcombine.low %v722_v11, %v726_v13  ;;  %v651_v8 = vld [vmem:[#allocation8 + $0x588] sm:$0xff]  ;;  %v9961_v11 = vcombine.low %v515_v60, %v519_v61  ;;  %v10089_v13 = vcombine.low %v643_v62, %v647_v1 }
  0xf6   :  { %2041 = vmatpush1.bf16.msra.mxu0 %v10039_v23  ;;  %v655_v10 = vld [vmem:[#allocation8 + $0x5a8] sm:$0xff]  ;;  %v9970_v14 = vcombine.high %v523_v5, %v527_v7  ;;  %v9969_v21 = vcombine.low %v523_v5, %v527_v7 }
  0xf7   :  { %2081 = vmatprep.subr.bf16.mxu1 %v10168_v18  ;;  %2092 = vmatprep.subr.bf16.mxu0 %v9922_v25  ;;  %v531_v15 = vld [vmem:[#allocation8 + $0x1c8] sm:$0xff]  ;;  %v10098_v19 = vcombine.high %v651_v8, %v655_v10  ;;  %v10097_v22 = vcombine.low %v651_v8, %v655_v10 }
  0xf8   :  { %2082 = vmatpush1.bf16.msra.mxu1 %v10167_v24  ;;  %v535_v16 = vld [vmem:[#allocation8 + $0x1e8] sm:$0xff] }
  0xf9   :  { %2133 = vmatprep.subr.bf16.mxu1 %v10050_v26  ;;  %2043 = vmatmul.mubr.bf16.vlgmr.msra.gmra.mrb[0].mxu0 %v12165_v29  ;;  %v659_v18 = vld [vmem:[#allocation8 + $0x5c8] sm:$0xff]  ;;  %v9978_v23 = vcombine.high %v531_v15, %v535_v16  ;;  %v9977_v30 = vcombine.low %v531_v15, %v535_v16 }
  0xfa   :  { %2093 = vmatpush1.bf16.msra.mxu0 %v9921_v33  ;;  %2124 = vmatprep.mubr.bf16.mxu0 %v12155_v12  ;;  %v539_v24 = vld [vmem:[#allocation8 + $0x208] sm:$0xff]  ;;  %v10106_v27 = vcombine.high %v659_v18, %v663_v20  ;;  %v10105_v31 = vcombine.low %v659_v18, %v663_v20 }
  0xfb   :  { %2084 = vmatmul.mubr.bf16.vlgmr.msra.gmra.mrb[0].mxu1 %v12169_v32  ;;  %2094 = vmatprep.subr.bf16.mxu0 %v9930_v35  ;;  %v543_v25 = vld [vmem:[#allocation8 + $0x228] sm:$0xff] }
  0xfc   :  { %2134 = vmatpush1.bf16.msra.mxu1 %v10049_v34  ;;  %2165 = vmatprep.mubr.bf16.mxu1 %v12160_v17  ;;  %v667_v26 = vld [vmem:[#allocation8 + $0x608] sm:$0xff]  ;;  %v9986_v33 = vcombine.high %v539_v24, %v543_v25 }
  0xfd   :  { %2135 = vmatprep.subr.bf16.mxu1 %v10058_v39  ;;  %v671_v28 = vld [vmem:[#allocation8 + $0x628] sm:$0xff]  ;;  %v9985_v39 = vcombine.low %v539_v24, %v543_v25 }
  0xfe   :  { %2095 = vmatpush1.bf16.msra.mxu0 %v9929_v0  ;;  %v547_v34 = vld [vmem:[#allocation8 + $0x248] sm:$0xff]  ;;  %v10114_v37 = vcombine.high %v667_v26, %v671_v28  ;;  %v10113_v40 = vcombine.low %v667_v26, %v671_v28 }
  0xff   :  { %2096 = vmatprep.subr.bf16.mxu0 %v9938_v41  ;;  %v551_v35 = vld [vmem:[#allocation8 + $0x268] sm:$0xff] }
 0x100   :  { %2136 = vmatpush1.bf16.msra.mxu1 %v10057_v6  ;;  %v675_v36 = vld [vmem:[#allocation8 + $0x648] sm:$0xff]  ;;  %v9994_v0 = vcombine.high %v547_v34, %v551_v35 }
 0x101   :  { %2137 = vmatprep.subr.bf16.mxu1 %v10066_v46  ;;  %v679_v38 = vld [vmem:[#allocation8 + $0x668] sm:$0xff]  ;;  %v9993_v46 = vcombine.low %v547_v34, %v551_v35  ;;  %v604_v34 = vld [vmem:[#allocation8 + $0x410] sm:$0xff] }
 0x102   :  { %2097 = vmatpush1.bf16.msra.mxu0 %v9937_v48  ;;  %v555_v6 = vld [vmem:[#allocation8 + $0x288] sm:$0xff]  ;;  %v10122_v43 = vcombine.high %v675_v36, %v679_v38  ;;  %v10121_v47 = vcombine.low %v675_v36, %v679_v38  ;;  %v608_v36 = vld [vmem:[#allocation8 + $0x430] sm:$0xff] }
 0x103   :  { %2098 = vmatprep.subr.bf16.mxu0 %v9946_v50  ;;  %v559_v41 = vld [vmem:[#allocation8 + $0x2a8] sm:$0xff] }
 0x104   :  { %2138 = vmatpush1.bf16.msra.mxu1 %v10065_v49  ;;  %v683_v42 = vld [vmem:[#allocation8 + $0x688] sm:$0xff]  ;;  %v10002_v48 = vcombine.high %v555_v6, %v559_v41 }
 0x105   :  { %2139 = vmatprep.subr.bf16.mxu1 %v10074_v55  ;;  %v687_v44 = vld [vmem:[#allocation8 + $0x6a8] sm:$0xff]  ;;  %v10001_v55 = vcombine.low %v555_v6, %v559_v41  ;;  %v612_v6 = vld [vmem:[#allocation8 + $0x450] sm:$0xff]  ;;  %v10052_v41 = vcombine.high %v604_v34, %v608_v36 }
 0x106   :  { %2099 = vmatpush1.bf16.msra.mxu0 %v9945_v57  ;;  %v563_v49 = vld [vmem:[#allocation8 + $0x2c8] sm:$0xff]  ;;  %v10130_v52 = vcombine.high %v683_v42, %v687_v44  ;;  %v10129_v56 = vcombine.low %v683_v42, %v687_v44  ;;  %v616_v42 = vld [vmem:[#allocation8 + $0x470] sm:$0xff]  ;;  %v10051_v44 = vcombine.low %v604_v34, %v608_v36 }
 0x107   :  { %2100 = vmatprep.subr.bf16.mxu0 %v9954_v59  ;;  %v567_v50 = vld [vmem:[#allocation8 + $0x2e8] sm:$0xff]  ;;  %v664_v34 = vld [vmem:[#allocation8 + $0x5f0] sm:$0xff] }
 0x108   :  { %2140 = vmatpush1.bf16.msra.mxu1 %v10073_v58  ;;  %v691_v51 = vld [vmem:[#allocation8 + $0x6c8] sm:$0xff]  ;;  %v10010_v57 = vcombine.high %v563_v49, %v567_v50 }
 0x109   :  { %2141 = vmatprep.subr.bf16.mxu1 %v10082_v63  ;;  %v695_v53 = vld [vmem:[#allocation8 + $0x6e8] sm:$0xff]  ;;  %v10009_v63 = vcombine.low %v563_v49, %v567_v50  ;;  %v620_v49 = vld [vmem:[#allocation8 + $0x490] sm:$0xff]  ;;  %v10060_v50 = vcombine.high %v612_v6, %v616_v42 }
 0x10a   :  { %2101 = vmatpush1.bf16.msra.mxu0 %v9953_v2  ;;  %v571_v58 = vld [vmem:[#allocation8 + $0x308] sm:$0xff]  ;;  %v10138_v61 = vcombine.high %v691_v51, %v695_v53  ;;  %v10137_v1 = vcombine.low %v691_v51, %v695_v53  ;;  %v624_v51 = vld [vmem:[#allocation8 + $0x4b0] sm:$0xff]  ;;  %v10059_v53 = vcombine.low %v612_v6, %v616_v42 }
 0x10b   :  { %2102 = vmatprep.subr.bf16.mxu0 %v9962_v4  ;;  %v575_v59 = vld [vmem:[#allocation8 + $0x328] sm:$0xff]  ;;  %v672_v6 = vld [vmem:[#allocation8 + $0x630] sm:$0xff] }
 0x10c   :  { %2142 = vmatpush1.bf16.msra.mxu1 %v10081_v3  ;;  %v699_v60 = vld [vmem:[#allocation8 + $0x708] sm:$0xff]  ;;  %v10018_v2 = vcombine.high %v571_v58, %v575_v59 }
 0x10d   :  { %2143 = vmatprep.subr.bf16.mxu1 %v10090_v9  ;;  %v703_v62 = vld [vmem:[#allocation8 + $0x728] sm:$0xff]  ;;  %v10017_v9 = vcombine.low %v571_v58, %v575_v59  ;;  %v628_v58 = vld [vmem:[#allocation8 + $0x4d0] sm:$0xff]  ;;  %v10068_v59 = vcombine.high %v620_v49, %v624_v51 }
 0x10e   :  { %2103 = vmatpush1.bf16.msra.mxu0 %v9961_v11  ;;  %v579_v3 = vld [vmem:[#allocation8 + $0x348] sm:$0xff]  ;;  %v10146_v7 = vcombine.high %v699_v60, %v703_v62  ;;  %v10145_v10 = vcombine.low %v699_v60, %v703_v62  ;;  %v632_v60 = vld [vmem:[#allocation8 + $0x4f0] sm:$0xff]  ;;  %v10067_v62 = vcombine.low %v620_v49, %v624_v51 }
 0x10f   :  { %2104 = vmatprep.subr.bf16.mxu0 %v9970_v14  ;;  %v583_v4 = vld [vmem:[#allocation8 + $0x368] sm:$0xff]  ;;  %v680_v49 = vld [vmem:[#allocation8 + $0x670] sm:$0xff] }
 0x110   :  { %2144 = vmatpush1.bf16.msra.mxu1 %v10089_v13  ;;  %v707_v5 = vld [vmem:[#allocation8 + $0x748] sm:$0xff]  ;;  %v10026_v11 = vcombine.high %v579_v3, %v583_v4 }
 0x111   :  { %2145 = vmatprep.subr.bf16.mxu1 %v10098_v19  ;;  %v711_v8 = vld [vmem:[#allocation8 + $0x768] sm:$0xff]  ;;  %v10025_v19 = vcombine.low %v579_v3, %v583_v4  ;;  %v636_v3 = vld [vmem:[#allocation8 + $0x510] sm:$0xff]  ;;  %v10076_v4 = vcombine.high %v628_v58, %v632_v60 }
 0x112   :  { %2105 = vmatpush1.bf16.msra.mxu0 %v9969_v21  ;;  %v587_v13 = vld [vmem:[#allocation8 + $0x388] sm:$0xff]  ;;  %v10154_v16 = vcombine.high %v707_v5, %v711_v8  ;;  %v10153_v20 = vcombine.low %v707_v5, %v711_v8  ;;  %v640_v5 = vld [vmem:[#allocation8 + $0x530] sm:$0xff]  ;;  %v10075_v8 = vcombine.low %v628_v58, %v632_v60 }
 0x113   :  { %2106 = vmatprep.subr.bf16.mxu0 %v9978_v23  ;;  %v591_v14 = vld [vmem:[#allocation8 + $0x3a8] sm:$0xff]  ;;  %v688_v58 = vld [vmem:[#allocation8 + $0x6b0] sm:$0xff] }
 0x114   :  { %2146 = vmatpush1.bf16.msra.mxu1 %v10097_v22  ;;  %v715_v15 = vld [vmem:[#allocation8 + $0x788] sm:$0xff]  ;;  %v10034_v21 = vcombine.high %v587_v13, %v591_v14 }
 0x115   :  { %2147 = vmatprep.subr.bf16.mxu1 %v10106_v27  ;;  %v719_v18 = vld [vmem:[#allocation8 + $0x7a8] sm:$0xff]  ;;  %v10033_v27 = vcombine.low %v587_v13, %v591_v14  ;;  %v644_v13 = vld [vmem:[#allocation8 + $0x550] sm:$0xff]  ;;  %v10084_v14 = vcombine.high %v636_v3, %v640_v5 }
 0x116   :  { %2107 = vmatpush1.bf16.msra.mxu0 %v9977_v30  ;;  %v595_v22 = vld [vmem:[#allocation8 + $0x3c8] sm:$0xff]  ;;  %v10162_v25 = vcombine.high %v715_v15, %v719_v18  ;;  %v10161_v28 = vcombine.low %v715_v15, %v719_v18  ;;  %v648_v15 = vld [vmem:[#allocation8 + $0x570] sm:$0xff]  ;;  %v10083_v18 = vcombine.low %v636_v3, %v640_v5 }
 0x117   :  { %2108 = vmatprep.subr.bf16.mxu0 %v9986_v33  ;;  %v599_v23 = vld [vmem:[#allocation8 + $0x3e8] sm:$0xff]  ;;  %v480_v33 = vld [vmem:[#allocation8 + $0x30] sm:$0xff] }
 0x118   :  { %2148 = vmatpush1.bf16.msra.mxu1 %v10105_v31  ;;  %v723_v24 = vld [vmem:[#allocation8 + $0x7c8] sm:$0xff]  ;;  %v10042_v30 = vcombine.high %v595_v22, %v599_v23  ;;  %v476_v31 = vld [vmem:[#allocation8 + $0x10] sm:$0xff] }
 0x119   :  { %2149 = vmatprep.subr.bf16.mxu1 %v10114_v37  ;;  %v727_v26 = vld [vmem:[#allocation8 + $0x7e8] sm:$0xff]  ;;  %v10041_v37 = vcombine.low %v595_v22, %v599_v23  ;;  %v652_v22 = vld [vmem:[#allocation8 + $0x590] sm:$0xff]  ;;  %v10092_v23 = vcombine.high %v644_v13, %v648_v15 }
 0x11a   :  { %2109 = vmatpush1.bf16.msra.mxu0 %v9985_v39  ;;  %v10170_v35 = vcombine.high %v723_v24, %v727_v26  ;;  %v10169_v38 = vcombine.low %v723_v24, %v727_v26  ;;  %v9924_v39 = vcombine.high %v476_v31, %v480_v33  ;;  %v656_v24 = vld [vmem:[#allocation8 + $0x5b0] sm:$0xff]  ;;  %v10091_v26 = vcombine.low %v644_v13, %v648_v15 }
 0x11b   :  { %2110 = vmatprep.subr.bf16.mxu0 %v9994_v0  ;;  %v488_v0 = vld [vmem:[#allocation8 + $0x70] sm:$0xff]  ;;  %v10099_v36 = vcombine.low %v652_v22, %v656_v24 }
 0x11c   :  { %2150 = vmatpush1.bf16.msra.mxu1 %v10113_v40  ;;  %v484_v40 = vld [vmem:[#allocation8 + $0x50] sm:$0xff] }
 0x11d   :  { %2151 = vmatprep.subr.bf16.mxu1 %v10122_v43  ;;  %v9923_v43 = vcombine.low %v476_v31, %v480_v33  ;;  %v660_v31 = vld [vmem:[#allocation8 + $0x5d0] sm:$0xff]  ;;  %v10100_v33 = vcombine.high %v652_v22, %v656_v24 }
 0x11e   :  { %2111 = vmatpush1.bf16.msra.mxu0 %v9993_v46  ;;  %v9932_v46 = vcombine.high %v484_v40, %v488_v0  ;;  %v10107_v42 = vcombine.low %v660_v31, %v664_v34  ;;  %v696_v3 = vld [vmem:[#allocation8 + $0x6f0] sm:$0xff] }
 0x11f   :  { %2112 = vmatprep.subr.bf16.mxu0 %v10002_v48  ;;  %v496_v48 = vld [vmem:[#allocation8 + $0xb0] sm:$0xff] }
 0x120   :  { %2152 = vmatpush1.bf16.msra.mxu1 %v10121_v47  ;;  %v492_v47 = vld [vmem:[#allocation8 + $0x90] sm:$0xff] }
 0x121   :  { %2153 = vmatprep.subr.bf16.mxu1 %v10130_v52  ;;  %v9931_v52 = vcombine.low %v484_v40, %v488_v0  ;;  %v668_v40 = vld [vmem:[#allocation8 + $0x610] sm:$0xff]  ;;  %v10108_v0 = vcombine.high %v660_v31, %v664_v34 }
 0x122   :  { %2113 = vmatpush1.bf16.msra.mxu0 %v10001_v55  ;;  %v9940_v55 = vcombine.high %v492_v47, %v496_v48  ;;  %v10115_v51 = vcombine.low %v668_v40, %v672_v6  ;;  %v704_v13 = vld [vmem:[#allocation8 + $0x730] sm:$0xff] }
 0x123   :  { %2114 = vmatprep.subr.bf16.mxu0 %v10010_v57  ;;  %v504_v57 = vld [vmem:[#allocation8 + $0xf0] sm:$0xff] }
 0x124   :  { %2154 = vmatpush1.bf16.msra.mxu1 %v10129_v56  ;;  %v500_v56 = vld [vmem:[#allocation8 + $0xd0] sm:$0xff] }
 0x125   :  { %2155 = vmatprep.subr.bf16.mxu1 %v10138_v61  ;;  %v9939_v61 = vcombine.low %v492_v47, %v496_v48  ;;  %v676_v47 = vld [vmem:[#allocation8 + $0x650] sm:$0xff]  ;;  %v10116_v48 = vcombine.high %v668_v40, %v672_v6 }
 0x126   :  { %2115 = vmatpush1.bf16.msra.mxu0 %v10009_v63  ;;  %v9948_v63 = vcombine.high %v500_v56, %v504_v57  ;;  %v10123_v60 = vcombine.low %v676_v47, %v680_v49  ;;  %v712_v22 = vld [vmem:[#allocation8 + $0x770] sm:$0xff] }
 0x127   :  { %2116 = vmatprep.subr.bf16.mxu0 %v10018_v2  ;;  %v512_v2 = vld [vmem:[#allocation8 + $0x130] sm:$0xff] }
 0x128   :  { %2156 = vmatpush1.bf16.msra.mxu1 %v10137_v1  ;;  %v508_v1 = vld [vmem:[#allocation8 + $0x110] sm:$0xff] }
 0x129   :  { %2157 = vmatprep.subr.bf16.mxu1 %v10146_v7  ;;  %v9947_v7 = vcombine.low %v500_v56, %v504_v57  ;;  %v684_v56 = vld [vmem:[#allocation8 + $0x690] sm:$0xff]  ;;  %v10124_v57 = vcombine.high %v676_v47, %v680_v49  ;;  %v609_v47 = vld [vmem:[#allocation8 + $0x438] sm:$0xff] }
 0x12a   :  { %2117 = vmatpush1.bf16.msra.mxu0 %v10017_v9  ;;  %v9956_v9 = vcombine.high %v508_v1, %v512_v2  ;;  %v10131_v5 = vcombine.low %v684_v56, %v688_v58  ;;  %v720_v31 = vld [vmem:[#allocation8 + $0x7b0] sm:$0xff] }
 0x12b   :  { %2118 = vmatprep.subr.bf16.mxu0 %v10026_v11  ;;  %v520_v11 = vld [vmem:[#allocation8 + $0x170] sm:$0xff] }
 0x12c   :  { %2158 = vmatpush1.bf16.msra.mxu1 %v10145_v10  ;;  %v516_v10 = vld [vmem:[#allocation8 + $0x150] sm:$0xff] }
 0x12d   :  { %2159 = vmatprep.subr.bf16.mxu1 %v10154_v16  ;;  %v9955_v16 = vcombine.low %v508_v1, %v512_v2  ;;  %v692_v1 = vld [vmem:[#allocation8 + $0x6d0] sm:$0xff]  ;;  %v10132_v2 = vcombine.high %v684_v56, %v688_v58  ;;  %v617_v56 = vld [vmem:[#allocation8 + $0x478] sm:$0xff] }
 0x12e   :  { %2119 = vmatpush1.bf16.msra.mxu0 %v10025_v19  ;;  %v9964_v19 = vcombine.high %v516_v10, %v520_v11  ;;  %v10139_v15 = vcombine.low %v692_v1, %v696_v3  ;;  %v728_v40 = vld [vmem:[#allocation8 + $0x7f0] sm:$0xff] }
 0x12f   :  { %2120 = vmatprep.subr.bf16.mxu0 %v10034_v21  ;;  %v528_v21 = vld [vmem:[#allocation8 + $0x1b0] sm:$0xff] }
 0x130   :  { %2160 = vmatpush1.bf16.msra.mxu1 %v10153_v20  ;;  %v524_v20 = vld [vmem:[#allocation8 + $0x190] sm:$0xff] }
 0x131   :  { %2161 = vmatprep.subr.bf16.mxu1 %v10162_v25  ;;  %v9963_v25 = vcombine.low %v516_v10, %v520_v11  ;;  %v700_v10 = vld [vmem:[#allocation8 + $0x710] sm:$0xff]  ;;  %v10140_v11 = vcombine.high %v692_v1, %v696_v3  ;;  %v625_v1 = vld [vmem:[#allocation8 + $0x4b8] sm:$0xff] }
 0x132   :  { %2121 = vmatpush1.bf16.msra.mxu0 %v10033_v27  ;;  %v9972_v27 = vcombine.high %v524_v20, %v528_v21  ;;  %v10147_v24 = vcombine.low %v700_v10, %v704_v13 }
 0x133   :  { %2122 = vmatprep.subr.bf16.mxu0 %v10042_v30  ;;  %v536_v30 = vld [vmem:[#allocation8 + $0x1f0] sm:$0xff] }
 0x134   :  { %2162 = vmatpush1.bf16.msra.mxu1 %v10161_v28  ;;  %v532_v28 = vld [vmem:[#allocation8 + $0x1d0] sm:$0xff] }
 0x135   :  { %2163 = vmatprep.subr.bf16.mxu1 %v10170_v35  ;;  %v9971_v35 = vcombine.low %v524_v20, %v528_v21  ;;  %v708_v20 = vld [vmem:[#allocation8 + $0x750] sm:$0xff]  ;;  %v10148_v21 = vcombine.high %v700_v10, %v704_v13  ;;  %v633_v10 = vld [vmem:[#allocation8 + $0x4f8] sm:$0xff] }
 0x136   :  { %2123 = vmatpush1.bf16.msra.mxu0 %v10041_v37  ;;  %v9980_v37 = vcombine.high %v532_v28, %v536_v30  ;;  %v10155_v34 = vcombine.low %v708_v20, %v712_v22 }
 0x137   :  { %2174 = vmatprep.subr.bf16.mxu0 %v9924_v39  ;;  %v544_v39 = vld [vmem:[#allocation8 + $0x230] sm:$0xff] }
 0x138   :  { %2164 = vmatpush1.bf16.msra.mxu1 %v10169_v38  ;;  %v540_v38 = vld [vmem:[#allocation8 + $0x210] sm:$0xff] }
 0x139   :  { %2215 = vmatprep.subr.bf16.mxu1 %v10052_v41  ;;  %2125 = vmatmul.mubr.bf16.vlgmr.msra.gmra.mrb[4].mxu0 %v12165_v29  ;;  %v9979_v41 = vcombine.low %v532_v28, %v536_v30  ;;  %v716_v28 = vld [vmem:[#allocation8 + $0x790] sm:$0xff]  ;;  %v10156_v30 = vcombine.high %v708_v20, %v712_v22  ;;  %v641_v20 = vld [vmem:[#allocation8 + $0x538] sm:$0xff] }
 0x13a   :  { %2175 = vmatpush1.bf16.msra.mxu0 %v9923_v43  ;;  %2206 = vmatprep.mubr.bf16.mxu0 %v12155_v12  ;;  %v9988_v43 = vcombine.high %v540_v38, %v544_v39  ;;  %v10163_v6 = vcombine.low %v716_v28, %v720_v31 }
 0x13b   :  { %2166 = vmatmul.mubr.bf16.vlgmr.msra.gmra.mrb[4].mxu1 %v12169_v32  ;;  %2176 = vmatprep.subr.bf16.mxu0 %v9932_v46  ;;  %v552_v46 = vld [vmem:[#allocation8 + $0x270] sm:$0xff] }
 0x13c   :  { %2216 = vmatpush1.bf16.msra.mxu1 %v10051_v44  ;;  %2247 = vmatprep.mubr.bf16.mxu1 %v12160_v17  ;;  %v548_v44 = vld [vmem:[#allocation8 + $0x250] sm:$0xff] }
 0x13d   :  { %2217 = vmatprep.subr.bf16.mxu1 %v10060_v50  ;;  %v9987_v50 = vcombine.low %v540_v38, %v544_v39  ;;  %v724_v38 = vld [vmem:[#allocation8 + $0x7d0] sm:$0xff]  ;;  %v10164_v39 = vcombine.high %v716_v28, %v720_v31 }
 0x13e   :  { %2177 = vmatpush1.bf16.msra.mxu0 %v9931_v52  ;;  %v9996_v52 = vcombine.high %v548_v44, %v552_v46  ;;  %v10171_v49 = vcombine.low %v724_v38, %v728_v40 }
 0x13f   :  { %2178 = vmatprep.subr.bf16.mxu0 %v9940_v55  ;;  %v560_v55 = vld [vmem:[#allocation8 + $0x2b0] sm:$0xff] }
 0x140   :  { %2218 = vmatpush1.bf16.msra.mxu1 %v10059_v53  ;;  %v556_v53 = vld [vmem:[#allocation8 + $0x290] sm:$0xff] }
 0x141   :  { %2219 = vmatprep.subr.bf16.mxu1 %v10068_v59  ;;  %v9995_v59 = vcombine.low %v548_v44, %v552_v46  ;;  %v10172_v44 = vcombine.high %v724_v38, %v728_v40  ;;  %v605_v46 = vld [vmem:[#allocation8 + $0x418] sm:$0xff] }
 0x142   :  { %2179 = vmatpush1.bf16.msra.mxu0 %v9939_v61  ;;  %v10004_v61 = vcombine.high %v556_v53, %v560_v55  ;;  %v10053_v58 = vcombine.low %v605_v46, %v609_v47 }
 0x143   :  { %2180 = vmatprep.subr.bf16.mxu0 %v9948_v63  ;;  %v568_v63 = vld [vmem:[#allocation8 + $0x2f0] sm:$0xff] }
 0x144   :  { %2220 = vmatpush1.bf16.msra.mxu1 %v10067_v62  ;;  %v564_v62 = vld [vmem:[#allocation8 + $0x2d0] sm:$0xff] }
 0x145   :  { %2221 = vmatprep.subr.bf16.mxu1 %v10076_v4  ;;  %v10003_v4 = vcombine.low %v556_v53, %v560_v55  ;;  %v613_v53 = vld [vmem:[#allocation8 + $0x458] sm:$0xff]  ;;  %v10054_v55 = vcombine.high %v605_v46, %v609_v47 }
 0x146   :  { %2181 = vmatpush1.bf16.msra.mxu0 %v9947_v7  ;;  %v10012_v7 = vcombine.high %v564_v62, %v568_v63  ;;  %v10061_v3 = vcombine.low %v613_v53, %v617_v56 }
 0x147   :  { %2182 = vmatprep.subr.bf16.mxu0 %v9956_v9  ;;  %v576_v9 = vld [vmem:[#allocation8 + $0x330] sm:$0xff] }
 0x148   :  { %2222 = vmatpush1.bf16.msra.mxu1 %v10075_v8  ;;  %v572_v8 = vld [vmem:[#allocation8 + $0x310] sm:$0xff] }
 0x149   :  { %2223 = vmatprep.subr.bf16.mxu1 %v10084_v14  ;;  %v10011_v14 = vcombine.low %v564_v62, %v568_v63  ;;  %v497_v62 = vld [vmem:[#allocation8 + $0xb8] sm:$0xff] }
 0x14a   :  { %2183 = vmatpush1.bf16.msra.mxu0 %v9955_v16  ;;  %v10020_v16 = vcombine.high %v572_v8, %v576_v9  ;;  %v621_v63 = vld [vmem:[#allocation8 + $0x498] sm:$0xff] }
 0x14b   :  { %2184 = vmatprep.subr.bf16.mxu0 %v9964_v19  ;;  %v584_v19 = vld [vmem:[#allocation8 + $0x370] sm:$0xff]  ;;  %v10069_v13 = vcombine.low %v621_v63, %v625_v1 }
 0x14c   :  { %2224 = vmatpush1.bf16.msra.mxu1 %v10083_v18  ;;  %v580_v18 = vld [vmem:[#allocation8 + $0x350] sm:$0xff] }
 0x14d   :  { %2225 = vmatprep.subr.bf16.mxu1 %v10092_v23  ;;  %v10019_v23 = vcombine.low %v572_v8, %v576_v9  ;;  %v505_v8 = vld [vmem:[#allocation8 + $0xf8] sm:$0xff] }
 0x14e   :  { %2185 = vmatpush1.bf16.msra.mxu0 %v9963_v25  ;;  %v10028_v25 = vcombine.high %v580_v18, %v584_v19  ;;  %v629_v9 = vld [vmem:[#allocation8 + $0x4d8] sm:$0xff] }
 0x14f   :  { %2186 = vmatprep.subr.bf16.mxu0 %v9972_v27  ;;  %v592_v27 = vld [vmem:[#allocation8 + $0x3b0] sm:$0xff] }
 0x150   :  { %2226 = vmatpush1.bf16.msra.mxu1 %v10091_v26  ;;  %v588_v26 = vld [vmem:[#allocation8 + $0x390] sm:$0xff] }
 0x151   :  { %2227 = vmatprep.subr.bf16.mxu1 %v10100_v33  ;;  %v10027_v33 = vcombine.low %v580_v18, %v584_v19  ;;  %v513_v18 = vld [vmem:[#allocation8 + $0x138] sm:$0xff] }
 0x152   :  { %2187 = vmatpush1.bf16.msra.mxu0 %v9971_v35  ;;  %v10036_v35 = vcombine.high %v588_v26, %v592_v27  ;;  %v637_v19 = vld [vmem:[#allocation8 + $0x518] sm:$0xff] }
 0x153   :  { %2188 = vmatprep.subr.bf16.mxu0 %v9980_v37  ;;  %v600_v37 = vld [vmem:[#allocation8 + $0x3f0] sm:$0xff]  ;;  %v10085_v28 = vcombine.low %v637_v19, %v641_v20 }
 0x154   :  { %2228 = vmatpush1.bf16.msra.mxu1 %v10099_v36  ;;  %v596_v36 = vld [vmem:[#allocation8 + $0x3d0] sm:$0xff] }
 0x155   :  { %2229 = vmatprep.subr.bf16.mxu1 %v10108_v0  ;;  %v10035_v0 = vcombine.low %v588_v26, %v592_v27  ;;  %v649_v26 = vld [vmem:[#allocation8 + $0x578] sm:$0xff] }
 0x156   :  { %2189 = vmatpush1.bf16.msra.mxu0 %v9979_v41  ;;  %v10044_v41 = vcombine.high %v596_v36, %v600_v37 }
 0x157   :  { %2190 = vmatprep.subr.bf16.mxu0 %v9988_v43  ;;  %v481_v43 = vld [vmem:[#allocation8 + $0x38] sm:$0xff] }
 0x158   :  { %2230 = vmatpush1.bf16.msra.mxu1 %v10107_v42  ;;  %v477_v42 = vld [vmem:[#allocation8 + $0x18] sm:$0xff] }
 0x159   :  { %2231 = vmatprep.subr.bf16.mxu1 %v10116_v48  ;;  %v10043_v48 = vcombine.low %v596_v36, %v600_v37  ;;  %v657_v36 = vld [vmem:[#allocation8 + $0x5b8] sm:$0xff] }
 0x15a   :  { %2191 = vmatpush1.bf16.msra.mxu0 %v9987_v50  ;;  %v9926_v50 = vcombine.high %v477_v42, %v481_v43 }
 0x15b   :  { %2192 = vmatprep.subr.bf16.mxu0 %v9996_v52  ;;  %v489_v52 = vld [vmem:[#allocation8 + $0x78] sm:$0xff] }
 0x15c   :  { %2232 = vmatpush1.bf16.msra.mxu1 %v10115_v51  ;;  %v485_v51 = vld [vmem:[#allocation8 + $0x58] sm:$0xff] }
 0x15d   :  { %2233 = vmatprep.subr.bf16.mxu1 %v10124_v57  ;;  %v9925_v57 = vcombine.low %v477_v42, %v481_v43  ;;  %v665_v42 = vld [vmem:[#allocation8 + $0x5f8] sm:$0xff] }
 0x15e   :  { %2193 = vmatpush1.bf16.msra.mxu0 %v9995_v59  ;;  %v9934_v59 = vcombine.high %v485_v51, %v489_v52 }
 0x15f   :  { %2194 = vmatprep.subr.bf16.mxu0 %v10004_v61  ;;  %v493_v61 = vld [vmem:[#allocation8 + $0x98] sm:$0xff] }
 0x160   :  { %2234 = vmatpush1.bf16.msra.mxu1 %v10123_v60  ;;  %v10062_v60 = vcombine.high %v613_v53, %v617_v56 }
 0x161   :  { %2235 = vmatprep.subr.bf16.mxu1 %v10132_v2  ;;  %v9933_v2 = vcombine.low %v485_v51, %v489_v52  ;;  %v673_v51 = vld [vmem:[#allocation8 + $0x638] sm:$0xff] }
 0x162   :  { %2195 = vmatpush1.bf16.msra.mxu0 %v10003_v4  ;;  %v9942_v4 = vcombine.high %v493_v61, %v497_v62 }
 0x163   :  { %2196 = vmatprep.subr.bf16.mxu0 %v10012_v7  ;;  %v501_v7 = vld [vmem:[#allocation8 + $0xd8] sm:$0xff] }
 0x164   :  { %2236 = vmatpush1.bf16.msra.mxu1 %v10131_v5  ;;  %v10070_v5 = vcombine.high %v621_v63, %v625_v1 }
 0x165   :  { %2237 = vmatprep.subr.bf16.mxu1 %v10140_v11  ;;  %v9941_v11 = vcombine.low %v493_v61, %v497_v62 }
 0x166   :  { %2197 = vmatpush1.bf16.msra.mxu0 %v10011_v14  ;;  %v9950_v14 = vcombine.high %v501_v7, %v505_v8 }
 0x167   :  { %2198 = vmatprep.subr.bf16.mxu0 %v10020_v16  ;;  %v509_v16 = vld [vmem:[#allocation8 + $0x118] sm:$0xff] }
 0x168   :  { %2238 = vmatpush1.bf16.msra.mxu1 %v10139_v15  ;;  %v10078_v15 = vcombine.high %v629_v9, %v633_v10  ;;  %v9958_v22 = vcombine.high %v509_v16, %v513_v18  ;;  %v9957_v27 = vcombine.low %v509_v16, %v513_v18 }
 0x169   :  { %2239 = vmatprep.subr.bf16.mxu1 %v10148_v21  ;;  %v9949_v21 = vcombine.low %v501_v7, %v505_v8 }
 0x16a   :  { %2199 = vmatpush1.bf16.msra.mxu0 %v10019_v23  ;;  %v517_v23 = vld [vmem:[#allocation8 + $0x158] sm:$0xff] }
 0x16b   :  { %2200 = vmatprep.subr.bf16.mxu0 %v10028_v25  ;;  %v645_v25 = vld [vmem:[#allocation8 + $0x558] sm:$0xff] }
 0x16c   :  { %2240 = vmatpush1.bf16.msra.mxu1 %v10147_v24  ;;  %v521_v24 = vld [vmem:[#allocation8 + $0x178] sm:$0xff]  ;;  %v10094_v31 = vcombine.high %v645_v25, %v649_v26  ;;  %v10093_v38 = vcombine.low %v645_v25, %v649_v26 }
 0x16d   :  { %2241 = vmatprep.subr.bf16.mxu1 %v10156_v30  ;;  %v9966_v30 = vcombine.high %v517_v23, %v521_v24  ;;  %v9965_v37 = vcombine.low %v517_v23, %v521_v24 }
 0x16e   :  { %2201 = vmatpush1.bf16.msra.mxu0 %v10027_v33  ;;  %v525_v33 = vld [vmem:[#allocation8 + $0x198] sm:$0xff] }
 0x16f   :  { %2202 = vmatprep.subr.bf16.mxu0 %v10036_v35  ;;  %v653_v35 = vld [vmem:[#allocation8 + $0x598] sm:$0xff] }
 0x170   :  { %2242 = vmatpush1.bf16.msra.mxu1 %v10155_v34  ;;  %v529_v34 = vld [vmem:[#allocation8 + $0x1b8] sm:$0xff]  ;;  %v10102_v40 = vcombine.high %v653_v35, %v657_v36 }
 0x171   :  { %2243 = vmatprep.subr.bf16.mxu1 %v10164_v39  ;;  %v9974_v39 = vcombine.high %v525_v33, %v529_v34  ;;  %v9973_v43 = vcombine.low %v525_v33, %v529_v34 }
 0x172   :  { %2203 = vmatpush1.bf16.msra.mxu0 %v10035_v0  ;;  %v533_v0 = vld [vmem:[#allocation8 + $0x1d8] sm:$0xff] }
 0x173   :  { %2204 = vmatprep.subr.bf16.mxu0 %v10044_v41  ;;  %v661_v41 = vld [vmem:[#allocation8 + $0x5d8] sm:$0xff] }
 0x174   :  { %2244 = vmatpush1.bf16.msra.mxu1 %v10163_v6  ;;  %v537_v6 = vld [vmem:[#allocation8 + $0x1f8] sm:$0xff]  ;;  %v10110_v47 = vcombine.high %v661_v41, %v665_v42  ;;  %v10109_v53 = vcombine.low %v661_v41, %v665_v42 }
 0x175   :  { %2245 = vmatprep.subr.bf16.mxu1 %v10172_v44  ;;  %v10101_v44 = vcombine.low %v653_v35, %v657_v36  ;;  %v9982_v46 = vcombine.high %v533_v0, %v537_v6  ;;  %v9981_v52 = vcombine.low %v533_v0, %v537_v6  ;;  %v164_v6 = vld [vmem:[#allocation3] sm:$0xff] }
 0x176   :  { %2205 = vmatpush1.bf16.msra.mxu0 %v10043_v48  ;;  %v541_v48 = vld [vmem:[#allocation8 + $0x218] sm:$0xff] }
 0x177   :  { %2256 = vmatprep.subr.bf16.mxu0 %v9926_v50  ;;  %v669_v50 = vld [vmem:[#allocation8 + $0x618] sm:$0xff] }
 0x178   :  { %2246 = vmatpush1.bf16.msra.mxu1 %v10171_v49  ;;  %v545_v49 = vld [vmem:[#allocation8 + $0x238] sm:$0xff]  ;;  %v10118_v56 = vcombine.high %v669_v50, %v673_v51  ;;  %v10117_v62 = vcombine.low %v669_v50, %v673_v51 }
 0x179   :  { %2297 = vmatprep.subr.bf16.mxu1 %v10054_v55  ;;  %2207 = vmatmul.mubr.bf16.vlgmr.msra.gmra.mrb[8].mxu0 %v12165_v29  ;;  %v9990_v55 = vcombine.high %v541_v48, %v545_v49  ;;  %v9989_v61 = vcombine.low %v541_v48, %v545_v49  ;;  %v729_v48 = vld [vmem:[#allocation8 + $0x7f8] sm:$0xff]  ;;  %v166_v49 = vcombine.high %v164_v6, %v164_v6 }
 0x17a   :  { %2257 = vmatpush1.bf16.msra.mxu0 %v9925_v57  ;;  %2288 = vmatprep.mubr.bf16.mxu0 %v12155_v12  ;;  %v10077_v12 = vcombine.low %v629_v9, %v633_v10  ;;  %v549_v57 = vld [vmem:[#allocation8 + $0x258] sm:$0xff] }
 0x17b   :  { %2248 = vmatmul.mubr.bf16.vlgmr.msra.gmra.mrb[8].mxu1 %v12169_v32  ;;  %2258 = vmatprep.subr.bf16.mxu0 %v9934_v59  ;;  %v677_v59 = vld [vmem:[#allocation8 + $0x658] sm:$0xff] }
 0x17c   :  { %2298 = vmatpush1.bf16.msra.mxu1 %v10053_v58  ;;  %2329 = vmatprep.mubr.bf16.mxu1 %v12160_v17  ;;  %v10086_v17 = vcombine.high %v637_v19, %v641_v20  ;;  %v553_v58 = vld [vmem:[#allocation8 + $0x278] sm:$0xff] }
 0x17d   :  { %2299 = vmatprep.subr.bf16.mxu1 %v10062_v60  ;;  %v681_v60 = vld [vmem:[#allocation8 + $0x678] sm:$0xff]  ;;  %v9998_v63 = vcombine.high %v549_v57, %v553_v58  ;;  %v9997_v7 = vcombine.low %v549_v57, %v553_v58  ;;  %v12184_v57 = vrot.slane %v164_v6, %v12145_v54  ;;  %v346_v58 = vld [vmem:[#allocation7 + $0x400] sm:$0xff] }
 0x17e   :  { %2259 = vmatpush1.bf16.msra.mxu0 %v9933_v2  ;;  %v10126_v1 = vcombine.high %v677_v59, %v681_v60  ;;  %v557_v2 = vld [vmem:[#allocation8 + $0x298] sm:$0xff]  ;;  %v10125_v8 = vcombine.low %v677_v59, %v681_v60  ;;  %v350_v59 = vld [vmem:[#allocation7 + $0x420] sm:$0xff]  ;;  %v12187_v60 = vrot.slane %v166_v49, %v12145_v54 }
 0x17f   :  { %2260 = vmatprep.subr.bf16.mxu0 %v9942_v4  ;;  %v685_v4 = vld [vmem:[#allocation8 + $0x698] sm:$0xff] }
 0x180   :  { %2300 = vmatpush1.bf16.msra.mxu1 %v10061_v3  ;;  %v561_v3 = vld [vmem:[#allocation8 + $0x2b8] sm:$0xff] }
 0x181   :  { %2301 = vmatprep.subr.bf16.mxu1 %v10070_v5  ;;  %v689_v5 = vld [vmem:[#allocation8 + $0x6b8] sm:$0xff]  ;;  %v10006_v9 = vcombine.high %v557_v2, %v561_v3  ;;  %v10005_v16 = vcombine.low %v557_v2, %v561_v3  ;;  %v226_v2 = vld [vmem:[#allocation7 + $0x40] sm:$0xff] }
 0x182   :  { %2261 = vmatpush1.bf16.msra.mxu0 %v9941_v11  ;;  %v10134_v10 = vcombine.high %v685_v4, %v689_v5  ;;  %v565_v11 = vld [vmem:[#allocation8 + $0x2d8] sm:$0xff]  ;;  %v10133_v18 = vcombine.low %v685_v4, %v689_v5  ;;  %v230_v3 = vld [vmem:[#allocation7 + $0x60] sm:$0xff]  ;;  %v181_v4 = vcombine.high %v12184_v57, %v12184_v57 }
 0x183   :  { %2262 = vmatprep.subr.bf16.mxu0 %v9950_v14  ;;  %v693_v14 = vld [vmem:[#allocation8 + $0x6d8] sm:$0xff]  ;;  %v354_v5 = vld [vmem:[#allocation7 + $0x440] sm:$0xff] }
 0x184   :  { %2302 = vmatpush1.bf16.msra.mxu1 %v10069_v13  ;;  %v569_v13 = vld [vmem:[#allocation8 + $0x2f8] sm:$0xff] }
 0x185   :  { %2303 = vmatprep.subr.bf16.mxu1 %v10078_v15  ;;  %v697_v15 = vld [vmem:[#allocation8 + $0x6f8] sm:$0xff]  ;;  %v10014_v19 = vcombine.high %v565_v11, %v569_v13  ;;  %v10013_v23 = vcombine.low %v565_v11, %v569_v13  ;;  %v234_v13 = vld [vmem:[#allocation7 + $0x80] sm:$0xff] }
 0x186   :  { %2263 = vmatpush1.bf16.msra.mxu0 %v9949_v21  ;;  %v10142_v20 = vcombine.high %v693_v14, %v697_v15  ;;  %v573_v21 = vld [vmem:[#allocation8 + $0x318] sm:$0xff]  ;;  %v10141_v24 = vcombine.low %v693_v14, %v697_v15  ;;  %v238_v14 = vld [vmem:[#allocation7 + $0xa0] sm:$0xff]  ;;  %v12193_v15 = vpack.c.bf16 %v181_v4, %v181_v4 }
 0x187   :  { %2264 = vmatprep.subr.bf16.mxu0 %v9958_v22  ;;  %v701_v22 = vld [vmem:[#allocation8 + $0x718] sm:$0xff] }
 0x188   :  { %2304 = vmatpush1.bf16.msra.mxu1 %v10077_v12  ;;  %v577_v12 = vld [vmem:[#allocation8 + $0x338] sm:$0xff] }
 0x189   :  { %2305 = vmatprep.subr.bf16.mxu1 %v10086_v17  ;;  %v705_v17 = vld [vmem:[#allocation8 + $0x738] sm:$0xff]  ;;  %v10022_v25 = vcombine.high %v573_v21, %v577_v12  ;;  %v10021_v33 = vcombine.low %v573_v21, %v577_v12  ;;  %v10192_v12 = vcombine.high %v234_v13, %v238_v14 }
 0x18a   :  { %2265 = vmatpush1.bf16.msra.mxu0 %v9957_v27  ;;  %v10150_v26 = vcombine.high %v701_v22, %v705_v17  ;;  %v581_v27 = vld [vmem:[#allocation8 + $0x358] sm:$0xff]  ;;  %v10149_v34 = vcombine.low %v701_v22, %v705_v17  ;;  %v242_v17 = vld [vmem:[#allocation7 + $0xc0] sm:$0xff] }
 0x18b   :  { %2266 = vmatprep.subr.bf16.mxu0 %v9966_v30  ;;  %v709_v30 = vld [vmem:[#allocation8 + $0x758] sm:$0xff] }
 0x18c   :  { %2306 = vmatpush1.bf16.msra.mxu1 %v10085_v28  ;;  %v585_v28 = vld [vmem:[#allocation8 + $0x378] sm:$0xff] }
 0x18d   :  { %2307 = vmatprep.subr.bf16.mxu1 %v10094_v31  ;;  %v713_v31 = vld [vmem:[#allocation8 + $0x778] sm:$0xff]  ;;  %v10030_v35 = vcombine.high %v581_v27, %v585_v28  ;;  %v10029_v0 = vcombine.low %v581_v27, %v585_v28  ;;  %v250_v28 = vld [vmem:[#allocation7 + $0x100] sm:$0xff] }
 0x18e   :  { %2267 = vmatpush1.bf16.msra.mxu0 %v9965_v37  ;;  %v10158_v36 = vcombine.high %v709_v30, %v713_v31  ;;  %v589_v37 = vld [vmem:[#allocation8 + $0x398] sm:$0xff]  ;;  %v10157_v41 = vcombine.low %v709_v30, %v713_v31  ;;  %v254_v30 = vld [vmem:[#allocation7 + $0x120] sm:$0xff] }
 0x18f   :  { %2268 = vmatprep.subr.bf16.mxu0 %v9974_v39  ;;  %v717_v39 = vld [vmem:[#allocation8 + $0x798] sm:$0xff]  ;;  %v378_v31 = vld [vmem:[#allocation7 + $0x500] sm:$0xff]  ;;  %v10207_v6 = vcombine.low %v250_v28, %v254_v30 }
 0x190   :  { %2308 = vmatpush1.bf16.msra.mxu1 %v10093_v38  ;;  %v593_v38 = vld [vmem:[#allocation8 + $0x3b8] sm:$0xff] }
 0x191   :  { %2309 = vmatprep.subr.bf16.mxu1 %v10102_v40  ;;  %v721_v40 = vld [vmem:[#allocation8 + $0x7b8] sm:$0xff]  ;;  %v10038_v42 = vcombine.high %v589_v37, %v593_v38  ;;  %v10037_v50 = vcombine.low %v589_v37, %v593_v38  ;;  %v258_v38 = vld [vmem:[#allocation7 + $0x140] sm:$0xff] }
 0x192   :  { %2269 = vmatpush1.bf16.msra.mxu0 %v9973_v43  ;;  %v10166_v43 = vcombine.high %v717_v39, %v721_v40  ;;  %v10165_v51 = vcombine.low %v717_v39, %v721_v40  ;;  %v262_v39 = vld [vmem:[#allocation7 + $0x160] sm:$0xff] }
 0x193   :  { %2270 = vmatprep.subr.bf16.mxu0 %v9982_v46  ;;  %v601_v46 = vld [vmem:[#allocation8 + $0x3f8] sm:$0xff]  ;;  %v386_v40 = vld [vmem:[#allocation7 + $0x540] sm:$0xff]  ;;  %v10215_v49 = vcombine.low %v258_v38, %v262_v39 }
 0x194   :  { %2310 = vmatpush1.bf16.msra.mxu1 %v10101_v44  ;;  %v597_v44 = vld [vmem:[#allocation8 + $0x3d8] sm:$0xff] }
 0x195   :  { %2311 = vmatprep.subr.bf16.mxu1 %v10110_v47  ;;  %v725_v47 = vld [vmem:[#allocation8 + $0x7d8] sm:$0xff] }
 0x196   :  { %2271 = vmatpush1.bf16.msra.mxu0 %v9981_v52  ;;  %v10046_v52 = vcombine.high %v597_v44, %v601_v46 }
 0x197   :  { %2272 = vmatprep.subr.bf16.mxu0 %v9990_v55  ;;  %v218_v55 = vld [vmem:[#allocation7] sm:$0xff] }
 0x198   :  { %2312 = vmatpush1.bf16.msra.mxu1 %v10109_v53  ;;  %v10174_v53 = vcombine.high %v725_v47, %v729_v48 }
 0x199   :  { %2313 = vmatprep.subr.bf16.mxu1 %v10118_v56  ;;  %v222_v56 = vld [vmem:[#allocation7 + $0x20] sm:$0xff] }
 0x19a   :  { %2273 = vmatpush1.bf16.msra.mxu0 %v9989_v61  ;;  %v10045_v61 = vcombine.low %v597_v44, %v601_v46  ;;  %v10175_v54 = vcombine.low %v218_v55, %v222_v56  ;;  %v266_v44 = vld [vmem:[#allocation7 + $0x180] sm:$0xff] }
 0x19b   :  { %2274 = vmatprep.subr.bf16.mxu0 %v9998_v63  ;;  %v10176_v63 = vcombine.high %v218_v55, %v222_v56  ;;  %v270_v46 = vld [vmem:[#allocation7 + $0x1a0] sm:$0xff] }
 0x19c   :  { %2314 = vmatpush1.bf16.msra.mxu1 %v10117_v62  ;;  %v10173_v62 = vcombine.low %v725_v47, %v729_v48  ;;  %v394_v47 = vld [vmem:[#allocation7 + $0x580] sm:$0xff] }
 0x19d   :  { %2315 = vmatprep.subr.bf16.mxu1 %v10126_v1  ;;  %v10304_v1 = vcombine.high %v346_v58, %v350_v59  ;;  %v398_v48 = vld [vmem:[#allocation7 + $0x5a0] sm:$0xff] }
 0x19e   :  { %2275 = vmatpush1.bf16.msra.mxu0 %v9997_v7  ;;  %v358_v7 = vld [vmem:[#allocation7 + $0x460] sm:$0xff] }
 0x19f   :  { %2276 = vmatprep.subr.bf16.mxu0 %v10006_v9  ;;  %v10303_v9 = vcombine.low %v346_v58, %v350_v59  ;;  %v10312_v11 = vcombine.high %v354_v5, %v358_v7  ;;  %v10311_v21 = vcombine.low %v354_v5, %v358_v7  ;;  %v274_v55 = vld [vmem:[#allocation7 + $0x1c0] sm:$0xff] }
 0x1a0   :  { %2316 = vmatpush1.bf16.msra.mxu1 %v10125_v8  ;;  %v182_v8 = vcombine.high %v12187_v60, %v12187_v60  ;;  %v278_v56 = vld [vmem:[#allocation7 + $0x1e0] sm:$0xff] }
 0x1a1   :  { %2317 = vmatprep.subr.bf16.mxu1 %v10134_v10  ;;  %v10184_v10 = vcombine.high %v226_v2, %v230_v3 }
 0x1a2   :  { %2277 = vmatpush1.bf16.msra.mxu0 %v10005_v16  ;;  %v362_v16 = vld [vmem:[#allocation7 + $0x480] sm:$0xff] }
 0x1a3   :  { %2278 = vmatprep.subr.bf16.mxu0 %v10014_v19  ;;  %v12196_v19 = vpack.c.bf16 %v182_v8, %v182_v8  ;;  %v10351_v8 = vcombine.low %v394_v47, %v398_v48 }
 0x1a4   :  { %2318 = vmatpush1.bf16.msra.mxu1 %v10133_v18  ;;  %v366_v18 = vld [vmem:[#allocation7 + $0x4a0] sm:$0xff] }
 0x1a5   :  { %2319 = vmatprep.subr.bf16.mxu1 %v10142_v20  ;;  %v10183_v20 = vcombine.low %v226_v2, %v230_v3  ;;  %v10320_v22 = vcombine.high %v362_v16, %v366_v18  ;;  %v10223_v3 = vcombine.low %v266_v44, %v270_v46 }
 0x1a6   :  { %2279 = vmatpush1.bf16.msra.mxu0 %v10013_v23  ;;  %v246_v23 = vld [vmem:[#allocation7 + $0xe0] sm:$0xff] }
 0x1a7   :  { %2280 = vmatprep.subr.bf16.mxu0 %v10022_v25  ;;  %v10191_v25 = vcombine.low %v234_v13, %v238_v14  ;;  %v286_v13 = vld [vmem:[#allocation7 + $0x220] sm:$0xff] }
 0x1a8   :  { %2320 = vmatpush1.bf16.msra.mxu1 %v10141_v24  ;;  %v370_v24 = vld [vmem:[#allocation7 + $0x4c0] sm:$0xff] }
 0x1a9   :  { %2321 = vmatprep.subr.bf16.mxu1 %v10150_v26  ;;  %v10200_v26 = vcombine.high %v242_v17, %v246_v23  ;;  %v410_v14 = vld [vmem:[#allocation7 + $0x600] sm:$0xff] }
 0x1aa   :  { %2281 = vmatpush1.bf16.msra.mxu0 %v10021_v33  ;;  %v382_v33 = vld [vmem:[#allocation7 + $0x520] sm:$0xff] }
 0x1ab   :  { %2282 = vmatprep.subr.bf16.mxu0 %v10030_v35  ;;  %v10336_v37 = vcombine.high %v378_v31, %v382_v33 }
 0x1ac   :  { %2322 = vmatpush1.bf16.msra.mxu1 %v10149_v34  ;;  %v10199_v34 = vcombine.low %v242_v17, %v246_v23  ;;  %v294_v17 = vld [vmem:[#allocation7 + $0x260] sm:$0xff] }
 0x1ad   :  { %2323 = vmatprep.subr.bf16.mxu1 %v10158_v36  ;;  %v10208_v36 = vcombine.high %v250_v28, %v254_v30  ;;  %v418_v23 = vld [vmem:[#allocation7 + $0x640] sm:$0xff] }
 0x1ae   :  { %2283 = vmatpush1.bf16.msra.mxu0 %v10029_v0  ;;  %v390_v0 = vld [vmem:[#allocation7 + $0x560] sm:$0xff] }
 0x1af   :  { %2284 = vmatprep.subr.bf16.mxu0 %v10038_v42  ;;  %v10216_v42 = vcombine.high %v258_v38, %v262_v39  ;;  %v302_v28 = vld [vmem:[#allocation7 + $0x2a0] sm:$0xff] }
 0x1b0   :  { %2324 = vmatpush1.bf16.msra.mxu1 %v10157_v41  ;;  %v10335_v41 = vcombine.low %v378_v31, %v382_v33  ;;  %v426_v30 = vld [vmem:[#allocation7 + $0x680] sm:$0xff] }
 0x1b1   :  { %2325 = vmatprep.subr.bf16.mxu1 %v10166_v43  ;;  %v10344_v43 = vcombine.high %v386_v40, %v390_v0  ;;  %v430_v31 = vld [vmem:[#allocation7 + $0x6a0] sm:$0xff] }
 0x1b2   :  { %2285 = vmatpush1.bf16.msra.mxu0 %v10037_v50  ;;  %v10343_v50 = vcombine.low %v386_v40, %v390_v0  ;;  %v310_v38 = vld [vmem:[#allocation7 + $0x2e0] sm:$0xff] }
 0x1b3   :  { %2286 = vmatprep.subr.bf16.mxu0 %v10046_v52  ;;  %v434_v39 = vld [vmem:[#allocation7 + $0x6c0] sm:$0xff] }
 0x1b4   :  { %2326 = vmatpush1.bf16.msra.mxu1 %v10165_v51  ;;  %v10224_v51 = vcombine.high %v266_v44, %v270_v46  ;;  %v438_v40 = vld [vmem:[#allocation7 + $0x6e0] sm:$0xff] }
 0x1b5   :  { %2327 = vmatprep.subr.bf16.mxu1 %v10174_v53  ;;  %v10352_v53 = vcombine.high %v394_v47, %v398_v48  ;;  %v318_v44 = vld [vmem:[#allocation7 + $0x320] sm:$0xff] }
 0x1b6   :  { %2287 = vmatpush1.bf16.msra.mxu0 %v10045_v61  ;;  %v402_v61 = vld [vmem:[#allocation7 + $0x5c0] sm:$0xff] }
 0x1b7   :  { %3618 = vmatprep.subr.bf16.mxu0 %v10176_v63  ;;  %v442_v46 = vld [vmem:[#allocation7 + $0x700] sm:$0xff] }
 0x1b8   :  { %2328 = vmatpush1.bf16.msra.mxu1 %v10173_v62  ;;  %v406_v62 = vld [vmem:[#allocation7 + $0x5e0] sm:$0xff] }
 0x1b9   :  { %3659 = vmatprep.subr.bf16.mxu1 %v10304_v1  ;;  %2289 = vmatmul.mubr.bf16.vlgmr.msra.gmra.mrb[12].mxu0 %v12165_v29  ;;  %v374_v29 = vld [vmem:[#allocation7 + $0x4e0] sm:$0xff] }
 0x1ba   :  { %3619 = vmatpush1.bf16.msra.mxu0 %v10175_v54  ;;  %3650 = vmatprep.mubr.bf16.mxu0 %v12193_v15  ;;  %v10328_v27 = vcombine.high %v370_v24, %v374_v29  ;;  %v10327_v35 = vcombine.low %v370_v24, %v374_v29  ;;  %v10232_v54 = vcombine.high %v274_v55, %v278_v56  ;;  %v422_v24 = vld [vmem:[#allocation7 + $0x660] sm:$0xff] }
 0x1bb   :  { %2330 = vmatmul.mubr.bf16.vlgmr.msra.gmra.mrb[12].mxu1 %v12169_v32  ;;  %3620 = vmatprep.subr.bf16.mxu0 %v10184_v10  ;;  %v10319_v32 = vcombine.low %v362_v16, %v366_v18  ;;  %v10360_v10 = vcombine.high %v402_v61, %v406_v62  ;;  %v414_v16 = vld [vmem:[#allocation7 + $0x620] sm:$0xff]  ;;  %v10231_v18 = vcombine.low %v274_v55, %v278_v56 }
 0x1bc   :  { %3660 = vmatpush1.bf16.msra.mxu1 %v10303_v9  ;;  %3691 = vmatprep.mubr.bf16.mxu1 %v12196_v19  ;;  %v446_v47 = vld [vmem:[#allocation7 + $0x720] sm:$0xff] }
 0x1bd   :  { %3661 = vmatprep.subr.bf16.mxu1 %v10312_v11  ;;  %v282_v11 = vld [vmem:[#allocation7 + $0x200] sm:$0xff] }
 0x1be   :  { %3621 = vmatpush1.bf16.msra.mxu0 %v10183_v20  ;;  %v10359_v20 = vcombine.low %v402_v61, %v406_v62  ;;  %v10239_v29 = vcombine.low %v282_v11, %v286_v13  ;;  %v450_v55 = vld [vmem:[#allocation7 + $0x740] sm:$0xff] }
 0x1bf   :  { %3622 = vmatprep.subr.bf16.mxu0 %v10192_v12  ;;  %v10368_v12 = vcombine.high %v410_v14, %v414_v16  ;;  %v454_v56 = vld [vmem:[#allocation7 + $0x760] sm:$0xff] }
 0x1c0   :  { %3662 = vmatpush1.bf16.msra.mxu1 %v10311_v21  ;;  %v10240_v21 = vcombine.high %v282_v11, %v286_v13  ;;  %v10408_v62 = vcombine.high %v450_v55, %v454_v56  ;;  %v342_v11 = vld [vmem:[#allocation7 + $0x3e0] sm:$0xff] }
 0x1c1   :  { %3663 = vmatprep.subr.bf16.mxu1 %v10320_v22  ;;  %v290_v22 = vld [vmem:[#allocation7 + $0x240] sm:$0xff] }
 0x1c2   :  { %3623 = vmatpush1.bf16.msra.mxu0 %v10191_v25  ;;  %v10367_v25 = vcombine.low %v410_v14, %v414_v16  ;;  %v10247_v33 = vcombine.low %v290_v22, %v294_v17  ;;  %v466_v13 = vld [vmem:[#allocation7 + $0x7c0] sm:$0xff] }
 0x1c3   :  { %3624 = vmatprep.subr.bf16.mxu0 %v10200_v26  ;;  %v10376_v26 = vcombine.high %v418_v23, %v422_v24  ;;  %v470_v14 = vld [vmem:[#allocation7 + $0x7e0] sm:$0xff] }
 0x1c4   :  { %3664 = vmatpush1.bf16.msra.mxu1 %v10319_v32  ;;  %v10248_v32 = vcombine.high %v290_v22, %v294_v17  ;;  %v223_v22 = vld [vmem:[#allocation7 + $0x28] sm:$0xff] }
 0x1c5   :  { %3665 = vmatprep.subr.bf16.mxu1 %v10328_v27  ;;  %v298_v27 = vld [vmem:[#allocation7 + $0x280] sm:$0xff]  ;;  %v347_v17 = vld [vmem:[#allocation7 + $0x408] sm:$0xff] }
 0x1c6   :  { %3625 = vmatpush1.bf16.msra.mxu0 %v10199_v34  ;;  %v10375_v34 = vcombine.low %v418_v23, %v422_v24  ;;  %v10255_v0 = vcombine.low %v298_v27, %v302_v28  ;;  %v351_v23 = vld [vmem:[#allocation7 + $0x428] sm:$0xff] }
 0x1c7   :  { %3626 = vmatprep.subr.bf16.mxu0 %v10208_v36  ;;  %v10384_v36 = vcombine.high %v426_v30, %v430_v31 }
 0x1c8   :  { %3666 = vmatpush1.bf16.msra.mxu1 %v10327_v35  ;;  %v10256_v35 = vcombine.high %v298_v27, %v302_v28  ;;  %v231_v27 = vld [vmem:[#allocation7 + $0x68] sm:$0xff]  ;;  %v12207_v28 = vpack.c.bf16 %v12184_v57, %v12184_v57 }
 0x1c9   :  { %3667 = vmatprep.subr.bf16.mxu1 %v10336_v37  ;;  %v306_v37 = vld [vmem:[#allocation7 + $0x2c0] sm:$0xff]  ;;  %v363_v57 = vld [vmem:[#allocation7 + $0x488] sm:$0xff] }
 0x1ca   :  { %3627 = vmatpush1.bf16.msra.mxu0 %v10207_v6  ;;  %v10383_v6 = vcombine.low %v426_v30, %v430_v31  ;;  %v10263_v48 = vcombine.low %v306_v37, %v310_v38  ;;  %v355_v30 = vld [vmem:[#allocation7 + $0x448] sm:$0xff] }
 0x1cb   :  { %3628 = vmatprep.subr.bf16.mxu0 %v10216_v42  ;;  %v10392_v42 = vcombine.high %v434_v39, %v438_v40  ;;  %v359_v31 = vld [vmem:[#allocation7 + $0x468] sm:$0xff] }
 0x1cc   :  { %3668 = vmatpush1.bf16.msra.mxu1 %v10335_v41  ;;  %v2044_v52 = vpop.f32.mrb[0].mxu0  ;;  %v10264_v41 = vcombine.high %v306_v37, %v310_v38  ;;  %v10314_v37 = vcombine.high %v355_v30, %v359_v31  ;;  %v235_v38 = vld [vmem:[#allocation7 + $0x88] sm:$0xff] }
 0x1cd   :  { %3669 = vmatprep.subr.bf16.mxu1 %v10344_v43  ;;  %v2046_v59 = vpop.f32.mrb[1].mxu0  ;;  %v314_v43 = vld [vmem:[#allocation7 + $0x300] sm:$0xff] }
 0x1ce   :  { %v2085_v58 = vpop.f32.mrb[0].mxu1  ;;  %v2048_v2 = vpop.f32.mrb[2].mxu0  ;;  %3629 = vmatpush1.bf16.msra.mxu0 %v10215_v49  ;;  %v10391_v49 = vcombine.low %v434_v39, %v438_v40  ;;  %v239_v39 = vld [vmem:[#allocation7 + $0xa8] sm:$0xff] }
 0x1cf   :  { %v12201_v63 = vadd.f32 %v2085_v58, %v2044_v52  ;;  %v2087_v1 = vpop.f32.mrb[1].mxu1  ;;  %v2049_v7 = vpop.f32.mrb[3].mxu0  ;;  %3630 = vmatprep.subr.bf16.mxu0 %v10224_v51  ;;  %v10400_v51 = vcombine.high %v442_v46, %v446_v47  ;;  %v322_v52 = vld [vmem:[#allocation7 + $0x340] sm:$0xff]  ;;  %v10271_v58 = vcombine.low %v314_v43, %v318_v44  ;;  %v367_v40 = vld [vmem:[#allocation7 + $0x4a8] sm:$0xff] }
 0x1d0   :  { %v12203_v4 = vadd.f32 %v2087_v1, %v2046_v59  ;;  %v2089_v5 = vpop.f32.mrb[2].mxu1  ;;  %3670 = vmatpush1.bf16.msra.mxu1 %v10343_v50  ;;  %v10272_v50 = vcombine.high %v314_v43, %v318_v44  ;;  %v10399_v59 = vcombine.low %v442_v46, %v446_v47  ;;  %v330_v1 = vld [vmem:[#allocation7 + $0x380] sm:$0xff]  ;;  %v247_v43 = vld [vmem:[#allocation7 + $0xe8] sm:$0xff]  ;;  %v10193_v47 = vcombine.low %v235_v38, %v239_v39 }
 0x1d1   :  { %v2090_v9 = vpop.f32.mrb[3].mxu1  ;;  %3671 = vmatprep.subr.bf16.mxu1 %v10352_v53  ;;  %v326_v53 = vld [vmem:[#allocation7 + $0x360] sm:$0xff]  ;;  %v371_v44 = vld [vmem:[#allocation7 + $0x4c8] sm:$0xff] }
 0x1d2   :  { %3631 = vmatpush1.bf16.msra.mxu0 %v10223_v3  ;;  %v10280_v61 = vcombine.high %v322_v52, %v326_v53  ;;  %v334_v2 = vld [vmem:[#allocation7 + $0x3a0] sm:$0xff]  ;;  %v10279_v7 = vcombine.low %v322_v52, %v326_v53  ;;  %v375_v46 = vld [vmem:[#allocation7 + $0x4e8] sm:$0xff] }
 0x1d3   :  { %3632 = vmatprep.subr.bf16.mxu0 %v10232_v54  ;;  %v458_v3 = vld [vmem:[#allocation7 + $0x780] sm:$0xff]  ;;  %v10288_v54 = vcombine.high %v330_v1, %v334_v2  ;;  %v10287_v16 = vcombine.low %v330_v1, %v334_v2  ;;  %v255_v52 = vld [vmem:[#allocation7 + $0x128] sm:$0xff] }
 0x1d4   :  { %3672 = vmatpush1.bf16.msra.mxu1 %v10351_v8  ;;  %v462_v5 = vld [vmem:[#allocation7 + $0x7a0] sm:$0xff]  ;;  %v10407_v8 = vcombine.low %v450_v55, %v454_v56  ;;  %v379_v53 = vld [vmem:[#allocation7 + $0x508] sm:$0xff] }
 0x1d5   :  { %3673 = vmatprep.subr.bf16.mxu1 %v10360_v10  ;;  %v10416_v9 = vcombine.high %v458_v3, %v462_v5  ;;  %v338_v10 = vld [vmem:[#allocation7 + $0x3c0] sm:$0xff]  ;;  %v383_v55 = vld [vmem:[#allocation7 + $0x528] sm:$0xff] }
 0x1d6   :  { %3633 = vmatpush1.bf16.msra.mxu0 %v10231_v18  ;;  %v10415_v18 = vcombine.low %v458_v3, %v462_v5  ;;  %v10295_v24 = vcombine.low %v338_v10, %v342_v11  ;;  %v263_v1 = vld [vmem:[#allocation7 + $0x168] sm:$0xff] }
 0x1d7   :  { %3634 = vmatprep.subr.bf16.mxu0 %v10240_v21  ;;  %v10424_v21 = vcombine.high %v466_v13, %v470_v14  ;;  %v387_v2 = vld [vmem:[#allocation7 + $0x548] sm:$0xff] }
 0x1d8   :  { %3674 = vmatpush1.bf16.msra.mxu1 %v10359_v20  ;;  %v10296_v20 = vcombine.high %v338_v10, %v342_v11  ;;  %v391_v3 = vld [vmem:[#allocation7 + $0x568] sm:$0xff] }
 0x1d9   :  { %3675 = vmatprep.subr.bf16.mxu1 %v10368_v12  ;;  %v219_v12 = vld [vmem:[#allocation7 + $0x8] sm:$0xff] }
 0x1da   :  { %3635 = vmatpush1.bf16.msra.mxu0 %v10239_v29  ;;  %v10423_v29 = vcombine.low %v466_v13, %v470_v14  ;;  %v271_v10 = vld [vmem:[#allocation7 + $0x1a8] sm:$0xff] }
 0x1db   :  { %3636 = vmatprep.subr.bf16.mxu0 %v10248_v32  ;;  %v10306_v32 = vcombine.high %v347_v17, %v351_v23  ;;  %v395_v11 = vld [vmem:[#allocation7 + $0x588] sm:$0xff] }
 0x1dc   :  { %3676 = vmatpush1.bf16.msra.mxu1 %v10367_v25  ;;  %v10178_v25 = vcombine.high %v219_v12, %v223_v22  ;;  %v399_v13 = vld [vmem:[#allocation7 + $0x5a8] sm:$0xff] }
 0x1dd   :  { %3677 = vmatprep.subr.bf16.mxu1 %v10376_v26  ;;  %v227_v26 = vld [vmem:[#allocation7 + $0x48] sm:$0xff] }
 0x1de   :  { %3637 = vmatpush1.bf16.msra.mxu0 %v10247_v33  ;;  %v12211_v33 = vpack.c.bf16 %v12187_v60, %v12187_v60  ;;  %v10313_v60 = vcombine.low %v355_v30, %v359_v31 }
 0x1df   :  { %3638 = vmatprep.subr.bf16.mxu0 %v10256_v35  ;;  %v10305_v35 = vcombine.low %v347_v17, %v351_v23 }
 0x1e0   :  { %3678 = vmatpush1.bf16.msra.mxu1 %v10375_v34  ;;  %v10177_v34 = vcombine.low %v219_v12, %v223_v22  ;;  %v275_v12 = vld [vmem:[#allocation7 + $0x1c8] sm:$0xff] }
 0x1e1   :  { %3679 = vmatprep.subr.bf16.mxu1 %v10384_v36  ;;  %v10186_v36 = vcombine.high %v227_v26, %v231_v27  ;;  %v279_v22 = vld [vmem:[#allocation7 + $0x1e8] sm:$0xff] }
 0x1e2   :  { %3639 = vmatpush1.bf16.msra.mxu0 %v10255_v0  ;;  %v10185_v0 = vcombine.low %v227_v26, %v231_v27 }
 0x1e3   :  { %3640 = vmatprep.subr.bf16.mxu0 %v10264_v41  ;;  %v10322_v41 = vcombine.high %v363_v57, %v367_v40 }
 0x1e4   :  { %3680 = vmatpush1.bf16.msra.mxu1 %v10383_v6  ;;  %v10194_v6 = vcombine.high %v235_v38, %v239_v39  ;;  %v283_v39 = vld [vmem:[#allocation7 + $0x208] sm:$0xff] }
 0x1e5   :  { %3681 = vmatprep.subr.bf16.mxu1 %v10392_v42  ;;  %v243_v42 = vld [vmem:[#allocation7 + $0xc8] sm:$0xff] }
 0x1e6   :  { %3641 = vmatpush1.bf16.msra.mxu0 %v10263_v48  ;;  %v10321_v48 = vcombine.low %v363_v57, %v367_v40  ;;  %v10201_v56 = vcombine.low %v243_v42, %v247_v43  ;;  %v287_v57 = vld [vmem:[#allocation7 + $0x228] sm:$0xff] }
 0x1e7   :  { %3642 = vmatprep.subr.bf16.mxu0 %v10272_v50  ;;  %v10330_v50 = vcombine.high %v371_v44, %v375_v46  ;;  %v411_v40 = vld [vmem:[#allocation7 + $0x608] sm:$0xff] }
 0x1e8   :  { %3682 = vmatpush1.bf16.msra.mxu1 %v10391_v49  ;;  %v10202_v49 = vcombine.high %v243_v42, %v247_v43  ;;  %v291_v43 = vld [vmem:[#allocation7 + $0x248] sm:$0xff] }
 0x1e9   :  { %3683 = vmatprep.subr.bf16.mxu1 %v10400_v51  ;;  %v251_v51 = vld [vmem:[#allocation7 + $0x108] sm:$0xff] }
 0x1ea   :  { %3643 = vmatpush1.bf16.msra.mxu0 %v10271_v58  ;;  %v10329_v58 = vcombine.low %v371_v44, %v375_v46  ;;  %v10209_v5 = vcombine.low %v251_v51, %v255_v52  ;;  %v295_v44 = vld [vmem:[#allocation7 + $0x268] sm:$0xff] }
 0x1eb   :  { %3644 = vmatprep.subr.bf16.mxu0 %v10280_v61  ;;  %v10338_v61 = vcombine.high %v379_v53, %v383_v55  ;;  %v419_v46 = vld [vmem:[#allocation7 + $0x648] sm:$0xff] }
 0x1ec   :  { %3684 = vmatpush1.bf16.msra.mxu1 %v10399_v59  ;;  %v10210_v59 = vcombine.high %v251_v51, %v255_v52  ;;  %v299_v52 = vld [vmem:[#allocation7 + $0x288] sm:$0xff] }
 0x1ed   :  { %3685 = vmatprep.subr.bf16.mxu1 %v10408_v62  ;;  %v259_v62 = vld [vmem:[#allocation7 + $0x148] sm:$0xff] }
 0x1ee   :  { %3645 = vmatpush1.bf16.msra.mxu0 %v10279_v7  ;;  %v10337_v7 = vcombine.low %v379_v53, %v383_v55  ;;  %v10217_v14 = vcombine.low %v259_v62, %v263_v1  ;;  %v303_v53 = vld [vmem:[#allocation7 + $0x2a8] sm:$0xff] }
 0x1ef   :  { %3646 = vmatprep.subr.bf16.mxu0 %v10288_v54  ;;  %v10346_v54 = vcombine.high %v387_v2, %v391_v3  ;;  %v427_v55 = vld [vmem:[#allocation7 + $0x688] sm:$0xff] }
 0x1f0   :  { %3686 = vmatpush1.bf16.msra.mxu1 %v10407_v8  ;;  %v10218_v8 = vcombine.high %v259_v62, %v263_v1  ;;  %v307_v1 = vld [vmem:[#allocation7 + $0x2c8] sm:$0xff] }
 0x1f1   :  { %3687 = vmatprep.subr.bf16.mxu1 %v10416_v9  ;;  %v267_v9 = vld [vmem:[#allocation7 + $0x188] sm:$0xff] }
 0x1f2   :  { %3647 = vmatpush1.bf16.msra.mxu0 %v10287_v16  ;;  %v10345_v16 = vcombine.low %v387_v2, %v391_v3  ;;  %v10225_v27 = vcombine.low %v267_v9, %v271_v10  ;;  %v311_v2 = vld [vmem:[#allocation7 + $0x2e8] sm:$0xff] }
 0x1f3   :  { %3648 = vmatprep.subr.bf16.mxu0 %v10296_v20  ;;  %v435_v3 = vld [vmem:[#allocation7 + $0x6c8] sm:$0xff] }
 0x1f4   :  { %3688 = vmatpush1.bf16.msra.mxu1 %v10415_v18  ;;  %v10226_v18 = vcombine.high %v267_v9, %v271_v10  ;;  %v315_v10 = vld [vmem:[#allocation7 + $0x308] sm:$0xff] }
 0x1f5   :  { %3689 = vmatprep.subr.bf16.mxu1 %v10424_v21  ;;  %v10354_v21 = vcombine.high %v395_v11, %v399_v13 }
 0x1f6   :  { %3649 = vmatpush1.bf16.msra.mxu0 %v10295_v24  ;;  %v403_v24 = vld [vmem:[#allocation7 + $0x5c8] sm:$0xff] }
 0x1f7   :  { %3700 = vmatprep.subr.bf16.mxu0 %v10178_v25 }
 0x1f8   :  { %3690 = vmatpush1.bf16.msra.mxu1 %v10423_v29  ;;  %v407_v29 = vld [vmem:[#allocation7 + $0x5e8] sm:$0xff] }
 0x1f9   :  { %3741 = vmatprep.subr.bf16.mxu1 %v10306_v32  ;;  %3651 = vmatmul.mubr.bf16.vlgmr.msra.gmra.mrb[16].mxu0 %v12207_v28  ;;  %v10362_v38 = vcombine.high %v403_v24, %v407_v29 }
 0x1fa   :  { %3701 = vmatpush1.bf16.msra.mxu0 %v10177_v34  ;;  %3732 = vmatprep.mubr.bf16.mxu0 %v12193_v15 }
 0x1fb   :  { %3692 = vmatmul.mubr.bf16.vlgmr.msra.gmra.mrb[16].mxu1 %v12211_v33  ;;  %3702 = vmatprep.subr.bf16.mxu0 %v10186_v36  ;;  %v10234_v36 = vcombine.high %v275_v12, %v279_v22 }
 0x1fc   :  { %3742 = vmatpush1.bf16.msra.mxu1 %v10305_v35  ;;  %3773 = vmatprep.mubr.bf16.mxu1 %v12196_v19  ;;  %v10353_v35 = vcombine.low %v395_v11, %v399_v13  ;;  %v319_v11 = vld [vmem:[#allocation7 + $0x328] sm:$0xff] }
 0x1fd   :  { %3743 = vmatprep.subr.bf16.mxu1 %v10314_v37  ;;  %v443_v13 = vld [vmem:[#allocation7 + $0x708] sm:$0xff] }
 0x1fe   :  { %3703 = vmatpush1.bf16.msra.mxu0 %v10185_v0  ;;  %v415_v0 = vld [vmem:[#allocation7 + $0x628] sm:$0xff] }
 0x1ff   :  { %3704 = vmatprep.subr.bf16.mxu0 %v10194_v6  ;;  %v10361_v6 = vcombine.low %v403_v24, %v407_v29  ;;  %v10370_v42 = vcombine.high %v411_v40, %v415_v0  ;;  %v10273_v24 = vcombine.low %v315_v10, %v319_v11 }
 0x200   :  { %3744 = vmatpush1.bf16.msra.mxu1 %v10313_v60  ;;  %v10233_v60 = vcombine.low %v275_v12, %v279_v22  ;;  %v323_v12 = vld [vmem:[#allocation7 + $0x348] sm:$0xff] }
 0x201   :  { %3745 = vmatprep.subr.bf16.mxu1 %v10322_v41  ;;  %v10242_v41 = vcombine.high %v283_v39, %v287_v57  ;;  %v327_v22 = vld [vmem:[#allocation7 + $0x368] sm:$0xff] }
 0x202   :  { %3705 = vmatpush1.bf16.msra.mxu0 %v10193_v47  ;;  %v423_v47 = vld [vmem:[#allocation7 + $0x668] sm:$0xff] }
 0x203   :  { %3706 = vmatprep.subr.bf16.mxu0 %v10202_v49  ;;  %v10369_v49 = vcombine.low %v411_v40, %v415_v0  ;;  %v10378_v51 = vcombine.high %v419_v46, %v423_v47  ;;  %v343_v40 = vld [vmem:[#allocation7 + $0x3e8] sm:$0xff] }
 0x204   :  { %3746 = vmatpush1.bf16.msra.mxu1 %v10321_v48  ;;  %v10241_v48 = vcombine.low %v283_v39, %v287_v57  ;;  %v339_v57 = vld [vmem:[#allocation7 + $0x3c8] sm:$0xff] }
 0x205   :  { %3747 = vmatprep.subr.bf16.mxu1 %v10330_v50  ;;  %v10250_v50 = vcombine.high %v291_v43, %v295_v44  ;;  %v467_v0 = vld [vmem:[#allocation7 + $0x7c8] sm:$0xff] }
 0x206   :  { %3707 = vmatpush1.bf16.msra.mxu0 %v10201_v56  ;;  %v431_v56 = vld [vmem:[#allocation7 + $0x6a8] sm:$0xff] }
 0x207   :  { %3708 = vmatprep.subr.bf16.mxu0 %v10210_v59  ;;  %v10377_v59 = vcombine.low %v419_v46, %v423_v47  ;;  %v10386_v62 = vcombine.high %v427_v55, %v431_v56  ;;  %v224_v46 = vld [vmem:[#allocation7 + $0x30] sm:$0xff] }
 0x208   :  { %3748 = vmatpush1.bf16.msra.mxu1 %v10329_v58  ;;  %v10249_v58 = vcombine.low %v291_v43, %v295_v44  ;;  %v220_v44 = vld [vmem:[#allocation7 + $0x10] sm:$0xff] }
 0x209   :  { %3749 = vmatprep.subr.bf16.mxu1 %v10338_v61  ;;  %v10258_v61 = vcombine.high %v299_v52, %v303_v53  ;;  %v348_v47 = vld [vmem:[#allocation7 + $0x410] sm:$0xff] }
 0x20a   :  { %3709 = vmatpush1.bf16.msra.mxu0 %v10209_v5  ;;  %v439_v5 = vld [vmem:[#allocation7 + $0x6e8] sm:$0xff] }
 0x20b   :  { %3710 = vmatprep.subr.bf16.mxu0 %v10218_v8  ;;  %v10385_v8 = vcombine.low %v427_v55, %v431_v56  ;;  %v10394_v9 = vcombine.high %v435_v3, %v439_v5  ;;  %v232_v55 = vld [vmem:[#allocation7 + $0x70] sm:$0xff] }
 0x20c   :  { %3750 = vmatpush1.bf16.msra.mxu1 %v10337_v7  ;;  %v2126_v20 = vpop.f32.mrb[4].mxu0  ;;  %v10257_v7 = vcombine.low %v299_v52, %v303_v53  ;;  %v228_v53 = vld [vmem:[#allocation7 + $0x50] sm:$0xff] }
 0x20d   :  { %3751 = vmatprep.subr.bf16.mxu1 %v10346_v54  ;;  %v2128_v23 = vpop.f32.mrb[5].mxu0  ;;  %v10266_v54 = vcombine.high %v307_v1, %v311_v2  ;;  %v356_v56 = vld [vmem:[#allocation7 + $0x450] sm:$0xff] }
 0x20e   :  { %v2167_v17 = vpop.f32.mrb[4].mxu1  ;;  %v2130_v26 = vpop.f32.mrb[6].mxu0  ;;  %3711 = vmatpush1.bf16.msra.mxu0 %v10217_v14  ;;  %v447_v14 = vld [vmem:[#allocation7 + $0x728] sm:$0xff] }
 0x20f   :  { %v12217_v25 = vadd.f32 %v2167_v17, %v2126_v20  ;;  %v2169_v32 = vpop.f32.mrb[5].mxu1  ;;  %v2131_v34 = vpop.f32.mrb[7].mxu0  ;;  %3712 = vmatprep.subr.bf16.mxu0 %v10226_v18  ;;  %v10393_v18 = vcombine.low %v435_v3, %v439_v5  ;;  %v10274_v20 = vcombine.high %v315_v10, %v319_v11  ;;  %v451_v17 = vld [vmem:[#allocation7 + $0x748] sm:$0xff]  ;;  %v10401_v29 = vcombine.low %v443_v13, %v447_v14  ;;  %v240_v3 = vld [vmem:[#allocation7 + $0xb0] sm:$0xff] }
 0x210   :  { %v12219_v30 = vadd.f32 %v2169_v32, %v2128_v23  ;;  %v2171_v31 = vpop.f32.mrb[6].mxu1  ;;  %3752 = vmatpush1.bf16.msra.mxu1 %v10345_v16  ;;  %v10265_v16 = vcombine.low %v307_v1, %v311_v2  ;;  %v455_v23 = vld [vmem:[#allocation7 + $0x768] sm:$0xff]  ;;  %v10282_v32 = vcombine.high %v323_v12, %v327_v22  ;;  %v236_v2 = vld [vmem:[#allocation7 + $0x90] sm:$0xff] }
 0x211   :  { %v2172_v37 = vpop.f32.mrb[7].mxu1  ;;  %3753 = vmatprep.subr.bf16.mxu1 %v10354_v21  ;;  %v10402_v21 = vcombine.high %v443_v13, %v447_v14  ;;  %v10410_v26 = vcombine.high %v451_v17, %v455_v23  ;;  %v335_v31 = vld [vmem:[#allocation7 + $0x3a8] sm:$0xff]  ;;  %v364_v5 = vld [vmem:[#allocation7 + $0x490] sm:$0xff] }
 0x212   :  { %3713 = vmatpush1.bf16.msra.mxu0 %v10225_v27  ;;  %v331_v27 = vld [vmem:[#allocation7 + $0x388] sm:$0xff]  ;;  %v10409_v37 = vcombine.low %v451_v17, %v455_v23  ;;  %v244_v11 = vld [vmem:[#allocation7 + $0xd0] sm:$0xff] }
 0x213   :  { %3714 = vmatprep.subr.bf16.mxu0 %v10234_v36  ;;  %v459_v34 = vld [vmem:[#allocation7 + $0x788] sm:$0xff]  ;;  %v10281_v36 = vcombine.low %v323_v12, %v327_v22  ;;  %v248_v13 = vld [vmem:[#allocation7 + $0xf0] sm:$0xff] }
 0x214   :  { %3754 = vmatpush1.bf16.msra.mxu1 %v10353_v35  ;;  %v463_v35 = vld [vmem:[#allocation7 + $0x7a8] sm:$0xff]  ;;  %v372_v14 = vld [vmem:[#allocation7 + $0x4d0] sm:$0xff] }
 0x215   :  { %3755 = vmatprep.subr.bf16.mxu1 %v10362_v38  ;;  %v10290_v38 = vcombine.high %v331_v27, %v335_v31  ;;  %v10418_v39 = vcombine.high %v459_v34, %v463_v35  ;;  %v252_v22 = vld [vmem:[#allocation7 + $0x110] sm:$0xff] }
 0x216   :  { %3715 = vmatpush1.bf16.msra.mxu0 %v10233_v60  ;;  %v471_v60 = vld [vmem:[#allocation7 + $0x7e8] sm:$0xff]  ;;  %v256_v17 = vld [vmem:[#allocation7 + $0x130] sm:$0xff] }
 0x217   :  { %3716 = vmatprep.subr.bf16.mxu0 %v10242_v41  ;;  %v10417_v41 = vcombine.low %v459_v34, %v463_v35  ;;  %v10426_v43 = vcombine.high %v467_v0, %v471_v60  ;;  %v380_v23 = vld [vmem:[#allocation7 + $0x510] sm:$0xff] }
 0x218   :  { %3756 = vmatpush1.bf16.msra.mxu1 %v10361_v6  ;;  %v10289_v6 = vcombine.low %v331_v27, %v335_v31  ;;  %v260_v31 = vld [vmem:[#allocation7 + $0x150] sm:$0xff] }
 0x219   :  { %3757 = vmatprep.subr.bf16.mxu1 %v10370_v42  ;;  %v10298_v42 = vcombine.high %v339_v57, %v343_v40  ;;  %v264_v34 = vld [vmem:[#allocation7 + $0x170] sm:$0xff] }
 0x21a   :  { %3717 = vmatpush1.bf16.msra.mxu0 %v10241_v48  ;;  %v352_v48 = vld [vmem:[#allocation7 + $0x430] sm:$0xff] }
 0x21b   :  { %3718 = vmatprep.subr.bf16.mxu0 %v10250_v50  ;;  %v10425_v50 = vcombine.low %v467_v0, %v471_v60  ;;  %v10308_v52 = vcombine.high %v348_v47, %v352_v48  ;;  %v388_v35 = vld [vmem:[#allocation7 + $0x550] sm:$0xff] }
 0x21c   :  { %3758 = vmatpush1.bf16.msra.mxu1 %v10369_v49  ;;  %v10297_v49 = vcombine.low %v339_v57, %v343_v40  ;;  %v268_v40 = vld [vmem:[#allocation7 + $0x190] sm:$0xff] }
 0x21d   :  { %3759 = vmatprep.subr.bf16.mxu1 %v10378_v51  ;;  %v10180_v51 = vcombine.high %v220_v44, %v224_v46  ;;  %v272_v0 = vld [vmem:[#allocation7 + $0x1b0] sm:$0xff] }
 0x21e   :  { %3719 = vmatpush1.bf16.msra.mxu0 %v10249_v58  ;;  %v360_v58 = vld [vmem:[#allocation7 + $0x470] sm:$0xff] }
 0x21f   :  { %3720 = vmatprep.subr.bf16.mxu0 %v10258_v61  ;;  %v10307_v61 = vcombine.low %v348_v47, %v352_v48  ;;  %v10316_v1 = vcombine.high %v356_v56, %v360_v58  ;;  %v396_v60 = vld [vmem:[#allocation7 + $0x590] sm:$0xff] }
 0x220   :  { %3760 = vmatpush1.bf16.msra.mxu1 %v10377_v59  ;;  %v10179_v59 = vcombine.low %v220_v44, %v224_v46  ;;  %v276_v47 = vld [vmem:[#allocation7 + $0x1d0] sm:$0xff] }
 0x221   :  { %3761 = vmatprep.subr.bf16.mxu1 %v10386_v62  ;;  %v10188_v62 = vcombine.high %v228_v53, %v232_v55  ;;  %v280_v48 = vld [vmem:[#allocation7 + $0x1f0] sm:$0xff] }
 0x222   :  { %3721 = vmatpush1.bf16.msra.mxu0 %v10257_v7  ;;  %v368_v7 = vld [vmem:[#allocation7 + $0x4b0] sm:$0xff] }
 0x223   :  { %3722 = vmatprep.subr.bf16.mxu0 %v10266_v54  ;;  %v10315_v54 = vcombine.low %v356_v56, %v360_v58  ;;  %v10324_v10 = vcombine.high %v364_v5, %v368_v7  ;;  %v10227_v58 = vcombine.low %v268_v40, %v272_v0 }
 0x224   :  { %3762 = vmatpush1.bf16.msra.mxu1 %v10385_v8  ;;  %v10187_v8 = vcombine.low %v228_v53, %v232_v55 }
 0x225   :  { %3763 = vmatprep.subr.bf16.mxu1 %v10394_v9  ;;  %v10196_v9 = vcombine.high %v236_v2, %v240_v3 }
 0x226   :  { %3723 = vmatpush1.bf16.msra.mxu0 %v10265_v16  ;;  %v376_v16 = vld [vmem:[#allocation7 + $0x4f0] sm:$0xff] }
 0x227   :  { %3724 = vmatprep.subr.bf16.mxu0 %v10274_v20  ;;  %v10323_v20 = vcombine.low %v364_v5, %v368_v7  ;;  %v10332_v12 = vcombine.high %v372_v14, %v376_v16  ;;  %v284_v7 = vld [vmem:[#allocation7 + $0x210] sm:$0xff] }
 0x228   :  { %3764 = vmatpush1.bf16.msra.mxu1 %v10393_v18  ;;  %v10195_v18 = vcombine.low %v236_v2, %v240_v3  ;;  %v10236_v2 = vcombine.high %v276_v47, %v280_v48 }
 0x229   :  { %3765 = vmatprep.subr.bf16.mxu1 %v10402_v21  ;;  %v10204_v21 = vcombine.high %v244_v11, %v248_v13 }
 0x22a   :  { %3725 = vmatpush1.bf16.msra.mxu0 %v10273_v24  ;;  %v384_v24 = vld [vmem:[#allocation7 + $0x530] sm:$0xff] }
 0x22b   :  { %3726 = vmatprep.subr.bf16.mxu0 %v10282_v32  ;;  %v10331_v32 = vcombine.low %v372_v14, %v376_v16  ;;  %v10340_v27 = vcombine.high %v380_v23, %v384_v24  ;;  %v292_v16 = vld [vmem:[#allocation7 + $0x250] sm:$0xff] }
 0x22c   :  { %3766 = vmatpush1.bf16.msra.mxu1 %v10401_v29  ;;  %v10203_v29 = vcombine.low %v244_v11, %v248_v13 }
 0x22d   :  { %3767 = vmatprep.subr.bf16.mxu1 %v10410_v26  ;;  %v10212_v26 = vcombine.high %v252_v22, %v256_v17 }
 0x22e   :  { %3727 = vmatpush1.bf16.msra.mxu0 %v10281_v36  ;;  %v392_v36 = vld [vmem:[#allocation7 + $0x570] sm:$0xff] }
 0x22f   :  { %3728 = vmatprep.subr.bf16.mxu0 %v10290_v38  ;;  %v10339_v38 = vcombine.low %v380_v23, %v384_v24  ;;  %v10348_v57 = vcombine.high %v388_v35, %v392_v36  ;;  %v300_v24 = vld [vmem:[#allocation7 + $0x290] sm:$0xff] }
 0x230   :  { %3768 = vmatpush1.bf16.msra.mxu1 %v10409_v37  ;;  %v10211_v37 = vcombine.low %v252_v22, %v256_v17 }
 0x231   :  { %3769 = vmatprep.subr.bf16.mxu1 %v10418_v39  ;;  %v10220_v39 = vcombine.high %v260_v31, %v264_v34 }
 0x232   :  { %3729 = vmatpush1.bf16.msra.mxu0 %v10289_v6  ;;  %v400_v6 = vld [vmem:[#allocation7 + $0x5b0] sm:$0xff] }
 0x233   :  { %3730 = vmatprep.subr.bf16.mxu0 %v10298_v42  ;;  %v10347_v42 = vcombine.low %v388_v35, %v392_v36  ;;  %v10356_v46 = vcombine.high %v396_v60, %v400_v6  ;;  %v308_v36 = vld [vmem:[#allocation7 + $0x2d0] sm:$0xff] }
 0x234   :  { %3770 = vmatpush1.bf16.msra.mxu1 %v10417_v41  ;;  %v10219_v41 = vcombine.low %v260_v31, %v264_v34 }
 0x235   :  { %3771 = vmatprep.subr.bf16.mxu1 %v10426_v43  ;;  %v10228_v43 = vcombine.high %v268_v40, %v272_v0 }
 0x236   :  { %3731 = vmatpush1.bf16.msra.mxu0 %v10297_v49 }
 0x237   :  { %3782 = vmatprep.subr.bf16.mxu0 %v10180_v51  ;;  %v404_v51 = vld [vmem:[#allocation7 + $0x5d0] sm:$0xff] }
 0x238   :  { %3772 = vmatpush1.bf16.msra.mxu1 %v10425_v50 }
 0x239   :  { %3823 = vmatprep.subr.bf16.mxu1 %v10308_v52  ;;  %3733 = vmatmul.mubr.bf16.vlgmr.msra.gmra.mrb[20].mxu0 %v12207_v28  ;;  %v408_v52 = vld [vmem:[#allocation7 + $0x5f0] sm:$0xff] }
 0x23a   :  { %3783 = vmatpush1.bf16.msra.mxu0 %v10179_v59  ;;  %3814 = vmatprep.mubr.bf16.mxu0 %v12193_v15  ;;  %v10364_v5 = vcombine.high %v404_v51, %v408_v52  ;;  %v10363_v11 = vcombine.low %v404_v51, %v408_v52  ;;  %v452_v51 = vld [vmem:[#allocation7 + $0x750] sm:$0xff] }
 0x23b   :  { %3774 = vmatmul.mubr.bf16.vlgmr.msra.gmra.mrb[20].mxu1 %v12211_v33  ;;  %3784 = vmatprep.subr.bf16.mxu0 %v10188_v62  ;;  %v456_v52 = vld [vmem:[#allocation7 + $0x770] sm:$0xff] }
 0x23c   :  { %3824 = vmatpush1.bf16.msra.mxu1 %v10307_v61  ;;  %3855 = vmatprep.mubr.bf16.mxu1 %v12196_v19 }
 0x23d   :  { %3825 = vmatprep.subr.bf16.mxu1 %v10316_v1  ;;  %v10355_v1 = vcombine.low %v396_v60, %v400_v6  ;;  %v316_v6 = vld [vmem:[#allocation7 + $0x310] sm:$0xff] }
 0x23e   :  { %3785 = vmatpush1.bf16.msra.mxu0 %v10187_v8  ;;  %v288_v8 = vld [vmem:[#allocation7 + $0x230] sm:$0xff] }
 0x23f   :  { %3786 = vmatprep.subr.bf16.mxu0 %v10196_v9  ;;  %v416_v9 = vld [vmem:[#allocation7 + $0x630] sm:$0xff]  ;;  %v10244_v13 = vcombine.high %v284_v7, %v288_v8 }
 0x240   :  { %3826 = vmatpush1.bf16.msra.mxu1 %v10315_v54  ;;  %v412_v54 = vld [vmem:[#allocation7 + $0x610] sm:$0xff] }
 0x241   :  { %3827 = vmatprep.subr.bf16.mxu1 %v10324_v10  ;;  %v10235_v10 = vcombine.low %v276_v47, %v280_v48  ;;  %v10372_v14 = vcombine.high %v412_v54, %v416_v9  ;;  %v10371_v22 = vcombine.low %v412_v54, %v416_v9  ;;  %v340_v9 = vld [vmem:[#allocation7 + $0x3d0] sm:$0xff] }
 0x242   :  { %3787 = vmatpush1.bf16.msra.mxu0 %v10195_v18  ;;  %v296_v18 = vld [vmem:[#allocation7 + $0x270] sm:$0xff] }
 0x243   :  { %3788 = vmatprep.subr.bf16.mxu0 %v10204_v21  ;;  %v424_v21 = vld [vmem:[#allocation7 + $0x670] sm:$0xff]  ;;  %v10252_v17 = vcombine.high %v292_v16, %v296_v18 }
 0x244   :  { %3828 = vmatpush1.bf16.msra.mxu1 %v10323_v20  ;;  %v420_v20 = vld [vmem:[#allocation7 + $0x650] sm:$0xff] }
 0x245   :  { %3829 = vmatprep.subr.bf16.mxu1 %v10332_v12  ;;  %v10243_v12 = vcombine.low %v284_v7, %v288_v8  ;;  %v10380_v23 = vcombine.high %v420_v20, %v424_v21  ;;  %v10379_v31 = vcombine.low %v420_v20, %v424_v21  ;;  %v10411_v7 = vcombine.low %v452_v51, %v456_v52  ;;  %v221_v21 = vld [vmem:[#allocation7 + $0x18] sm:$0xff] }
 0x246   :  { %3789 = vmatpush1.bf16.msra.mxu0 %v10203_v29  ;;  %v304_v29 = vld [vmem:[#allocation7 + $0x2b0] sm:$0xff] }
 0x247   :  { %3790 = vmatprep.subr.bf16.mxu0 %v10212_v26  ;;  %v432_v26 = vld [vmem:[#allocation7 + $0x6b0] sm:$0xff]  ;;  %v10260_v34 = vcombine.high %v300_v24, %v304_v29 }
 0x248   :  { %3830 = vmatpush1.bf16.msra.mxu1 %v10331_v32  ;;  %v428_v32 = vld [vmem:[#allocation7 + $0x690] sm:$0xff] }
 0x249   :  { %3831 = vmatprep.subr.bf16.mxu1 %v10340_v27  ;;  %v10251_v27 = vcombine.low %v292_v16, %v296_v18  ;;  %v10388_v35 = vcombine.high %v428_v32, %v432_v26  ;;  %v10387_v40 = vcombine.low %v428_v32, %v432_v26  ;;  %v229_v26 = vld [vmem:[#allocation7 + $0x58] sm:$0xff] }
 0x24a   :  { %3791 = vmatpush1.bf16.msra.mxu0 %v10211_v37  ;;  %v312_v37 = vld [vmem:[#allocation7 + $0x2f0] sm:$0xff] }
 0x24b   :  { %3792 = vmatprep.subr.bf16.mxu0 %v10220_v39  ;;  %v440_v39 = vld [vmem:[#allocation7 + $0x6f0] sm:$0xff]  ;;  %v10268_v0 = vcombine.high %v308_v36, %v312_v37 }
 0x24c   :  { %3832 = vmatpush1.bf16.msra.mxu1 %v10339_v38  ;;  %v2208_v44 = vpop.f32.mrb[8].mxu0  ;;  %v436_v38 = vld [vmem:[#allocation7 + $0x6d0] sm:$0xff] }
 0x24d   :  { %3833 = vmatprep.subr.bf16.mxu1 %v10348_v57  ;;  %v2210_v50 = vpop.f32.mrb[9].mxu0  ;;  %v10259_v57 = vcombine.low %v300_v24, %v304_v29  ;;  %v10396_v60 = vcombine.high %v436_v38, %v440_v39 }
 0x24e   :  { %v2249_v49 = vpop.f32.mrb[8].mxu1  ;;  %v2212_v56 = vpop.f32.mrb[10].mxu0  ;;  %3793 = vmatpush1.bf16.msra.mxu0 %v10219_v41  ;;  %v320_v41 = vld [vmem:[#allocation7 + $0x330] sm:$0xff] }
 0x24f   :  { %v12225_v53 = vadd.f32 %v2249_v49, %v2208_v44  ;;  %v2251_v55 = vpop.f32.mrb[9].mxu1  ;;  %v2213_v62 = vpop.f32.mrb[11].mxu0  ;;  %3794 = vmatprep.subr.bf16.mxu0 %v10228_v43  ;;  %v448_v43 = vld [vmem:[#allocation7 + $0x730] sm:$0xff]  ;;  %v10267_v44 = vcombine.low %v308_v36, %v312_v37  ;;  %v10276_v47 = vcombine.high %v316_v6, %v320_v41 }
 0x250   :  { %v12227_v59 = vadd.f32 %v2251_v55, %v2210_v50  ;;  %v2253_v61 = vpop.f32.mrb[10].mxu1  ;;  %3834 = vmatpush1.bf16.msra.mxu1 %v10347_v42  ;;  %v444_v42 = vld [vmem:[#allocation7 + $0x710] sm:$0xff]  ;;  %v10275_v55 = vcombine.low %v316_v6, %v320_v41 }
 0x251   :  { %v2254_v3 = vpop.f32.mrb[11].mxu1  ;;  %3835 = vmatprep.subr.bf16.mxu1 %v10356_v46  ;;  %v10395_v46 = vcombine.low %v436_v38, %v440_v39  ;;  %v10404_v48 = vcombine.high %v444_v42, %v448_v43  ;;  %v324_v49 = vld [vmem:[#allocation7 + $0x350] sm:$0xff]  ;;  %v10403_v56 = vcombine.low %v444_v42, %v448_v43  ;;  %v10412_v61 = vcombine.high %v452_v51, %v456_v52  ;;  %v237_v39 = vld [vmem:[#allocation7 + $0x98] sm:$0xff] }
 0x252   :  { %3795 = vmatpush1.bf16.msra.mxu0 %v10227_v58  ;;  %v328_v50 = vld [vmem:[#allocation7 + $0x370] sm:$0xff]  ;;  %v245_v43 = vld [vmem:[#allocation7 + $0xd8] sm:$0xff] }
 0x253   :  { %3796 = vmatprep.subr.bf16.mxu0 %v10236_v2  ;;  %v10284_v58 = vcombine.high %v324_v49, %v328_v50  ;;  %v332_v62 = vld [vmem:[#allocation7 + $0x390] sm:$0xff]  ;;  %v253_v52 = vld [vmem:[#allocation7 + $0x118] sm:$0xff] }
 0x254   :  { %3836 = vmatpush1.bf16.msra.mxu1 %v10355_v1  ;;  %v336_v1 = vld [vmem:[#allocation7 + $0x3b0] sm:$0xff] }
 0x255   :  { %3837 = vmatprep.subr.bf16.mxu1 %v10364_v5  ;;  %v460_v2 = vld [vmem:[#allocation7 + $0x790] sm:$0xff]  ;;  %v10283_v5 = vcombine.low %v324_v49, %v328_v50  ;;  %v10292_v8 = vcombine.high %v332_v62, %v336_v1 }
 0x256   :  { %3797 = vmatpush1.bf16.msra.mxu0 %v10235_v10  ;;  %v464_v3 = vld [vmem:[#allocation7 + $0x7b0] sm:$0xff] }
 0x257   :  { %3798 = vmatprep.subr.bf16.mxu0 %v10244_v13  ;;  %v10420_v54 = vcombine.high %v460_v2, %v464_v3  ;;  %v344_v10 = vld [vmem:[#allocation7 + $0x3f0] sm:$0xff]  ;;  %v10419_v16 = vcombine.low %v460_v2, %v464_v3  ;;  %v265_v2 = vld [vmem:[#allocation7 + $0x178] sm:$0xff] }
 0x258   :  { %3838 = vmatpush1.bf16.msra.mxu1 %v10363_v11  ;;  %v468_v11 = vld [vmem:[#allocation7 + $0x7d0] sm:$0xff]  ;;  %v10300_v18 = vcombine.high %v340_v9, %v344_v10  ;;  %v389_v3 = vld [vmem:[#allocation7 + $0x558] sm:$0xff] }
 0x259   :  { %3839 = vmatprep.subr.bf16.mxu1 %v10372_v14  ;;  %v472_v13 = vld [vmem:[#allocation7 + $0x7f0] sm:$0xff]  ;;  %v10291_v14 = vcombine.low %v332_v62, %v336_v1  ;;  %v261_v1 = vld [vmem:[#allocation7 + $0x158] sm:$0xff] }
 0x25a   :  { %3799 = vmatpush1.bf16.msra.mxu0 %v10243_v12  ;;  %v10428_v20 = vcombine.high %v468_v11, %v472_v13  ;;  %v225_v12 = vld [vmem:[#allocation7 + $0x38] sm:$0xff]  ;;  %v10427_v24 = vcombine.low %v468_v11, %v472_v13 }
 0x25b   :  { %3800 = vmatprep.subr.bf16.mxu0 %v10252_v17  ;;  %v353_v17 = vld [vmem:[#allocation7 + $0x438] sm:$0xff]  ;;  %v10182_v29 = vcombine.high %v221_v21, %v225_v12 }
 0x25c   :  { %3840 = vmatpush1.bf16.msra.mxu1 %v10371_v22  ;;  %v349_v22 = vld [vmem:[#allocation7 + $0x418] sm:$0xff] }
 0x25d   :  { %3841 = vmatprep.subr.bf16.mxu1 %v10380_v23  ;;  %v10299_v23 = vcombine.low %v340_v9, %v344_v10  ;;  %v10310_v32 = vcombine.high %v349_v22, %v353_v17  ;;  %v10309_v36 = vcombine.low %v349_v22, %v353_v17  ;;  %v269_v10 = vld [vmem:[#allocation7 + $0x198] sm:$0xff] }
 0x25e   :  { %3801 = vmatpush1.bf16.msra.mxu0 %v10251_v27  ;;  %v233_v27 = vld [vmem:[#allocation7 + $0x78] sm:$0xff] }
 0x25f   :  { %3802 = vmatprep.subr.bf16.mxu0 %v10260_v34  ;;  %v361_v34 = vld [vmem:[#allocation7 + $0x478] sm:$0xff]  ;;  %v10190_v37 = vcombine.high %v229_v26, %v233_v27 }
 0x260   :  { %3842 = vmatpush1.bf16.msra.mxu1 %v10379_v31  ;;  %v357_v31 = vld [vmem:[#allocation7 + $0x458] sm:$0xff] }
 0x261   :  { %3843 = vmatprep.subr.bf16.mxu1 %v10388_v35  ;;  %v10181_v35 = vcombine.low %v221_v21, %v225_v12  ;;  %v10318_v38 = vcombine.high %v357_v31, %v361_v34  ;;  %v10317_v6 = vcombine.low %v357_v31, %v361_v34  ;;  %v273_v11 = vld [vmem:[#allocation7 + $0x1b8] sm:$0xff] }
 0x262   :  { %3803 = vmatpush1.bf16.msra.mxu0 %v10259_v57  ;;  %v241_v57 = vld [vmem:[#allocation7 + $0xb8] sm:$0xff]  ;;  %v10229_v34 = vcombine.low %v269_v10, %v273_v11 }
 0x263   :  { %3804 = vmatprep.subr.bf16.mxu0 %v10268_v0  ;;  %v369_v0 = vld [vmem:[#allocation7 + $0x4b8] sm:$0xff]  ;;  %v10198_v41 = vcombine.high %v237_v39, %v241_v57 }
 0x264   :  { %3844 = vmatpush1.bf16.msra.mxu1 %v10387_v40  ;;  %v365_v40 = vld [vmem:[#allocation7 + $0x498] sm:$0xff] }
 0x265   :  { %3845 = vmatprep.subr.bf16.mxu1 %v10396_v60  ;;  %v10189_v60 = vcombine.low %v229_v26, %v233_v27  ;;  %v10326_v42 = vcombine.high %v365_v40, %v369_v0  ;;  %v10325_v49 = vcombine.low %v365_v40, %v369_v0  ;;  %v397_v13 = vld [vmem:[#allocation7 + $0x598] sm:$0xff] }
 0x266   :  { %3805 = vmatpush1.bf16.msra.mxu0 %v10267_v44  ;;  %v249_v44 = vld [vmem:[#allocation7 + $0xf8] sm:$0xff] }
 0x267   :  { %3806 = vmatprep.subr.bf16.mxu0 %v10276_v47  ;;  %v377_v47 = vld [vmem:[#allocation7 + $0x4f8] sm:$0xff]  ;;  %v10206_v50 = vcombine.high %v245_v43, %v249_v44 }
 0x268   :  { %3846 = vmatpush1.bf16.msra.mxu1 %v10395_v46  ;;  %v373_v46 = vld [vmem:[#allocation7 + $0x4d8] sm:$0xff] }
 0x269   :  { %3847 = vmatprep.subr.bf16.mxu1 %v10404_v48  ;;  %v10197_v48 = vcombine.low %v237_v39, %v241_v57  ;;  %v10334_v51 = vcombine.high %v373_v46, %v377_v47  ;;  %v277_v22 = vld [vmem:[#allocation7 + $0x1d8] sm:$0xff] }
 0x26a   :  { %3807 = vmatpush1.bf16.msra.mxu0 %v10275_v55  ;;  %v257_v55 = vld [vmem:[#allocation7 + $0x138] sm:$0xff] }
 0x26b   :  { %3808 = vmatprep.subr.bf16.mxu0 %v10284_v58  ;;  %v385_v58 = vld [vmem:[#allocation7 + $0x538] sm:$0xff]  ;;  %v10214_v62 = vcombine.high %v253_v52, %v257_v55 }
 0x26c   :  { %3848 = vmatpush1.bf16.msra.mxu1 %v10403_v56  ;;  %v381_v56 = vld [vmem:[#allocation7 + $0x518] sm:$0xff] }
 0x26d   :  { %3849 = vmatprep.subr.bf16.mxu1 %v10412_v61  ;;  %v10205_v61 = vcombine.low %v245_v43, %v249_v44  ;;  %v281_v17 = vld [vmem:[#allocation7 + $0x1f8] sm:$0xff] }
 0x26e   :  { %3809 = vmatpush1.bf16.msra.mxu0 %v10283_v5  ;;  %v393_v5 = vld [vmem:[#allocation7 + $0x578] sm:$0xff]  ;;  %v10238_v39 = vcombine.high %v277_v22, %v281_v17 }
 0x26f   :  { %3810 = vmatprep.subr.bf16.mxu0 %v10292_v8  ;;  %v10341_v8 = vcombine.low %v381_v56, %v385_v58  ;;  %v10350_v9 = vcombine.high %v389_v3, %v393_v5  ;;  %v285_v0 = vld [vmem:[#allocation7 + $0x218] sm:$0xff] }
 0x270   :  { %3850 = vmatpush1.bf16.msra.mxu1 %v10411_v7  ;;  %v10213_v7 = vcombine.low %v253_v52, %v257_v55 }
 0x271   :  { %3851 = vmatprep.subr.bf16.mxu1 %v10420_v54  ;;  %v10222_v54 = vcombine.high %v261_v1, %v265_v2 }
 0x272   :  { %3811 = vmatpush1.bf16.msra.mxu0 %v10291_v14  ;;  %v401_v14 = vld [vmem:[#allocation7 + $0x5b8] sm:$0xff] }
 0x273   :  { %3812 = vmatprep.subr.bf16.mxu0 %v10300_v18  ;;  %v10349_v18 = vcombine.low %v389_v3, %v393_v5  ;;  %v10358_v12 = vcombine.high %v397_v13, %v401_v14  ;;  %v309_v5 = vld [vmem:[#allocation7 + $0x2d8] sm:$0xff] }
 0x274   :  { %3852 = vmatpush1.bf16.msra.mxu1 %v10419_v16  ;;  %v10221_v16 = vcombine.low %v261_v1, %v265_v2 }
 0x275   :  { %3853 = vmatprep.subr.bf16.mxu1 %v10428_v20  ;;  %v10230_v20 = vcombine.high %v269_v10, %v273_v11 }
 0x276   :  { %3813 = vmatpush1.bf16.msra.mxu0 %v10299_v23 }
 0x277   :  { %3864 = vmatprep.subr.bf16.mxu0 %v10182_v29  ;;  %v405_v29 = vld [vmem:[#allocation7 + $0x5d8] sm:$0xff] }
 0x278   :  { %3854 = vmatpush1.bf16.msra.mxu1 %v10427_v24 }
 0x279   :  { %3905 = vmatprep.subr.bf16.mxu1 %v10310_v32  ;;  %3815 = vmatmul.mubr.bf16.vlgmr.msra.gmra.mrb[24].mxu0 %v12207_v28  ;;  %v409_v32 = vld [vmem:[#allocation7 + $0x5f8] sm:$0xff] }
 0x27a   :  { %3865 = vmatpush1.bf16.msra.mxu0 %v10181_v35  ;;  %3896 = vmatprep.mubr.bf16.mxu0 %v12193_v15  ;;  %v10333_v15 = vcombine.low %v373_v46, %v377_v47  ;;  %v10366_v40 = vcombine.high %v405_v29, %v409_v32  ;;  %v10365_v43 = vcombine.low %v405_v29, %v409_v32  ;;  %v293_v47 = vld [vmem:[#allocation7 + $0x258] sm:$0xff] }
 0x27b   :  { %3856 = vmatmul.mubr.bf16.vlgmr.msra.gmra.mrb[24].mxu1 %v12211_v33  ;;  %3866 = vmatprep.subr.bf16.mxu0 %v10190_v37  ;;  %v453_v29 = vld [vmem:[#allocation7 + $0x758] sm:$0xff] }
 0x27c   :  { %3906 = vmatpush1.bf16.msra.mxu1 %v10309_v36  ;;  %3937 = vmatprep.mubr.bf16.mxu1 %v12196_v19  ;;  %v10342_v19 = vcombine.high %v381_v56, %v385_v58  ;;  %v301_v58 = vld [vmem:[#allocation7 + $0x298] sm:$0xff] }
 0x27d   :  { %3907 = vmatprep.subr.bf16.mxu1 %v10318_v38  ;;  %v10357_v38 = vcombine.low %v397_v13, %v401_v14  ;;  %v317_v14 = vld [vmem:[#allocation7 + $0x318] sm:$0xff] }
 0x27e   :  { %3867 = vmatpush1.bf16.msra.mxu0 %v10189_v60  ;;  %v289_v60 = vld [vmem:[#allocation7 + $0x238] sm:$0xff] }
 0x27f   :  { %3868 = vmatprep.subr.bf16.mxu0 %v10198_v41  ;;  %v417_v41 = vld [vmem:[#allocation7 + $0x638] sm:$0xff]  ;;  %v10246_v44 = vcombine.high %v285_v0, %v289_v60 }
 0x280   :  { %3908 = vmatpush1.bf16.msra.mxu1 %v10317_v6  ;;  %v413_v6 = vld [vmem:[#allocation7 + $0x618] sm:$0xff] }
 0x281   :  { %3909 = vmatprep.subr.bf16.mxu1 %v10326_v42  ;;  %v10237_v42 = vcombine.low %v277_v22, %v281_v17  ;;  %v10374_v46 = vcombine.high %v413_v6, %v417_v41  ;;  %v10373_v52 = vcombine.low %v413_v6, %v417_v41  ;;  %v457_v32 = vld [vmem:[#allocation7 + $0x778] sm:$0xff] }
 0x282   :  { %3869 = vmatpush1.bf16.msra.mxu0 %v10197_v48  ;;  %v297_v48 = vld [vmem:[#allocation7 + $0x278] sm:$0xff] }
 0x283   :  { %3870 = vmatprep.subr.bf16.mxu0 %v10206_v50  ;;  %v425_v50 = vld [vmem:[#allocation7 + $0x678] sm:$0xff]  ;;  %v10254_v55 = vcombine.high %v293_v47, %v297_v48 }
 0x284   :  { %3910 = vmatpush1.bf16.msra.mxu1 %v10325_v49  ;;  %v421_v49 = vld [vmem:[#allocation7 + $0x658] sm:$0xff] }
 0x285   :  { %3911 = vmatprep.subr.bf16.mxu1 %v10334_v51  ;;  %v10245_v51 = vcombine.low %v285_v0, %v289_v60  ;;  %v10382_v56 = vcombine.high %v421_v49, %v425_v50  ;;  %v10381_v1 = vcombine.low %v421_v49, %v425_v50  ;;  %v10413_v0 = vcombine.low %v453_v29, %v457_v32  ;;  %v341_v41 = vld [vmem:[#allocation7 + $0x3d8] sm:$0xff] }
 0x286   :  { %3871 = vmatpush1.bf16.msra.mxu0 %v10205_v61  ;;  %v305_v61 = vld [vmem:[#allocation7 + $0x2b8] sm:$0xff] }
 0x287   :  { %3872 = vmatprep.subr.bf16.mxu0 %v10214_v62  ;;  %v433_v62 = vld [vmem:[#allocation7 + $0x6b8] sm:$0xff]  ;;  %v10262_v2 = vcombine.high %v301_v58, %v305_v61 }
 0x288   :  { %3912 = vmatpush1.bf16.msra.mxu1 %v10333_v15  ;;  %v429_v15 = vld [vmem:[#allocation7 + $0x698] sm:$0xff] }
 0x289   :  { %3913 = vmatprep.subr.bf16.mxu1 %v10342_v19  ;;  %v10253_v19 = vcombine.low %v293_v47, %v297_v48  ;;  %v10390_v3 = vcombine.high %v429_v15, %v433_v62  ;;  %v10389_v10 = vcombine.low %v429_v15, %v433_v62 }
 0x28a   :  { %3873 = vmatpush1.bf16.msra.mxu0 %v10213_v7  ;;  %v313_v7 = vld [vmem:[#allocation7 + $0x2f8] sm:$0xff] }
 0x28b   :  { %3874 = vmatprep.subr.bf16.mxu0 %v10222_v54  ;;  %v441_v54 = vld [vmem:[#allocation7 + $0x6f8] sm:$0xff]  ;;  %v10270_v11 = vcombine.high %v309_v5, %v313_v7 }
 0x28c   :  { %3914 = vmatpush1.bf16.msra.mxu1 %v10341_v8  ;;  %v2290_v21 = vpop.f32.mrb[12].mxu0  ;;  %v437_v8 = vld [vmem:[#allocation7 + $0x6d8] sm:$0xff] }
 0x28d   :  { %3915 = vmatprep.subr.bf16.mxu1 %v10350_v9  ;;  %v2292_v24 = vpop.f32.mrb[13].mxu0  ;;  %v10261_v9 = vcombine.low %v301_v58, %v305_v61  ;;  %v10398_v13 = vcombine.high %v437_v8, %v441_v54 }
 0x28e   :  { %v2331_v23 = vpop.f32.mrb[12].mxu1  ;;  %v2294_v31 = vpop.f32.mrb[14].mxu0  ;;  %3875 = vmatpush1.bf16.msra.mxu0 %v10221_v16  ;;  %v321_v16 = vld [vmem:[#allocation7 + $0x338] sm:$0xff] }
 0x28f   :  { %v12233_v26 = vadd.f32 %v2331_v23, %v2290_v21  ;;  %v2333_v27 = vpop.f32.mrb[13].mxu1  ;;  %v2295_v37 = vpop.f32.mrb[15].mxu0  ;;  %3876 = vmatprep.subr.bf16.mxu0 %v10230_v20  ;;  %v449_v20 = vld [vmem:[#allocation7 + $0x738] sm:$0xff]  ;;  %v10269_v21 = vcombine.low %v309_v5, %v313_v7  ;;  %v10278_v22 = vcombine.high %v317_v14, %v321_v16 }
 0x290   :  { %v12235_v35 = vadd.f32 %v2333_v27, %v2292_v24  ;;  %v2335_v36 = vpop.f32.mrb[14].mxu1  ;;  %3916 = vmatpush1.bf16.msra.mxu1 %v10349_v18  ;;  %v445_v18 = vld [vmem:[#allocation7 + $0x718] sm:$0xff]  ;;  %v10277_v27 = vcombine.low %v317_v14, %v321_v16  ;;  %v4079_v16 = vld [vmem:[#allocation11] sm:$0xff] }
 0x291   :  { %v2336_v57 = vpop.f32.mrb[15].mxu1  ;;  %3917 = vmatprep.subr.bf16.mxu1 %v10358_v12  ;;  %v10397_v12 = vcombine.low %v437_v8, %v441_v54  ;;  %v10406_v17 = vcombine.high %v445_v18, %v449_v20  ;;  %v325_v23 = vld [vmem:[#allocation7 + $0x358] sm:$0xff]  ;;  %v10405_v31 = vcombine.low %v445_v18, %v449_v20  ;;  %v10414_v36 = vcombine.high %v453_v29, %v457_v32  ;;  %v4083_v18 = vld [vmem:[#allocation11 + $0x20] sm:$0xff]  ;;  %v4080_v20 = vld [vmem:[#allocation11 + $0x8] sm:$0xff] }
 0x292   :  { %3877 = vmatpush1.bf16.msra.mxu0 %v10229_v34  ;;  %v329_v24 = vld [vmem:[#allocation7 + $0x378] sm:$0xff]  ;;  %v4088_v29 = vld [vmem:[#allocation11 + $0x48] sm:$0xff] }
 0x293   :  { %3878 = vmatprep.subr.bf16.mxu0 %v10238_v39  ;;  %v10286_v34 = vcombine.high %v325_v23, %v329_v24  ;;  %v333_v37 = vld [vmem:[#allocation7 + $0x398] sm:$0xff]  ;;  %v4092_v32 = vld [vmem:[#allocation11 + $0x68] sm:$0xff] }
 0x294   :  { %3918 = vmatpush1.bf16.msra.mxu1 %v10357_v38  ;;  %v337_v38 = vld [vmem:[#allocation7 + $0x3b8] sm:$0xff] }
 0x295   :  { %3919 = vmatprep.subr.bf16.mxu1 %v10366_v40  ;;  %v461_v39 = vld [vmem:[#allocation7 + $0x798] sm:$0xff]  ;;  %v10285_v40 = vcombine.low %v325_v23, %v329_v24  ;;  %v10294_v60 = vcombine.high %v333_v37, %v337_v38 }
 0x296   :  { %3879 = vmatpush1.bf16.msra.mxu0 %v10237_v42  ;;  %v465_v57 = vld [vmem:[#allocation7 + $0x7b8] sm:$0xff] }
 0x297   :  { %3880 = vmatprep.subr.bf16.mxu0 %v10246_v44  ;;  %v10422_v6 = vcombine.high %v461_v39, %v465_v57  ;;  %v345_v42 = vld [vmem:[#allocation7 + $0x3f8] sm:$0xff]  ;;  %v10421_v47 = vcombine.low %v461_v39, %v465_v57  ;;  %v10441_v39 = vcombine.low %v4088_v29, %v4092_v32 }
 0x298   :  { %3920 = vmatpush1.bf16.msra.mxu1 %v10365_v43  ;;  %v469_v43 = vld [vmem:[#allocation7 + $0x7d8] sm:$0xff]  ;;  %v10302_v48 = vcombine.high %v341_v41, %v345_v42  ;;  %v10301_v50 = vcombine.low %v341_v41, %v345_v42  ;;  %v4108_v41 = vld [vmem:[#allocation11 + $0xe8] sm:$0xff] }
 0x299   :  { %3921 = vmatprep.subr.bf16.mxu1 %v10374_v46  ;;  %v473_v44 = vld [vmem:[#allocation7 + $0x7f8] sm:$0xff]  ;;  %v10293_v46 = vcombine.low %v333_v37, %v337_v38  ;;  %v4100_v37 = vld [vmem:[#allocation11 + $0xa8] sm:$0xff] }
 0x29a   :  { %3881 = vmatpush1.bf16.msra.mxu0 %v10245_v51  ;;  %v10430_v49 = vcombine.high %v469_v43, %v473_v44  ;;  %v10429_v51 = vcombine.low %v469_v43, %v473_v44 }
 0x29b   :  { %3882 = vmatprep.subr.bf16.mxu0 %v10254_v55 }
 0x29c   :  { %3922 = vmatpush1.bf16.msra.mxu1 %v10373_v52 }
 0x29d   :  { %3923 = vmatprep.subr.bf16.mxu1 %v10382_v56 }
 0x29e   :  { %3883 = vmatpush1.bf16.msra.mxu0 %v10253_v19 }
 0x29f   :  { %3884 = vmatprep.subr.bf16.mxu0 %v10262_v2 }
 0x2a0   :  { %3924 = vmatpush1.bf16.msra.mxu1 %v10381_v1 }
 0x2a1   :  { %3925 = vmatprep.subr.bf16.mxu1 %v10390_v3 }
 0x2a2   :  { %3885 = vmatpush1.bf16.msra.mxu0 %v10261_v9 }
 0x2a3   :  { %3886 = vmatprep.subr.bf16.mxu0 %v10270_v11 }
 0x2a4   :  { %3926 = vmatpush1.bf16.msra.mxu1 %v10389_v10 }
 0x2a5   :  { %3927 = vmatprep.subr.bf16.mxu1 %v10398_v13 }
 0x2a6   :  { %3887 = vmatpush1.bf16.msra.mxu0 %v10269_v21  ;;  %v10431_v21 = vcombine.low %v4079_v16, %v4083_v18 }
 0x2a7   :  { %3888 = vmatprep.subr.bf16.mxu0 %v10278_v22  ;;  %v4084_v22 = vld [vmem:[#allocation11 + $0x28] sm:$0xff] }
 0x2a8   :  { %3928 = vmatpush1.bf16.msra.mxu1 %v10397_v12  ;;  %v10432_v12 = vcombine.high %v4079_v16, %v4083_v18  ;;  %v10433_v23 = vcombine.low %v4080_v20, %v4084_v22  ;;  %v10434_v24 = vcombine.high %v4080_v20, %v4084_v22  ;;  %v4139_v16 = vld [vmem:[#allocation11 + $0x1e0] sm:$0xff]  ;;  %v4136_v18 = vld [vmem:[#allocation11 + $0x1c8] sm:$0xff] }
 0x2a9   :  { %3929 = vmatprep.subr.bf16.mxu1 %v10406_v17  ;;  %v4091_v17 = vld [vmem:[#allocation11 + $0x60] sm:$0xff]  ;;  %v4140_v20 = vld [vmem:[#allocation11 + $0x1e8] sm:$0xff] }
 0x2aa   :  { %3889 = vmatpush1.bf16.msra.mxu0 %v10277_v27  ;;  %v4095_v27 = vld [vmem:[#allocation11 + $0x80] sm:$0xff] }
 0x2ab   :  { %3890 = vmatprep.subr.bf16.mxu0 %v10286_v34  ;;  %v4099_v34 = vld [vmem:[#allocation11 + $0xa0] sm:$0xff] }
 0x2ac   :  { %3930 = vmatpush1.bf16.msra.mxu1 %v10405_v31  ;;  %v10442_v31 = vcombine.high %v4088_v29, %v4092_v32  ;;  %v10448_v57 = vcombine.high %v4095_v27, %v4099_v34  ;;  %v10447_v42 = vcombine.low %v4095_v27, %v4099_v34  ;;  %v10489_v32 = vcombine.low %v4136_v18, %v4140_v20 }
 0x2ad   :  { %3931 = vmatprep.subr.bf16.mxu1 %v10414_v36  ;;  %v4096_v36 = vld [vmem:[#allocation11 + $0x88] sm:$0xff] }
 0x2ae   :  { %3891 = vmatpush1.bf16.msra.mxu0 %v10285_v40  ;;  %v10450_v40 = vcombine.high %v4096_v36, %v4100_v37  ;;  %v10449_v43 = vcombine.low %v4096_v36, %v4100_v37 }
 0x2af   :  { %3892 = vmatprep.subr.bf16.mxu0 %v10294_v60  ;;  %v4107_v60 = vld [vmem:[#allocation11 + $0xe0] sm:$0xff] }
 0x2b0   :  { %3932 = vmatpush1.bf16.msra.mxu1 %v10413_v0  ;;  %v4103_v0 = vld [vmem:[#allocation11 + $0xc0] sm:$0xff] }
 0x2b1   :  { %3933 = vmatprep.subr.bf16.mxu1 %v10422_v6  ;;  %v4104_v6 = vld [vmem:[#allocation11 + $0xc8] sm:$0xff]  ;;  %v10456_v44 = vcombine.high %v4103_v0, %v4107_v60 }
 0x2b2   :  { %3893 = vmatpush1.bf16.msra.mxu0 %v10293_v46  ;;  %v10458_v46 = vcombine.high %v4104_v6, %v4108_v41 }
 0x2b3   :  { %3894 = vmatprep.subr.bf16.mxu0 %v10302_v48  ;;  %v4115_v48 = vld [vmem:[#allocation11 + $0x120] sm:$0xff] }
 0x2b4   :  { %3934 = vmatpush1.bf16.msra.mxu1 %v10421_v47  ;;  %v4111_v47 = vld [vmem:[#allocation11 + $0x100] sm:$0xff] }
 0x2b5   :  { %3935 = vmatprep.subr.bf16.mxu1 %v10430_v49  ;;  %v4112_v49 = vld [vmem:[#allocation11 + $0x108] sm:$0xff] }
 0x2b6   :  { %3895 = vmatpush1.bf16.msra.mxu0 %v10301_v50  ;;  %v4116_v50 = vld [vmem:[#allocation11 + $0x128] sm:$0xff] }
 0x2b7   :  { %7193 = vmatprep.subr.bf16.mxu0 %v10432_v12 }
 0x2b8   :  { %3936 = vmatpush1.bf16.msra.mxu1 %v10429_v51  ;;  %v10455_v51 = vcombine.low %v4103_v0, %v4107_v60 }
 0x2b9   :  { %3897 = vmatmul.mubr.bf16.vlgmr.msra.gmra.mrb[28].mxu0 %v12207_v28  ;;  %7357 = vmatprep.subr.bf16.mxu1 %v10434_v24  ;;  %v4144_v24 = vld [vmem:[#allocation11 + $0x208] sm:$0xff] }
 0x2ba   :  { %7194 = vmatpush1.bf16.msra.mxu0 %v10431_v21 }
 0x2bb   :  { %3938 = vmatmul.mubr.bf16.vlgmr.msra.gmra.mrb[28].mxu1 %v12211_v33 }
 0x2bc   :  { %7358 = vmatpush1.bf16.msra.mxu1 %v10433_v23  ;;  %v4147_v23 = vld [vmem:[#allocation11 + $0x220] sm:$0xff] }
 0x2bd   :  { %7359 = vmatprep.subr.bf16.mxu1 %v10442_v31 }
 0x2c0   :  { %7360 = vmatpush1.bf16.msra.mxu1 %v10441_v39 }
 0x2c1   :  { %7361 = vmatprep.subr.bf16.mxu1 %v10450_v40 }
 0x2c4   :  { %7362 = vmatpush1.bf16.msra.mxu1 %v10449_v43 }
 0x2c5   :  { %7363 = vmatprep.subr.bf16.mxu1 %v10458_v46  ;;  %v12254_v46 = vsub.s32 0, %v12142_v45 }
 0x2cc   :  { %v3652_v52 = vpop.f32.mrb[16].mxu0 }
 0x2cd   :  { %v3653_v55 = vadd.f32 %v3652_v52, %v12201_v63  ;;  %v3654_v58 = vpop.f32.mrb[17].mxu0  ;;  %v10457_v52 = vcombine.low %v4104_v6, %v4108_v41 }
 0x2ce   :  { %v3693_v56 = vpop.f32.mrb[16].mxu1  ;;  %v3655_v61 = vadd.f32 %v3654_v58, %v12203_v4  ;;  %v3656_v62 = vpop.f32.mrb[18].mxu0  ;;  %v4119_v58 = vld [vmem:[#allocation11 + $0x140] sm:$0xff] }
 0x2cf   :  { %v3695_v15 = vpop.f32.mrb[17].mxu1  ;;  %v12241_v19 = vadd.f32 %v3693_v56, %v3653_v55  ;;  %v3657_v2 = vpop.f32.mrb[19].mxu0  ;;  %v10464_v55 = vcombine.high %v4111_v47, %v4115_v48  ;;  %v10466_v56 = vcombine.high %v4112_v49, %v4116_v50  ;;  %v4124_v62 = vld [vmem:[#allocation11 + $0x168] sm:$0xff]  ;;  %7364 = vmatpush1.bf16.msra.mxu1 %v10457_v52 }
 0x2d0   :  { %v3697_v1 = vpop.f32.mrb[18].mxu1  ;;  %v12243_v3 = vadd.f32 %v3695_v15, %v3655_v61  ;;  %v4123_v61 = vld [vmem:[#allocation11 + $0x160] sm:$0xff]  ;;  %v4120_v15 = vld [vmem:[#allocation11 + $0x148] sm:$0xff]  ;;  %v10465_v2 = vcombine.low %v4112_v49, %v4116_v50 }
 0x2d1   :  { %v3698_v5 = vpop.f32.mrb[19].mxu1  ;;  %v10463_v1 = vcombine.low %v4111_v47, %v4115_v48  ;;  %7365 = vmatprep.subr.bf16.mxu1 %v10466_v56  ;;  %v12257_v47 = vsub.s32 1, %v12142_v45  ;;  %v3946_v48 = vld [vmem:[#allocation10] sm:$0xff]  ;;  %v3966_v56 = vsub.s32 4, %v12142_v45 }
 0x2d2   :  { %v10472_v5 = vcombine.high %v4119_v58, %v4123_v61  ;;  %v3951_v49 = vrot.slane %v3946_v48, %v12254_v46 }
 0x2d3   :  { %7366 = vmatpush1.bf16.msra.mxu1 %v10465_v2 }
 0x2d4   :  { %v12269_v52 = vadd.f32 %v3951_v49, %v12241_v19 }
 0x30c   :  { %v3734_v7 = vpop.f32.mrb[20].mxu0 }
 0x30d   :  { %v3735_v28 = vadd.f32 %v3734_v7, %v12217_v25  ;;  %v3736_v8 = vpop.f32.mrb[21].mxu0  ;;  %v4087_v25 = vld [vmem:[#allocation11 + $0x40] sm:$0xff]  ;;  %v10474_v7 = vcombine.high %v4120_v15, %v4124_v62 }
 0x30e   :  { %v3775_v33 = vpop.f32.mrb[20].mxu1  ;;  %v3737_v63 = vadd.f32 %v3736_v8, %v12219_v30  ;;  %v3738_v9 = vpop.f32.mrb[22].mxu0  ;;  %v10440_v30 = vcombine.high %v4087_v25, %v4091_v17  ;;  %v10439_v38 = vcombine.low %v4087_v25, %v4091_v17  ;;  %v4128_v8 = vld [vmem:[#allocation11 + $0x188] sm:$0xff]  ;;  %v10490_v25 = vcombine.high %v4136_v18, %v4140_v20  ;;  %v4143_v17 = vld [vmem:[#allocation11 + $0x200] sm:$0xff] }
 0x30f   :  { %v3777_v54 = vpop.f32.mrb[21].mxu1  ;;  %v12247_v10 = vadd.f32 %v3775_v33, %v3735_v28  ;;  %v3739_v11 = vpop.f32.mrb[23].mxu0  ;;  %v4127_v28 = vld [vmem:[#allocation11 + $0x180] sm:$0xff]  ;;  %v10473_v9 = vcombine.low %v4120_v15, %v4124_v62  ;;  %7367 = vmatprep.subr.bf16.mxu1 %v10474_v7  ;;  %v10496_v27 = vcombine.high %v4143_v17, %v4147_v23  ;;  %v10495_v34 = vcombine.low %v4143_v17, %v4147_v23 }
 0x310   :  { %v3779_v4 = vpop.f32.mrb[22].mxu1  ;;  %v12249_v13 = vadd.f32 %v3777_v54, %v3737_v63  ;;  %7195 = vmatprep.subr.bf16.mxu0 %v10440_v30  ;;  %v4131_v33 = vld [vmem:[#allocation11 + $0x1a0] sm:$0xff]  ;;  %v4132_v63 = vld [vmem:[#allocation11 + $0x1a8] sm:$0xff]  ;;  %v10471_v54 = vcombine.low %v4119_v58, %v4123_v61  ;;  %v3970_v15 = vsub.s32 5, %v12142_v45  ;;  %v4016_v62 = vmul.f32 %v12269_v52, %v12269_v52 }
 0x311   :  { %v3780_v14 = vpop.f32.mrb[23].mxu1  ;;  %7196 = vmatpush1.bf16.msra.mxu0 %v10439_v38  ;;  %v10480_v4 = vcombine.high %v4127_v28, %v4131_v33  ;;  %v10482_v11 = vcombine.high %v4128_v8, %v4132_v63  ;;  %v10479_v21 = vcombine.low %v4127_v28, %v4131_v33  ;;  %7368 = vmatpush1.bf16.msra.mxu1 %v10473_v9  ;;  %v4148_v30 = vld [vmem:[#allocation11 + $0x228] sm:$0xff]  ;;  %v3974_v20 = vsub.s32 6, %v12142_v45 }
 0x312   :  { %7197 = vmatprep.subr.bf16.mxu0 %v10448_v57  ;;  %v4135_v14 = vld [vmem:[#allocation11 + $0x1c0] sm:$0xff]  ;;  %v10481_v12 = vcombine.low %v4128_v8, %v4132_v63  ;;  %v10498_v31 = vcombine.high %v4144_v24, %v4148_v30  ;;  %v10497_v36 = vcombine.low %v4144_v24, %v4148_v30  ;;  %v3971_v7 = vrot.slane %v3946_v48, %v3970_v15 }
 0x313   :  { %v10488_v22 = vcombine.high %v4135_v14, %v4139_v16  ;;  %7369 = vmatprep.subr.bf16.mxu1 %v10482_v11  ;;  %v10487_v29 = vcombine.low %v4135_v14, %v4139_v16  ;;  %v4024_v28 = vsel %vm3996_vm0, %v4016_v62, 0.0 }
 0x315   :  { %7198 = vmatpush1.bf16.msra.mxu0 %v10447_v42  ;;  %7370 = vmatpush1.bf16.msra.mxu1 %v10481_v12  ;;  %v3978_v12 = vsub.s32 7, %v12142_v45 }
 0x316   :  { %7199 = vmatprep.subr.bf16.mxu0 %v10456_v44  ;;  %7371 = vmatprep.subr.bf16.mxu1 %v10490_v25 }
 0x319   :  { %7200 = vmatpush1.bf16.msra.mxu0 %v10455_v51  ;;  %7372 = vmatpush1.bf16.msra.mxu1 %v10489_v32  ;;  %v12266_v51 = vsub.s32 3, %v12142_v45  ;;  %v3975_v32 = vrot.slane %v3946_v48, %v3974_v20 }
 0x31a   :  { %7201 = vmatprep.subr.bf16.mxu0 %v10464_v55  ;;  %7373 = vmatprep.subr.bf16.mxu1 %v10498_v31 }
 0x31b   :  { %v3963_v61 = vrot.slane %v3946_v48, %v12266_v51 }
 0x31d   :  { %7202 = vmatpush1.bf16.msra.mxu0 %v10463_v1  ;;  %7374 = vmatpush1.bf16.msra.mxu1 %v10497_v36  ;;  %v3997_v1 = vsel %vm3996_vm0, %v12269_v52, 0.0 }
 0x31e   :  { %7203 = vmatprep.subr.bf16.mxu0 %v10472_v5  ;;  %v12293_v5 = vadd.f32 %v3963_v61, %v12249_v13 }
 0x320   :  { %v4002_v14 = vsel %vm3996_vm0, %v12293_v5, 0.0 }
 0x321   :  { %7204 = vmatpush1.bf16.msra.mxu0 %v10471_v54 }
 0x322   :  { %7205 = vmatprep.subr.bf16.mxu0 %v10480_v4  ;;  %v4019_v4 = vmul.f32 %v12293_v5, %v12293_v5 }
 0x325   :  { %7206 = vmatpush1.bf16.msra.mxu0 %v10479_v21 }
 0x326   :  { %7207 = vmatprep.subr.bf16.mxu0 %v10488_v22  ;;  %v4029_v22 = vsel %vm3996_vm0, %v4019_v4, 0.0  ;;  %v4156_v4 = vld [vmem:[#allocation11 + $0x268] sm:$0xff] }
 0x329   :  { %7208 = vmatpush1.bf16.msra.mxu0 %v10487_v29 }
 0x32a   :  { %7209 = vmatprep.subr.bf16.mxu0 %v10496_v27 }
 0x32d   :  { %7210 = vmatpush1.bf16.msra.mxu0 %v10495_v34 }
 0x34c   :  { %v3816_v37 = vpop.f32.mrb[24].mxu0 }
 0x34d   :  { %v3817_v38 = vadd.f32 %v3816_v37, %v12225_v53  ;;  %v3818_v57 = vpop.f32.mrb[25].mxu0  ;;  %v12260_v53 = vsub.s32 2, %v12142_v45  ;;  %v3979_v37 = vrot.slane %v3946_v48, %v3978_v12 }
 0x34e   :  { %v3857_v39 = vpop.f32.mrb[24].mxu1  ;;  %v3819_v40 = vadd.f32 %v3818_v57, %v12227_v59  ;;  %v3820_v60 = vpop.f32.mrb[26].mxu0  ;;  %v3955_v59 = vrot.slane %v3946_v48, %v12257_v47 }
 0x34f   :  { %v3859_v0 = vpop.f32.mrb[25].mxu1  ;;  %v3858_v6 = vadd.f32 %v3857_v39, %v3817_v38  ;;  %v3821_v42 = vpop.f32.mrb[27].mxu0  ;;  %v3959_v50 = vrot.slane %v3946_v48, %v12260_v53 }
 0x350   :  { %v3861_v41 = vpop.f32.mrb[26].mxu1  ;;  %v3860_v43 = vadd.f32 %v3859_v0, %v3819_v40  ;;  %v12272_v55 = vadd.f32 %v3955_v59, %v12243_v3  ;;  %v3967_v3 = vrot.slane %v3946_v48, %v3966_v56 }
 0x351   :  { %v3862_v44 = vpop.f32.mrb[27].mxu1  ;;  %v12276_v58 = vadd.f32 %v3959_v50, %v12247_v10 }
 0x352   :  { %v4017_v19 = vmul.f32 %v12272_v55, %v12272_v55  ;;  %v3998_v10 = vsel %vm3996_vm0, %v12272_v55, 0.0  ;;  %v12301_v63 = vadd.f32 %v3967_v3, %v3858_v6  ;;  %v12310_v18 = vadd.f32 %v3971_v7, %v3860_v43 }
 0x353   :  { %v4018_v2 = vmul.f32 %v12276_v58, %v12276_v58  ;;  %v4000_v8 = vsel %vm3996_vm0, %v12276_v58, 0.0  ;;  %v3999_v54 = vadd.f32 %v3998_v10, %v3997_v1 }
 0x354   :  { %v4025_v33 = vsel %vm3996_vm0, %v4017_v19, 0.0  ;;  %v4020_v16 = vmul.f32 %v12301_v63, %v12301_v63  ;;  %v4004_v25 = vsel %vm3996_vm0, %v12301_v63, 0.0  ;;  %v4021_v24 = vmul.f32 %v12310_v18, %v12310_v18 }
 0x355   :  { %v4027_v9 = vsel %vm3996_vm0, %v4018_v2, 0.0  ;;  %v4026_v13 = vadd.f32 %v4025_v33, %v4024_v28  ;;  %v4001_v11 = vadd.f32 %v4000_v8, %v3999_v54  ;;  %v4151_v28 = vld [vmem:[#allocation11 + $0x240] sm:$0xff]  ;;  %v4152_v8 = vld [vmem:[#allocation11 + $0x248] sm:$0xff] }
 0x356   :  { %v4031_v31 = vsel %vm3996_vm0, %v4020_v16, 0.0  ;;  %v4155_v33 = vld [vmem:[#allocation11 + $0x260] sm:$0xff] }
 0x357   :  { %v4028_v21 = vadd.f32 %v4027_v9, %v4026_v13  ;;  %v4003_v23 = vadd.f32 %v4002_v14, %v4001_v11  ;;  %v10503_v54 = vcombine.low %v4151_v28, %v4155_v33  ;;  %v10504_v9 = vcombine.high %v4151_v28, %v4155_v33  ;;  %v4159_v14 = vld [vmem:[#allocation11 + $0x280] sm:$0xff]  ;;  %v4200_v33 = vld [vmem:[#allocation11 + $0x3c8] sm:$0xff] }
 0x358   :  { %v10505_v13 = vcombine.low %v4152_v8, %v4156_v4  ;;  %v10506_v11 = vcombine.high %v4152_v8, %v4156_v4  ;;  %v4163_v16 = vld [vmem:[#allocation11 + $0x2a0] sm:$0xff]  ;;  %v4204_v8 = vld [vmem:[#allocation11 + $0x3e8] sm:$0xff] }
 0x359   :  { %v4005_v39 = vadd.f32 %v4004_v25, %v4003_v23  ;;  %v4030_v57 = vadd.f32 %v4029_v22, %v4028_v21  ;;  %7211 = vmatprep.subr.bf16.mxu0 %v10504_v9  ;;  %v4160_v21 = vld [vmem:[#allocation11 + $0x288] sm:$0xff]  ;;  %v10512_v22 = vcombine.high %v4159_v14, %v4163_v16  ;;  %v4203_v28 = vld [vmem:[#allocation11 + $0x3e0] sm:$0xff] }
 0x35a   :  { %7375 = vmatprep.subr.bf16.mxu1 %v10506_v11  ;;  %7212 = vmatpush1.bf16.msra.mxu0 %v10503_v54  ;;  %v4164_v25 = vld [vmem:[#allocation11 + $0x2a8] sm:$0xff] }
 0x35b   :  { %v4032_v42 = vadd.f32 %v4031_v31, %v4030_v57  ;;  %7376 = vmatpush1.bf16.msra.mxu1 %v10505_v13  ;;  %v10513_v23 = vcombine.low %v4160_v21, %v4164_v25  ;;  %7213 = vmatprep.subr.bf16.mxu0 %v10512_v22  ;;  %v4172_v31 = vld [vmem:[#allocation11 + $0x2e8] sm:$0xff]  ;;  %v10554_v13 = vcombine.high %v4200_v33, %v4204_v8 }
 0x35c   :  { %v4176_v57 = vld [vmem:[#allocation11 + $0x308] sm:$0xff] }
 0x35d   :  { %v4208_v22 = vld [vmem:[#allocation11 + $0x408] sm:$0xff] }
 0x38c   :  { %v3898_v17 = vpop.f32.mrb[28].mxu0 }
 0x38d   :  { %v3899_v30 = vadd.f32 %v3898_v17, %v12233_v26  ;;  %v3900_v27 = vpop.f32.mrb[29].mxu0  ;;  %v4006_v26 = vsel %vm3996_vm0, %v12310_v18, 0.0  ;;  %v10511_v17 = vcombine.low %v4159_v14, %v4163_v16  ;;  %v10553_v14 = vcombine.low %v4200_v33, %v4204_v8  ;;  %v4207_v16 = vld [vmem:[#allocation11 + $0x400] sm:$0xff]  ;;  %v4228_v33 = vld [vmem:[#allocation11 + $0x4a8] sm:$0xff] }
 0x38e   :  { %v3939_v29 = vpop.f32.mrb[28].mxu1  ;;  %v3901_v34 = vadd.f32 %v3900_v27, %v12235_v35  ;;  %v3902_v38 = vpop.f32.mrb[30].mxu0  ;;  %v4033_v35 = vsel %vm3996_vm0, %v4021_v24, 0.0  ;;  %v4007_v49 = vadd.f32 %v4006_v26, %v4005_v39  ;;  %v10514_v24 = vcombine.high %v4160_v21, %v4164_v25  ;;  %v4179_v39 = vld [vmem:[#allocation11 + $0x320] sm:$0xff] }
 0x38f   :  { %v3941_v36 = vpop.f32.mrb[29].mxu1  ;;  %v3940_v40 = vadd.f32 %v3939_v29, %v3899_v30  ;;  %v3903_v60 = vpop.f32.mrb[31].mxu0  ;;  %v4034_v19 = vadd.f32 %v4033_v35, %v4032_v42  ;;  %7214 = vmatpush1.bf16.msra.mxu0 %v10511_v17  ;;  %v4167_v30 = vld [vmem:[#allocation11 + $0x2c0] sm:$0xff]  ;;  %v4212_v17 = vld [vmem:[#allocation11 + $0x428] sm:$0xff] }
 0x390   :  { %v3943_v0 = vpop.f32.mrb[30].mxu1  ;;  %v3942_v6 = vadd.f32 %v3941_v36, %v3901_v34  ;;  %7377 = vmatprep.subr.bf16.mxu1 %v10514_v24  ;;  %v4171_v29 = vld [vmem:[#allocation11 + $0x2e0] sm:$0xff]  ;;  %v4180_v60 = vld [vmem:[#allocation11 + $0x328] sm:$0xff]  ;;  %v10561_v24 = vcombine.low %v4208_v22, %v4212_v17 }
 0x391   :  { %v3944_v41 = vpop.f32.mrb[31].mxu1  ;;  %v12328_v43 = vadd.f32 %v3975_v32, %v3940_v40  ;;  %v4168_v32 = vld [vmem:[#allocation11 + $0x2c8] sm:$0xff]  ;;  %7378 = vmatpush1.bf16.msra.mxu1 %v10513_v23  ;;  %v10520_v27 = vcombine.high %v4167_v30, %v4171_v29  ;;  %v10519_v34 = vcombine.low %v4167_v30, %v4171_v29  ;;  %v4175_v38 = vld [vmem:[#allocation11 + $0x300] sm:$0xff]  ;;  %v10530_v42 = vcombine.high %v4176_v57, %v4180_v60 }
 0x392   :  { %v12331_v44 = vadd.f32 %v3979_v37, %v3942_v6  ;;  %v10521_v36 = vcombine.low %v4168_v32, %v4172_v31  ;;  %v10522_v37 = vcombine.high %v4168_v32, %v4172_v31  ;;  %v10527_v40 = vcombine.low %v4175_v38, %v4179_v39  ;;  %v4183_v26 = vld [vmem:[#allocation11 + $0x340] sm:$0xff] }
 0x393   :  { %v4008_v48 = vsel %vm3996_vm0, %v12328_v43, 0.0  ;;  %v4022_v59 = vmul.f32 %v12328_v43, %v12328_v43  ;;  %7215 = vmatprep.subr.bf16.mxu0 %v10520_v27  ;;  %v10528_v0 = vcombine.high %v4175_v38, %v4179_v39  ;;  %v4187_v6 = vld [vmem:[#allocation11 + $0x360] sm:$0xff]  ;;  %v10529_v41 = vcombine.low %v4176_v57, %v4180_v60 }
 0x394   :  { %v4009_v50 = vadd.f32 %v4008_v48, %v4007_v49  ;;  %v4010_v61 = vsel %vm3996_vm0, %v12331_v44, 0.0  ;;  %v4023_v62 = vmul.f32 %v12331_v44, %v12331_v44  ;;  %7379 = vmatprep.subr.bf16.mxu1 %v10522_v37  ;;  %7216 = vmatpush1.bf16.msra.mxu0 %v10519_v34  ;;  %v10536_v35 = vcombine.high %v4183_v26, %v4187_v6  ;;  %v4184_v49 = vld [vmem:[#allocation11 + $0x348] sm:$0xff]  ;;  %v4211_v21 = vld [vmem:[#allocation11 + $0x420] sm:$0xff] }
 0x395   :  { %v4035_v3 = vsel %vm3996_vm0, %v4022_v59, 0.0  ;;  %7380 = vmatpush1.bf16.msra.mxu1 %v10521_v36  ;;  %v4188_v48 = vld [vmem:[#allocation11 + $0x368] sm:$0xff]  ;;  %v4191_v59 = vld [vmem:[#allocation11 + $0x380] sm:$0xff]  ;;  %7217 = vmatprep.subr.bf16.mxu0 %v10528_v0  ;;  %v10560_v25 = vcombine.high %v4207_v16, %v4211_v21  ;;  %v10559_v23 = vcombine.low %v4207_v16, %v4211_v21  ;;  %v10562_v30 = vcombine.high %v4208_v22, %v4212_v17 }
 0x396   :  { %v4011_v1 = vadd.f32 %v4010_v61, %v4009_v50  ;;  %v4036_v10 = vadd.f32 %v4035_v3, %v4034_v19  ;;  %v4037_v2 = vsel %vm3996_vm0, %v4023_v62, 0.0  ;;  %v10538_v50 = vcombine.high %v4184_v49, %v4188_v48  ;;  %v4195_v61 = vld [vmem:[#allocation11 + $0x3a0] sm:$0xff]  ;;  %v4192_v62 = vld [vmem:[#allocation11 + $0x388] sm:$0xff]  ;;  %7381 = vmatprep.subr.bf16.mxu1 %v10530_v42 }
 0x397   :  { %v4196_v19 = vld [vmem:[#allocation11 + $0x3a8] sm:$0xff]  ;;  %v10535_v3 = vcombine.low %v4183_v26, %v4187_v6  ;;  %v10543_v54 = vcombine.low %v4191_v59, %v4195_v61 }
 0x398   :  { %4012 = vadd.xlane.f32.xlu0 %v4011_v1  ;;  %v4038_v7 = vadd.f32 %v4037_v2, %v4036_v10  ;;  %7218 = vmatpush1.bf16.msra.mxu0 %v10527_v40  ;;  %v10537_v1 = vcombine.low %v4184_v49, %v4188_v48  ;;  %v10544_v10 = vcombine.high %v4191_v59, %v4195_v61  ;;  %v4232_v16 = vld [vmem:[#allocation11 + $0x4c8] sm:$0xff] }
 0x399   :  { %7382 = vmatpush1.bf16.msra.mxu1 %v10529_v41  ;;  %7219 = vmatprep.subr.bf16.mxu0 %v10536_v35  ;;  %v10546_v2 = vcombine.high %v4192_v62, %v4196_v19  ;;  %v10545_v9 = vcombine.low %v4192_v62, %v4196_v19  ;;  %v4216_v62 = vld [vmem:[#allocation11 + $0x448] sm:$0xff] }
 0x39a   :  { %7383 = vmatprep.subr.bf16.mxu1 %v10538_v50  ;;  %v4236_v21 = vld [vmem:[#allocation11 + $0x4e8] sm:$0xff] }
 0x39c   :  { %4039 = vadd.xlane.f32.xlu0 %v4038_v7  ;;  %v4199_v7 = vld [vmem:[#allocation11 + $0x3c0] sm:$0xff]  ;;  %7220 = vmatpush1.bf16.msra.mxu0 %v10535_v3 }
 0x39d   :  { %7384 = vmatpush1.bf16.msra.mxu1 %v10537_v1  ;;  %7221 = vmatprep.subr.bf16.mxu0 %v10544_v10  ;;  %v10552_v4 = vcombine.high %v4199_v7, %v4203_v28  ;;  %v10551_v11 = vcombine.low %v4199_v7, %v4203_v28  ;;  %v4223_v1 = vld [vmem:[#allocation11 + $0x480] sm:$0xff]  ;;  %v4224_v28 = vld [vmem:[#allocation11 + $0x488] sm:$0xff] }
 0x39e   :  { %7385 = vmatprep.subr.bf16.mxu1 %v10546_v2  ;;  %v4227_v7 = vld [vmem:[#allocation11 + $0x4a0] sm:$0xff] }
 0x39f   :  { %v10575_v22 = vcombine.low %v4223_v1, %v4227_v7 }
 0x3a0   :  { %7222 = vmatpush1.bf16.msra.mxu0 %v10543_v54 }
 0x3a1   :  { %7386 = vmatpush1.bf16.msra.mxu1 %v10545_v9  ;;  %7223 = vmatprep.subr.bf16.mxu0 %v10552_v4  ;;  %v10576_v4 = vcombine.high %v4223_v1, %v4227_v7  ;;  %v4271_v7 = vld [vmem:[#allocation11 + $0x600] sm:$0xff] }
 0x3a2   :  { %7387 = vmatprep.subr.bf16.mxu1 %v10554_v13  ;;  %v10578_v13 = vcombine.high %v4224_v28, %v4228_v33 }
 0x3a4   :  { %7224 = vmatpush1.bf16.msra.mxu0 %v10551_v11  ;;  %v4231_v11 = vld [vmem:[#allocation11 + $0x4c0] sm:$0xff] }
 0x3a5   :  { %7388 = vmatpush1.bf16.msra.mxu1 %v10553_v14  ;;  %7234 = vmatprep.subr.bf16.mxu0 %v10560_v25  ;;  %v4235_v14 = vld [vmem:[#allocation11 + $0x4e0] sm:$0xff]  ;;  %v10577_v25 = vcombine.low %v4224_v28, %v4228_v33  ;;  %v4272_v33 = vld [vmem:[#allocation11 + $0x608] sm:$0xff] }
 0x3a6   :  { %7398 = vmatprep.subr.bf16.mxu1 %v10562_v30  ;;  %v10584_v17 = vcombine.high %v4231_v11, %v4235_v14  ;;  %v4243_v30 = vld [vmem:[#allocation11 + $0x520] sm:$0xff] }
 0x3a7   :  { %v4275_v28 = vld [vmem:[#allocation11 + $0x620] sm:$0xff] }
 0x425   :  { %v4013_v29 = vpop.xlane.xlu0 %4012 }
 0x426   :  { %v4015_v32 = vmul.f32 0.0009765625, %v4013_v29  ;;  %v4240_v29 = vld [vmem:[#allocation11 + $0x508] sm:$0xff] }
 0x428   :  { %v4042_v31 = vmul.f32 %v4015_v32, %v4015_v32  ;;  %v4046_v39 = vsub.f32 %v12272_v55, %v4015_v32  ;;  %v4045_v57 = vsub.f32 %v12269_v52, %v4015_v32  ;;  %v4048_v40 = vsub.f32 %v12293_v5, %v4015_v32 }
 0x429   :  { %v4040_v27 = vpop.xlane.xlu0 %4039  ;;  %v4047_v0 = vsub.f32 %v12276_v58, %v4015_v32  ;;  %v4050_v26 = vsub.f32 %v12310_v18, %v4015_v32  ;;  %v4049_v6 = vsub.f32 %v12301_v63, %v4015_v32  ;;  %v4052_v41 = vsub.f32 %v12331_v44, %v4015_v32  ;;  %v4215_v63 = vld [vmem:[#allocation11 + $0x440] sm:$0xff] }
 0x42a   :  { %v4041_v34 = vmul.f32 0.0009765625, %v4040_v27  ;;  %v4051_v42 = vsub.f32 %v12328_v43, %v4015_v32  ;;  %v4219_v44 = vld [vmem:[#allocation11 + $0x460] sm:$0xff]  ;;  %v4220_v43 = vld [vmem:[#allocation11 + $0x468] sm:$0xff]  ;;  %v10583_v27 = vcombine.low %v4231_v11, %v4235_v14 }
 0x42b   :  { %v10568_v10 = vcombine.high %v4215_v63, %v4219_v44  ;;  %v10570_v2 = vcombine.high %v4216_v62, %v4220_v43  ;;  %v10567_v54 = vcombine.low %v4215_v63, %v4219_v44  ;;  %v10569_v9 = vcombine.low %v4216_v62, %v4220_v43  ;;  %v4244_v32 = vld [vmem:[#allocation11 + $0x528] sm:$0xff]  ;;  %v4263_v63 = vld [vmem:[#allocation11 + $0x5c0] sm:$0xff] }
 0x42c   :  { %v4043_v36 = vsub.f32 %v4041_v34, %v4042_v31  ;;  %v10585_v31 = vcombine.low %v4232_v16, %v4236_v21  ;;  %v4264_v44 = vld [vmem:[#allocation11 + $0x5c8] sm:$0xff]  ;;  %v4279_v14 = vld [vmem:[#allocation11 + $0x640] sm:$0xff] }
 0x42d   :  { %v4268_v62 = vld [vmem:[#allocation11 + $0x5e8] sm:$0xff] }
 0x42e   :  { %v4044_v37 = vmax.f32 %v4043_v36, 0.0  ;;  %v10594_v36 = vcombine.high %v4240_v29, %v4244_v32 }
 0x430   :  { %v4053_v38 = vadd.f32 1e-05, %v4044_v37  ;;  %v4247_v37 = vld [vmem:[#allocation11 + $0x540] sm:$0xff] }
 0x432   :  { %11686 = vrsqrt.f32 %v4053_v38  ;;  %v4251_v38 = vld [vmem:[#allocation11 + $0x560] sm:$0xff] }
 0x43c   :  { %v11687_v60 = vpop.eup %11686 }
 0x43d   :  { %v4056_v35 = vmul.f32 %v11687_v60, %v4046_v39  ;;  %v4055_v49 = vmul.f32 %v11687_v60, %v4045_v57  ;;  %v4058_v48 = vmul.f32 %v11687_v60, %v4048_v40  ;;  %v12351_v59 = vmul.f32 %v11687_v60, %v4047_v0  ;;  %v4248_v39 = vld [vmem:[#allocation11 + $0x548] sm:$0xff] }
 0x43e   :  { %v12353_v55 = vmul.f32 %v11687_v60, %v4050_v26  ;;  %v12355_v52 = vmul.f32 %v11687_v60, %v4049_v6  ;;  %v12357_v5 = vmul.f32 %v11687_v60, %v4052_v41  ;;  %v12359_v58 = vmul.f32 %v11687_v60, %v4051_v42  ;;  %v4252_v57 = vld [vmem:[#allocation11 + $0x568] sm:$0xff]  ;;  %v4255_v6 = vld [vmem:[#allocation11 + $0x580] sm:$0xff] }
 0x43f   :  { %v4064_v18 = vmax.f32 %v4056_v35, 0.0  ;;  %v4063_v50 = vmax.f32 %v4055_v49, 0.0  ;;  %v4066_v61 = vmax.f32 %v4058_v48, 0.0  ;;  %v10593_v0 = vcombine.low %v4240_v29, %v4244_v32  ;;  %v4259_v41 = vld [vmem:[#allocation11 + $0x5a0] sm:$0xff]  ;;  %v4256_v42 = vld [vmem:[#allocation11 + $0x588] sm:$0xff] }
 0x440   :  { %v10600_v60 = vcombine.high %v4247_v37, %v4251_v38  ;;  %v10602_v26 = vcombine.high %v4248_v39, %v4252_v57  ;;  %v4260_v35 = vld [vmem:[#allocation11 + $0x5a8] sm:$0xff]  ;;  %v10599_v49 = vcombine.low %v4247_v37, %v4251_v38  ;;  %v10601_v48 = vcombine.low %v4248_v39, %v4252_v57  ;;  %v4291_v29 = vld [vmem:[#allocation11 + $0x6a0] sm:$0xff] }
 0x441   :  { %v12361_v19 = vpack.c.bf16 %v4064_v18, %v4064_v18  ;;  %v12363_v3 = vpack.c.bf16 %v4063_v50, %v4063_v50  ;;  %v12369_v8 = vpack.c.bf16 %v4066_v61, %v4066_v61  ;;  %v10608_v18 = vcombine.high %v4255_v6, %v4259_v41  ;;  %v4267_v61 = vld [vmem:[#allocation11 + $0x5e0] sm:$0xff]  ;;  %v4288_v32 = vld [vmem:[#allocation11 + $0x688] sm:$0xff] }
 0x442   :  { %v10610_v50 = vcombine.high %v4256_v42, %v4260_v35  ;;  %v10607_v43 = vcombine.low %v4255_v6, %v4259_v41  ;;  %v10609_v1 = vcombine.low %v4256_v42, %v4260_v35  ;;  %v4295_v38 = vld [vmem:[#allocation11 + $0x6c0] sm:$0xff]  ;;  %v4296_v57 = vld [vmem:[#allocation11 + $0x6c8] sm:$0xff] }
 0x443   :  { %7225 = vmatprep.mubr.bf16.mxu0 %v12361_v19  ;;  %7389 = vmatprep.mubr.bf16.mxu1 %v12361_v19  ;;  %v4299_v39 = vld [vmem:[#allocation11 + $0x6e0] sm:$0xff]  ;;  %v4304_v35 = vld [vmem:[#allocation11 + $0x708] sm:$0xff] }
 0x444   :  { %7226 = vmatmul.mubr.bf16.vlgmr.msra.gmra.mrb[32].mxu0 %v12363_v3  ;;  %7390 = vmatmul.mubr.bf16.vlgmr.msra.gmra.mrb[32].mxu1 %v12363_v3  ;;  %v4303_v41 = vld [vmem:[#allocation11 + $0x700] sm:$0xff] }
 0x445   :  { %7235 = vmatpush1.bf16.msra.mxu0 %v10559_v23  ;;  %7399 = vmatpush1.bf16.msra.mxu1 %v10561_v24  ;;  %v10586_v23 = vcombine.high %v4232_v16, %v4236_v21  ;;  %v4239_v24 = vld [vmem:[#allocation11 + $0x500] sm:$0xff]  ;;  %v4280_v21 = vld [vmem:[#allocation11 + $0x648] sm:$0xff] }
 0x446   :  { %7266 = vmatprep.mubr.bf16.mxu0 %v12369_v8  ;;  %7430 = vmatprep.mubr.bf16.mxu1 %v12369_v8  ;;  %v10592_v34 = vcombine.high %v4239_v24, %v4243_v30  ;;  %v10591_v40 = vcombine.low %v4239_v24, %v4243_v30  ;;  %v4283_v16 = vld [vmem:[#allocation11 + $0x660] sm:$0xff] }
 0x447   :  { %7236 = vmatprep.subr.bf16.mxu0 %v10568_v10  ;;  %7400 = vmatprep.subr.bf16.mxu1 %v10570_v2  ;;  %v10616_v10 = vcombine.high %v4263_v63, %v4267_v61  ;;  %v10618_v2 = vcombine.high %v4264_v44, %v4268_v62  ;;  %v4287_v30 = vld [vmem:[#allocation11 + $0x680] sm:$0xff] }
 0x448   :  { %v4307_v42 = vld [vmem:[#allocation11 + $0x720] sm:$0xff] }
 0x449   :  { %7237 = vmatpush1.bf16.msra.mxu0 %v10567_v54  ;;  %7401 = vmatpush1.bf16.msra.mxu1 %v10569_v9  ;;  %v4276_v54 = vld [vmem:[#allocation11 + $0x628] sm:$0xff]  ;;  %v10615_v9 = vcombine.low %v4263_v63, %v4267_v61  ;;  %v4311_v61 = vld [vmem:[#allocation11 + $0x740] sm:$0xff] }
 0x44a   :  { %7238 = vmatprep.subr.bf16.mxu0 %v10576_v4  ;;  %7402 = vmatprep.subr.bf16.mxu1 %v10578_v13  ;;  %v10617_v4 = vcombine.low %v4264_v44, %v4268_v62  ;;  %v10624_v13 = vcombine.high %v4271_v7, %v4275_v28  ;;  %v10626_v11 = vcombine.high %v4272_v33, %v4276_v54  ;;  %v4315_v44 = vld [vmem:[#allocation11 + $0x760] sm:$0xff]  ;;  %v4312_v62 = vld [vmem:[#allocation11 + $0x748] sm:$0xff] }
 0x44d   :  { %7239 = vmatpush1.bf16.msra.mxu0 %v10575_v22  ;;  %7403 = vmatpush1.bf16.msra.mxu1 %v10577_v25  ;;  %v4284_v22 = vld [vmem:[#allocation11 + $0x668] sm:$0xff]  ;;  %v10623_v25 = vcombine.low %v4271_v7, %v4275_v28  ;;  %v4319_v28 = vld [vmem:[#allocation11 + $0x780] sm:$0xff] }
 0x44e   :  { %7240 = vmatprep.subr.bf16.mxu0 %v10584_v17  ;;  %7404 = vmatprep.subr.bf16.mxu1 %v10586_v23  ;;  %v10625_v17 = vcombine.low %v4272_v33, %v4276_v54  ;;  %v10632_v23 = vcombine.high %v4279_v14, %v4283_v16  ;;  %v10634_v24 = vcombine.high %v4280_v21, %v4284_v22  ;;  %v4323_v33 = vld [vmem:[#allocation11 + $0x7a0] sm:$0xff]  ;;  %v4320_v54 = vld [vmem:[#allocation11 + $0x788] sm:$0xff] }
 0x451   :  { %7241 = vmatpush1.bf16.msra.mxu0 %v10583_v27  ;;  %7405 = vmatpush1.bf16.msra.mxu1 %v10585_v31  ;;  %v4292_v27 = vld [vmem:[#allocation11 + $0x6a8] sm:$0xff]  ;;  %v10631_v31 = vcombine.low %v4279_v14, %v4283_v16  ;;  %v4327_v16 = vld [vmem:[#allocation11 + $0x7c0] sm:$0xff] }
 0x452   :  { %7242 = vmatprep.subr.bf16.mxu0 %v10592_v34  ;;  %7406 = vmatprep.subr.bf16.mxu1 %v10594_v36  ;;  %v10633_v34 = vcombine.low %v4280_v21, %v4284_v22  ;;  %v10640_v36 = vcombine.high %v4287_v30, %v4291_v29  ;;  %v10642_v37 = vcombine.high %v4288_v32, %v4292_v27  ;;  %v4331_v21 = vld [vmem:[#allocation11 + $0x7e0] sm:$0xff]  ;;  %v4328_v22 = vld [vmem:[#allocation11 + $0x7c8] sm:$0xff] }
 0x455   :  { %7243 = vmatpush1.bf16.msra.mxu0 %v10591_v40  ;;  %7407 = vmatpush1.bf16.msra.mxu1 %v10593_v0  ;;  %v4300_v40 = vld [vmem:[#allocation11 + $0x6e8] sm:$0xff]  ;;  %v10639_v0 = vcombine.low %v4287_v30, %v4291_v29  ;;  %v4335_v29 = vld [vmem:[#allocation11 + $0x800] sm:$0xff] }
 0x456   :  { %7244 = vmatprep.subr.bf16.mxu0 %v10600_v60  ;;  %7408 = vmatprep.subr.bf16.mxu1 %v10602_v26  ;;  %v10641_v60 = vcombine.low %v4288_v32, %v4292_v27  ;;  %v10648_v26 = vcombine.high %v4295_v38, %v4299_v39  ;;  %v10650_v6 = vcombine.high %v4296_v57, %v4300_v40  ;;  %v4339_v32 = vld [vmem:[#allocation11 + $0x820] sm:$0xff]  ;;  %v4336_v27 = vld [vmem:[#allocation11 + $0x808] sm:$0xff] }
 0x459   :  { %7245 = vmatpush1.bf16.msra.mxu0 %v10599_v49  ;;  %7409 = vmatpush1.bf16.msra.mxu1 %v10601_v48  ;;  %v4308_v49 = vld [vmem:[#allocation11 + $0x728] sm:$0xff]  ;;  %v10647_v48 = vcombine.low %v4295_v38, %v4299_v39  ;;  %v10688_v38 = vcombine.high %v4335_v29, %v4339_v32 }
 0x45a   :  { %7246 = vmatprep.subr.bf16.mxu0 %v10608_v18  ;;  %7410 = vmatprep.subr.bf16.mxu1 %v10610_v50  ;;  %v10649_v18 = vcombine.low %v4296_v57, %v4300_v40  ;;  %v10656_v50 = vcombine.high %v4303_v41, %v4307_v42  ;;  %v10658_v63 = vcombine.high %v4304_v35, %v4308_v49  ;;  %v4068_v57 = vmax.f32 %v12353_v55, 0.0  ;;  %v4343_v40 = vld [vmem:[#allocation11 + $0x840] sm:$0xff]  ;;  %v4352_v55 = vld [vmem:[#allocation11 + $0x888] sm:$0xff] }
 0x45d   :  { %7247 = vmatpush1.bf16.msra.mxu0 %v10607_v43  ;;  %7411 = vmatpush1.bf16.msra.mxu1 %v10609_v1  ;;  %v4316_v43 = vld [vmem:[#allocation11 + $0x768] sm:$0xff]  ;;  %v10655_v1 = vcombine.low %v4303_v41, %v4307_v42 }
 0x45e   :  { %7248 = vmatprep.subr.bf16.mxu0 %v10616_v10  ;;  %7412 = vmatprep.subr.bf16.mxu1 %v10618_v2  ;;  %v10657_v10 = vcombine.low %v4304_v35, %v4308_v49  ;;  %v10664_v2 = vcombine.high %v4311_v61, %v4315_v44  ;;  %v10666_v7 = vcombine.high %v4312_v62, %v4316_v43 }
 0x45f   :  { %v12377_v35 = vpack.c.bf16 %v4068_v57, %v4068_v57 }
 0x461   :  { %7249 = vmatpush1.bf16.msra.mxu0 %v10615_v9  ;;  %7413 = vmatpush1.bf16.msra.mxu1 %v10617_v4  ;;  %v4324_v9 = vld [vmem:[#allocation11 + $0x7a8] sm:$0xff]  ;;  %v10663_v4 = vcombine.low %v4311_v61, %v4315_v44 }
 0x462   :  { %7250 = vmatprep.subr.bf16.mxu0 %v10624_v13  ;;  %7414 = vmatprep.subr.bf16.mxu1 %v10626_v11  ;;  %v10665_v13 = vcombine.low %v4312_v62, %v4316_v43  ;;  %v10672_v11 = vcombine.high %v4319_v28, %v4323_v33  ;;  %v10674_v14 = vcombine.high %v4320_v54, %v4324_v9  ;;  %v4359_v43 = vld [vmem:[#allocation11 + $0x8c0] sm:$0xff] }
 0x465   :  { %7251 = vmatpush1.bf16.msra.mxu0 %v10623_v25  ;;  %7415 = vmatpush1.bf16.msra.mxu1 %v10625_v17  ;;  %v4332_v25 = vld [vmem:[#allocation11 + $0x7e8] sm:$0xff]  ;;  %v10671_v17 = vcombine.low %v4319_v28, %v4323_v33 }
 0x466   :  { %7252 = vmatprep.subr.bf16.mxu0 %v10632_v23  ;;  %7416 = vmatprep.subr.bf16.mxu1 %v10634_v24  ;;  %v10673_v23 = vcombine.low %v4320_v54, %v4324_v9  ;;  %v10680_v24 = vcombine.high %v4327_v16, %v4331_v21  ;;  %v10682_v30 = vcombine.high %v4328_v22, %v4332_v25  ;;  %v4367_v9 = vld [vmem:[#allocation11 + $0x900] sm:$0xff] }
 0x469   :  { %7253 = vmatpush1.bf16.msra.mxu0 %v10631_v31  ;;  %7417 = vmatpush1.bf16.msra.mxu1 %v10633_v34  ;;  %v4340_v31 = vld [vmem:[#allocation11 + $0x828] sm:$0xff]  ;;  %v10679_v34 = vcombine.low %v4327_v16, %v4331_v21 }
 0x46a   :  { %7254 = vmatprep.subr.bf16.mxu0 %v10640_v36  ;;  %7418 = vmatprep.subr.bf16.mxu1 %v10642_v37  ;;  %v10681_v36 = vcombine.low %v4328_v22, %v4332_v25  ;;  %v4065_v37 = vmax.f32 %v12351_v59, 0.0  ;;  %v10690_v39 = vcombine.high %v4336_v27, %v4340_v31  ;;  %v10689_v42 = vcombine.low %v4336_v27, %v4340_v31  ;;  %v4375_v25 = vld [vmem:[#allocation11 + $0x940] sm:$0xff] }
 0x46b   :  { %v4383_v31 = vld [vmem:[#allocation11 + $0x980] sm:$0xff] }
 0x46c   :  { %v12375_v41 = vpack.c.bf16 %v4065_v37, %v4065_v37  ;;  %v4388_v37 = vld [vmem:[#allocation11 + $0x9a8] sm:$0xff] }
 0x46d   :  { %7255 = vmatpush1.bf16.msra.mxu0 %v10639_v0  ;;  %7419 = vmatpush1.bf16.msra.mxu1 %v10641_v60  ;;  %v4347_v0 = vld [vmem:[#allocation11 + $0x860] sm:$0xff]  ;;  %v4344_v60 = vld [vmem:[#allocation11 + $0x848] sm:$0xff] }
 0x46e   :  { %7256 = vmatprep.subr.bf16.mxu0 %v10648_v26  ;;  %7420 = vmatprep.subr.bf16.mxu1 %v10650_v6  ;;  %v4348_v26 = vld [vmem:[#allocation11 + $0x868] sm:$0xff]  ;;  %v10687_v6 = vcombine.low %v4335_v29, %v4339_v32  ;;  %v10696_v49 = vcombine.high %v4343_v40, %v4347_v0 }
 0x46f   :  { %v10698_v59 = vcombine.high %v4344_v60, %v4348_v26  ;;  %v10697_v61 = vcombine.low %v4344_v60, %v4348_v26  ;;  %v4395_v60 = vld [vmem:[#allocation11 + $0x9e0] sm:$0xff]  ;;  %v4392_v26 = vld [vmem:[#allocation11 + $0x9c8] sm:$0xff] }
 0x471   :  { %7257 = vmatpush1.bf16.msra.mxu0 %v10647_v48  ;;  %7421 = vmatpush1.bf16.msra.mxu1 %v10649_v18  ;;  %v4351_v48 = vld [vmem:[#allocation11 + $0x880] sm:$0xff] }
 0x472   :  { %7258 = vmatprep.subr.bf16.mxu0 %v10656_v50  ;;  %7422 = vmatprep.subr.bf16.mxu1 %v10658_v63  ;;  %v4355_v18 = vld [vmem:[#allocation11 + $0x8a0] sm:$0xff]  ;;  %v4356_v50 = vld [vmem:[#allocation11 + $0x8a8] sm:$0xff]  ;;  %v10695_v63 = vcombine.low %v4343_v40, %v4347_v0 }
 0x473   :  { %v10704_v44 = vcombine.high %v4351_v48, %v4355_v18  ;;  %v10706_v62 = vcombine.high %v4352_v55, %v4356_v50  ;;  %v10705_v28 = vcombine.low %v4352_v55, %v4356_v50  ;;  %v4391_v0 = vld [vmem:[#allocation11 + $0x9c0] sm:$0xff]  ;;  %v4400_v50 = vld [vmem:[#allocation11 + $0xa08] sm:$0xff] }
 0x474   :  { %v4403_v55 = vld [vmem:[#allocation11 + $0xa20] sm:$0xff] }
 0x475   :  { %7259 = vmatpush1.bf16.msra.mxu0 %v10655_v1  ;;  %7423 = vmatpush1.bf16.msra.mxu1 %v10657_v10  ;;  %v4363_v1 = vld [vmem:[#allocation11 + $0x8e0] sm:$0xff]  ;;  %v4360_v10 = vld [vmem:[#allocation11 + $0x8c8] sm:$0xff] }
 0x476   :  { %7260 = vmatprep.subr.bf16.mxu0 %v10664_v2  ;;  %7424 = vmatprep.subr.bf16.mxu1 %v10666_v7  ;;  %v4364_v2 = vld [vmem:[#allocation11 + $0x8e8] sm:$0xff]  ;;  %v10703_v7 = vcombine.low %v4351_v48, %v4355_v18  ;;  %v10712_v33 = vcombine.high %v4359_v43, %v4363_v1  ;;  %v4399_v18 = vld [vmem:[#allocation11 + $0xa00] sm:$0xff] }
 0x477   :  { %v10714_v54 = vcombine.high %v4360_v10, %v4364_v2  ;;  %v10713_v16 = vcombine.low %v4360_v10, %v4364_v2  ;;  %v4411_v10 = vld [vmem:[#allocation11 + $0xa60] sm:$0xff]  ;;  %v4408_v2 = vld [vmem:[#allocation11 + $0xa48] sm:$0xff] }
 0x479   :  { %7261 = vmatpush1.bf16.msra.mxu0 %v10663_v4  ;;  %7425 = vmatpush1.bf16.msra.mxu1 %v10665_v13  ;;  %v4371_v4 = vld [vmem:[#allocation11 + $0x920] sm:$0xff]  ;;  %v4368_v13 = vld [vmem:[#allocation11 + $0x908] sm:$0xff] }
 0x47a   :  { %7262 = vmatprep.subr.bf16.mxu0 %v10672_v11  ;;  %7426 = vmatprep.subr.bf16.mxu1 %v10674_v14  ;;  %v4372_v11 = vld [vmem:[#allocation11 + $0x928] sm:$0xff]  ;;  %v10711_v14 = vcombine.low %v4359_v43, %v4363_v1  ;;  %v10720_v21 = vcombine.high %v4367_v9, %v4371_v4  ;;  %v4407_v1 = vld [vmem:[#allocation11 + $0xa40] sm:$0xff] }
 0x47b   :  { %v10722_v22 = vcombine.high %v4368_v13, %v4372_v11  ;;  %v10721_v29 = vcombine.low %v4368_v13, %v4372_v11  ;;  %v4419_v13 = vld [vmem:[#allocation11 + $0xaa0] sm:$0xff]  ;;  %v4416_v11 = vld [vmem:[#allocation11 + $0xa88] sm:$0xff] }
 0x47d   :  { %7263 = vmatpush1.bf16.msra.mxu0 %v10671_v17  ;;  %7427 = vmatpush1.bf16.msra.mxu1 %v10673_v23  ;;  %v4379_v17 = vld [vmem:[#allocation11 + $0x960] sm:$0xff]  ;;  %v4376_v23 = vld [vmem:[#allocation11 + $0x948] sm:$0xff] }
 0x47e   :  { %7264 = vmatprep.subr.bf16.mxu0 %v10680_v24  ;;  %7428 = vmatprep.subr.bf16.mxu1 %v10682_v30  ;;  %v4380_v24 = vld [vmem:[#allocation11 + $0x968] sm:$0xff]  ;;  %v10719_v30 = vcombine.low %v4367_v9, %v4371_v4  ;;  %v10728_v32 = vcombine.high %v4375_v25, %v4379_v17  ;;  %v4415_v4 = vld [vmem:[#allocation11 + $0xa80] sm:$0xff] }
 0x47f   :  { %v10730_v27 = vcombine.high %v4376_v23, %v4380_v24 }
 0x481   :  { %7265 = vmatpush1.bf16.msra.mxu0 %v10679_v34  ;;  %7429 = vmatpush1.bf16.msra.mxu1 %v10681_v36  ;;  %v4387_v34 = vld [vmem:[#allocation11 + $0x9a0] sm:$0xff]  ;;  %v4384_v36 = vld [vmem:[#allocation11 + $0x988] sm:$0xff] }
 0x482   :  { %7275 = vmatprep.subr.bf16.mxu0 %v10688_v38  ;;  %7439 = vmatprep.subr.bf16.mxu1 %v10690_v39  ;;  %v10727_v38 = vcombine.low %v4375_v25, %v4379_v17  ;;  %v10729_v39 = vcombine.low %v4376_v23, %v4380_v24  ;;  %v10736_v57 = vcombine.high %v4383_v31, %v4387_v34  ;;  %v4423_v17 = vld [vmem:[#allocation11 + $0xac0] sm:$0xff]  ;;  %v4424_v24 = vld [vmem:[#allocation11 + $0xac8] sm:$0xff] }
 0x483   :  { %v10738_v40 = vcombine.high %v4384_v36, %v4388_v37  ;;  %v4427_v23 = vld [vmem:[#allocation11 + $0xae0] sm:$0xff] }
 0x484   :  { %7267 = vmatmul.mubr.bf16.vlgmr.msra.gmra.mrb[32].mxu0 %v12375_v41  ;;  %7431 = vmatmul.mubr.bf16.vlgmr.msra.gmra.mrb[32].mxu1 %v12375_v41 }
 0x485   :  { %7276 = vmatpush1.bf16.msra.mxu0 %v10687_v6  ;;  %7307 = vmatprep.mubr.bf16.mxu0 %v12377_v35  ;;  %v4396_v6 = vld [vmem:[#allocation11 + $0x9e8] sm:$0xff] }
 0x486   :  { %7440 = vmatpush1.bf16.msra.mxu1 %v10689_v42  ;;  %7471 = vmatprep.mubr.bf16.mxu1 %v12377_v35  ;;  %v10735_v42 = vcombine.low %v4383_v31, %v4387_v34  ;;  %v10746_v48 = vcombine.high %v4392_v26, %v4396_v6  ;;  %v4431_v34 = vld [vmem:[#allocation11 + $0xb00] sm:$0xff] }
 0x487   :  { %7277 = vmatprep.subr.bf16.mxu0 %v10696_v49  ;;  %7441 = vmatprep.subr.bf16.mxu1 %v10698_v59  ;;  %v10737_v49 = vcombine.low %v4384_v36, %v4388_v37  ;;  %v10744_v59 = vcombine.high %v4391_v0, %v4395_v60  ;;  %v4435_v36 = vld [vmem:[#allocation11 + $0xb20] sm:$0xff]  ;;  %v4432_v37 = vld [vmem:[#allocation11 + $0xb08] sm:$0xff] }
 0x489   :  { %7278 = vmatpush1.bf16.msra.mxu0 %v10695_v63  ;;  %v4404_v63 = vld [vmem:[#allocation11 + $0xa28] sm:$0xff] }
 0x48a   :  { %7442 = vmatpush1.bf16.msra.mxu1 %v10697_v61  ;;  %7279 = vmatprep.subr.bf16.mxu0 %v10704_v44  ;;  %v10743_v61 = vcombine.low %v4391_v0, %v4395_v60  ;;  %v10745_v44 = vcombine.low %v4392_v26, %v4396_v6  ;;  %v10754_v43 = vcombine.high %v4400_v50, %v4404_v63  ;;  %v4439_v60 = vld [vmem:[#allocation11 + $0xb40] sm:$0xff]  ;;  %v4440_v6 = vld [vmem:[#allocation11 + $0xb48] sm:$0xff] }
 0x48b   :  { %7443 = vmatprep.subr.bf16.mxu1 %v10706_v62  ;;  %v10752_v62 = vcombine.high %v4399_v18, %v4403_v55  ;;  %v4443_v26 = vld [vmem:[#allocation11 + $0xb60] sm:$0xff] }
 0x48d   :  { %7280 = vmatpush1.bf16.msra.mxu0 %v10703_v7  ;;  %v4412_v7 = vld [vmem:[#allocation11 + $0xa68] sm:$0xff] }
 0x48e   :  { %7444 = vmatpush1.bf16.msra.mxu1 %v10705_v28  ;;  %7281 = vmatprep.subr.bf16.mxu0 %v10712_v33  ;;  %v10751_v28 = vcombine.low %v4399_v18, %v4403_v55  ;;  %v10753_v33 = vcombine.low %v4400_v50, %v4404_v63  ;;  %v10762_v9 = vcombine.high %v4408_v2, %v4412_v7  ;;  %v4447_v55 = vld [vmem:[#allocation11 + $0xb80] sm:$0xff]  ;;  %v4448_v63 = vld [vmem:[#allocation11 + $0xb88] sm:$0xff] }
 0x48f   :  { %7445 = vmatprep.subr.bf16.mxu1 %v10714_v54  ;;  %v10760_v54 = vcombine.high %v4407_v1, %v4411_v10  ;;  %v4451_v50 = vld [vmem:[#allocation11 + $0xba0] sm:$0xff] }
 0x491   :  { %7282 = vmatpush1.bf16.msra.mxu0 %v10711_v14  ;;  %v4420_v14 = vld [vmem:[#allocation11 + $0xaa8] sm:$0xff] }
 0x492   :  { %7446 = vmatpush1.bf16.msra.mxu1 %v10713_v16  ;;  %7283 = vmatprep.subr.bf16.mxu0 %v10720_v21  ;;  %v10759_v16 = vcombine.low %v4407_v1, %v4411_v10  ;;  %v10761_v21 = vcombine.low %v4408_v2, %v4412_v7  ;;  %v10770_v25 = vcombine.high %v4416_v11, %v4420_v14  ;;  %v4455_v10 = vld [vmem:[#allocation11 + $0xbc0] sm:$0xff]  ;;  %v4456_v7 = vld [vmem:[#allocation11 + $0xbc8] sm:$0xff] }
 0x493   :  { %7447 = vmatprep.subr.bf16.mxu1 %v10722_v22  ;;  %v10768_v22 = vcombine.high %v4415_v4, %v4419_v13  ;;  %v4459_v2 = vld [vmem:[#allocation11 + $0xbe0] sm:$0xff] }
 0x495   :  { %7284 = vmatpush1.bf16.msra.mxu0 %v10719_v30  ;;  %v4428_v30 = vld [vmem:[#allocation11 + $0xae8] sm:$0xff] }
 0x496   :  { %7448 = vmatpush1.bf16.msra.mxu1 %v10721_v29  ;;  %7285 = vmatprep.subr.bf16.mxu0 %v10728_v32  ;;  %v10767_v29 = vcombine.low %v4415_v4, %v4419_v13  ;;  %v10769_v32 = vcombine.low %v4416_v11, %v4420_v14  ;;  %v10778_v31 = vcombine.high %v4424_v24, %v4428_v30  ;;  %v4463_v13 = vld [vmem:[#allocation11 + $0xc00] sm:$0xff]  ;;  %v4464_v14 = vld [vmem:[#allocation11 + $0xc08] sm:$0xff] }
 0x497   :  { %7449 = vmatprep.subr.bf16.mxu1 %v10730_v27  ;;  %v10776_v27 = vcombine.high %v4423_v17, %v4427_v23  ;;  %v4467_v11 = vld [vmem:[#allocation11 + $0xc20] sm:$0xff] }
 0x499   :  { %7286 = vmatpush1.bf16.msra.mxu0 %v10727_v38  ;;  %v4436_v38 = vld [vmem:[#allocation11 + $0xb28] sm:$0xff] }
 0x49a   :  { %7450 = vmatpush1.bf16.msra.mxu1 %v10729_v39  ;;  %7287 = vmatprep.subr.bf16.mxu0 %v10736_v57  ;;  %v10775_v39 = vcombine.low %v4423_v17, %v4427_v23  ;;  %v10777_v57 = vcombine.low %v4424_v24, %v4428_v30  ;;  %v10786_v0 = vcombine.high %v4432_v37, %v4436_v38  ;;  %v4070_v24 = vmax.f32 %v12357_v5, 0.0  ;;  %v4471_v30 = vld [vmem:[#allocation11 + $0xc40] sm:$0xff] }
 0x49b   :  { %7451 = vmatprep.subr.bf16.mxu1 %v10738_v40  ;;  %v10784_v40 = vcombine.high %v4431_v34, %v4435_v36  ;;  %v10816_v17 = vcombine.high %v4463_v13, %v4467_v11 }
 0x49d   :  { %7288 = vmatpush1.bf16.msra.mxu0 %v10735_v42  ;;  %v4444_v42 = vld [vmem:[#allocation11 + $0xb68] sm:$0xff] }
 0x49e   :  { %7452 = vmatpush1.bf16.msra.mxu1 %v10737_v49  ;;  %7289 = vmatprep.subr.bf16.mxu0 %v10744_v59  ;;  %v10783_v49 = vcombine.low %v4431_v34, %v4435_v36  ;;  %v10785_v59 = vcombine.low %v4432_v37, %v4436_v38  ;;  %v10794_v18 = vcombine.high %v4440_v6, %v4444_v42  ;;  %v4479_v38 = vld [vmem:[#allocation11 + $0xc80] sm:$0xff] }
 0x49f   :  { %7453 = vmatprep.subr.bf16.mxu1 %v10746_v48  ;;  %v10792_v48 = vcombine.high %v4439_v60, %v4443_v26 }
 0x4a1   :  { %7290 = vmatpush1.bf16.msra.mxu0 %v10743_v61  ;;  %v4452_v61 = vld [vmem:[#allocation11 + $0xba8] sm:$0xff] }
 0x4a2   :  { %7454 = vmatpush1.bf16.msra.mxu1 %v10745_v44  ;;  %7291 = vmatprep.subr.bf16.mxu0 %v10752_v62  ;;  %v10791_v44 = vcombine.low %v4439_v60, %v4443_v26  ;;  %v10793_v62 = vcombine.low %v4440_v6, %v4444_v42  ;;  %v10802_v1 = vcombine.high %v4448_v63, %v4452_v61  ;;  %v4487_v42 = vld [vmem:[#allocation11 + $0xcc0] sm:$0xff] }
 0x4a3   :  { %7455 = vmatprep.subr.bf16.mxu1 %v10754_v43  ;;  %v10800_v43 = vcombine.high %v4447_v55, %v4451_v50 }
 0x4a5   :  { %7292 = vmatpush1.bf16.msra.mxu0 %v10751_v28  ;;  %v4460_v28 = vld [vmem:[#allocation11 + $0xbe8] sm:$0xff] }
 0x4a6   :  { %7456 = vmatpush1.bf16.msra.mxu1 %v10753_v33  ;;  %7293 = vmatprep.subr.bf16.mxu0 %v10760_v54  ;;  %v10799_v33 = vcombine.low %v4447_v55, %v4451_v50  ;;  %v10801_v54 = vcombine.low %v4448_v63, %v4452_v61  ;;  %v10810_v4 = vcombine.high %v4456_v7, %v4460_v28  ;;  %v4495_v61 = vld [vmem:[#allocation11 + $0xd00] sm:$0xff] }
 0x4a7   :  { %7457 = vmatprep.subr.bf16.mxu1 %v10762_v9  ;;  %v10808_v9 = vcombine.high %v4455_v10, %v4459_v2 }
 0x4a9   :  { %7294 = vmatpush1.bf16.msra.mxu0 %v10759_v16  ;;  %v4468_v16 = vld [vmem:[#allocation11 + $0xc28] sm:$0xff] }
 0x4aa   :  { %7458 = vmatpush1.bf16.msra.mxu1 %v10761_v21  ;;  %7295 = vmatprep.subr.bf16.mxu0 %v10768_v22  ;;  %v10807_v21 = vcombine.low %v4455_v10, %v4459_v2  ;;  %v10809_v22 = vcombine.low %v4456_v7, %v4460_v28  ;;  %v10818_v23 = vcombine.high %v4464_v14, %v4468_v16  ;;  %v4503_v28 = vld [vmem:[#allocation11 + $0xd40] sm:$0xff] }
 0x4ab   :  { %7459 = vmatprep.subr.bf16.mxu1 %v10770_v25  ;;  %v4067_v25 = vmax.f32 %v12355_v52, 0.0  ;;  %v10817_v36 = vcombine.low %v4464_v14, %v4468_v16  ;;  %v4483_v52 = vld [vmem:[#allocation11 + $0xca0] sm:$0xff] }
 0x4ac   :  { %v10832_v26 = vcombine.high %v4479_v38, %v4483_v52  ;;  %v4511_v16 = vld [vmem:[#allocation11 + $0xd80] sm:$0xff] }
 0x4ad   :  { %7296 = vmatpush1.bf16.msra.mxu0 %v10767_v29  ;;  %v4475_v29 = vld [vmem:[#allocation11 + $0xc60] sm:$0xff]  ;;  %v12385_v34 = vpack.c.bf16 %v4067_v25, %v4067_v25  ;;  %v4516_v25 = vld [vmem:[#allocation11 + $0xda8] sm:$0xff] }
 0x4ae   :  { %7460 = vmatpush1.bf16.msra.mxu1 %v10769_v32  ;;  %7297 = vmatprep.subr.bf16.mxu0 %v10776_v27  ;;  %v10815_v32 = vcombine.low %v4463_v13, %v4467_v11  ;;  %v4472_v27 = vld [vmem:[#allocation11 + $0xc48] sm:$0xff]  ;;  %v10824_v37 = vcombine.high %v4471_v30, %v4475_v29 }
 0x4af   :  { %7461 = vmatprep.subr.bf16.mxu1 %v10778_v31  ;;  %v4476_v31 = vld [vmem:[#allocation11 + $0xc68] sm:$0xff] }
 0x4b0   :  { %v10826_v5 = vcombine.high %v4472_v27, %v4476_v31  ;;  %v10825_v60 = vcombine.low %v4472_v27, %v4476_v31  ;;  %v4520_v27 = vld [vmem:[#allocation11 + $0xdc8] sm:$0xff] }
 0x4b1   :  { %7298 = vmatpush1.bf16.msra.mxu0 %v10775_v39  ;;  %v12388_v39 = vpack.c.bf16 %v4070_v24, %v4070_v24  ;;  %v4524_v31 = vld [vmem:[#allocation11 + $0xde8] sm:$0xff] }
 0x4b2   :  { %7462 = vmatpush1.bf16.msra.mxu1 %v10777_v57  ;;  %7299 = vmatprep.subr.bf16.mxu0 %v10784_v40  ;;  %v4480_v57 = vld [vmem:[#allocation11 + $0xc88] sm:$0xff] }
 0x4b3   :  { %7463 = vmatprep.subr.bf16.mxu1 %v10786_v0  ;;  %v4484_v40 = vld [vmem:[#allocation11 + $0xca8] sm:$0xff]  ;;  %v10823_v0 = vcombine.low %v4471_v30, %v4475_v29  ;;  %v4519_v29 = vld [vmem:[#allocation11 + $0xdc0] sm:$0xff] }
 0x4b4   :  { %v10834_v6 = vcombine.high %v4480_v57, %v4484_v40  ;;  %v10833_v55 = vcombine.low %v4480_v57, %v4484_v40  ;;  %v4531_v57 = vld [vmem:[#allocation11 + $0xe20] sm:$0xff]  ;;  %v4528_v40 = vld [vmem:[#allocation11 + $0xe08] sm:$0xff] }
 0x4b5   :  { %7300 = vmatpush1.bf16.msra.mxu0 %v10783_v49  ;;  %v4491_v49 = vld [vmem:[#allocation11 + $0xce0] sm:$0xff] }
 0x4b6   :  { %7464 = vmatpush1.bf16.msra.mxu1 %v10785_v59  ;;  %7301 = vmatprep.subr.bf16.mxu0 %v10792_v48  ;;  %v4488_v59 = vld [vmem:[#allocation11 + $0xcc8] sm:$0xff]  ;;  %v10840_v50 = vcombine.high %v4487_v42, %v4491_v49 }
 0x4b7   :  { %7465 = vmatprep.subr.bf16.mxu1 %v10794_v18  ;;  %v4492_v48 = vld [vmem:[#allocation11 + $0xce8] sm:$0xff]  ;;  %v10831_v18 = vcombine.low %v4479_v38, %v4483_v52  ;;  %v10874_v52 = vcombine.high %v4520_v27, %v4524_v31 }
 0x4b8   :  { %v10842_v63 = vcombine.high %v4488_v59, %v4492_v48  ;;  %v10841_v10 = vcombine.low %v4488_v59, %v4492_v48  ;;  %v4539_v59 = vld [vmem:[#allocation11 + $0xe60] sm:$0xff]  ;;  %v4536_v48 = vld [vmem:[#allocation11 + $0xe48] sm:$0xff] }
 0x4b9   :  { %7302 = vmatpush1.bf16.msra.mxu0 %v10791_v44  ;;  %v4499_v44 = vld [vmem:[#allocation11 + $0xd20] sm:$0xff] }
 0x4ba   :  { %7466 = vmatpush1.bf16.msra.mxu1 %v10793_v62  ;;  %7303 = vmatprep.subr.bf16.mxu0 %v10800_v43  ;;  %v4496_v62 = vld [vmem:[#allocation11 + $0xd08] sm:$0xff]  ;;  %v10848_v2 = vcombine.high %v4495_v61, %v4499_v44 }
 0x4bb   :  { %7467 = vmatprep.subr.bf16.mxu1 %v10802_v1  ;;  %v4500_v43 = vld [vmem:[#allocation11 + $0xd28] sm:$0xff]  ;;  %v10839_v1 = vcombine.low %v4487_v42, %v4491_v49  ;;  %v4535_v49 = vld [vmem:[#allocation11 + $0xe40] sm:$0xff] }
 0x4bc   :  { %v10850_v7 = vcombine.high %v4496_v62, %v4500_v43  ;;  %v10849_v13 = vcombine.low %v4496_v62, %v4500_v43  ;;  %v4547_v62 = vld [vmem:[#allocation11 + $0xea0] sm:$0xff]  ;;  %v4544_v43 = vld [vmem:[#allocation11 + $0xe88] sm:$0xff] }
 0x4bd   :  { %7304 = vmatpush1.bf16.msra.mxu0 %v10799_v33  ;;  %v4507_v33 = vld [vmem:[#allocation11 + $0xd60] sm:$0xff] }
 0x4be   :  { %7468 = vmatpush1.bf16.msra.mxu1 %v10801_v54  ;;  %7305 = vmatprep.subr.bf16.mxu0 %v10808_v9  ;;  %v4504_v54 = vld [vmem:[#allocation11 + $0xd48] sm:$0xff]  ;;  %v10856_v11 = vcombine.high %v4503_v28, %v4507_v33 }
 0x4bf   :  { %7469 = vmatprep.subr.bf16.mxu1 %v10810_v4  ;;  %v4508_v9 = vld [vmem:[#allocation11 + $0xd68] sm:$0xff]  ;;  %v10847_v4 = vcombine.low %v4495_v61, %v4499_v44  ;;  %v4543_v44 = vld [vmem:[#allocation11 + $0xe80] sm:$0xff] }
 0x4c0   :  { %v10858_v14 = vcombine.high %v4504_v54, %v4508_v9 }
 0x4c1   :  { %7306 = vmatpush1.bf16.msra.mxu0 %v10807_v21  ;;  %v4515_v21 = vld [vmem:[#allocation11 + $0xda0] sm:$0xff] }
 0x4c2   :  { %7470 = vmatpush1.bf16.msra.mxu1 %v10809_v22  ;;  %7316 = vmatprep.subr.bf16.mxu0 %v10816_v17  ;;  %v4512_v22 = vld [vmem:[#allocation11 + $0xd88] sm:$0xff]  ;;  %v10855_v17 = vcombine.low %v4503_v28, %v4507_v33  ;;  %v10864_v24 = vcombine.high %v4511_v16, %v4515_v21  ;;  %v4551_v33 = vld [vmem:[#allocation11 + $0xec0] sm:$0xff] }
 0x4c3   :  { %7480 = vmatprep.subr.bf16.mxu1 %v10818_v23  ;;  %v10857_v23 = vcombine.low %v4504_v54, %v4508_v9  ;;  %v10866_v30 = vcombine.high %v4512_v22, %v4516_v25  ;;  %v4555_v54 = vld [vmem:[#allocation11 + $0xee0] sm:$0xff]  ;;  %v4552_v9 = vld [vmem:[#allocation11 + $0xec8] sm:$0xff] }
 0x4c4   :  { %7308 = vmatmul.mubr.bf16.vlgmr.msra.gmra.mrb[32].mxu0 %v12385_v34 }
 0x4c5   :  { %7472 = vmatmul.mubr.bf16.vlgmr.msra.gmra.mrb[32].mxu1 %v12385_v34  ;;  %7317 = vmatpush1.bf16.msra.mxu0 %v10815_v32  ;;  %v4523_v32 = vld [vmem:[#allocation11 + $0xde0] sm:$0xff] }
 0x4c6   :  { %7348 = vmatprep.mubr.bf16.mxu0 %v12388_v39  ;;  %7481 = vmatpush1.bf16.msra.mxu1 %v10817_v36  ;;  %v10863_v36 = vcombine.low %v4511_v16, %v4515_v21  ;;  %v10872_v38 = vcombine.high %v4519_v29, %v4523_v32  ;;  %v4559_v21 = vld [vmem:[#allocation11 + $0xf00] sm:$0xff] }
 0x4c7   :  { %7512 = vmatprep.mubr.bf16.mxu1 %v12388_v39  ;;  %7318 = vmatprep.subr.bf16.mxu0 %v10824_v37  ;;  %v10865_v37 = vcombine.low %v4512_v22, %v4516_v25  ;;  %v4563_v22 = vld [vmem:[#allocation11 + $0xf20] sm:$0xff]  ;;  %v4560_v25 = vld [vmem:[#allocation11 + $0xf08] sm:$0xff] }
 0x4c8   :  { %7482 = vmatprep.subr.bf16.mxu1 %v10826_v5  ;;  %v4527_v5 = vld [vmem:[#allocation11 + $0xe00] sm:$0xff] }
 0x4c9   :  { %7319 = vmatpush1.bf16.msra.mxu0 %v10823_v0  ;;  %v4532_v0 = vld [vmem:[#allocation11 + $0xe28] sm:$0xff] }
 0x4ca   :  { %7483 = vmatpush1.bf16.msra.mxu1 %v10825_v60  ;;  %7320 = vmatprep.subr.bf16.mxu0 %v10832_v26  ;;  %v10871_v60 = vcombine.low %v4519_v29, %v4523_v32  ;;  %v10873_v26 = vcombine.low %v4520_v27, %v4524_v31  ;;  %v10882_v42 = vcombine.high %v4528_v40, %v4532_v0  ;;  %v4567_v32 = vld [vmem:[#allocation11 + $0xf40] sm:$0xff]  ;;  %v4568_v31 = vld [vmem:[#allocation11 + $0xf48] sm:$0xff] }
 0x4cb   :  { %7484 = vmatprep.subr.bf16.mxu1 %v10834_v6  ;;  %v10880_v6 = vcombine.high %v4527_v5, %v4531_v57  ;;  %v4571_v27 = vld [vmem:[#allocation11 + $0xf60] sm:$0xff] }
 0x4cd   :  { %7321 = vmatpush1.bf16.msra.mxu0 %v10831_v18  ;;  %v4540_v18 = vld [vmem:[#allocation11 + $0xe68] sm:$0xff] }
 0x4ce   :  { %7485 = vmatpush1.bf16.msra.mxu1 %v10833_v55  ;;  %7322 = vmatprep.subr.bf16.mxu0 %v10840_v50  ;;  %v10879_v55 = vcombine.low %v4527_v5, %v4531_v57  ;;  %v10881_v50 = vcombine.low %v4528_v40, %v4532_v0  ;;  %v10890_v61 = vcombine.high %v4536_v48, %v4540_v18  ;;  %v4575_v57 = vld [vmem:[#allocation11 + $0xf80] sm:$0xff]  ;;  %v4576_v0 = vld [vmem:[#allocation11 + $0xf88] sm:$0xff] }
 0x4cf   :  { %7486 = vmatprep.subr.bf16.mxu1 %v10842_v63  ;;  %v10888_v63 = vcombine.high %v4535_v49, %v4539_v59  ;;  %v4579_v40 = vld [vmem:[#allocation11 + $0xfa0] sm:$0xff] }
 0x4d1   :  { %7323 = vmatpush1.bf16.msra.mxu0 %v10839_v1  ;;  %v4548_v1 = vld [vmem:[#allocation11 + $0xea8] sm:$0xff] }
 0x4d2   :  { %7487 = vmatpush1.bf16.msra.mxu1 %v10841_v10  ;;  %7324 = vmatprep.subr.bf16.mxu0 %v10848_v2  ;;  %v10887_v10 = vcombine.low %v4535_v49, %v4539_v59  ;;  %v10889_v2 = vcombine.low %v4536_v48, %v4540_v18  ;;  %v10898_v28 = vcombine.high %v4544_v43, %v4548_v1  ;;  %v4583_v59 = vld [vmem:[#allocation11 + $0xfc0] sm:$0xff]  ;;  %v4584_v18 = vld [vmem:[#allocation11 + $0xfc8] sm:$0xff] }
 0x4d3   :  { %7488 = vmatprep.subr.bf16.mxu1 %v10850_v7  ;;  %v10896_v7 = vcombine.high %v4543_v44, %v4547_v62  ;;  %v4587_v48 = vld [vmem:[#allocation11 + $0xfe0] sm:$0xff] }
 0x4d5   :  { %7325 = vmatpush1.bf16.msra.mxu0 %v10847_v4  ;;  %v4556_v4 = vld [vmem:[#allocation11 + $0xee8] sm:$0xff] }
 0x4d6   :  { %7489 = vmatpush1.bf16.msra.mxu1 %v10849_v13  ;;  %7326 = vmatprep.subr.bf16.mxu0 %v10856_v11  ;;  %v10895_v13 = vcombine.low %v4543_v44, %v4547_v62  ;;  %v10897_v11 = vcombine.low %v4544_v43, %v4548_v1  ;;  %v10906_v16 = vcombine.high %v4552_v9, %v4556_v4  ;;  %v4081_v62 = vld [vmem:[#allocation11 + $0x10] sm:$0xff]  ;;  %v4082_v1 = vld [vmem:[#allocation11 + $0x18] sm:$0xff] }
 0x4d7   :  { %7490 = vmatprep.subr.bf16.mxu1 %v10858_v14  ;;  %v10904_v14 = vcombine.high %v4551_v33, %v4555_v54  ;;  %v4085_v43 = vld [vmem:[#allocation11 + $0x30] sm:$0xff] }
 0x4d9   :  { %7327 = vmatpush1.bf16.msra.mxu0 %v10855_v17  ;;  %v4564_v17 = vld [vmem:[#allocation11 + $0xf28] sm:$0xff] }
 0x4da   :  { %7491 = vmatpush1.bf16.msra.mxu1 %v10857_v23  ;;  %7328 = vmatprep.subr.bf16.mxu0 %v10864_v24  ;;  %v10903_v23 = vcombine.low %v4551_v33, %v4555_v54  ;;  %v10905_v24 = vcombine.low %v4552_v9, %v4556_v4  ;;  %v10914_v29 = vcombine.high %v4560_v25, %v4564_v17  ;;  %v4089_v9 = vld [vmem:[#allocation11 + $0x50] sm:$0xff] }
 0x4db   :  { %7492 = vmatprep.subr.bf16.mxu1 %v10866_v30  ;;  %v10912_v30 = vcombine.high %v4559_v21, %v4563_v22  ;;  %v10436_v33 = vcombine.high %v4081_v62, %v4085_v43  ;;  %v4093_v4 = vld [vmem:[#allocation11 + $0x70] sm:$0xff] }
 0x4dd   :  { %7329 = vmatpush1.bf16.msra.mxu0 %v10863_v36  ;;  %v4572_v36 = vld [vmem:[#allocation11 + $0xf68] sm:$0xff] }
 0x4de   :  { %7493 = vmatpush1.bf16.msra.mxu1 %v10865_v37  ;;  %7330 = vmatprep.subr.bf16.mxu0 %v10872_v38  ;;  %v10911_v37 = vcombine.low %v4559_v21, %v4563_v22  ;;  %v10913_v38 = vcombine.low %v4560_v25, %v4564_v17  ;;  %v10922_v5 = vcombine.high %v4568_v31, %v4572_v36  ;;  %v4097_v25 = vld [vmem:[#allocation11 + $0x90] sm:$0xff] }
 0x4df   :  { %7494 = vmatprep.subr.bf16.mxu1 %v10874_v52  ;;  %v10920_v52 = vcombine.high %v4567_v32, %v4571_v27  ;;  %v10444_v22 = vcombine.high %v4089_v9, %v4093_v4  ;;  %v4101_v17 = vld [vmem:[#allocation11 + $0xb0] sm:$0xff] }
 0x4e1   :  { %7331 = vmatpush1.bf16.msra.mxu0 %v10871_v60  ;;  %v4580_v60 = vld [vmem:[#allocation11 + $0xfa8] sm:$0xff] }
 0x4e2   :  { %7495 = vmatpush1.bf16.msra.mxu1 %v10873_v26  ;;  %7332 = vmatprep.subr.bf16.mxu0 %v10880_v6  ;;  %v10919_v26 = vcombine.low %v4567_v32, %v4571_v27  ;;  %v10921_v6 = vcombine.low %v4568_v31, %v4572_v36  ;;  %v10930_v49 = vcombine.high %v4576_v0, %v4580_v60  ;;  %v4105_v31 = vld [vmem:[#allocation11 + $0xd0] sm:$0xff] }
 0x4e3   :  { %7496 = vmatprep.subr.bf16.mxu1 %v10882_v42  ;;  %v10928_v42 = vcombine.high %v4575_v57, %v4579_v40  ;;  %v10452_v32 = vcombine.high %v4097_v25, %v4101_v17  ;;  %v4109_v36 = vld [vmem:[#allocation11 + $0xf0] sm:$0xff] }
 0x4e5   :  { %7333 = vmatpush1.bf16.msra.mxu0 %v10879_v55  ;;  %v4588_v55 = vld [vmem:[#allocation11 + $0xfe8] sm:$0xff] }
 0x4e6   :  { %7497 = vmatpush1.bf16.msra.mxu1 %v10881_v50  ;;  %7334 = vmatprep.subr.bf16.mxu0 %v10888_v63  ;;  %v10927_v50 = vcombine.low %v4575_v57, %v4579_v40  ;;  %v10929_v63 = vcombine.low %v4576_v0, %v4580_v60  ;;  %v10938_v44 = vcombine.high %v4584_v18, %v4588_v55  ;;  %v4113_v0 = vld [vmem:[#allocation11 + $0x110] sm:$0xff] }
 0x4e7   :  { %7498 = vmatprep.subr.bf16.mxu1 %v10890_v61  ;;  %v10936_v61 = vcombine.high %v4583_v59, %v4587_v48  ;;  %v10460_v57 = vcombine.high %v4105_v31, %v4109_v36  ;;  %v4117_v60 = vld [vmem:[#allocation11 + $0x130] sm:$0xff] }
 0x4e9   :  { %7335 = vmatpush1.bf16.msra.mxu0 %v10887_v10  ;;  %v4086_v10 = vld [vmem:[#allocation11 + $0x38] sm:$0xff] }
 0x4ea   :  { %7499 = vmatpush1.bf16.msra.mxu1 %v10889_v2  ;;  %7336 = vmatprep.subr.bf16.mxu0 %v10896_v7  ;;  %v10935_v2 = vcombine.low %v4583_v59, %v4587_v48  ;;  %v10937_v7 = vcombine.low %v4584_v18, %v4588_v55  ;;  %v10438_v54 = vcombine.high %v4082_v1, %v4086_v10  ;;  %v4121_v48 = vld [vmem:[#allocation11 + $0x150] sm:$0xff]  ;;  %v4122_v55 = vld [vmem:[#allocation11 + $0x158] sm:$0xff] }
 0x4eb   :  { %7500 = vmatprep.subr.bf16.mxu1 %v10898_v28  ;;  %v4069_v28 = vmax.f32 %v12359_v58, 0.0  ;;  %v10437_v21 = vcombine.low %v4082_v1, %v4086_v10  ;;  %v4125_v18 = vld [vmem:[#allocation11 + $0x170] sm:$0xff]  ;;  %v4130_v10 = vld [vmem:[#allocation11 + $0x198] sm:$0xff] }
 0x4ec   :  { %v4133_v1 = vld [vmem:[#allocation11 + $0x1b0] sm:$0xff] }
 0x4ed   :  { %7337 = vmatpush1.bf16.msra.mxu0 %v10895_v13  ;;  %v10435_v13 = vcombine.low %v4081_v62, %v4085_v43  ;;  %v4129_v43 = vld [vmem:[#allocation11 + $0x190] sm:$0xff] }
 0x4ee   :  { %7501 = vmatpush1.bf16.msra.mxu1 %v10897_v11  ;;  %7338 = vmatprep.subr.bf16.mxu0 %v10904_v14  ;;  %v4090_v11 = vld [vmem:[#allocation11 + $0x58] sm:$0xff] }
 0x4ef   :  { %7502 = vmatprep.subr.bf16.mxu1 %v10906_v16  ;;  %v4094_v14 = vld [vmem:[#allocation11 + $0x78] sm:$0xff]  ;;  %v12394_v16 = vpack.c.bf16 %v4069_v28, %v4069_v28 }
 0x4f0   :  { %v10446_v58 = vcombine.high %v4090_v11, %v4094_v14 }
 0x4f1   :  { %7339 = vmatpush1.bf16.msra.mxu0 %v10903_v23  ;;  %v4098_v23 = vld [vmem:[#allocation11 + $0x98] sm:$0xff] }
 0x4f2   :  { %7503 = vmatpush1.bf16.msra.mxu1 %v10905_v24  ;;  %7340 = vmatprep.subr.bf16.mxu0 %v10912_v30  ;;  %v4102_v24 = vld [vmem:[#allocation11 + $0xb8] sm:$0xff]  ;;  %v10443_v30 = vcombine.low %v4089_v9, %v4093_v4  ;;  %v4137_v9 = vld [vmem:[#allocation11 + $0x1d0] sm:$0xff] }
 0x4f3   :  { %7504 = vmatprep.subr.bf16.mxu1 %v10914_v29  ;;  %v10445_v29 = vcombine.low %v4090_v11, %v4094_v14  ;;  %v10454_v27 = vcombine.high %v4098_v23, %v4102_v24  ;;  %v4141_v4 = vld [vmem:[#allocation11 + $0x1f0] sm:$0xff]  ;;  %v4142_v11 = vld [vmem:[#allocation11 + $0x1f8] sm:$0xff]  ;;  %v10483_v14 = vcombine.low %v4129_v43, %v4133_v1 }
 0x4f5   :  { %7341 = vmatpush1.bf16.msra.mxu0 %v10911_v37  ;;  %v4106_v37 = vld [vmem:[#allocation11 + $0xd8] sm:$0xff] }
 0x4f6   :  { %7505 = vmatpush1.bf16.msra.mxu1 %v10913_v38  ;;  %7342 = vmatprep.subr.bf16.mxu0 %v10920_v52  ;;  %v4110_v38 = vld [vmem:[#allocation11 + $0xf8] sm:$0xff]  ;;  %v10451_v52 = vcombine.low %v4097_v25, %v4101_v17  ;;  %v4145_v17 = vld [vmem:[#allocation11 + $0x210] sm:$0xff] }
 0x4f7   :  { %7506 = vmatprep.subr.bf16.mxu1 %v10922_v5  ;;  %v10453_v5 = vcombine.low %v4098_v23, %v4102_v24  ;;  %v10462_v40 = vcombine.high %v4106_v37, %v4110_v38  ;;  %v4146_v23 = vld [vmem:[#allocation11 + $0x218] sm:$0xff] }
 0x4f8   :  { %v4150_v24 = vld [vmem:[#allocation11 + $0x238] sm:$0xff] }
 0x4f9   :  { %7343 = vmatpush1.bf16.msra.mxu0 %v10919_v26  ;;  %v4114_v26 = vld [vmem:[#allocation11 + $0x118] sm:$0xff] }
 0x4fa   :  { %7507 = vmatpush1.bf16.msra.mxu1 %v10921_v6  ;;  %7344 = vmatprep.subr.bf16.mxu0 %v10928_v42  ;;  %v4118_v6 = vld [vmem:[#allocation11 + $0x138] sm:$0xff]  ;;  %v10461_v42 = vcombine.low %v4106_v37, %v4110_v38 }
 0x4fb   :  { %7508 = vmatprep.subr.bf16.mxu1 %v10930_v49  ;;  %v10468_v49 = vcombine.high %v4113_v0, %v4117_v60  ;;  %v10470_v59 = vcombine.high %v4114_v26, %v4118_v6  ;;  %v4154_v37 = vld [vmem:[#allocation11 + $0x258] sm:$0xff] }
 0x4fc   :  { %v4158_v38 = vld [vmem:[#allocation11 + $0x278] sm:$0xff] }
 0x4fd   :  { %7345 = vmatpush1.bf16.msra.mxu0 %v10927_v50  ;;  %v4126_v50 = vld [vmem:[#allocation11 + $0x178] sm:$0xff] }
 0x4fe   :  { %7509 = vmatpush1.bf16.msra.mxu1 %v10929_v63  ;;  %7346 = vmatprep.subr.bf16.mxu0 %v10936_v61  ;;  %v10467_v63 = vcombine.low %v4113_v0, %v4117_v60  ;;  %v10469_v61 = vcombine.low %v4114_v26, %v4118_v6  ;;  %v10478_v62 = vcombine.high %v4122_v55, %v4126_v50  ;;  %v4161_v0 = vld [vmem:[#allocation11 + $0x290] sm:$0xff]  ;;  %v4162_v26 = vld [vmem:[#allocation11 + $0x298] sm:$0xff] }
 0x4ff   :  { %7510 = vmatprep.subr.bf16.mxu1 %v10938_v44  ;;  %v10476_v44 = vcombine.high %v4121_v48, %v4125_v18  ;;  %v10477_v28 = vcombine.low %v4122_v55, %v4126_v50  ;;  %v4165_v60 = vld [vmem:[#allocation11 + $0x2b0] sm:$0xff]  ;;  %v4166_v6 = vld [vmem:[#allocation11 + $0x2b8] sm:$0xff] }
 0x500   :  { %v4170_v55 = vld [vmem:[#allocation11 + $0x2d8] sm:$0xff] }
 0x501   :  { %7347 = vmatpush1.bf16.msra.mxu0 %v10935_v2  ;;  %v4134_v2 = vld [vmem:[#allocation11 + $0x1b8] sm:$0xff] }
 0x502   :  { %7511 = vmatpush1.bf16.msra.mxu1 %v10937_v7  ;;  %7521 = vmatprep.subr.bf16.mxu0 %v10436_v33  ;;  %v10475_v7 = vcombine.low %v4121_v48, %v4125_v18  ;;  %v10484_v33 = vcombine.high %v4129_v43, %v4133_v1  ;;  %v4169_v48 = vld [vmem:[#allocation11 + $0x2d0] sm:$0xff]  ;;  %v4174_v50 = vld [vmem:[#allocation11 + $0x2f8] sm:$0xff] }
 0x503   :  { %7685 = vmatprep.subr.bf16.mxu1 %v10438_v54  ;;  %v10486_v54 = vcombine.high %v4130_v10, %v4134_v2  ;;  %v4173_v18 = vld [vmem:[#allocation11 + $0x2f0] sm:$0xff] }
 0x504   :  { %7349 = vmatmul.mubr.bf16.vlgmr.msra.gmra.mrb[32].mxu0 %v12394_v16  ;;  %v4177_v43 = vld [vmem:[#allocation11 + $0x310] sm:$0xff] }
 0x505   :  { %7513 = vmatmul.mubr.bf16.vlgmr.msra.gmra.mrb[32].mxu1 %v12394_v16  ;;  %7522 = vmatpush1.bf16.msra.mxu0 %v10435_v13  ;;  %v4138_v13 = vld [vmem:[#allocation11 + $0x1d8] sm:$0xff]  ;;  %v4181_v1 = vld [vmem:[#allocation11 + $0x330] sm:$0xff] }
 0x506   :  { %7553 = vmatprep.mubr.bf16.mxu0 %v12361_v19  ;;  %7686 = vmatpush1.bf16.msra.mxu1 %v10437_v21  ;;  %v10485_v21 = vcombine.low %v4130_v10, %v4134_v2  ;;  %v10494_v25 = vcombine.high %v4138_v13, %v4142_v11  ;;  %v4178_v10 = vld [vmem:[#allocation11 + $0x318] sm:$0xff] }
 0x507   :  { %7717 = vmatprep.mubr.bf16.mxu1 %v12361_v19  ;;  %7523 = vmatprep.subr.bf16.mxu0 %v10444_v22  ;;  %v10459_v19 = vcombine.low %v4105_v31, %v4109_v36  ;;  %v10492_v22 = vcombine.high %v4137_v9, %v4141_v4  ;;  %v4153_v31 = vld [vmem:[#allocation11 + $0x250] sm:$0xff]  ;;  %v4182_v2 = vld [vmem:[#allocation11 + $0x338] sm:$0xff] }
 0x508   :  { %7687 = vmatprep.subr.bf16.mxu1 %v10446_v58  ;;  %v4149_v58 = vld [vmem:[#allocation11 + $0x230] sm:$0xff] }
 0x509   :  { %7524 = vmatpush1.bf16.msra.mxu0 %v10443_v30  ;;  %v10491_v30 = vcombine.low %v4137_v9, %v4141_v4  ;;  %v4157_v36 = vld [vmem:[#allocation11 + $0x270] sm:$0xff] }
 0x50a   :  { %7688 = vmatpush1.bf16.msra.mxu1 %v10445_v29  ;;  %7525 = vmatprep.subr.bf16.mxu0 %v10452_v32  ;;  %v10493_v29 = vcombine.low %v4138_v13, %v4142_v11  ;;  %v10500_v32 = vcombine.high %v4145_v17, %v4149_v58  ;;  %v4185_v9 = vld [vmem:[#allocation11 + $0x350] sm:$0xff]  ;;  %v4186_v13 = vld [vmem:[#allocation11 + $0x358] sm:$0xff] }
 0x50b   :  { %7689 = vmatprep.subr.bf16.mxu1 %v10454_v27  ;;  %v10502_v27 = vcombine.high %v4146_v23, %v4150_v24  ;;  %v4189_v4 = vld [vmem:[#allocation11 + $0x370] sm:$0xff]  ;;  %v4190_v11 = vld [vmem:[#allocation11 + $0x378] sm:$0xff] }
 0x50d   :  { %7526 = vmatpush1.bf16.msra.mxu0 %v10451_v52  ;;  %v10499_v52 = vcombine.low %v4145_v17, %v4149_v58  ;;  %v4193_v17 = vld [vmem:[#allocation11 + $0x390] sm:$0xff] }
 0x50e   :  { %7690 = vmatpush1.bf16.msra.mxu1 %v10453_v5  ;;  %7527 = vmatprep.subr.bf16.mxu0 %v10460_v57  ;;  %v10501_v5 = vcombine.low %v4146_v23, %v4150_v24  ;;  %v10508_v57 = vcombine.high %v4153_v31, %v4157_v36  ;;  %v4197_v58 = vld [vmem:[#allocation11 + $0x3b0] sm:$0xff]  ;;  %v4194_v23 = vld [vmem:[#allocation11 + $0x398] sm:$0xff] }
 0x50f   :  { %7691 = vmatprep.subr.bf16.mxu1 %v10462_v40  ;;  %v10510_v40 = vcombine.high %v4154_v37, %v4158_v38  ;;  %v4198_v24 = vld [vmem:[#allocation11 + $0x3b8] sm:$0xff] }
 0x511   :  { %7528 = vmatpush1.bf16.msra.mxu0 %v10459_v19  ;;  %v10507_v19 = vcombine.low %v4153_v31, %v4157_v36  ;;  %v4201_v31 = vld [vmem:[#allocation11 + $0x3d0] sm:$0xff] }
 0x512   :  { %7692 = vmatpush1.bf16.msra.mxu1 %v10461_v42  ;;  %7529 = vmatprep.subr.bf16.mxu0 %v10468_v49  ;;  %v10509_v42 = vcombine.low %v4154_v37, %v4158_v38  ;;  %v10516_v49 = vcombine.high %v4161_v0, %v4165_v60  ;;  %v4205_v36 = vld [vmem:[#allocation11 + $0x3f0] sm:$0xff]  ;;  %v4202_v37 = vld [vmem:[#allocation11 + $0x3d8] sm:$0xff] }
 0x513   :  { %7693 = vmatprep.subr.bf16.mxu1 %v10470_v59  ;;  %v10518_v59 = vcombine.high %v4162_v26, %v4166_v6  ;;  %v4206_v38 = vld [vmem:[#allocation11 + $0x3f8] sm:$0xff] }
 0x515   :  { %7530 = vmatpush1.bf16.msra.mxu0 %v10467_v63  ;;  %v10515_v63 = vcombine.low %v4161_v0, %v4165_v60  ;;  %v4209_v0 = vld [vmem:[#allocation11 + $0x410] sm:$0xff] }
 0x516   :  { %7694 = vmatpush1.bf16.msra.mxu1 %v10469_v61  ;;  %7531 = vmatprep.subr.bf16.mxu0 %v10476_v44  ;;  %v10517_v61 = vcombine.low %v4162_v26, %v4166_v6  ;;  %v10524_v44 = vcombine.high %v4169_v48, %v4173_v18  ;;  %v4213_v60 = vld [vmem:[#allocation11 + $0x430] sm:$0xff]  ;;  %v4210_v26 = vld [vmem:[#allocation11 + $0x418] sm:$0xff] }
 0x517   :  { %7695 = vmatprep.subr.bf16.mxu1 %v10478_v62  ;;  %v10526_v62 = vcombine.high %v4170_v55, %v4174_v50  ;;  %v4214_v6 = vld [vmem:[#allocation11 + $0x438] sm:$0xff] }
 0x519   :  { %7532 = vmatpush1.bf16.msra.mxu0 %v10475_v7  ;;  %v10523_v7 = vcombine.low %v4169_v48, %v4173_v18  ;;  %v4217_v48 = vld [vmem:[#allocation11 + $0x450] sm:$0xff] }
 0x51a   :  { %7696 = vmatpush1.bf16.msra.mxu1 %v10477_v28  ;;  %7533 = vmatprep.subr.bf16.mxu0 %v10484_v33  ;;  %v10525_v28 = vcombine.low %v4170_v55, %v4174_v50  ;;  %v10532_v33 = vcombine.high %v4177_v43, %v4181_v1  ;;  %v4221_v18 = vld [vmem:[#allocation11 + $0x470] sm:$0xff]  ;;  %v10563_v55 = vcombine.low %v4209_v0, %v4213_v60  ;;  %v4218_v50 = vld [vmem:[#allocation11 + $0x458] sm:$0xff] }
 0x51b   :  { %7697 = vmatprep.subr.bf16.mxu1 %v10486_v54  ;;  %v10534_v54 = vcombine.high %v4178_v10, %v4182_v2 }
 0x51d   :  { %7534 = vmatpush1.bf16.msra.mxu0 %v10483_v14  ;;  %v10531_v14 = vcombine.low %v4177_v43, %v4181_v1  ;;  %v4229_v43 = vld [vmem:[#allocation11 + $0x4b0] sm:$0xff] }
 0x51e   :  { %7698 = vmatpush1.bf16.msra.mxu1 %v10485_v21  ;;  %7535 = vmatprep.subr.bf16.mxu0 %v10492_v22  ;;  %v10533_v21 = vcombine.low %v4178_v10, %v4182_v2  ;;  %v10540_v22 = vcombine.high %v4185_v9, %v4189_v4  ;;  %v4226_v10 = vld [vmem:[#allocation11 + $0x498] sm:$0xff] }
 0x51f   :  { %7699 = vmatprep.subr.bf16.mxu1 %v10494_v25  ;;  %v10542_v25 = vcombine.high %v4186_v13, %v4190_v11  ;;  %v4230_v2 = vld [vmem:[#allocation11 + $0x4b8] sm:$0xff] }
 0x521   :  { %7536 = vmatpush1.bf16.msra.mxu0 %v10491_v30  ;;  %v10539_v30 = vcombine.low %v4185_v9, %v4189_v4  ;;  %v4233_v9 = vld [vmem:[#allocation11 + $0x4d0] sm:$0xff] }
 0x522   :  { %7700 = vmatpush1.bf16.msra.mxu1 %v10493_v29  ;;  %7537 = vmatprep.subr.bf16.mxu0 %v10500_v32  ;;  %v10541_v29 = vcombine.low %v4186_v13, %v4190_v11  ;;  %v10548_v32 = vcombine.high %v4193_v17, %v4197_v58  ;;  %v4237_v4 = vld [vmem:[#allocation11 + $0x4f0] sm:$0xff]  ;;  %v4234_v13 = vld [vmem:[#allocation11 + $0x4d8] sm:$0xff] }
 0x523   :  { %7701 = vmatprep.subr.bf16.mxu1 %v10502_v27  ;;  %v10550_v27 = vcombine.high %v4194_v23, %v4198_v24  ;;  %v4238_v11 = vld [vmem:[#allocation11 + $0x4f8] sm:$0xff] }
 0x525   :  { %7538 = vmatpush1.bf16.msra.mxu0 %v10499_v52  ;;  %v10547_v52 = vcombine.low %v4193_v17, %v4197_v58  ;;  %v4245_v17 = vld [vmem:[#allocation11 + $0x530] sm:$0xff]  ;;  %v4242_v58 = vld [vmem:[#allocation11 + $0x518] sm:$0xff] }
 0x526   :  { %7702 = vmatpush1.bf16.msra.mxu1 %v10501_v5  ;;  %7539 = vmatprep.subr.bf16.mxu0 %v10508_v57  ;;  %v10549_v5 = vcombine.low %v4194_v23, %v4198_v24  ;;  %v10556_v57 = vcombine.high %v4201_v31, %v4205_v36  ;;  %v4246_v23 = vld [vmem:[#allocation11 + $0x538] sm:$0xff]  ;;  %v10589_v24 = vcombine.low %v4234_v13, %v4238_v11 }
 0x527   :  { %7703 = vmatprep.subr.bf16.mxu1 %v10510_v40  ;;  %v10558_v40 = vcombine.high %v4202_v37, %v4206_v38 }
 0x529   :  { %7540 = vmatpush1.bf16.msra.mxu0 %v10507_v19  ;;  %v10555_v19 = vcombine.low %v4201_v31, %v4205_v36  ;;  %v4250_v31 = vld [vmem:[#allocation11 + $0x558] sm:$0xff] }
 0x52a   :  { %7704 = vmatpush1.bf16.msra.mxu1 %v10509_v42  ;;  %7541 = vmatprep.subr.bf16.mxu0 %v10516_v49  ;;  %v10557_v42 = vcombine.low %v4202_v37, %v4206_v38  ;;  %v10564_v49 = vcombine.high %v4209_v0, %v4213_v60  ;;  %v4254_v36 = vld [vmem:[#allocation11 + $0x578] sm:$0xff]  ;;  %v10597_v38 = vcombine.low %v4242_v58, %v4246_v23 }
 0x52b   :  { %7705 = vmatprep.subr.bf16.mxu1 %v10518_v59  ;;  %v10566_v59 = vcombine.high %v4210_v26, %v4214_v6  ;;  %v4258_v0 = vld [vmem:[#allocation11 + $0x598] sm:$0xff] }
 0x52c   :  { %v4262_v60 = vld [vmem:[#allocation11 + $0x5b8] sm:$0xff] }
 0x52d   :  { %7542 = vmatpush1.bf16.msra.mxu0 %v10515_v63  ;;  %v4222_v63 = vld [vmem:[#allocation11 + $0x478] sm:$0xff] }
 0x52e   :  { %7706 = vmatpush1.bf16.msra.mxu1 %v10517_v61  ;;  %7543 = vmatprep.subr.bf16.mxu0 %v10524_v44  ;;  %v10565_v61 = vcombine.low %v4210_v26, %v4214_v6  ;;  %v10572_v44 = vcombine.high %v4217_v48, %v4221_v18  ;;  %v10574_v1 = vcombine.high %v4218_v50, %v4222_v63 }
 0x52f   :  { %7707 = vmatprep.subr.bf16.mxu1 %v10526_v62  ;;  %v4225_v62 = vld [vmem:[#allocation11 + $0x490] sm:$0xff]  ;;  %v10605_v6 = vcombine.low %v4250_v31, %v4254_v36 }
 0x531   :  { %7544 = vmatpush1.bf16.msra.mxu0 %v10523_v7  ;;  %v10571_v7 = vcombine.low %v4217_v48, %v4221_v18  ;;  %v4266_v48 = vld [vmem:[#allocation11 + $0x5d8] sm:$0xff] }
 0x532   :  { %7708 = vmatpush1.bf16.msra.mxu1 %v10525_v28  ;;  %7545 = vmatprep.subr.bf16.mxu0 %v10532_v33  ;;  %v10573_v28 = vcombine.low %v4218_v50, %v4222_v63  ;;  %v10580_v33 = vcombine.high %v4225_v62, %v4229_v43  ;;  %v4270_v18 = vld [vmem:[#allocation11 + $0x5f8] sm:$0xff]  ;;  %v10613_v50 = vcombine.low %v4258_v0, %v4262_v60 }
 0x533   :  { %7709 = vmatprep.subr.bf16.mxu1 %v10534_v54  ;;  %v10582_v54 = vcombine.high %v4226_v10, %v4230_v2 }
 0x535   :  { %7546 = vmatpush1.bf16.msra.mxu0 %v10531_v14  ;;  %v10579_v14 = vcombine.low %v4225_v62, %v4229_v43  ;;  %v4277_v62 = vld [vmem:[#allocation11 + $0x630] sm:$0xff]  ;;  %v4274_v43 = vld [vmem:[#allocation11 + $0x618] sm:$0xff] }
 0x536   :  { %7710 = vmatpush1.bf16.msra.mxu1 %v10533_v21  ;;  %7547 = vmatprep.subr.bf16.mxu0 %v10540_v22  ;;  %v10588_v21 = vcombine.high %v4233_v9, %v4237_v4  ;;  %v10590_v22 = vcombine.high %v4234_v13, %v4238_v11 }
 0x537   :  { %7711 = vmatprep.subr.bf16.mxu1 %v10542_v25  ;;  %v4241_v25 = vld [vmem:[#allocation11 + $0x510] sm:$0xff] }
 0x538   :  { %v10595_v37 = vcombine.low %v4241_v25, %v4245_v17 }
 0x539   :  { %7548 = vmatpush1.bf16.msra.mxu0 %v10539_v30  ;;  %v10596_v30 = vcombine.high %v4241_v25, %v4245_v17  ;;  %v4290_v25 = vld [vmem:[#allocation11 + $0x698] sm:$0xff] }
 0x53a   :  { %7712 = vmatpush1.bf16.msra.mxu1 %v10541_v29  ;;  %7549 = vmatprep.subr.bf16.mxu0 %v10548_v32  ;;  %v10598_v29 = vcombine.high %v4242_v58, %v4246_v23  ;;  %v4249_v32 = vld [vmem:[#allocation11 + $0x550] sm:$0xff]  ;;  %v4294_v17 = vld [vmem:[#allocation11 + $0x6b8] sm:$0xff] }
 0x53b   :  { %7713 = vmatprep.subr.bf16.mxu1 %v10550_v27  ;;  %v4253_v27 = vld [vmem:[#allocation11 + $0x570] sm:$0xff] }
 0x53c   :  { %v10603_v26 = vcombine.low %v4249_v32, %v4253_v27 }
 0x53d   :  { %7550 = vmatpush1.bf16.msra.mxu0 %v10547_v52  ;;  %v10604_v52 = vcombine.high %v4249_v32, %v4253_v27  ;;  %v4298_v32 = vld [vmem:[#allocation11 + $0x6d8] sm:$0xff] }
 0x53e   :  { %7714 = vmatpush1.bf16.msra.mxu1 %v10549_v5  ;;  %7551 = vmatprep.subr.bf16.mxu0 %v10556_v57  ;;  %v10606_v5 = vcombine.high %v4250_v31, %v4254_v36  ;;  %v4257_v57 = vld [vmem:[#allocation11 + $0x590] sm:$0xff]  ;;  %v4302_v27 = vld [vmem:[#allocation11 + $0x6f8] sm:$0xff]  ;;  %v10645_v36 = vcombine.low %v4290_v25, %v4294_v17 }
 0x53f   :  { %7715 = vmatprep.subr.bf16.mxu1 %v10558_v40  ;;  %v4261_v40 = vld [vmem:[#allocation11 + $0x5b0] sm:$0xff] }
 0x541   :  { %7552 = vmatpush1.bf16.msra.mxu0 %v10555_v19  ;;  %v10612_v19 = vcombine.high %v4257_v57, %v4261_v40 }
 0x542   :  { %7716 = vmatpush1.bf16.msra.mxu1 %v10557_v42  ;;  %7562 = vmatprep.subr.bf16.mxu0 %v10564_v49  ;;  %v10614_v42 = vcombine.high %v4258_v0, %v4262_v60  ;;  %v4265_v49 = vld [vmem:[#allocation11 + $0x5d0] sm:$0xff]  ;;  %v10653_v60 = vcombine.low %v4298_v32, %v4302_v27 }
 0x543   :  { %7726 = vmatprep.subr.bf16.mxu1 %v10566_v59  ;;  %v4269_v59 = vld [vmem:[#allocation11 + $0x5f0] sm:$0xff] }
 0x544   :  { %7554 = vmatmul.mubr.bf16.vlgmr.msra.gmra.mrb[36].mxu0 %v12363_v3  ;;  %v10620_v63 = vcombine.high %v4265_v49, %v4269_v59 }
 0x545   :  { %7718 = vmatmul.mubr.bf16.vlgmr.msra.gmra.mrb[36].mxu1 %v12363_v3  ;;  %7563 = vmatpush1.bf16.msra.mxu0 %v10563_v55  ;;  %v10581_v3 = vcombine.low %v4226_v10, %v4230_v2  ;;  %v10611_v55 = vcombine.low %v4257_v57, %v4261_v40  ;;  %v10619_v10 = vcombine.low %v4265_v49, %v4269_v59  ;;  %v4306_v57 = vld [vmem:[#allocation11 + $0x718] sm:$0xff] }
 0x546   :  { %7594 = vmatprep.mubr.bf16.mxu0 %v12369_v8  ;;  %7727 = vmatpush1.bf16.msra.mxu1 %v10565_v61  ;;  %v10622_v61 = vcombine.high %v4266_v48, %v4270_v18  ;;  %v10621_v2 = vcombine.low %v4266_v48, %v4270_v18  ;;  %v4310_v40 = vld [vmem:[#allocation11 + $0x738] sm:$0xff] }
 0x547   :  { %7758 = vmatprep.mubr.bf16.mxu1 %v12369_v8  ;;  %7564 = vmatprep.subr.bf16.mxu0 %v10572_v44  ;;  %v10587_v8 = vcombine.low %v4233_v9, %v4237_v4  ;;  %v4273_v44 = vld [vmem:[#allocation11 + $0x610] sm:$0xff]  ;;  %v4282_v9 = vld [vmem:[#allocation11 + $0x658] sm:$0xff]  ;;  %v10661_v18 = vcombine.low %v4306_v57, %v4310_v40 }
 0x548   :  { %7728 = vmatprep.subr.bf16.mxu1 %v10574_v1  ;;  %v4278_v1 = vld [vmem:[#allocation11 + $0x638] sm:$0xff]  ;;  %v10627_v13 = vcombine.low %v4273_v44, %v4277_v62 }
 0x549   :  { %7565 = vmatpush1.bf16.msra.mxu0 %v10571_v7  ;;  %v10628_v7 = vcombine.high %v4273_v44, %v4277_v62  ;;  %v4286_v4 = vld [vmem:[#allocation11 + $0x678] sm:$0xff]  ;;  %v10629_v11 = vcombine.low %v4274_v43, %v4278_v1 }
 0x54a   :  { %7729 = vmatpush1.bf16.msra.mxu1 %v10573_v28  ;;  %7566 = vmatprep.subr.bf16.mxu0 %v10580_v33  ;;  %v10630_v28 = vcombine.high %v4274_v43, %v4278_v1  ;;  %v4281_v33 = vld [vmem:[#allocation11 + $0x650] sm:$0xff]  ;;  %v10637_v23 = vcombine.low %v4282_v9, %v4286_v4  ;;  %v4314_v49 = vld [vmem:[#allocation11 + $0x758] sm:$0xff] }
 0x54b   :  { %7730 = vmatprep.subr.bf16.mxu1 %v10582_v54  ;;  %v4285_v54 = vld [vmem:[#allocation11 + $0x670] sm:$0xff]  ;;  %v4318_v59 = vld [vmem:[#allocation11 + $0x778] sm:$0xff] }
 0x54c   :  { %v10635_v58 = vcombine.low %v4281_v33, %v4285_v54  ;;  %v4322_v44 = vld [vmem:[#allocation11 + $0x798] sm:$0xff]  ;;  %v10669_v1 = vcombine.low %v4314_v49, %v4318_v59 }
 0x54d   :  { %7567 = vmatpush1.bf16.msra.mxu0 %v10579_v14  ;;  %v10636_v14 = vcombine.high %v4281_v33, %v4285_v54  ;;  %v4326_v62 = vld [vmem:[#allocation11 + $0x7b8] sm:$0xff] }
 0x54e   :  { %7731 = vmatpush1.bf16.msra.mxu1 %v10581_v3  ;;  %7568 = vmatprep.subr.bf16.mxu0 %v10588_v21  ;;  %v10638_v3 = vcombine.high %v4282_v9, %v4286_v4  ;;  %v4289_v21 = vld [vmem:[#allocation11 + $0x690] sm:$0xff]  ;;  %v4330_v33 = vld [vmem:[#allocation11 + $0x7d8] sm:$0xff]  ;;  %v10677_v4 = vcombine.low %v4322_v44, %v4326_v62 }
 0x54f   :  { %7732 = vmatprep.subr.bf16.mxu1 %v10590_v22  ;;  %v4293_v22 = vld [vmem:[#allocation11 + $0x6b0] sm:$0xff]  ;;  %v4334_v54 = vld [vmem:[#allocation11 + $0x7f8] sm:$0xff] }
 0x550   :  { %v10643_v31 = vcombine.low %v4289_v21, %v4293_v22 }
 0x551   :  { %7569 = vmatpush1.bf16.msra.mxu0 %v10587_v8  ;;  %v10644_v8 = vcombine.high %v4289_v21, %v4293_v22  ;;  %v4338_v21 = vld [vmem:[#allocation11 + $0x818] sm:$0xff] }
 0x552   :  { %7733 = vmatpush1.bf16.msra.mxu1 %v10589_v24  ;;  %7570 = vmatprep.subr.bf16.mxu0 %v10596_v30  ;;  %v10646_v24 = vcombine.high %v4290_v25, %v4294_v17  ;;  %v4297_v30 = vld [vmem:[#allocation11 + $0x6d0] sm:$0xff]  ;;  %v4342_v22 = vld [vmem:[#allocation11 + $0x838] sm:$0xff]  ;;  %v10685_v17 = vcombine.low %v4330_v33, %v4334_v54 }
 0x553   :  { %7734 = vmatprep.subr.bf16.mxu1 %v10598_v29  ;;  %v4301_v29 = vld [vmem:[#allocation11 + $0x6f0] sm:$0xff] }
 0x554   :  { %v10651_v0 = vcombine.low %v4297_v30, %v4301_v29 }
 0x555   :  { %7571 = vmatpush1.bf16.msra.mxu0 %v10595_v37  ;;  %v10652_v37 = vcombine.high %v4297_v30, %v4301_v29  ;;  %v4346_v29 = vld [vmem:[#allocation11 + $0x858] sm:$0xff] }
 0x556   :  { %7735 = vmatpush1.bf16.msra.mxu1 %v10597_v38  ;;  %7572 = vmatprep.subr.bf16.mxu0 %v10604_v52  ;;  %v10654_v38 = vcombine.high %v4298_v32, %v4302_v27  ;;  %v4305_v52 = vld [vmem:[#allocation11 + $0x710] sm:$0xff]  ;;  %v4350_v32 = vld [vmem:[#allocation11 + $0x878] sm:$0xff]  ;;  %v10693_v27 = vcombine.low %v4338_v21, %v4342_v22 }
 0x557   :  { %7736 = vmatprep.subr.bf16.mxu1 %v10606_v5  ;;  %v4309_v5 = vld [vmem:[#allocation11 + $0x730] sm:$0xff] }
 0x558   :  { %v10659_v48 = vcombine.low %v4305_v52, %v4309_v5 }
 0x559   :  { %7573 = vmatpush1.bf16.msra.mxu0 %v10603_v26  ;;  %v10660_v26 = vcombine.high %v4305_v52, %v4309_v5  ;;  %v4354_v52 = vld [vmem:[#allocation11 + $0x898] sm:$0xff] }
 0x55a   :  { %7737 = vmatpush1.bf16.msra.mxu1 %v10605_v6  ;;  %7574 = vmatprep.subr.bf16.mxu0 %v10612_v19  ;;  %v10662_v6 = vcombine.high %v4306_v57, %v4310_v40  ;;  %v4313_v19 = vld [vmem:[#allocation11 + $0x750] sm:$0xff]  ;;  %v4358_v5 = vld [vmem:[#allocation11 + $0x8b8] sm:$0xff]  ;;  %v10701_v40 = vcombine.low %v4346_v29, %v4350_v32 }
 0x55b   :  { %7738 = vmatprep.subr.bf16.mxu1 %v10614_v42  ;;  %v4317_v42 = vld [vmem:[#allocation11 + $0x770] sm:$0xff] }
 0x55c   :  { %v10667_v43 = vcombine.low %v4313_v19, %v4317_v42 }
 0x55d   :  { %7575 = vmatpush1.bf16.msra.mxu0 %v10611_v55  ;;  %v10668_v55 = vcombine.high %v4313_v19, %v4317_v42  ;;  %v4362_v19 = vld [vmem:[#allocation11 + $0x8d8] sm:$0xff] }
 0x55e   :  { %7739 = vmatpush1.bf16.msra.mxu1 %v10613_v50  ;;  %7576 = vmatprep.subr.bf16.mxu0 %v10620_v63  ;;  %v10670_v50 = vcombine.high %v4314_v49, %v4318_v59  ;;  %v4321_v63 = vld [vmem:[#allocation11 + $0x790] sm:$0xff]  ;;  %v4366_v42 = vld [vmem:[#allocation11 + $0x8f8] sm:$0xff] }
 0x55f   :  { %7740 = vmatprep.subr.bf16.mxu1 %v10622_v61  ;;  %v4325_v61 = vld [vmem:[#allocation11 + $0x7b0] sm:$0xff] }
 0x560   :  { %v10675_v9 = vcombine.low %v4321_v63, %v4325_v61 }
 0x561   :  { %7577 = vmatpush1.bf16.msra.mxu0 %v10619_v10  ;;  %v10676_v10 = vcombine.high %v4321_v63, %v4325_v61  ;;  %v4374_v63 = vld [vmem:[#allocation11 + $0x938] sm:$0xff]  ;;  %v10717_v61 = vcombine.low %v4362_v19, %v4366_v42 }
 0x562   :  { %7741 = vmatpush1.bf16.msra.mxu1 %v10621_v2  ;;  %7578 = vmatprep.subr.bf16.mxu0 %v10628_v7  ;;  %v10678_v2 = vcombine.high %v4322_v44, %v4326_v62  ;;  %v4329_v7 = vld [vmem:[#allocation11 + $0x7d0] sm:$0xff] }
 0x563   :  { %7742 = vmatprep.subr.bf16.mxu1 %v10630_v28  ;;  %v4333_v28 = vld [vmem:[#allocation11 + $0x7f0] sm:$0xff] }
 0x564   :  { %v10683_v25 = vcombine.low %v4329_v7, %v4333_v28 }
 0x565   :  { %7579 = vmatpush1.bf16.msra.mxu0 %v10627_v13  ;;  %v10684_v13 = vcombine.high %v4329_v7, %v4333_v28 }
 0x566   :  { %7743 = vmatpush1.bf16.msra.mxu1 %v10629_v11  ;;  %7580 = vmatprep.subr.bf16.mxu0 %v10636_v14  ;;  %v10686_v11 = vcombine.high %v4330_v33, %v4334_v54  ;;  %v4337_v14 = vld [vmem:[#allocation11 + $0x810] sm:$0xff] }
 0x567   :  { %7744 = vmatprep.subr.bf16.mxu1 %v10638_v3  ;;  %v4341_v3 = vld [vmem:[#allocation11 + $0x830] sm:$0xff] }
 0x568   :  { %v10691_v30 = vcombine.low %v4337_v14, %v4341_v3 }
 0x569   :  { %7581 = vmatpush1.bf16.msra.mxu0 %v10635_v58  ;;  %v10692_v58 = vcombine.high %v4337_v14, %v4341_v3 }
 0x56a   :  { %7745 = vmatpush1.bf16.msra.mxu1 %v10637_v23  ;;  %7582 = vmatprep.subr.bf16.mxu0 %v10644_v8  ;;  %v10694_v23 = vcombine.high %v4338_v21, %v4342_v22  ;;  %v4345_v8 = vld [vmem:[#allocation11 + $0x850] sm:$0xff] }
 0x56b   :  { %7746 = vmatprep.subr.bf16.mxu1 %v10646_v24  ;;  %v4349_v24 = vld [vmem:[#allocation11 + $0x870] sm:$0xff] }
 0x56c   :  { %v10699_v57 = vcombine.low %v4345_v8, %v4349_v24 }
 0x56d   :  { %7583 = vmatpush1.bf16.msra.mxu0 %v10643_v31  ;;  %v10700_v31 = vcombine.high %v4345_v8, %v4349_v24 }
 0x56e   :  { %7747 = vmatpush1.bf16.msra.mxu1 %v10645_v36  ;;  %7584 = vmatprep.subr.bf16.mxu0 %v10652_v37  ;;  %v4353_v36 = vld [vmem:[#allocation11 + $0x890] sm:$0xff] }
 0x56f   :  { %7748 = vmatprep.subr.bf16.mxu1 %v10654_v38  ;;  %v4357_v37 = vld [vmem:[#allocation11 + $0x8b0] sm:$0xff]  ;;  %v10702_v38 = vcombine.high %v4346_v29, %v4350_v32 }
 0x570   :  { %v10707_v49 = vcombine.low %v4353_v36, %v4357_v37  ;;  %v4401_v32 = vld [vmem:[#allocation11 + $0xa10] sm:$0xff] }
 0x571   :  { %7585 = vmatpush1.bf16.msra.mxu0 %v10651_v0  ;;  %v10708_v0 = vcombine.high %v4353_v36, %v4357_v37  ;;  %v4406_v36 = vld [vmem:[#allocation11 + $0xa38] sm:$0xff] }
 0x572   :  { %7749 = vmatpush1.bf16.msra.mxu1 %v10653_v60  ;;  %7586 = vmatprep.subr.bf16.mxu0 %v10660_v26  ;;  %v10710_v60 = vcombine.high %v4354_v52, %v4358_v5  ;;  %v4361_v26 = vld [vmem:[#allocation11 + $0x8d0] sm:$0xff] }
 0x573   :  { %7750 = vmatprep.subr.bf16.mxu1 %v10662_v6  ;;  %v4365_v6 = vld [vmem:[#allocation11 + $0x8f0] sm:$0xff] }
 0x574   :  { %v10716_v59 = vcombine.high %v4361_v26, %v4365_v6 }
 0x575   :  { %7587 = vmatpush1.bf16.msra.mxu0 %v10659_v48  ;;  %v10718_v48 = vcombine.high %v4362_v19, %v4366_v42 }
 0x576   :  { %7751 = vmatpush1.bf16.msra.mxu1 %v10661_v18  ;;  %7588 = vmatprep.subr.bf16.mxu0 %v10668_v55  ;;  %v4369_v18 = vld [vmem:[#allocation11 + $0x910] sm:$0xff] }
 0x577   :  { %7752 = vmatprep.subr.bf16.mxu1 %v10670_v50  ;;  %v4373_v55 = vld [vmem:[#allocation11 + $0x930] sm:$0xff]  ;;  %v4370_v50 = vld [vmem:[#allocation11 + $0x918] sm:$0xff] }
 0x578   :  { %v10724_v44 = vcombine.high %v4369_v18, %v4373_v55  ;;  %v10726_v62 = vcombine.high %v4370_v50, %v4374_v63  ;;  %v10723_v7 = vcombine.low %v4369_v18, %v4373_v55  ;;  %v10725_v28 = vcombine.low %v4370_v50, %v4374_v63 }
 0x579   :  { %7589 = vmatpush1.bf16.msra.mxu0 %v10667_v43  ;;  %v4377_v43 = vld [vmem:[#allocation11 + $0x950] sm:$0xff] }
 0x57a   :  { %7753 = vmatpush1.bf16.msra.mxu1 %v10669_v1  ;;  %7590 = vmatprep.subr.bf16.mxu0 %v10676_v10  ;;  %v4381_v1 = vld [vmem:[#allocation11 + $0x970] sm:$0xff]  ;;  %v4378_v10 = vld [vmem:[#allocation11 + $0x958] sm:$0xff] }
 0x57b   :  { %7754 = vmatprep.subr.bf16.mxu1 %v10678_v2  ;;  %v4382_v2 = vld [vmem:[#allocation11 + $0x978] sm:$0xff]  ;;  %v10732_v33 = vcombine.high %v4377_v43, %v4381_v1  ;;  %v10731_v14 = vcombine.low %v4377_v43, %v4381_v1 }
 0x57c   :  { %v10734_v54 = vcombine.high %v4378_v10, %v4382_v2  ;;  %v10733_v3 = vcombine.low %v4378_v10, %v4382_v2 }
 0x57d   :  { %7591 = vmatpush1.bf16.msra.mxu0 %v10675_v9  ;;  %v4385_v9 = vld [vmem:[#allocation11 + $0x990] sm:$0xff] }
 0x57e   :  { %7755 = vmatpush1.bf16.msra.mxu1 %v10677_v4  ;;  %7592 = vmatprep.subr.bf16.mxu0 %v10684_v13  ;;  %v4389_v4 = vld [vmem:[#allocation11 + $0x9b0] sm:$0xff]  ;;  %v4386_v13 = vld [vmem:[#allocation11 + $0x998] sm:$0xff] }
 0x57f   :  { %7756 = vmatprep.subr.bf16.mxu1 %v10686_v11  ;;  %v4390_v11 = vld [vmem:[#allocation11 + $0x9b8] sm:$0xff]  ;;  %v10740_v21 = vcombine.high %v4385_v9, %v4389_v4  ;;  %v10739_v8 = vcombine.low %v4385_v9, %v4389_v4 }
 0x580   :  { %v10742_v22 = vcombine.high %v4386_v13, %v4390_v11  ;;  %v10741_v24 = vcombine.low %v4386_v13, %v4390_v11 }
 0x581   :  { %7593 = vmatpush1.bf16.msra.mxu0 %v10683_v25  ;;  %v4393_v25 = vld [vmem:[#allocation11 + $0x9d0] sm:$0xff] }
 0x582   :  { %7757 = vmatpush1.bf16.msra.mxu1 %v10685_v17  ;;  %7603 = vmatprep.subr.bf16.mxu0 %v10692_v58  ;;  %v4397_v17 = vld [vmem:[#allocation11 + $0x9f0] sm:$0xff]  ;;  %v4394_v58 = vld [vmem:[#allocation11 + $0x9d8] sm:$0xff] }
 0x583   :  { %7767 = vmatprep.subr.bf16.mxu1 %v10694_v23  ;;  %v4398_v23 = vld [vmem:[#allocation11 + $0x9f8] sm:$0xff]  ;;  %v10747_v37 = vcombine.low %v4393_v25, %v4397_v17 }
 0x584   :  { %7595 = vmatmul.mubr.bf16.vlgmr.msra.gmra.mrb[36].mxu0 %v12375_v41  ;;  %v10750_v29 = vcombine.high %v4394_v58, %v4398_v23 }
 0x585   :  { %7759 = vmatmul.mubr.bf16.vlgmr.msra.gmra.mrb[36].mxu1 %v12375_v41  ;;  %7604 = vmatpush1.bf16.msra.mxu0 %v10691_v30  ;;  %v10709_v41 = vcombine.low %v4354_v52, %v4358_v5  ;;  %v10748_v30 = vcombine.high %v4393_v25, %v4397_v17 }
 0x586   :  { %7635 = vmatprep.mubr.bf16.mxu0 %v12377_v35  ;;  %7768 = vmatpush1.bf16.msra.mxu1 %v10693_v27  ;;  %v4405_v27 = vld [vmem:[#allocation11 + $0xa30] sm:$0xff] }
 0x587   :  { %7799 = vmatprep.mubr.bf16.mxu1 %v12377_v35  ;;  %7605 = vmatprep.subr.bf16.mxu0 %v10700_v31  ;;  %v10715_v35 = vcombine.low %v4361_v26, %v4365_v6  ;;  %v4402_v31 = vld [vmem:[#allocation11 + $0xa18] sm:$0xff]  ;;  %v10756_v52 = vcombine.high %v4401_v32, %v4405_v27  ;;  %v10755_v26 = vcombine.low %v4401_v32, %v4405_v27 }
 0x588   :  { %7769 = vmatprep.subr.bf16.mxu1 %v10702_v38  ;;  %v10749_v38 = vcombine.low %v4394_v58, %v4398_v23  ;;  %v10758_v5 = vcombine.high %v4402_v31, %v4406_v36  ;;  %v10757_v6 = vcombine.low %v4402_v31, %v4406_v36 }
 0x589   :  { %7606 = vmatpush1.bf16.msra.mxu0 %v10699_v57  ;;  %v4409_v57 = vld [vmem:[#allocation11 + $0xa50] sm:$0xff] }
 0x58a   :  { %7770 = vmatpush1.bf16.msra.mxu1 %v10701_v40  ;;  %7607 = vmatprep.subr.bf16.mxu0 %v10708_v0  ;;  %v4413_v40 = vld [vmem:[#allocation11 + $0xa70] sm:$0xff]  ;;  %v4410_v0 = vld [vmem:[#allocation11 + $0xa58] sm:$0xff] }
 0x58b   :  { %7771 = vmatprep.subr.bf16.mxu1 %v10710_v60  ;;  %v4414_v60 = vld [vmem:[#allocation11 + $0xa78] sm:$0xff]  ;;  %v10764_v19 = vcombine.high %v4409_v57, %v4413_v40  ;;  %v10763_v18 = vcombine.low %v4409_v57, %v4413_v40 }
 0x58c   :  { %v10766_v42 = vcombine.high %v4410_v0, %v4414_v60  ;;  %v10765_v55 = vcombine.low %v4410_v0, %v4414_v60 }
 0x58d   :  { %7608 = vmatpush1.bf16.msra.mxu0 %v10707_v49  ;;  %v4417_v49 = vld [vmem:[#allocation11 + $0xa90] sm:$0xff] }
 0x58e   :  { %7772 = vmatpush1.bf16.msra.mxu1 %v10709_v41  ;;  %7609 = vmatprep.subr.bf16.mxu0 %v10716_v59  ;;  %v4421_v41 = vld [vmem:[#allocation11 + $0xab0] sm:$0xff]  ;;  %v4418_v59 = vld [vmem:[#allocation11 + $0xa98] sm:$0xff] }
 0x58f   :  { %7773 = vmatprep.subr.bf16.mxu1 %v10718_v48  ;;  %v4422_v48 = vld [vmem:[#allocation11 + $0xab8] sm:$0xff]  ;;  %v10772_v50 = vcombine.high %v4417_v49, %v4421_v41  ;;  %v10771_v43 = vcombine.low %v4417_v49, %v4421_v41 }
 0x590   :  { %v10774_v63 = vcombine.high %v4418_v59, %v4422_v48  ;;  %v10773_v1 = vcombine.low %v4418_v59, %v4422_v48 }
 0x591   :  { %7610 = vmatpush1.bf16.msra.mxu0 %v10715_v35  ;;  %v4425_v35 = vld [vmem:[#allocation11 + $0xad0] sm:$0xff] }
 0x592   :  { %7774 = vmatpush1.bf16.msra.mxu1 %v10717_v61  ;;  %7611 = vmatprep.subr.bf16.mxu0 %v10724_v44  ;;  %v4429_v61 = vld [vmem:[#allocation11 + $0xaf0] sm:$0xff]  ;;  %v4426_v44 = vld [vmem:[#allocation11 + $0xad8] sm:$0xff] }
 0x593   :  { %7775 = vmatprep.subr.bf16.mxu1 %v10726_v62  ;;  %v4430_v62 = vld [vmem:[#allocation11 + $0xaf8] sm:$0xff]  ;;  %v10780_v10 = vcombine.high %v4425_v35, %v4429_v61  ;;  %v10779_v9 = vcombine.low %v4425_v35, %v4429_v61 }
 0x594   :  { %v10782_v2 = vcombine.high %v4426_v44, %v4430_v62  ;;  %v10781_v4 = vcombine.low %v4426_v44, %v4430_v62  ;;  %v4478_v35 = vld [vmem:[#allocation11 + $0xc78] sm:$0xff]  ;;  %v4481_v62 = vld [vmem:[#allocation11 + $0xc90] sm:$0xff] }
 0x595   :  { %7612 = vmatpush1.bf16.msra.mxu0 %v10723_v7  ;;  %v4433_v7 = vld [vmem:[#allocation11 + $0xb10] sm:$0xff] }
 0x596   :  { %7776 = vmatpush1.bf16.msra.mxu1 %v10725_v28  ;;  %7613 = vmatprep.subr.bf16.mxu0 %v10732_v33  ;;  %v4437_v28 = vld [vmem:[#allocation11 + $0xb30] sm:$0xff]  ;;  %v4434_v33 = vld [vmem:[#allocation11 + $0xb18] sm:$0xff] }
 0x597   :  { %7777 = vmatprep.subr.bf16.mxu1 %v10734_v54  ;;  %v4438_v54 = vld [vmem:[#allocation11 + $0xb38] sm:$0xff]  ;;  %v10788_v13 = vcombine.high %v4433_v7, %v4437_v28  ;;  %v10787_v25 = vcombine.low %v4433_v7, %v4437_v28 }
 0x598   :  { %v10790_v11 = vcombine.high %v4434_v33, %v4438_v54  ;;  %v10789_v17 = vcombine.low %v4434_v33, %v4438_v54 }
 0x599   :  { %7614 = vmatpush1.bf16.msra.mxu0 %v10731_v14  ;;  %v4441_v14 = vld [vmem:[#allocation11 + $0xb50] sm:$0xff] }
 0x59a   :  { %7778 = vmatpush1.bf16.msra.mxu1 %v10733_v3  ;;  %7615 = vmatprep.subr.bf16.mxu0 %v10740_v21  ;;  %v4445_v3 = vld [vmem:[#allocation11 + $0xb70] sm:$0xff]  ;;  %v4442_v21 = vld [vmem:[#allocation11 + $0xb58] sm:$0xff] }
 0x59b   :  { %7779 = vmatprep.subr.bf16.mxu1 %v10742_v22  ;;  %v4446_v22 = vld [vmem:[#allocation11 + $0xb78] sm:$0xff]  ;;  %v10796_v58 = vcombine.high %v4441_v14, %v4445_v3  ;;  %v10795_v32 = vcombine.low %v4441_v14, %v4445_v3 }
 0x59c   :  { %v10798_v23 = vcombine.high %v4442_v21, %v4446_v22  ;;  %v10797_v27 = vcombine.low %v4442_v21, %v4446_v22  ;;  %v4497_v22 = vld [vmem:[#allocation11 + $0xd10] sm:$0xff] }
 0x59d   :  { %7616 = vmatpush1.bf16.msra.mxu0 %v10739_v8  ;;  %v4449_v8 = vld [vmem:[#allocation11 + $0xb90] sm:$0xff] }
 0x59e   :  { %7780 = vmatpush1.bf16.msra.mxu1 %v10741_v24  ;;  %7617 = vmatprep.subr.bf16.mxu0 %v10748_v30  ;;  %v4453_v24 = vld [vmem:[#allocation11 + $0xbb0] sm:$0xff]  ;;  %v4450_v30 = vld [vmem:[#allocation11 + $0xb98] sm:$0xff] }
 0x59f   :  { %7781 = vmatprep.subr.bf16.mxu1 %v10750_v29  ;;  %v4454_v29 = vld [vmem:[#allocation11 + $0xbb8] sm:$0xff]  ;;  %v10804_v31 = vcombine.high %v4449_v8, %v4453_v24  ;;  %v10803_v57 = vcombine.low %v4449_v8, %v4453_v24 }
 0x5a0   :  { %v10806_v36 = vcombine.high %v4450_v30, %v4454_v29  ;;  %v10805_v40 = vcombine.low %v4450_v30, %v4454_v29  ;;  %v4505_v30 = vld [vmem:[#allocation11 + $0xd50] sm:$0xff] }
 0x5a1   :  { %7618 = vmatpush1.bf16.msra.mxu0 %v10747_v37  ;;  %v4457_v37 = vld [vmem:[#allocation11 + $0xbd0] sm:$0xff] }
 0x5a2   :  { %7782 = vmatpush1.bf16.msra.mxu1 %v10749_v38  ;;  %7619 = vmatprep.subr.bf16.mxu0 %v10756_v52  ;;  %v4461_v38 = vld [vmem:[#allocation11 + $0xbf0] sm:$0xff]  ;;  %v4458_v52 = vld [vmem:[#allocation11 + $0xbd8] sm:$0xff] }
 0x5a3   :  { %7783 = vmatprep.subr.bf16.mxu1 %v10758_v5  ;;  %v4462_v5 = vld [vmem:[#allocation11 + $0xbf8] sm:$0xff]  ;;  %v10812_v0 = vcombine.high %v4457_v37, %v4461_v38  ;;  %v10811_v49 = vcombine.low %v4457_v37, %v4461_v38  ;;  %v4509_v29 = vld [vmem:[#allocation11 + $0xd70] sm:$0xff] }
 0x5a4   :  { %v10814_v60 = vcombine.high %v4458_v52, %v4462_v5  ;;  %v10813_v41 = vcombine.low %v4458_v52, %v4462_v5  ;;  %v10860_v37 = vcombine.high %v4505_v30, %v4509_v29  ;;  %v4513_v52 = vld [vmem:[#allocation11 + $0xd90] sm:$0xff] }
 0x5a5   :  { %7620 = vmatpush1.bf16.msra.mxu0 %v10755_v26  ;;  %v4465_v26 = vld [vmem:[#allocation11 + $0xc10] sm:$0xff] }
 0x5a6   :  { %7784 = vmatpush1.bf16.msra.mxu1 %v10757_v6  ;;  %7621 = vmatprep.subr.bf16.mxu0 %v10764_v19  ;;  %v4469_v6 = vld [vmem:[#allocation11 + $0xc30] sm:$0xff]  ;;  %v4466_v19 = vld [vmem:[#allocation11 + $0xc18] sm:$0xff] }
 0x5a7   :  { %7785 = vmatprep.subr.bf16.mxu1 %v10766_v42  ;;  %v4470_v42 = vld [vmem:[#allocation11 + $0xc38] sm:$0xff]  ;;  %v10820_v59 = vcombine.high %v4465_v26, %v4469_v6  ;;  %v4517_v5 = vld [vmem:[#allocation11 + $0xdb0] sm:$0xff] }
 0x5a8   :  { %v10822_v48 = vcombine.high %v4466_v19, %v4470_v42  ;;  %v10821_v61 = vcombine.low %v4466_v19, %v4470_v42  ;;  %v4521_v42 = vld [vmem:[#allocation11 + $0xdd0] sm:$0xff] }
 0x5a9   :  { %7622 = vmatpush1.bf16.msra.mxu0 %v10763_v18  ;;  %v4473_v18 = vld [vmem:[#allocation11 + $0xc50] sm:$0xff] }
 0x5aa   :  { %7786 = vmatpush1.bf16.msra.mxu1 %v10765_v55  ;;  %7623 = vmatprep.subr.bf16.mxu0 %v10772_v50  ;;  %v4477_v55 = vld [vmem:[#allocation11 + $0xc70] sm:$0xff]  ;;  %v10819_v50 = vcombine.low %v4465_v26, %v4469_v6  ;;  %v10868_v26 = vcombine.high %v4513_v52, %v4517_v5 }
 0x5ab   :  { %7787 = vmatprep.subr.bf16.mxu1 %v10774_v63  ;;  %v4474_v63 = vld [vmem:[#allocation11 + $0xc58] sm:$0xff]  ;;  %v10828_v44 = vcombine.high %v4473_v18, %v4477_v55  ;;  %v10827_v7 = vcombine.low %v4473_v18, %v4477_v55 }
 0x5ac   :  { %v10829_v28 = vcombine.low %v4474_v63, %v4478_v35  ;;  %v4526_v18 = vld [vmem:[#allocation11 + $0xdf8] sm:$0xff] }
 0x5ad   :  { %7624 = vmatpush1.bf16.msra.mxu0 %v10771_v43  ;;  %v4485_v43 = vld [vmem:[#allocation11 + $0xcb0] sm:$0xff] }
 0x5ae   :  { %7788 = vmatpush1.bf16.msra.mxu1 %v10773_v1  ;;  %7625 = vmatprep.subr.bf16.mxu0 %v10780_v10  ;;  %v10830_v1 = vcombine.high %v4474_v63, %v4478_v35  ;;  %v4482_v10 = vld [vmem:[#allocation11 + $0xc98] sm:$0xff]  ;;  %v10836_v33 = vcombine.high %v4481_v62, %v4485_v43  ;;  %v10835_v14 = vcombine.low %v4481_v62, %v4485_v43 }
 0x5af   :  { %7789 = vmatprep.subr.bf16.mxu1 %v10782_v2  ;;  %v4486_v2 = vld [vmem:[#allocation11 + $0xcb8] sm:$0xff]  ;;  %v10867_v63 = vcombine.low %v4513_v52, %v4517_v5 }
 0x5b0   :  { %v10838_v54 = vcombine.high %v4482_v10, %v4486_v2 }
 0x5b1   :  { %7626 = vmatpush1.bf16.msra.mxu0 %v10779_v9  ;;  %v4489_v9 = vld [vmem:[#allocation11 + $0xcd0] sm:$0xff] }
 0x5b2   :  { %7790 = vmatpush1.bf16.msra.mxu1 %v10781_v4  ;;  %7627 = vmatprep.subr.bf16.mxu0 %v10788_v13  ;;  %v4493_v4 = vld [vmem:[#allocation11 + $0xcf0] sm:$0xff]  ;;  %v4490_v13 = vld [vmem:[#allocation11 + $0xcd8] sm:$0xff] }
 0x5b3   :  { %7791 = vmatprep.subr.bf16.mxu1 %v10790_v11  ;;  %v4494_v11 = vld [vmem:[#allocation11 + $0xcf8] sm:$0xff]  ;;  %v10844_v3 = vcombine.high %v4489_v9, %v4493_v4 }
 0x5b4   :  { %v10846_v21 = vcombine.high %v4490_v13, %v4494_v11 }
 0x5b5   :  { %7628 = vmatpush1.bf16.msra.mxu0 %v10787_v25  ;;  %v4501_v25 = vld [vmem:[#allocation11 + $0xd30] sm:$0xff] }
 0x5b6   :  { %7792 = vmatpush1.bf16.msra.mxu1 %v10789_v17  ;;  %7629 = vmatprep.subr.bf16.mxu0 %v10796_v58  ;;  %v4498_v17 = vld [vmem:[#allocation11 + $0xd18] sm:$0xff]  ;;  %v10852_v8 = vcombine.high %v4497_v22, %v4501_v25 }
 0x5b7   :  { %7793 = vmatprep.subr.bf16.mxu1 %v10798_v23  ;;  %v4502_v58 = vld [vmem:[#allocation11 + $0xd38] sm:$0xff]  ;;  %v10845_v23 = vcombine.low %v4490_v13, %v4494_v11  ;;  %v4537_v13 = vld [vmem:[#allocation11 + $0xe50] sm:$0xff] }
 0x5b8   :  { %v10854_v24 = vcombine.high %v4498_v17, %v4502_v58  ;;  %v4541_v11 = vld [vmem:[#allocation11 + $0xe70] sm:$0xff] }
 0x5b9   :  { %7630 = vmatpush1.bf16.msra.mxu0 %v10795_v32  ;;  %v4506_v32 = vld [vmem:[#allocation11 + $0xd58] sm:$0xff] }
 0x5ba   :  { %7794 = vmatpush1.bf16.msra.mxu1 %v10797_v27  ;;  %7631 = vmatprep.subr.bf16.mxu0 %v10804_v31  ;;  %v4510_v27 = vld [vmem:[#allocation11 + $0xd78] sm:$0xff]  ;;  %v10851_v31 = vcombine.low %v4497_v22, %v4501_v25  ;;  %v10892_v22 = vcombine.high %v4537_v13, %v4541_v11 }
 0x5bb   :  { %7795 = vmatprep.subr.bf16.mxu1 %v10806_v36  ;;  %v10853_v36 = vcombine.low %v4498_v17, %v4502_v58  ;;  %v10862_v38 = vcombine.high %v4506_v32, %v4510_v27  ;;  %v4545_v17 = vld [vmem:[#allocation11 + $0xe90] sm:$0xff] }
 0x5bc   :  { %v4549_v58 = vld [vmem:[#allocation11 + $0xeb0] sm:$0xff] }
 0x5bd   :  { %7632 = vmatpush1.bf16.msra.mxu0 %v10803_v57  ;;  %v4514_v57 = vld [vmem:[#allocation11 + $0xd98] sm:$0xff] }
 0x5be   :  { %7796 = vmatpush1.bf16.msra.mxu1 %v10805_v40  ;;  %7633 = vmatprep.subr.bf16.mxu0 %v10812_v0  ;;  %v4518_v40 = vld [vmem:[#allocation11 + $0xdb8] sm:$0xff]  ;;  %v10859_v0 = vcombine.low %v4505_v30, %v4509_v29  ;;  %v10900_v30 = vcombine.high %v4545_v17, %v4549_v58 }
 0x5bf   :  { %7797 = vmatprep.subr.bf16.mxu1 %v10814_v60  ;;  %v10861_v60 = vcombine.low %v4506_v32, %v4510_v27  ;;  %v10870_v19 = vcombine.high %v4514_v57, %v4518_v40  ;;  %v4553_v32 = vld [vmem:[#allocation11 + $0xed0] sm:$0xff] }
 0x5c0   :  { %v4557_v27 = vld [vmem:[#allocation11 + $0xef0] sm:$0xff] }
 0x5c1   :  { %7634 = vmatpush1.bf16.msra.mxu0 %v10811_v49  ;;  %v4525_v49 = vld [vmem:[#allocation11 + $0xdf0] sm:$0xff]  ;;  %v10908_v52 = vcombine.high %v4553_v32, %v4557_v27 }
 0x5c2   :  { %7798 = vmatpush1.bf16.msra.mxu1 %v10813_v41  ;;  %7644 = vmatprep.subr.bf16.mxu0 %v10820_v59  ;;  %v10876_v62 = vcombine.high %v4521_v42, %v4525_v49 }
 0x5c3   :  { %7808 = vmatprep.subr.bf16.mxu1 %v10822_v48  ;;  %v4522_v48 = vld [vmem:[#allocation11 + $0xdd8] sm:$0xff] }
 0x5c4   :  { %7636 = vmatmul.mubr.bf16.vlgmr.msra.gmra.mrb[36].mxu0 %v12385_v34 }
 0x5c5   :  { %7800 = vmatmul.mubr.bf16.vlgmr.msra.gmra.mrb[36].mxu1 %v12385_v34  ;;  %7645 = vmatpush1.bf16.msra.mxu0 %v10819_v50  ;;  %v10837_v34 = vcombine.low %v4482_v10, %v4486_v2  ;;  %v4529_v10 = vld [vmem:[#allocation11 + $0xe10] sm:$0xff] }
 0x5c6   :  { %7676 = vmatprep.mubr.bf16.mxu0 %v12388_v39  ;;  %7809 = vmatpush1.bf16.msra.mxu1 %v10821_v61  ;;  %v4533_v2 = vld [vmem:[#allocation11 + $0xe30] sm:$0xff] }
 0x5c7   :  { %7840 = vmatprep.mubr.bf16.mxu1 %v12388_v39  ;;  %7646 = vmatprep.subr.bf16.mxu0 %v10828_v44  ;;  %v10843_v39 = vcombine.low %v4489_v9, %v4493_v4  ;;  %v10869_v44 = vcombine.low %v4514_v57, %v4518_v40  ;;  %v10884_v9 = vcombine.high %v4529_v10, %v4533_v2  ;;  %v4561_v57 = vld [vmem:[#allocation11 + $0xf10] sm:$0xff] }
 0x5c8   :  { %7810 = vmatprep.subr.bf16.mxu1 %v10830_v1  ;;  %v10878_v1 = vcombine.high %v4522_v48, %v4526_v18  ;;  %v4565_v40 = vld [vmem:[#allocation11 + $0xf30] sm:$0xff] }
 0x5c9   :  { %7647 = vmatpush1.bf16.msra.mxu0 %v10827_v7  ;;  %v4530_v7 = vld [vmem:[#allocation11 + $0xe18] sm:$0xff] }
 0x5ca   :  { %7811 = vmatpush1.bf16.msra.mxu1 %v10829_v28  ;;  %7648 = vmatprep.subr.bf16.mxu0 %v10836_v33  ;;  %v4534_v28 = vld [vmem:[#allocation11 + $0xe38] sm:$0xff]  ;;  %v10875_v33 = vcombine.low %v4521_v42, %v4525_v49  ;;  %v10916_v42 = vcombine.high %v4561_v57, %v4565_v40 }
 0x5cb   :  { %7812 = vmatprep.subr.bf16.mxu1 %v10838_v54  ;;  %v10877_v54 = vcombine.low %v4522_v48, %v4526_v18  ;;  %v10886_v4 = vcombine.high %v4530_v7, %v4534_v28  ;;  %v4569_v48 = vld [vmem:[#allocation11 + $0xf50] sm:$0xff] }
 0x5cc   :  { %v4573_v18 = vld [vmem:[#allocation11 + $0xf70] sm:$0xff] }
 0x5cd   :  { %7649 = vmatpush1.bf16.msra.mxu0 %v10835_v14  ;;  %v4538_v14 = vld [vmem:[#allocation11 + $0xe58] sm:$0xff] }
 0x5ce   :  { %7813 = vmatpush1.bf16.msra.mxu1 %v10837_v34  ;;  %7650 = vmatprep.subr.bf16.mxu0 %v10844_v3  ;;  %v4542_v34 = vld [vmem:[#allocation11 + $0xe78] sm:$0xff]  ;;  %v10883_v3 = vcombine.low %v4529_v10, %v4533_v2 }
 0x5cf   :  { %7814 = vmatprep.subr.bf16.mxu1 %v10846_v21  ;;  %v10885_v21 = vcombine.low %v4530_v7, %v4534_v28  ;;  %v10894_v25 = vcombine.high %v4538_v14, %v4542_v34  ;;  %v4578_v10 = vld [vmem:[#allocation11 + $0xf98] sm:$0xff]  ;;  %v10923_v7 = vcombine.low %v4569_v48, %v4573_v18 }
 0x5d0   :  { %v4582_v2 = vld [vmem:[#allocation11 + $0xfb8] sm:$0xff] }
 0x5d1   :  { %7651 = vmatpush1.bf16.msra.mxu0 %v10843_v39  ;;  %v4546_v39 = vld [vmem:[#allocation11 + $0xe98] sm:$0xff] }
 0x5d2   :  { %7815 = vmatpush1.bf16.msra.mxu1 %v10845_v23  ;;  %7652 = vmatprep.subr.bf16.mxu0 %v10852_v8  ;;  %v4550_v23 = vld [vmem:[#allocation11 + $0xeb8] sm:$0xff]  ;;  %v10891_v8 = vcombine.low %v4537_v13, %v4541_v11 }
 0x5d3   :  { %7816 = vmatprep.subr.bf16.mxu1 %v10854_v24  ;;  %v10893_v24 = vcombine.low %v4538_v14, %v4542_v34  ;;  %v10902_v29 = vcombine.high %v4546_v39, %v4550_v23  ;;  %v4586_v13 = vld [vmem:[#allocation11 + $0xfd8] sm:$0xff]  ;;  %v10933_v34 = vcombine.low %v4578_v10, %v4582_v2 }
 0x5d4   :  { %v4590_v11 = vld [vmem:[#allocation11 + $0xff8] sm:$0xff] }
 0x5d5   :  { %7653 = vmatpush1.bf16.msra.mxu0 %v10851_v31  ;;  %v4554_v31 = vld [vmem:[#allocation11 + $0xed8] sm:$0xff] }
 0x5d6   :  { %7817 = vmatpush1.bf16.msra.mxu1 %v10853_v36  ;;  %7654 = vmatprep.subr.bf16.mxu0 %v10860_v37  ;;  %v4558_v36 = vld [vmem:[#allocation11 + $0xef8] sm:$0xff]  ;;  %v10899_v37 = vcombine.low %v4545_v17, %v4549_v58 }
 0x5d7   :  { %v12412_v6 = vpop.f32.mrb[32].mxu0  ;;  %7818 = vmatprep.subr.bf16.mxu1 %v10862_v38  ;;  %v10901_v38 = vcombine.low %v4546_v39, %v4550_v23  ;;  %v10910_v5 = vcombine.high %v4554_v31, %v4558_v36  ;;  %v11302_v17 = vld [vmem:[#allocation14] ss:$16 sps:$4 sm:$0xff]   ;;  %v11304_v58 = vld [vmem:[#allocation14 + $0x4] ss:$16 sps:$4 sm:$0xff]  }
 0x5d8   :  { %v12414_v41 = vpop.f32.mrb[32].mxu1  ;;  %v12416_v59 = vpop.f32.mrb[33].mxu0  ;;  %v11305_v39 = vld [vmem:[#allocation14 + $0x8] ss:$16 sps:$4 sm:$0xff]   ;;  %v11307_v23 = vld [vmem:[#allocation14 + $0xc] ss:$16 sps:$4 sm:$0xff]  }
 0x5d9   :  { %v12418_v55 = vpop.f32.mrb[33].mxu1  ;;  %v7354_v50 = vpop.f32.mrb[34].mxu0  ;;  %7655 = vmatpush1.bf16.msra.mxu0 %v10859_v0  ;;  %v4562_v0 = vld [vmem:[#allocation11 + $0xf18] sm:$0xff] }
 0x5da   :  { %v7518_v35 = vpop.f32.mrb[34].mxu1  ;;  %7819 = vmatpush1.bf16.msra.mxu1 %v10861_v60  ;;  %v7355_v61 = vpop.f32.mrb[35].mxu0  ;;  %7656 = vmatprep.subr.bf16.mxu0 %v10868_v26  ;;  %v4566_v60 = vld [vmem:[#allocation11 + $0xf38] sm:$0xff]  ;;  %v10907_v26 = vcombine.low %v4553_v32, %v4557_v27  ;;  %v11319_v27 = vld [vmem:[#allocation14 + $0x4c] ss:$16 sps:$4 sm:$0xff]  }
 0x5db   :  { %v7519_v43 = vpop.f32.mrb[35].mxu1  ;;  %7820 = vmatprep.subr.bf16.mxu1 %v10870_v19  ;;  %v10909_v19 = vcombine.low %v4554_v31, %v4558_v36  ;;  %v10918_v49 = vcombine.high %v4562_v0, %v4566_v60  ;;  %v4570_v50 = vld [vmem:[#allocation11 + $0xf58] sm:$0xff]  ;;  %v10915_v35 = vcombine.low %v4561_v57, %v4565_v40  ;;  %v10917_v61 = vcombine.low %v4562_v0, %v4566_v60  ;;  %v11331_v57 = vld [vmem:[#allocation14 + $0x8c] ss:$16 sps:$4 sm:$0xff]   ;;  %v11329_v0 = vld [vmem:[#allocation14 + $0x88] ss:$16 sps:$4 sm:$0xff]  }
 0x5dc   :  { %v4577_v43 = vld [vmem:[#allocation11 + $0xf90] sm:$0xff]  ;;  %v11316_v32 = vld [vmem:[#allocation14 + $0x44] ss:$16 sps:$4 sm:$0xff]   ;;  %v11314_v31 = vld [vmem:[#allocation14 + $0x40] ss:$16 sps:$4 sm:$0xff]  }
 0x5dd   :  { %7657 = vmatpush1.bf16.msra.mxu0 %v10867_v63  ;;  %v4574_v63 = vld [vmem:[#allocation11 + $0xf78] sm:$0xff] }
 0x5de   :  { %7821 = vmatpush1.bf16.msra.mxu1 %v10869_v44  ;;  %7658 = vmatprep.subr.bf16.mxu0 %v10876_v62  ;;  %v10924_v44 = vcombine.high %v4569_v48, %v4573_v18  ;;  %v10926_v62 = vcombine.high %v4570_v50, %v4574_v63  ;;  %v10925_v28 = vcombine.low %v4570_v50, %v4574_v63  ;;  %v11322_v36 = vld [vmem:[#allocation14 + $0x64] ss:$16 sps:$4 sm:$0xff]   ;;  %v11326_v40 = vld [vmem:[#allocation14 + $0x80] ss:$16 sps:$4 sm:$0xff]   ;;  %v11343_v48 = vld [vmem:[#allocation14 + $0xcc] ss:$16 sps:$4 sm:$0xff]  }
 0x5df   :  { %7822 = vmatprep.subr.bf16.mxu1 %v10878_v1  ;;  %v4581_v1 = vld [vmem:[#allocation11 + $0xfb0] sm:$0xff]  ;;  %v11334_v60 = vld [vmem:[#allocation14 + $0xa4] ss:$16 sps:$4 sm:$0xff]   ;;  %v11338_v18 = vld [vmem:[#allocation14 + $0xc0] ss:$16 sps:$4 sm:$0xff]  }
 0x5e0   :  { %v10931_v14 = vcombine.low %v4577_v43, %v4581_v1  ;;  %v11341_v50 = vld [vmem:[#allocation14 + $0xc8] ss:$16 sps:$4 sm:$0xff]   ;;  %v11346_v63 = vld [vmem:[#allocation14 + $0xe4] ss:$16 sps:$4 sm:$0xff]  }
 0x5e1   :  { %7659 = vmatpush1.bf16.msra.mxu0 %v10875_v33  ;;  %v10932_v33 = vcombine.high %v4577_v43, %v4581_v1  ;;  %v11355_v43 = vld [vmem:[#allocation14 + $0x10c] ss:$16 sps:$4 sm:$0xff]   ;;  %v11350_v1 = vld [vmem:[#allocation14 + $0x100] ss:$16 sps:$4 sm:$0xff]  }
 0x5e2   :  { %7823 = vmatpush1.bf16.msra.mxu1 %v10877_v54  ;;  %7660 = vmatprep.subr.bf16.mxu0 %v10884_v9  ;;  %v10934_v54 = vcombine.high %v4578_v10, %v4582_v2  ;;  %v4585_v9 = vld [vmem:[#allocation11 + $0xfd0] sm:$0xff]  ;;  %v4591_v2 = vld [vmem:[#allocation13] sm:$0xff] }
 0x5e3   :  { %7824 = vmatprep.subr.bf16.mxu1 %v10886_v4  ;;  %v4589_v4 = vld [vmem:[#allocation11 + $0xff0] sm:$0xff] }
 0x5e4   :  { %v11353_v10 = vld [vmem:[#allocation14 + $0x108] ss:$16 sps:$4 sm:$0xff]  }
 0x5e5   :  { %7661 = vmatpush1.bf16.msra.mxu0 %v10883_v3  ;;  %v10940_v3 = vcombine.high %v4585_v9, %v4589_v4 }
 0x5e6   :  { %7825 = vmatpush1.bf16.msra.mxu1 %v10885_v21  ;;  %7662 = vmatprep.subr.bf16.mxu0 %v10892_v22  ;;  %v10942_v21 = vcombine.high %v4586_v13, %v4590_v11  ;;  %v10939_v22 = vcombine.low %v4585_v9, %v4589_v4  ;;  %v4604_v9 = vrot.slane %v4591_v2, %v12260_v53 }
 0x5e7   :  { %7826 = vmatprep.subr.bf16.mxu1 %v10894_v25  ;;  %v10941_v25 = vcombine.low %v4586_v13, %v4590_v11 }
 0x5e9   :  { %7663 = vmatpush1.bf16.msra.mxu0 %v10891_v8  ;;  %v11310_v8 = vld [vmem:[#allocation14 + $0x24] ss:$16 sps:$4 sm:$0xff]  }
 0x5ea   :  { %7827 = vmatpush1.bf16.msra.mxu1 %v10893_v24  ;;  %7664 = vmatprep.subr.bf16.mxu0 %v10900_v30  ;;  %v11313_v24 = vld [vmem:[#allocation14 + $0x2c] ss:$16 sps:$4 sm:$0xff]   ;;  %v11308_v30 = vld [vmem:[#allocation14 + $0x20] ss:$16 sps:$4 sm:$0xff]  }
 0x5eb   :  { %7828 = vmatprep.subr.bf16.mxu1 %v10902_v29  ;;  %v11311_v29 = vld [vmem:[#allocation14 + $0x28] ss:$16 sps:$4 sm:$0xff]  }
 0x5ed   :  { %7665 = vmatpush1.bf16.msra.mxu0 %v10899_v37  ;;  %v11325_v37 = vld [vmem:[#allocation14 + $0x6c] ss:$16 sps:$4 sm:$0xff]  }
 0x5ee   :  { %7829 = vmatpush1.bf16.msra.mxu1 %v10901_v38  ;;  %7666 = vmatprep.subr.bf16.mxu0 %v10908_v52  ;;  %v11320_v38 = vld [vmem:[#allocation14 + $0x60] ss:$16 sps:$4 sm:$0xff]   ;;  %v11323_v52 = vld [vmem:[#allocation14 + $0x68] ss:$16 sps:$4 sm:$0xff]  }
 0x5ef   :  { %7830 = vmatprep.subr.bf16.mxu1 %v10910_v5  ;;  %v11328_v5 = vld [vmem:[#allocation14 + $0x84] ss:$16 sps:$4 sm:$0xff]  }
 0x5f1   :  { %7667 = vmatpush1.bf16.msra.mxu0 %v10907_v26  ;;  %v11337_v26 = vld [vmem:[#allocation14 + $0xac] ss:$16 sps:$4 sm:$0xff]  }
 0x5f2   :  { %7831 = vmatpush1.bf16.msra.mxu1 %v10909_v19  ;;  %7668 = vmatprep.subr.bf16.mxu0 %v10916_v42  ;;  %v11332_v19 = vld [vmem:[#allocation14 + $0xa0] ss:$16 sps:$4 sm:$0xff]   ;;  %v11335_v42 = vld [vmem:[#allocation14 + $0xa8] ss:$16 sps:$4 sm:$0xff]  }
 0x5f3   :  { %7832 = vmatprep.subr.bf16.mxu1 %v10918_v49  ;;  %v11340_v49 = vld [vmem:[#allocation14 + $0xc4] ss:$16 sps:$4 sm:$0xff]  }
 0x5f5   :  { %7669 = vmatpush1.bf16.msra.mxu0 %v10915_v35  ;;  %v11349_v35 = vld [vmem:[#allocation14 + $0xec] ss:$16 sps:$4 sm:$0xff]  }
 0x5f6   :  { %7833 = vmatpush1.bf16.msra.mxu1 %v10917_v61  ;;  %7670 = vmatprep.subr.bf16.mxu0 %v10924_v44  ;;  %v11344_v61 = vld [vmem:[#allocation14 + $0xe0] ss:$16 sps:$4 sm:$0xff]   ;;  %v11347_v44 = vld [vmem:[#allocation14 + $0xe8] ss:$16 sps:$4 sm:$0xff]  }
 0x5f7   :  { %7834 = vmatprep.subr.bf16.mxu1 %v10926_v62  ;;  %v11352_v62 = vld [vmem:[#allocation14 + $0x104] ss:$16 sps:$4 sm:$0xff]  }
 0x5f9   :  { %7671 = vmatpush1.bf16.msra.mxu0 %v10923_v7  ;;  %v4596_v7 = vrot.slane %v4591_v2, %v12254_v46 }
 0x5fa   :  { %7835 = vmatpush1.bf16.msra.mxu1 %v10925_v28  ;;  %7672 = vmatprep.subr.bf16.mxu0 %v10932_v33  ;;  %v4600_v28 = vrot.slane %v4591_v2, %v12257_v47 }
 0x5fb   :  { %7836 = vmatprep.subr.bf16.mxu1 %v10934_v54  ;;  %v12425_v33 = vadd.f32 %v12412_v6, %v4596_v7 }
 0x5fc   :  { %v12428_v54 = vadd.f32 %v12416_v59, %v4600_v28  ;;  %v4608_v59 = vrot.slane %v4591_v2, %v12266_v51 }
 0x5fd   :  { %7673 = vmatpush1.bf16.msra.mxu0 %v10931_v14  ;;  %v7867_v4 = vmul.f32 %v12425_v33, %v12425_v33  ;;  %v7849_v11 = vsel %vm3996_vm0, %v12425_v33, 0.0  ;;  %v12438_v14 = vadd.f32 %v12414_v41, %v4604_v9  ;;  %v11356_v9 = vld [vmem:[#allocation14 + $0x120] ss:$16 sps:$4 sm:$0xff]  }
 0x5fe   :  { %7837 = vmatpush1.bf16.msra.mxu1 %v10933_v34  ;;  %7674 = vmatprep.subr.bf16.mxu0 %v10940_v3  ;;  %v7868_v13 = vmul.f32 %v12428_v54, %v12428_v54  ;;  %v7850_v6 = vsel %vm3996_vm0, %v12428_v54, 0.0 }
 0x5ff   :  { %7838 = vmatprep.subr.bf16.mxu1 %v10942_v21  ;;  %v7875_v34 = vsel %vm3996_vm0, %v7867_v4, 0.0  ;;  %v7851_v21 = vadd.f32 %v7850_v6, %v7849_v11  ;;  %v7852_v41 = vsel %vm3996_vm0, %v12438_v14, 0.0  ;;  %v11358_v4 = vld [vmem:[#allocation14 + $0x124] ss:$16 sps:$4 sm:$0xff]   ;;  %v11361_v11 = vld [vmem:[#allocation14 + $0x12c] ss:$16 sps:$4 sm:$0xff]  }
 0x600   :  { %v7876_v3 = vsel %vm3996_vm0, %v7868_v13, 0.0  ;;  %v11359_v13 = vld [vmem:[#allocation14 + $0x128] ss:$16 sps:$4 sm:$0xff]   ;;  %v11364_v6 = vld [vmem:[#allocation14 + $0x144] ss:$16 sps:$4 sm:$0xff]  }
 0x601   :  { %7675 = vmatpush1.bf16.msra.mxu0 %v10939_v22  ;;  %v7869_v22 = vmul.f32 %v12438_v14, %v12438_v14 }
 0x602   :  { %7839 = vmatpush1.bf16.msra.mxu1 %v10941_v25  ;;  %9488 = vmatprep.subr.bf16.mxu0 %v11304_v58  ;;  %v12448_v25 = vadd.f32 %v12418_v55, %v4608_v59  ;;  %v4612_v58 = vrot.slane %v4591_v2, %v3966_v56  ;;  %v11367_v59 = vld [vmem:[#allocation14 + $0x14c] ss:$16 sps:$4 sm:$0xff]  }
 0x603   :  { %9652 = vmatprep.subr.bf16.mxu1 %v11307_v23  ;;  %v4620_v23 = vrot.slane %v4591_v2, %v3974_v20  ;;  %v4624_v20 = vrot.slane %v4591_v2, %v3978_v12 }
 0x604   :  { %7677 = vmatmul.mubr.bf16.vlgmr.msra.gmra.mrb[36].mxu0 %v12394_v16  ;;  %v7870_v55 = vmul.f32 %v12448_v25, %v12448_v25 }
 0x605   :  { %7841 = vmatmul.mubr.bf16.vlgmr.msra.gmra.mrb[36].mxu1 %v12394_v16  ;;  %9489 = vmatpush1.bf16.msra.mxu0 %v11302_v17  ;;  %v11317_v16 = vld [vmem:[#allocation14 + $0x48] ss:$16 sps:$4 sm:$0xff]   ;;  %v7877_v17 = vadd.f32 %v7876_v3, %v7875_v34  ;;  %v11362_v34 = vld [vmem:[#allocation14 + $0x140] ss:$16 sps:$4 sm:$0xff]  }
 0x606   :  { %9653 = vmatpush1.bf16.msra.mxu1 %v11305_v39  ;;  %9490 = vmatprep.subr.bf16.mxu0 %v11310_v8  ;;  %v7853_v39 = vadd.f32 %v7852_v41, %v7851_v21  ;;  %v4616_v8 = vrot.slane %v4591_v2, %v3970_v15  ;;  %v11365_v3 = vld [vmem:[#allocation14 + $0x148] ss:$16 sps:$4 sm:$0xff]   ;;  %v11370_v21 = vld [vmem:[#allocation14 + $0x164] ss:$16 sps:$4 sm:$0xff]  }
 0x607   :  { %9654 = vmatprep.subr.bf16.mxu1 %v11313_v24  ;;  %v7878_v24 = vsel %vm3996_vm0, %v7869_v22, 0.0  ;;  %v11373_v22 = vld [vmem:[#allocation14 + $0x16c] ss:$16 sps:$4 sm:$0xff]   ;;  %v11371_v41 = vld [vmem:[#allocation14 + $0x168] ss:$16 sps:$4 sm:$0xff]  }
 0x609   :  { %9491 = vmatpush1.bf16.msra.mxu0 %v11308_v30  ;;  %v7879_v30 = vadd.f32 %v7878_v24, %v7877_v17  ;;  %v11368_v17 = vld [vmem:[#allocation14 + $0x160] ss:$16 sps:$4 sm:$0xff]   ;;  %v11382_v24 = vld [vmem:[#allocation14 + $0x1a4] ss:$16 sps:$4 sm:$0xff]  }
 0x60a   :  { %9655 = vmatpush1.bf16.msra.mxu1 %v11311_v29  ;;  %9492 = vmatprep.subr.bf16.mxu0 %v11316_v32  ;;  %v7854_v32 = vsel %vm3996_vm0, %v12448_v25, 0.0 }
 0x60b   :  { %9656 = vmatprep.subr.bf16.mxu1 %v11319_v27 }
 0x60d   :  { %9493 = vmatpush1.bf16.msra.mxu0 %v11314_v31 }
 0x60e   :  { %9657 = vmatpush1.bf16.msra.mxu1 %v11317_v16  ;;  %9494 = vmatprep.subr.bf16.mxu0 %v11322_v36  ;;  %v7855_v16 = vadd.f32 %v7854_v32, %v7853_v39  ;;  %v11379_v39 = vld [vmem:[#allocation14 + $0x18c] ss:$16 sps:$4 sm:$0xff]   ;;  %v11388_v32 = vld [vmem:[#allocation14 + $0x1c4] ss:$16 sps:$4 sm:$0xff]  }
 0x60f   :  { %9658 = vmatprep.subr.bf16.mxu1 %v11325_v37 }
 0x611   :  { %9495 = vmatpush1.bf16.msra.mxu0 %v11320_v38 }
 0x612   :  { %9659 = vmatpush1.bf16.msra.mxu1 %v11323_v52  ;;  %9496 = vmatprep.subr.bf16.mxu0 %v11328_v5  ;;  %v7880_v52 = vsel %vm3996_vm0, %v7870_v55, 0.0  ;;  %v11385_v55 = vld [vmem:[#allocation14 + $0x1ac] ss:$16 sps:$4 sm:$0xff]  }
 0x613   :  { %9660 = vmatprep.subr.bf16.mxu1 %v11331_v57 }
 0x615   :  { %9497 = vmatpush1.bf16.msra.mxu0 %v11326_v40 }
 0x616   :  { %9661 = vmatpush1.bf16.msra.mxu1 %v11329_v0  ;;  %9498 = vmatprep.subr.bf16.mxu0 %v11334_v60  ;;  %v7881_v60 = vadd.f32 %v7880_v52, %v7879_v30  ;;  %v11380_v30 = vld [vmem:[#allocation14 + $0x1a0] ss:$16 sps:$4 sm:$0xff]   ;;  %v11395_v52 = vld [vmem:[#allocation14 + $0x1e8] ss:$16 sps:$4 sm:$0xff]  }
 0x617   :  { %9662 = vmatprep.subr.bf16.mxu1 %v11337_v26 }
 0x619   :  { %9499 = vmatpush1.bf16.msra.mxu0 %v11332_v19 }
 0x61a   :  { %9663 = vmatpush1.bf16.msra.mxu1 %v11335_v42  ;;  %9500 = vmatprep.subr.bf16.mxu0 %v11340_v49 }
 0x61b   :  { %9664 = vmatprep.subr.bf16.mxu1 %v11343_v48 }
 0x61d   :  { %9501 = vmatpush1.bf16.msra.mxu0 %v11338_v18 }
 0x61e   :  { %9665 = vmatpush1.bf16.msra.mxu1 %v11341_v50  ;;  %9502 = vmatprep.subr.bf16.mxu0 %v11346_v63 }
 0x61f   :  { %9666 = vmatprep.subr.bf16.mxu1 %v11349_v35 }
 0x621   :  { %9503 = vmatpush1.bf16.msra.mxu0 %v11344_v61 }
 0x622   :  { %9667 = vmatpush1.bf16.msra.mxu1 %v11347_v44  ;;  %9504 = vmatprep.subr.bf16.mxu0 %v11352_v62 }
 0x623   :  { %9668 = vmatprep.subr.bf16.mxu1 %v11355_v43 }
 0x625   :  { %9505 = vmatpush1.bf16.msra.mxu0 %v11350_v1 }
 0x626   :  { %9669 = vmatpush1.bf16.msra.mxu1 %v11353_v10  ;;  %9506 = vmatprep.subr.bf16.mxu0 %v11358_v4  ;;  %v11401_v4 = vld [vmem:[#allocation14 + $0x208] ss:$16 sps:$4 sm:$0xff]  }
 0x627   :  { %9670 = vmatprep.subr.bf16.mxu1 %v11361_v11  ;;  %v11409_v11 = vld [vmem:[#allocation14 + $0x22c] ss:$16 sps:$4 sm:$0xff]  }
 0x629   :  { %9507 = vmatpush1.bf16.msra.mxu0 %v11356_v9 }
 0x62a   :  { %9671 = vmatpush1.bf16.msra.mxu1 %v11359_v13  ;;  %9508 = vmatprep.subr.bf16.mxu0 %v11364_v6  ;;  %v11406_v13 = vld [vmem:[#allocation14 + $0x224] ss:$16 sps:$4 sm:$0xff]  }
 0x62b   :  { %9672 = vmatprep.subr.bf16.mxu1 %v11367_v59  ;;  %v11404_v59 = vld [vmem:[#allocation14 + $0x220] ss:$16 sps:$4 sm:$0xff]  }
 0x62d   :  { %9509 = vmatpush1.bf16.msra.mxu0 %v11362_v34  ;;  %v11407_v34 = vld [vmem:[#allocation14 + $0x228] ss:$16 sps:$4 sm:$0xff]  }
 0x62e   :  { %9673 = vmatpush1.bf16.msra.mxu1 %v11365_v3  ;;  %9510 = vmatprep.subr.bf16.mxu0 %v11370_v21  ;;  %v11412_v3 = vld [vmem:[#allocation14 + $0x244] ss:$16 sps:$4 sm:$0xff]   ;;  %v11415_v21 = vld [vmem:[#allocation14 + $0x24c] ss:$16 sps:$4 sm:$0xff]  }
 0x62f   :  { %9674 = vmatprep.subr.bf16.mxu1 %v11373_v22  ;;  %v11410_v22 = vld [vmem:[#allocation14 + $0x240] ss:$16 sps:$4 sm:$0xff]  }
 0x631   :  { %9511 = vmatpush1.bf16.msra.mxu0 %v11368_v17  ;;  %v11413_v17 = vld [vmem:[#allocation14 + $0x248] ss:$16 sps:$4 sm:$0xff]  }
 0x632   :  { %9675 = vmatpush1.bf16.msra.mxu1 %v11371_v41  ;;  %v11418_v41 = vld [vmem:[#allocation14 + $0x264] ss:$16 sps:$4 sm:$0xff]  }
 0x633   :  { %9676 = vmatprep.subr.bf16.mxu1 %v11379_v39  ;;  %v11416_v39 = vld [vmem:[#allocation14 + $0x260] ss:$16 sps:$4 sm:$0xff]  }
 0x6d7   :  { %v7678_v29 = vpop.f32.mrb[36].mxu0 }
 0x6d8   :  { %v12463_v27 = vadd.f32 %v7678_v29, %v4612_v58  ;;  %v7842_v56 = vpop.f32.mrb[36].mxu1  ;;  %v7680_v31 = vpop.f32.mrb[37].mxu0  ;;  %v11376_v58 = vld [vmem:[#allocation14 + $0x184] ss:$16 sps:$4 sm:$0xff]   ;;  %v11383_v29 = vld [vmem:[#allocation14 + $0x1a8] ss:$16 sps:$4 sm:$0xff]  }
 0x6d9   :  { %v12467_v36 = vadd.f32 %v7842_v56, %v4620_v23  ;;  %v12469_v15 = vadd.f32 %v7680_v31, %v4616_v8  ;;  %v7844_v37 = vpop.f32.mrb[37].mxu1  ;;  %v7682_v38 = vpop.f32.mrb[38].mxu0  ;;  %v11374_v23 = vld [vmem:[#allocation14 + $0x180] ss:$16 sps:$4 sm:$0xff]   ;;  %v11377_v8 = vld [vmem:[#allocation14 + $0x188] ss:$16 sps:$4 sm:$0xff]   ;;  %9512 = vmatprep.subr.bf16.mxu0 %v11376_v58 }
 0x6da   :  { %v7856_v5 = vsel %vm3996_vm0, %v12463_v27, 0.0  ;;  %v7871_v57 = vmul.f32 %v12463_v27, %v12463_v27  ;;  %v7846_v40 = vpop.f32.mrb[38].mxu1  ;;  %v7683_v0 = vpop.f32.mrb[39].mxu0  ;;  %v12483_v48 = vadd.f32 %v7844_v37, %v4624_v20  ;;  %9513 = vmatpush1.bf16.msra.mxu0 %v11374_v23  ;;  %9677 = vmatpush1.bf16.msra.mxu1 %v11377_v8  ;;  %v11391_v56 = vld [vmem:[#allocation14 + $0x1cc] ss:$16 sps:$4 sm:$0xff]  }
 0x6db   :  { %v7872_v45 = vmul.f32 %v12469_v15, %v12469_v15  ;;  %v7847_v12 = vpop.f32.mrb[39].mxu1  ;;  %v7857_v26 = vadd.f32 %v7856_v5, %v7855_v16  ;;  %v7858_v19 = vsel %vm3996_vm0, %v12469_v15, 0.0  ;;  %v7873_v49 = vmul.f32 %v12467_v36, %v12467_v36  ;;  %9514 = vmatprep.subr.bf16.mxu0 %v11382_v24  ;;  %9678 = vmatprep.subr.bf16.mxu1 %v11385_v55  ;;  %v11386_v31 = vld [vmem:[#allocation14 + $0x1c0] ss:$16 sps:$4 sm:$0xff]   ;;  %v11389_v20 = vld [vmem:[#allocation14 + $0x1c8] ss:$16 sps:$4 sm:$0xff]  }
 0x6dc   :  { %v7882_v42 = vsel %vm3996_vm0, %v7871_v57, 0.0  ;;  %v7860_v35 = vsel %vm3996_vm0, %v12467_v36, 0.0  ;;  %v7862_v62 = vsel %vm3996_vm0, %v12483_v48, 0.0  ;;  %v7874_v43 = vmul.f32 %v12483_v48, %v12483_v48  ;;  %v11394_v16 = vld [vmem:[#allocation14 + $0x1e4] ss:$16 sps:$4 sm:$0xff]  }
 0x6dd   :  { %v7859_v18 = vadd.f32 %v7858_v19, %v7857_v26  ;;  %v7883_v50 = vadd.f32 %v7882_v42, %v7881_v60  ;;  %v7884_v63 = vsel %vm3996_vm0, %v7872_v45, 0.0  ;;  %v7886_v1 = vsel %vm3996_vm0, %v7873_v49, 0.0  ;;  %v11397_v37 = vld [vmem:[#allocation14 + $0x1ec] ss:$16 sps:$4 sm:$0xff]   ;;  %v11392_v38 = vld [vmem:[#allocation14 + $0x1e0] ss:$16 sps:$4 sm:$0xff]  }
 0x6de   :  { %v7888_v7 = vsel %vm3996_vm0, %v7874_v43, 0.0  ;;  %9515 = vmatpush1.bf16.msra.mxu0 %v11380_v30  ;;  %9679 = vmatpush1.bf16.msra.mxu1 %v11383_v29  ;;  %v11400_v5 = vld [vmem:[#allocation14 + $0x204] ss:$16 sps:$4 sm:$0xff]   ;;  %v11403_v57 = vld [vmem:[#allocation14 + $0x20c] ss:$16 sps:$4 sm:$0xff]  }
 0x6df   :  { %v7861_v61 = vadd.f32 %v7860_v35, %v7859_v18  ;;  %v7885_v44 = vadd.f32 %v7884_v63, %v7883_v50  ;;  %9516 = vmatprep.subr.bf16.mxu0 %v11388_v32  ;;  %9680 = vmatprep.subr.bf16.mxu1 %v11391_v56  ;;  %v11421_v58 = vld [vmem:[#allocation14 + $0x26c] ss:$16 sps:$4 sm:$0xff]   ;;  %v11419_v23 = vld [vmem:[#allocation14 + $0x268] ss:$16 sps:$4 sm:$0xff]   ;;  %v11424_v8 = vld [vmem:[#allocation14 + $0x284] ss:$16 sps:$4 sm:$0xff]  }
 0x6e0   :  { %v11427_v24 = vld [vmem:[#allocation14 + $0x28c] ss:$16 sps:$4 sm:$0xff]   ;;  %v11422_v55 = vld [vmem:[#allocation14 + $0x280] ss:$16 sps:$4 sm:$0xff]   ;;  %v11425_v30 = vld [vmem:[#allocation14 + $0x288] ss:$16 sps:$4 sm:$0xff]  }
 0x6e1   :  { %v7863_v10 = vadd.f32 %v7862_v62, %v7861_v61  ;;  %v7887_v2 = vadd.f32 %v7886_v1, %v7885_v44  ;;  %v11430_v29 = vld [vmem:[#allocation14 + $0x2a4] ss:$16 sps:$4 sm:$0xff]   ;;  %v11433_v32 = vld [vmem:[#allocation14 + $0x2ac] ss:$16 sps:$4 sm:$0xff]   ;;  %v11428_v56 = vld [vmem:[#allocation14 + $0x2a0] ss:$16 sps:$4 sm:$0xff]  }
 0x6e2   :  { %9517 = vmatpush1.bf16.msra.mxu0 %v11386_v31  ;;  %9681 = vmatpush1.bf16.msra.mxu1 %v11389_v20  ;;  %v11431_v31 = vld [vmem:[#allocation14 + $0x2a8] ss:$16 sps:$4 sm:$0xff]   ;;  %v11436_v20 = vld [vmem:[#allocation14 + $0x2c4] ss:$16 sps:$4 sm:$0xff]  }
 0x6e3   :  { %7864 = vadd.xlane.f32.xlu1 %v7863_v10  ;;  %v7889_v28 = vadd.f32 %v7888_v7, %v7887_v2  ;;  %9518 = vmatprep.subr.bf16.mxu0 %v11394_v16  ;;  %v11439_v16 = vld [vmem:[#allocation14 + $0x2cc] ss:$16 sps:$4 sm:$0xff]  }
 0x6e4   :  { %9682 = vmatprep.subr.bf16.mxu1 %v11397_v37  ;;  %v11434_v37 = vld [vmem:[#allocation14 + $0x2c0] ss:$16 sps:$4 sm:$0xff]  }
 0x6e6   :  { %9519 = vmatpush1.bf16.msra.mxu0 %v11392_v38  ;;  %9683 = vmatpush1.bf16.msra.mxu1 %v11395_v52  ;;  %v11437_v38 = vld [vmem:[#allocation14 + $0x2c8] ss:$16 sps:$4 sm:$0xff]   ;;  %v11442_v52 = vld [vmem:[#allocation14 + $0x2e4] ss:$16 sps:$4 sm:$0xff]  }
 0x6e7   :  { %7890 = vadd.xlane.f32.xlu1 %v7889_v28  ;;  %9529 = vmatprep.subr.bf16.mxu0 %v11400_v5  ;;  %v11445_v5 = vld [vmem:[#allocation14 + $0x2ec] ss:$16 sps:$4 sm:$0xff]  }
 0x6e8   :  { %9693 = vmatprep.subr.bf16.mxu1 %v11403_v57  ;;  %v11440_v57 = vld [vmem:[#allocation14 + $0x2e0] ss:$16 sps:$4 sm:$0xff]  }
 0x770   :  { %v7865_v40 = vpop.xlane.xlu1 %7864 }
 0x771   :  { %v7866_v0 = vmul.f32 0.0009765625, %v7865_v40  ;;  %v11443_v40 = vld [vmem:[#allocation14 + $0x2e8] ss:$16 sps:$4 sm:$0xff]  }
 0x773   :  { %v7893_v45 = vmul.f32 %v7866_v0, %v7866_v0  ;;  %v7897_v49 = vsub.f32 %v12428_v54, %v7866_v0  ;;  %v7896_v18 = vsub.f32 %v12425_v33, %v7866_v0  ;;  %v7899_v50 = vsub.f32 %v12448_v25, %v7866_v0 }
 0x774   :  { %v7891_v60 = vpop.xlane.xlu1 %7890  ;;  %v7898_v63 = vsub.f32 %v12438_v14, %v7866_v0  ;;  %v7901_v61 = vsub.f32 %v12469_v15, %v7866_v0  ;;  %v7900_v44 = vsub.f32 %v12463_v27, %v7866_v0  ;;  %v7903_v62 = vsub.f32 %v12483_v48, %v7866_v0  ;;  %v11398_v48 = vld [vmem:[#allocation14 + $0x200] ss:$16 sps:$4 sm:$0xff]  }
 0x775   :  { %v7892_v12 = vmul.f32 0.0009765625, %v7891_v60  ;;  %v7902_v43 = vsub.f32 %v12467_v36, %v7866_v0  ;;  %v11448_v0 = vld [vmem:[#allocation14 + $0x304] ss:$16 sps:$4 sm:$0xff]   ;;  %v11451_v60 = vld [vmem:[#allocation14 + $0x30c] ss:$16 sps:$4 sm:$0xff]  }
 0x777   :  { %v7894_v26 = vsub.f32 %v7892_v12, %v7893_v45  ;;  %v11446_v45 = vld [vmem:[#allocation14 + $0x300] ss:$16 sps:$4 sm:$0xff]   ;;  %v11449_v12 = vld [vmem:[#allocation14 + $0x308] ss:$16 sps:$4 sm:$0xff]  }
 0x779   :  { %v7895_v19 = vmax.f32 %v7894_v26, 0.0  ;;  %v11454_v26 = vld [vmem:[#allocation14 + $0x324] ss:$16 sps:$4 sm:$0xff]  }
 0x77b   :  { %v7904_v42 = vadd.f32 1e-05, %v7895_v19  ;;  %v11457_v19 = vld [vmem:[#allocation14 + $0x32c] ss:$16 sps:$4 sm:$0xff]  }
 0x77d   :  { %11688 = vrsqrt.f32 %v7904_v42  ;;  %v11452_v42 = vld [vmem:[#allocation14 + $0x320] ss:$16 sps:$4 sm:$0xff]  }
 0x787   :  { %v11689_v35 = vpop.eup %11688 }
 0x788   :  { %v7907_v1 = vmul.f32 %v11689_v35, %v7897_v49  ;;  %v7906_v10 = vmul.f32 %v11689_v35, %v7896_v18  ;;  %v7909_v2 = vmul.f32 %v11689_v35, %v7899_v50  ;;  %v12502_v7 = vmul.f32 %v11689_v35, %v7898_v63  ;;  %v11455_v49 = vld [vmem:[#allocation14 + $0x328] ss:$16 sps:$4 sm:$0xff]   ;;  %v11460_v18 = vld [vmem:[#allocation14 + $0x344] ss:$16 sps:$4 sm:$0xff]   ;;  %v11463_v50 = vld [vmem:[#allocation14 + $0x34c] ss:$16 sps:$4 sm:$0xff]  }
 0x789   :  { %v12504_v54 = vmul.f32 %v11689_v35, %v7901_v61  ;;  %v12506_v33 = vmul.f32 %v11689_v35, %v7900_v44  ;;  %v12508_v25 = vmul.f32 %v11689_v35, %v7903_v62  ;;  %v12510_v14 = vmul.f32 %v11689_v35, %v7902_v43  ;;  %v11458_v63 = vld [vmem:[#allocation14 + $0x340] ss:$16 sps:$4 sm:$0xff]   ;;  %v11461_v35 = vld [vmem:[#allocation14 + $0x348] ss:$16 sps:$4 sm:$0xff]   ;;  %v11466_v61 = vld [vmem:[#allocation14 + $0x364] ss:$16 sps:$4 sm:$0xff]  }
 0x78a   :  { %v7915_v15 = vmax.f32 %v7907_v1, 0.0  ;;  %v7914_v28 = vmax.f32 %v7906_v10, 0.0  ;;  %v7917_v27 = vmax.f32 %v7909_v2, 0.0  ;;  %v11469_v44 = vld [vmem:[#allocation14 + $0x36c] ss:$16 sps:$4 sm:$0xff]  }
 0x78b   :  { %v11464_v62 = vld [vmem:[#allocation14 + $0x360] ss:$16 sps:$4 sm:$0xff]   ;;  %v11467_v43 = vld [vmem:[#allocation14 + $0x368] ss:$16 sps:$4 sm:$0xff]   ;;  %v11472_v1 = vld [vmem:[#allocation14 + $0x384] ss:$16 sps:$4 sm:$0xff]  }
 0x78c   :  { %v7923_v9 = vpack.c.bf16 %v7915_v15, %v7915_v15  ;;  %v7922_v36 = vpack.c.bf16 %v7914_v28, %v7914_v28  ;;  %v7925_v6 = vpack.c.bf16 %v7917_v27, %v7917_v27  ;;  %v11475_v10 = vld [vmem:[#allocation14 + $0x38c] ss:$16 sps:$4 sm:$0xff]   ;;  %v11470_v2 = vld [vmem:[#allocation14 + $0x380] ss:$16 sps:$4 sm:$0xff]   ;;  %v11473_v15 = vld [vmem:[#allocation14 + $0x388] ss:$16 sps:$4 sm:$0xff]  }
 0x78d   :  { %v11478_v28 = vld [vmem:[#allocation14 + $0x3a4] ss:$16 sps:$4 sm:$0xff]   ;;  %v11481_v27 = vld [vmem:[#allocation14 + $0x3ac] ss:$16 sps:$4 sm:$0xff]  }
 0x78e   :  { %9520 = vmatprep.mubr.bf16.mxu0 %v7923_v9  ;;  %9684 = vmatprep.mubr.bf16.mxu1 %v7923_v9  ;;  %v11476_v9 = vld [vmem:[#allocation14 + $0x3a0] ss:$16 sps:$4 sm:$0xff]  }
 0x78f   :  { %9521 = vmatmul.mubr.bf16.vlgmr.msra.gmra.mrb[40].mxu0 %v7922_v36  ;;  %9685 = vmatmul.mubr.bf16.vlgmr.msra.gmra.mrb[40].mxu1 %v7922_v36  ;;  %v11487_v36 = vld [vmem:[#allocation14 + $0x3cc] ss:$16 sps:$4 sm:$0xff]  }
 0x790   :  { %9530 = vmatpush1.bf16.msra.mxu0 %v11398_v48  ;;  %9694 = vmatpush1.bf16.msra.mxu1 %v11401_v4  ;;  %v11479_v48 = vld [vmem:[#allocation14 + $0x3a8] ss:$16 sps:$4 sm:$0xff]   ;;  %v11484_v4 = vld [vmem:[#allocation14 + $0x3c4] ss:$16 sps:$4 sm:$0xff]  }
 0x791   :  { %9561 = vmatprep.mubr.bf16.mxu0 %v7925_v6  ;;  %9725 = vmatprep.mubr.bf16.mxu1 %v7925_v6  ;;  %v11490_v6 = vld [vmem:[#allocation14 + $0x3e4] ss:$16 sps:$4 sm:$0xff]  }
 0x792   :  { %9531 = vmatprep.subr.bf16.mxu0 %v11406_v13  ;;  %9695 = vmatprep.subr.bf16.mxu1 %v11409_v11  ;;  %v11482_v13 = vld [vmem:[#allocation14 + $0x3c0] ss:$16 sps:$4 sm:$0xff]   ;;  %v11485_v11 = vld [vmem:[#allocation14 + $0x3c8] ss:$16 sps:$4 sm:$0xff]  }
 0x794   :  { %9532 = vmatpush1.bf16.msra.mxu0 %v11404_v59  ;;  %9696 = vmatpush1.bf16.msra.mxu1 %v11407_v34  ;;  %v11493_v59 = vld [vmem:[#allocation14 + $0x3ec] ss:$16 sps:$4 sm:$0xff]   ;;  %v11488_v34 = vld [vmem:[#allocation14 + $0x3e0] ss:$16 sps:$4 sm:$0xff]  }
 0x795   :  { %9533 = vmatprep.subr.bf16.mxu0 %v11412_v3  ;;  %9697 = vmatprep.subr.bf16.mxu1 %v11415_v21  ;;  %v11491_v3 = vld [vmem:[#allocation14 + $0x3e8] ss:$16 sps:$4 sm:$0xff]   ;;  %v7916_v21 = vmax.f32 %v12502_v7, 0.0 }
 0x796   :  { %v11503_v7 = vld [vmem:[#allocation14 + $0x428] ss:$16 sps:$4 sm:$0xff]  }
 0x798   :  { %9534 = vmatpush1.bf16.msra.mxu0 %v11410_v22  ;;  %9698 = vmatpush1.bf16.msra.mxu1 %v11413_v17  ;;  %v11496_v22 = vld [vmem:[#allocation14 + $0x404] ss:$16 sps:$4 sm:$0xff]   ;;  %v11499_v17 = vld [vmem:[#allocation14 + $0x40c] ss:$16 sps:$4 sm:$0xff]  }
 0x799   :  { %9535 = vmatprep.subr.bf16.mxu0 %v11418_v41  ;;  %9699 = vmatprep.subr.bf16.mxu1 %v11421_v58  ;;  %v7919_v41 = vmax.f32 %v12504_v54, 0.0  ;;  %v11494_v58 = vld [vmem:[#allocation14 + $0x400] ss:$16 sps:$4 sm:$0xff]   ;;  %v11511_v54 = vld [vmem:[#allocation14 + $0x44c] ss:$16 sps:$4 sm:$0xff]  }
 0x79c   :  { %9536 = vmatpush1.bf16.msra.mxu0 %v11416_v39  ;;  %9700 = vmatpush1.bf16.msra.mxu1 %v11419_v23  ;;  %v7924_v39 = vpack.c.bf16 %v7916_v21, %v7916_v21  ;;  %v11497_v23 = vld [vmem:[#allocation14 + $0x408] ss:$16 sps:$4 sm:$0xff]   ;;  %v11577_v21 = vld [vmem:[#allocation14 + $0x5ac] ss:$16 sps:$4 sm:$0xff]  }
 0x79d   :  { %9537 = vmatprep.subr.bf16.mxu0 %v11424_v8  ;;  %9701 = vmatprep.subr.bf16.mxu1 %v11427_v24  ;;  %v7927_v8 = vpack.c.bf16 %v7919_v41, %v7919_v41  ;;  %v11502_v24 = vld [vmem:[#allocation14 + $0x424] ss:$16 sps:$4 sm:$0xff]  }
 0x79e   :  { %v11580_v41 = vld [vmem:[#allocation14 + $0x5c4] ss:$16 sps:$4 sm:$0xff]  }
 0x7a0   :  { %9538 = vmatpush1.bf16.msra.mxu0 %v11422_v55  ;;  %9702 = vmatpush1.bf16.msra.mxu1 %v11425_v30  ;;  %v11505_v55 = vld [vmem:[#allocation14 + $0x42c] ss:$16 sps:$4 sm:$0xff]   ;;  %v11500_v30 = vld [vmem:[#allocation14 + $0x420] ss:$16 sps:$4 sm:$0xff]  }
 0x7a1   :  { %9539 = vmatprep.subr.bf16.mxu0 %v11430_v29  ;;  %9703 = vmatprep.subr.bf16.mxu1 %v11433_v32  ;;  %v11508_v29 = vld [vmem:[#allocation14 + $0x444] ss:$16 sps:$4 sm:$0xff]   ;;  %v11506_v32 = vld [vmem:[#allocation14 + $0x440] ss:$16 sps:$4 sm:$0xff]  }
 0x7a4   :  { %9540 = vmatpush1.bf16.msra.mxu0 %v11428_v56  ;;  %9704 = vmatpush1.bf16.msra.mxu1 %v11431_v31  ;;  %v11509_v56 = vld [vmem:[#allocation14 + $0x448] ss:$16 sps:$4 sm:$0xff]   ;;  %v11514_v31 = vld [vmem:[#allocation14 + $0x464] ss:$16 sps:$4 sm:$0xff]  }
 0x7a5   :  { %9541 = vmatprep.subr.bf16.mxu0 %v11436_v20  ;;  %9705 = vmatprep.subr.bf16.mxu1 %v11439_v16  ;;  %v11517_v20 = vld [vmem:[#allocation14 + $0x46c] ss:$16 sps:$4 sm:$0xff]   ;;  %v11512_v16 = vld [vmem:[#allocation14 + $0x460] ss:$16 sps:$4 sm:$0xff]  }
 0x7a8   :  { %9542 = vmatpush1.bf16.msra.mxu0 %v11434_v37  ;;  %9706 = vmatpush1.bf16.msra.mxu1 %v11437_v38  ;;  %v11515_v37 = vld [vmem:[#allocation14 + $0x468] ss:$16 sps:$4 sm:$0xff]   ;;  %v11520_v38 = vld [vmem:[#allocation14 + $0x484] ss:$16 sps:$4 sm:$0xff]  }
 0x7a9   :  { %9543 = vmatprep.subr.bf16.mxu0 %v11442_v52  ;;  %9707 = vmatprep.subr.bf16.mxu1 %v11445_v5  ;;  %v11523_v52 = vld [vmem:[#allocation14 + $0x48c] ss:$16 sps:$4 sm:$0xff]   ;;  %v11518_v5 = vld [vmem:[#allocation14 + $0x480] ss:$16 sps:$4 sm:$0xff]  }
 0x7ac   :  { %9544 = vmatpush1.bf16.msra.mxu0 %v11440_v57  ;;  %9708 = vmatpush1.bf16.msra.mxu1 %v11443_v40  ;;  %v11521_v57 = vld [vmem:[#allocation14 + $0x488] ss:$16 sps:$4 sm:$0xff]   ;;  %v11526_v40 = vld [vmem:[#allocation14 + $0x4a4] ss:$16 sps:$4 sm:$0xff]  }
 0x7ad   :  { %9545 = vmatprep.subr.bf16.mxu0 %v11448_v0  ;;  %9709 = vmatprep.subr.bf16.mxu1 %v11451_v60  ;;  %v11529_v0 = vld [vmem:[#allocation14 + $0x4ac] ss:$16 sps:$4 sm:$0xff]   ;;  %v11524_v60 = vld [vmem:[#allocation14 + $0x4a0] ss:$16 sps:$4 sm:$0xff]  }
 0x7b0   :  { %9546 = vmatpush1.bf16.msra.mxu0 %v11446_v45  ;;  %9710 = vmatpush1.bf16.msra.mxu1 %v11449_v12  ;;  %v11527_v45 = vld [vmem:[#allocation14 + $0x4a8] ss:$16 sps:$4 sm:$0xff]   ;;  %v11532_v12 = vld [vmem:[#allocation14 + $0x4c4] ss:$16 sps:$4 sm:$0xff]  }
 0x7b1   :  { %9547 = vmatprep.subr.bf16.mxu0 %v11454_v26  ;;  %9711 = vmatprep.subr.bf16.mxu1 %v11457_v19  ;;  %v11535_v26 = vld [vmem:[#allocation14 + $0x4cc] ss:$16 sps:$4 sm:$0xff]   ;;  %v11530_v19 = vld [vmem:[#allocation14 + $0x4c0] ss:$16 sps:$4 sm:$0xff]  }
 0x7b4   :  { %9548 = vmatpush1.bf16.msra.mxu0 %v11452_v42  ;;  %9712 = vmatpush1.bf16.msra.mxu1 %v11455_v49  ;;  %v11533_v42 = vld [vmem:[#allocation14 + $0x4c8] ss:$16 sps:$4 sm:$0xff]   ;;  %v11538_v49 = vld [vmem:[#allocation14 + $0x4e4] ss:$16 sps:$4 sm:$0xff]  }
 0x7b5   :  { %9549 = vmatprep.subr.bf16.mxu0 %v11460_v18  ;;  %9713 = vmatprep.subr.bf16.mxu1 %v11463_v50  ;;  %v11541_v18 = vld [vmem:[#allocation14 + $0x4ec] ss:$16 sps:$4 sm:$0xff]   ;;  %v11536_v50 = vld [vmem:[#allocation14 + $0x4e0] ss:$16 sps:$4 sm:$0xff]  }
 0x7b8   :  { %9550 = vmatpush1.bf16.msra.mxu0 %v11458_v63  ;;  %9714 = vmatpush1.bf16.msra.mxu1 %v11461_v35  ;;  %v11539_v63 = vld [vmem:[#allocation14 + $0x4e8] ss:$16 sps:$4 sm:$0xff]   ;;  %v11544_v35 = vld [vmem:[#allocation14 + $0x504] ss:$16 sps:$4 sm:$0xff]  }
 0x7b9   :  { %9551 = vmatprep.subr.bf16.mxu0 %v11466_v61  ;;  %9715 = vmatprep.subr.bf16.mxu1 %v11469_v44  ;;  %v11547_v61 = vld [vmem:[#allocation14 + $0x50c] ss:$16 sps:$4 sm:$0xff]   ;;  %v11542_v44 = vld [vmem:[#allocation14 + $0x500] ss:$16 sps:$4 sm:$0xff]  }
 0x7bc   :  { %9552 = vmatpush1.bf16.msra.mxu0 %v11464_v62  ;;  %9716 = vmatpush1.bf16.msra.mxu1 %v11467_v43  ;;  %v11545_v62 = vld [vmem:[#allocation14 + $0x508] ss:$16 sps:$4 sm:$0xff]   ;;  %v11550_v43 = vld [vmem:[#allocation14 + $0x524] ss:$16 sps:$4 sm:$0xff]  }
 0x7bd   :  { %9553 = vmatprep.subr.bf16.mxu0 %v11472_v1  ;;  %9717 = vmatprep.subr.bf16.mxu1 %v11475_v10  ;;  %v11553_v1 = vld [vmem:[#allocation14 + $0x52c] ss:$16 sps:$4 sm:$0xff]   ;;  %v11548_v10 = vld [vmem:[#allocation14 + $0x520] ss:$16 sps:$4 sm:$0xff]  }
 0x7c0   :  { %9554 = vmatpush1.bf16.msra.mxu0 %v11470_v2  ;;  %9718 = vmatpush1.bf16.msra.mxu1 %v11473_v15  ;;  %v11551_v2 = vld [vmem:[#allocation14 + $0x528] ss:$16 sps:$4 sm:$0xff]   ;;  %v11556_v15 = vld [vmem:[#allocation14 + $0x544] ss:$16 sps:$4 sm:$0xff]  }
 0x7c1   :  { %9555 = vmatprep.subr.bf16.mxu0 %v11478_v28  ;;  %9719 = vmatprep.subr.bf16.mxu1 %v11481_v27  ;;  %v11559_v28 = vld [vmem:[#allocation14 + $0x54c] ss:$16 sps:$4 sm:$0xff]   ;;  %v11554_v27 = vld [vmem:[#allocation14 + $0x540] ss:$16 sps:$4 sm:$0xff]  }
 0x7c4   :  { %9556 = vmatpush1.bf16.msra.mxu0 %v11476_v9  ;;  %9720 = vmatpush1.bf16.msra.mxu1 %v11479_v48  ;;  %v11557_v9 = vld [vmem:[#allocation14 + $0x548] ss:$16 sps:$4 sm:$0xff]   ;;  %v11562_v48 = vld [vmem:[#allocation14 + $0x564] ss:$16 sps:$4 sm:$0xff]  }
 0x7c5   :  { %9557 = vmatprep.subr.bf16.mxu0 %v11484_v4  ;;  %9721 = vmatprep.subr.bf16.mxu1 %v11487_v36  ;;  %v11565_v4 = vld [vmem:[#allocation14 + $0x56c] ss:$16 sps:$4 sm:$0xff]   ;;  %v11560_v36 = vld [vmem:[#allocation14 + $0x560] ss:$16 sps:$4 sm:$0xff]  }
 0x7c8   :  { %9558 = vmatpush1.bf16.msra.mxu0 %v11482_v13  ;;  %9722 = vmatpush1.bf16.msra.mxu1 %v11485_v11  ;;  %v11563_v13 = vld [vmem:[#allocation14 + $0x568] ss:$16 sps:$4 sm:$0xff]   ;;  %v11568_v11 = vld [vmem:[#allocation14 + $0x584] ss:$16 sps:$4 sm:$0xff]  }
 0x7c9   :  { %9559 = vmatprep.subr.bf16.mxu0 %v11490_v6  ;;  %9723 = vmatprep.subr.bf16.mxu1 %v11493_v59  ;;  %v11571_v6 = vld [vmem:[#allocation14 + $0x58c] ss:$16 sps:$4 sm:$0xff]   ;;  %v11566_v59 = vld [vmem:[#allocation14 + $0x580] ss:$16 sps:$4 sm:$0xff]  }
 0x7cc   :  { %9560 = vmatpush1.bf16.msra.mxu0 %v11488_v34  ;;  %9724 = vmatpush1.bf16.msra.mxu1 %v11491_v3  ;;  %v11569_v34 = vld [vmem:[#allocation14 + $0x588] ss:$16 sps:$4 sm:$0xff]   ;;  %v11574_v3 = vld [vmem:[#allocation14 + $0x5a4] ss:$16 sps:$4 sm:$0xff]  }
 0x7cd   :  { %9570 = vmatprep.subr.bf16.mxu0 %v11496_v22  ;;  %9734 = vmatprep.subr.bf16.mxu1 %v11499_v17  ;;  %v11572_v22 = vld [vmem:[#allocation14 + $0x5a0] ss:$16 sps:$4 sm:$0xff]   ;;  %v11575_v17 = vld [vmem:[#allocation14 + $0x5a8] ss:$16 sps:$4 sm:$0xff]  }
 0x7cf   :  { %9562 = vmatmul.mubr.bf16.vlgmr.msra.gmra.mrb[40].mxu0 %v7924_v39  ;;  %9726 = vmatmul.mubr.bf16.vlgmr.msra.gmra.mrb[40].mxu1 %v7924_v39  ;;  %v11578_v39 = vld [vmem:[#allocation14 + $0x5c0] ss:$16 sps:$4 sm:$0xff]  }
 0x7d0   :  { %9571 = vmatpush1.bf16.msra.mxu0 %v11494_v58  ;;  %9602 = vmatprep.mubr.bf16.mxu0 %v7927_v8  ;;  %v11583_v58 = vld [vmem:[#allocation14 + $0x5cc] ss:$16 sps:$4 sm:$0xff]  }
 0x7d1   :  { %9735 = vmatpush1.bf16.msra.mxu1 %v11497_v23  ;;  %9766 = vmatprep.mubr.bf16.mxu1 %v7927_v8  ;;  %v11581_v23 = vld [vmem:[#allocation14 + $0x5c8] ss:$16 sps:$4 sm:$0xff]   ;;  %v11586_v8 = vld [vmem:[#allocation14 + $0x5e4] ss:$16 sps:$4 sm:$0xff]  }
 0x7d2   :  { %9572 = vmatprep.subr.bf16.mxu0 %v11502_v24  ;;  %9736 = vmatprep.subr.bf16.mxu1 %v11505_v55  ;;  %v11589_v24 = vld [vmem:[#allocation14 + $0x5ec] ss:$16 sps:$4 sm:$0xff]   ;;  %v11584_v55 = vld [vmem:[#allocation14 + $0x5e0] ss:$16 sps:$4 sm:$0xff]  }
 0x7d4   :  { %9573 = vmatpush1.bf16.msra.mxu0 %v11500_v30  ;;  %v11587_v30 = vld [vmem:[#allocation14 + $0x5e8] ss:$16 sps:$4 sm:$0xff]  }
 0x7d5   :  { %9737 = vmatpush1.bf16.msra.mxu1 %v11503_v7  ;;  %9574 = vmatprep.subr.bf16.mxu0 %v11508_v29  ;;  %v7918_v7 = vmax.f32 %v12506_v33, 0.0  ;;  %v11592_v29 = vld [vmem:[#allocation14 + $0x604] ss:$16 sps:$4 sm:$0xff]   ;;  %v11599_v33 = vld [vmem:[#allocation14 + $0x628] ss:$16 sps:$4 sm:$0xff]  }
 0x7d6   :  { %9738 = vmatprep.subr.bf16.mxu1 %v11511_v54  ;;  %v11595_v54 = vld [vmem:[#allocation14 + $0x60c] ss:$16 sps:$4 sm:$0xff]  }
 0x7d8   :  { %9575 = vmatpush1.bf16.msra.mxu0 %v11506_v32  ;;  %v7921_v32 = vmax.f32 %v12508_v25, 0.0  ;;  %v11607_v25 = vld [vmem:[#allocation14 + $0x64c] ss:$16 sps:$4 sm:$0xff]  }
 0x7d9   :  { %9739 = vmatpush1.bf16.msra.mxu1 %v11509_v56  ;;  %9576 = vmatprep.subr.bf16.mxu0 %v11514_v31  ;;  %v11590_v56 = vld [vmem:[#allocation14 + $0x600] ss:$16 sps:$4 sm:$0xff]   ;;  %v7926_v31 = vpack.c.bf16 %v7918_v7, %v7918_v7  ;;  %v11671_v7 = vld [vmem:[#allocation14 + $0x7a8] ss:$16 sps:$4 sm:$0xff]  }
 0x7da   :  { %9740 = vmatprep.subr.bf16.mxu1 %v11517_v20  ;;  %v11593_v20 = vld [vmem:[#allocation14 + $0x608] ss:$16 sps:$4 sm:$0xff]  }
 0x7dc   :  { %9577 = vmatpush1.bf16.msra.mxu0 %v11512_v16  ;;  %v11598_v16 = vld [vmem:[#allocation14 + $0x624] ss:$16 sps:$4 sm:$0xff]  }
 0x7dd   :  { %9741 = vmatpush1.bf16.msra.mxu1 %v11515_v37  ;;  %9578 = vmatprep.subr.bf16.mxu0 %v11520_v38  ;;  %v7929_v37 = vpack.c.bf16 %v7921_v32, %v7921_v32  ;;  %v11601_v38 = vld [vmem:[#allocation14 + $0x62c] ss:$16 sps:$4 sm:$0xff]   ;;  %v11674_v32 = vld [vmem:[#allocation14 + $0x7c0] ss:$16 sps:$4 sm:$0xff]  }
 0x7de   :  { %9742 = vmatprep.subr.bf16.mxu1 %v11523_v52  ;;  %v11596_v52 = vld [vmem:[#allocation14 + $0x620] ss:$16 sps:$4 sm:$0xff]  }
 0x7e0   :  { %9579 = vmatpush1.bf16.msra.mxu0 %v11518_v5  ;;  %v11604_v5 = vld [vmem:[#allocation14 + $0x644] ss:$16 sps:$4 sm:$0xff]  }
 0x7e1   :  { %9743 = vmatpush1.bf16.msra.mxu1 %v11521_v57  ;;  %9580 = vmatprep.subr.bf16.mxu0 %v11526_v40  ;;  %v11602_v57 = vld [vmem:[#allocation14 + $0x640] ss:$16 sps:$4 sm:$0xff]   ;;  %v11605_v40 = vld [vmem:[#allocation14 + $0x648] ss:$16 sps:$4 sm:$0xff]  }
 0x7e2   :  { %9744 = vmatprep.subr.bf16.mxu1 %v11529_v0  ;;  %v11610_v0 = vld [vmem:[#allocation14 + $0x664] ss:$16 sps:$4 sm:$0xff]  }
 0x7e4   :  { %9581 = vmatpush1.bf16.msra.mxu0 %v11524_v60  ;;  %v11613_v60 = vld [vmem:[#allocation14 + $0x66c] ss:$16 sps:$4 sm:$0xff]  }
 0x7e5   :  { %9745 = vmatpush1.bf16.msra.mxu1 %v11527_v45  ;;  %9582 = vmatprep.subr.bf16.mxu0 %v11532_v12  ;;  %v11608_v45 = vld [vmem:[#allocation14 + $0x660] ss:$16 sps:$4 sm:$0xff]   ;;  %v11611_v12 = vld [vmem:[#allocation14 + $0x668] ss:$16 sps:$4 sm:$0xff]  }
 0x7e6   :  { %9746 = vmatprep.subr.bf16.mxu1 %v11535_v26  ;;  %v11616_v26 = vld [vmem:[#allocation14 + $0x684] ss:$16 sps:$4 sm:$0xff]  }
 0x7e8   :  { %9583 = vmatpush1.bf16.msra.mxu0 %v11530_v19  ;;  %v11619_v19 = vld [vmem:[#allocation14 + $0x68c] ss:$16 sps:$4 sm:$0xff]  }
 0x7e9   :  { %9747 = vmatpush1.bf16.msra.mxu1 %v11533_v42  ;;  %9584 = vmatprep.subr.bf16.mxu0 %v11538_v49  ;;  %v11614_v42 = vld [vmem:[#allocation14 + $0x680] ss:$16 sps:$4 sm:$0xff]   ;;  %v11617_v49 = vld [vmem:[#allocation14 + $0x688] ss:$16 sps:$4 sm:$0xff]  }
 0x7ea   :  { %9748 = vmatprep.subr.bf16.mxu1 %v11541_v18  ;;  %v11622_v18 = vld [vmem:[#allocation14 + $0x6a4] ss:$16 sps:$4 sm:$0xff]  }
 0x7ec   :  { %9585 = vmatpush1.bf16.msra.mxu0 %v11536_v50  ;;  %v11625_v50 = vld [vmem:[#allocation14 + $0x6ac] ss:$16 sps:$4 sm:$0xff]  }
 0x7ed   :  { %9749 = vmatpush1.bf16.msra.mxu1 %v11539_v63  ;;  %9586 = vmatprep.subr.bf16.mxu0 %v11544_v35  ;;  %v11620_v63 = vld [vmem:[#allocation14 + $0x6a0] ss:$16 sps:$4 sm:$0xff]   ;;  %v11623_v35 = vld [vmem:[#allocation14 + $0x6a8] ss:$16 sps:$4 sm:$0xff]  }
 0x7ee   :  { %9750 = vmatprep.subr.bf16.mxu1 %v11547_v61  ;;  %v11628_v61 = vld [vmem:[#allocation14 + $0x6c4] ss:$16 sps:$4 sm:$0xff]  }
 0x7f0   :  { %9587 = vmatpush1.bf16.msra.mxu0 %v11542_v44  ;;  %v11631_v44 = vld [vmem:[#allocation14 + $0x6cc] ss:$16 sps:$4 sm:$0xff]  }
 0x7f1   :  { %9751 = vmatpush1.bf16.msra.mxu1 %v11545_v62  ;;  %9588 = vmatprep.subr.bf16.mxu0 %v11550_v43  ;;  %v11626_v62 = vld [vmem:[#allocation14 + $0x6c0] ss:$16 sps:$4 sm:$0xff]   ;;  %v11629_v43 = vld [vmem:[#allocation14 + $0x6c8] ss:$16 sps:$4 sm:$0xff]  }
 0x7f2   :  { %9752 = vmatprep.subr.bf16.mxu1 %v11553_v1  ;;  %v11634_v1 = vld [vmem:[#allocation14 + $0x6e4] ss:$16 sps:$4 sm:$0xff]  }
 0x7f4   :  { %9589 = vmatpush1.bf16.msra.mxu0 %v11548_v10  ;;  %v11637_v10 = vld [vmem:[#allocation14 + $0x6ec] ss:$16 sps:$4 sm:$0xff]  }
 0x7f5   :  { %9753 = vmatpush1.bf16.msra.mxu1 %v11551_v2  ;;  %9590 = vmatprep.subr.bf16.mxu0 %v11556_v15  ;;  %v11632_v2 = vld [vmem:[#allocation14 + $0x6e0] ss:$16 sps:$4 sm:$0xff]   ;;  %v11635_v15 = vld [vmem:[#allocation14 + $0x6e8] ss:$16 sps:$4 sm:$0xff]  }
 0x7f6   :  { %9754 = vmatprep.subr.bf16.mxu1 %v11559_v28  ;;  %v11640_v28 = vld [vmem:[#allocation14 + $0x704] ss:$16 sps:$4 sm:$0xff]  }
 0x7f8   :  { %9591 = vmatpush1.bf16.msra.mxu0 %v11554_v27  ;;  %v11643_v27 = vld [vmem:[#allocation14 + $0x70c] ss:$16 sps:$4 sm:$0xff]  }
 0x7f9   :  { %9755 = vmatpush1.bf16.msra.mxu1 %v11557_v9  ;;  %9592 = vmatprep.subr.bf16.mxu0 %v11562_v48  ;;  %v11638_v9 = vld [vmem:[#allocation14 + $0x700] ss:$16 sps:$4 sm:$0xff]   ;;  %v11641_v48 = vld [vmem:[#allocation14 + $0x708] ss:$16 sps:$4 sm:$0xff]  }
 0x7fa   :  { %9756 = vmatprep.subr.bf16.mxu1 %v11565_v4  ;;  %v11646_v4 = vld [vmem:[#allocation14 + $0x724] ss:$16 sps:$4 sm:$0xff]  }
 0x7fc   :  { %9593 = vmatpush1.bf16.msra.mxu0 %v11560_v36  ;;  %v11649_v36 = vld [vmem:[#allocation14 + $0x72c] ss:$16 sps:$4 sm:$0xff]  }
 0x7fd   :  { %9757 = vmatpush1.bf16.msra.mxu1 %v11563_v13  ;;  %9594 = vmatprep.subr.bf16.mxu0 %v11568_v11  ;;  %v11644_v13 = vld [vmem:[#allocation14 + $0x720] ss:$16 sps:$4 sm:$0xff]   ;;  %v11647_v11 = vld [vmem:[#allocation14 + $0x728] ss:$16 sps:$4 sm:$0xff]  }
 0x7fe   :  { %9758 = vmatprep.subr.bf16.mxu1 %v11571_v6  ;;  %v11652_v6 = vld [vmem:[#allocation14 + $0x744] ss:$16 sps:$4 sm:$0xff]  }
 0x800   :  { %9595 = vmatpush1.bf16.msra.mxu0 %v11566_v59  ;;  %v11655_v59 = vld [vmem:[#allocation14 + $0x74c] ss:$16 sps:$4 sm:$0xff]  }
 0x801   :  { %9759 = vmatpush1.bf16.msra.mxu1 %v11569_v34  ;;  %9596 = vmatprep.subr.bf16.mxu0 %v11574_v3  ;;  %v11650_v34 = vld [vmem:[#allocation14 + $0x740] ss:$16 sps:$4 sm:$0xff]   ;;  %v11653_v3 = vld [vmem:[#allocation14 + $0x748] ss:$16 sps:$4 sm:$0xff]  }
 0x802   :  { %9760 = vmatprep.subr.bf16.mxu1 %v11577_v21  ;;  %v11658_v21 = vld [vmem:[#allocation14 + $0x764] ss:$16 sps:$4 sm:$0xff]  }
 0x804   :  { %9597 = vmatpush1.bf16.msra.mxu0 %v11572_v22  ;;  %v11661_v22 = vld [vmem:[#allocation14 + $0x76c] ss:$16 sps:$4 sm:$0xff]  }
 0x805   :  { %9761 = vmatpush1.bf16.msra.mxu1 %v11575_v17  ;;  %9598 = vmatprep.subr.bf16.mxu0 %v11580_v41  ;;  %v11656_v17 = vld [vmem:[#allocation14 + $0x760] ss:$16 sps:$4 sm:$0xff]   ;;  %v11659_v41 = vld [vmem:[#allocation14 + $0x768] ss:$16 sps:$4 sm:$0xff]  }
 0x806   :  { %9762 = vmatprep.subr.bf16.mxu1 %v11583_v58  ;;  %v11664_v58 = vld [vmem:[#allocation14 + $0x784] ss:$16 sps:$4 sm:$0xff]  }
 0x808   :  { %9599 = vmatpush1.bf16.msra.mxu0 %v11578_v39  ;;  %v11667_v39 = vld [vmem:[#allocation14 + $0x78c] ss:$16 sps:$4 sm:$0xff]  }
 0x809   :  { %9763 = vmatpush1.bf16.msra.mxu1 %v11581_v23  ;;  %9600 = vmatprep.subr.bf16.mxu0 %v11586_v8  ;;  %v11662_v23 = vld [vmem:[#allocation14 + $0x780] ss:$16 sps:$4 sm:$0xff]   ;;  %v11665_v8 = vld [vmem:[#allocation14 + $0x788] ss:$16 sps:$4 sm:$0xff]  }
 0x80a   :  { %9764 = vmatprep.subr.bf16.mxu1 %v11589_v24  ;;  %v11670_v24 = vld [vmem:[#allocation14 + $0x7a4] ss:$16 sps:$4 sm:$0xff]  }
 0x80c   :  { %9601 = vmatpush1.bf16.msra.mxu0 %v11584_v55  ;;  %v11673_v55 = vld [vmem:[#allocation14 + $0x7ac] ss:$16 sps:$4 sm:$0xff]  }
 0x80d   :  { %9765 = vmatpush1.bf16.msra.mxu1 %v11587_v30  ;;  %9611 = vmatprep.subr.bf16.mxu0 %v11592_v29  ;;  %v11668_v30 = vld [vmem:[#allocation14 + $0x7a0] ss:$16 sps:$4 sm:$0xff]   ;;  %v11676_v29 = vld [vmem:[#allocation14 + $0x7c4] ss:$16 sps:$4 sm:$0xff]  }
 0x80e   :  { %9775 = vmatprep.subr.bf16.mxu1 %v11595_v54  ;;  %v11679_v54 = vld [vmem:[#allocation14 + $0x7cc] ss:$16 sps:$4 sm:$0xff]  }
 0x80f   :  { %9603 = vmatmul.mubr.bf16.vlgmr.msra.gmra.mrb[40].mxu0 %v7926_v31 }
 0x810   :  { %9767 = vmatmul.mubr.bf16.vlgmr.msra.gmra.mrb[40].mxu1 %v7926_v31  ;;  %9612 = vmatpush1.bf16.msra.mxu0 %v11590_v56  ;;  %v11677_v56 = vld [vmem:[#allocation14 + $0x7c8] ss:$16 sps:$4 sm:$0xff]   ;;  %v11682_v31 = vld [vmem:[#allocation14 + $0x7e4] ss:$16 sps:$4 sm:$0xff]  }
 0x811   :  { %9643 = vmatprep.mubr.bf16.mxu0 %v7929_v37  ;;  %9776 = vmatpush1.bf16.msra.mxu1 %v11593_v20  ;;  %v11685_v20 = vld [vmem:[#allocation14 + $0x7ec] ss:$16 sps:$4 sm:$0xff]  }
 0x812   :  { %9807 = vmatprep.mubr.bf16.mxu1 %v7929_v37  ;;  %9613 = vmatprep.subr.bf16.mxu0 %v11598_v16  ;;  %v11680_v16 = vld [vmem:[#allocation14 + $0x7e0] ss:$16 sps:$4 sm:$0xff]   ;;  %v11683_v37 = vld [vmem:[#allocation14 + $0x7e8] ss:$16 sps:$4 sm:$0xff]  }
 0x813   :  { %9777 = vmatprep.subr.bf16.mxu1 %v11601_v38  ;;  %v7920_v38 = vmax.f32 %v12510_v14, 0.0 }
 0x814   :  { %9614 = vmatpush1.bf16.msra.mxu0 %v11596_v52 }
 0x815   :  { %9778 = vmatpush1.bf16.msra.mxu1 %v11599_v33  ;;  %9615 = vmatprep.subr.bf16.mxu0 %v11604_v5  ;;  %v7928_v52 = vpack.c.bf16 %v7920_v38, %v7920_v38  ;;  %v8186_v33 = vld [vmem:[#allocation16] sm:$0xf] }
 0x816   :  { %9779 = vmatprep.subr.bf16.mxu1 %v11607_v25  ;;  %v8191_v5 = vrot.slane %v8186_v33, %v12254_v46  ;;  %v8199_v25 = vrot.slane %v8186_v33, %v12260_v53 }
 0x818   :  { %9616 = vmatpush1.bf16.msra.mxu0 %v11602_v57  ;;  %v8195_v57 = vrot.slane %v8186_v33, %v12257_v47 }
 0x819   :  { %9780 = vmatpush1.bf16.msra.mxu1 %v11605_v40  ;;  %9617 = vmatprep.subr.bf16.mxu0 %v11610_v0  ;;  %v8203_v40 = vrot.slane %v8186_v33, %v12266_v51 }
 0x81a   :  { %9781 = vmatprep.subr.bf16.mxu1 %v11613_v60 }
 0x81c   :  { %9618 = vmatpush1.bf16.msra.mxu0 %v11608_v45 }
 0x81d   :  { %9782 = vmatpush1.bf16.msra.mxu1 %v11611_v12  ;;  %9619 = vmatprep.subr.bf16.mxu0 %v11616_v26 }
 0x81e   :  { %9783 = vmatprep.subr.bf16.mxu1 %v11619_v19 }
 0x820   :  { %9620 = vmatpush1.bf16.msra.mxu0 %v11614_v42 }
 0x821   :  { %9784 = vmatpush1.bf16.msra.mxu1 %v11617_v49  ;;  %9621 = vmatprep.subr.bf16.mxu0 %v11622_v18 }
 0x822   :  { %9785 = vmatprep.subr.bf16.mxu1 %v11625_v50 }
 0x824   :  { %9622 = vmatpush1.bf16.msra.mxu0 %v11620_v63 }
 0x825   :  { %9786 = vmatpush1.bf16.msra.mxu1 %v11623_v35  ;;  %9623 = vmatprep.subr.bf16.mxu0 %v11628_v61 }
 0x826   :  { %9787 = vmatprep.subr.bf16.mxu1 %v11631_v44 }
 0x828   :  { %9624 = vmatpush1.bf16.msra.mxu0 %v11626_v62 }
 0x829   :  { %9788 = vmatpush1.bf16.msra.mxu1 %v11629_v43  ;;  %9625 = vmatprep.subr.bf16.mxu0 %v11634_v1 }
 0x82a   :  { %9789 = vmatprep.subr.bf16.mxu1 %v11637_v10 }
 0x82c   :  { %9626 = vmatpush1.bf16.msra.mxu0 %v11632_v2 }
 0x82d   :  { %9790 = vmatpush1.bf16.msra.mxu1 %v11635_v15  ;;  %9627 = vmatprep.subr.bf16.mxu0 %v11640_v28 }
 0x82e   :  { %9791 = vmatprep.subr.bf16.mxu1 %v11643_v27 }
 0x830   :  { %9628 = vmatpush1.bf16.msra.mxu0 %v11638_v9 }
 0x831   :  { %9792 = vmatpush1.bf16.msra.mxu1 %v11641_v48  ;;  %9629 = vmatprep.subr.bf16.mxu0 %v11646_v4 }
 0x832   :  { %9793 = vmatprep.subr.bf16.mxu1 %v11649_v36 }
 0x834   :  { %9630 = vmatpush1.bf16.msra.mxu0 %v11644_v13 }
 0x835   :  { %9794 = vmatpush1.bf16.msra.mxu1 %v11647_v11  ;;  %9631 = vmatprep.subr.bf16.mxu0 %v11652_v6 }
 0x836   :  { %9795 = vmatprep.subr.bf16.mxu1 %v11655_v59 }
 0x838   :  { %9632 = vmatpush1.bf16.msra.mxu0 %v11650_v34 }
 0x839   :  { %9796 = vmatpush1.bf16.msra.mxu1 %v11653_v3  ;;  %9633 = vmatprep.subr.bf16.mxu0 %v11658_v21 }
 0x83a   :  { %9797 = vmatprep.subr.bf16.mxu1 %v11661_v22 }
 0x83c   :  { %9634 = vmatpush1.bf16.msra.mxu0 %v11656_v17 }
 0x83d   :  { %9798 = vmatpush1.bf16.msra.mxu1 %v11659_v41  ;;  %9635 = vmatprep.subr.bf16.mxu0 %v11664_v58 }
 0x83e   :  { %9799 = vmatprep.subr.bf16.mxu1 %v11667_v39  ;;  %v9858_v39 = vld [vmem:[#allocation17] sm:$0xf] }
 0x840   :  { %9636 = vmatpush1.bf16.msra.mxu0 %v11662_v23 }
 0x841   :  { %9800 = vmatpush1.bf16.msra.mxu1 %v11665_v8  ;;  %9637 = vmatprep.subr.bf16.mxu0 %v11670_v24 }
 0x842   :  { %9801 = vmatprep.subr.bf16.mxu1 %v11673_v55 }
 0x844   :  { %9638 = vmatpush1.bf16.msra.mxu0 %v11668_v30 }
 0x845   :  { %9802 = vmatpush1.bf16.msra.mxu1 %v11671_v7  ;;  %9639 = vmatprep.subr.bf16.mxu0 %v11676_v29  ;;  %v9863_v7 = vrot.slane %v9858_v39, %v12254_v46  ;;  %v9867_v29 = vrot.slane %v9858_v39, %v12257_v47 }
 0x846   :  { %9803 = vmatprep.subr.bf16.mxu1 %v11679_v54  ;;  %v9871_v54 = vrot.slane %v9858_v39, %v12260_v53 }
 0x848   :  { %9640 = vmatpush1.bf16.msra.mxu0 %v11674_v32 }
 0x849   :  { %9804 = vmatpush1.bf16.msra.mxu1 %v11677_v56  ;;  %9641 = vmatprep.subr.bf16.mxu0 %v11682_v31 }
 0x84a   :  { %9805 = vmatprep.subr.bf16.mxu1 %v11685_v20 }
 0x84c   :  { %9642 = vmatpush1.bf16.msra.mxu0 %v11680_v16  ;;  %v9875_v16 = vrot.slane %v9858_v39, %v12266_v51  ;;  %v11199_v51 = vld [vmem:[#allocation2] ss:$0 sm:$0xff] }
 0x84d   :  { %9806 = vmatpush1.bf16.msra.mxu1 %v11683_v37 }
 0x84f   :  { %9644 = vmatmul.mubr.bf16.vlgmr.msra.gmra.mrb[40].mxu0 %v7928_v52 }
 0x850   :  { %9808 = vmatmul.mubr.bf16.vlgmr.msra.gmra.mrb[40].mxu1 %v7928_v52 }
 0x922   :  { %v9645_v0 = vpop.f32.mrb[40].mxu0 }
 0x923   :  { %v11209_v60 = vadd.f32 %v9645_v0, %v8191_v5  ;;  %v9809_v45 = vpop.f32.mrb[40].mxu1  ;;  %v9647_v12 = vpop.f32.mrb[41].mxu0 }
 0x924   :  { %v11211_v14 = vadd.f32 %v9809_v45, %v8199_v25  ;;  %v11210_v26 = vadd.f32 %v9647_v12, %v8195_v57  ;;  %v9811_v19 = vpop.f32.mrb[41].mxu1  ;;  %v9649_v42 = vpop.f32.mrb[42].mxu0 }
 0x925   :  { %v9816_v49 = vsel %vm3996_vm0, %v11209_v60, 0.0  ;;  %v9827_v18 = vmul.f32 %v11209_v60, %v11209_v60  ;;  %v11212_v50 = vadd.f32 %v9811_v19, %v8203_v40  ;;  %v9813_v63 = vpop.f32.mrb[42].mxu1  ;;  %v9650_v35 = vpop.f32.mrb[43].mxu0 }
 0x926   :  { %v9829_v61 = vmul.f32 %v11211_v14, %v11211_v14  ;;  %v9817_v44 = vsel %vm3996_vm0, %v11210_v26, 0.0  ;;  %v9828_v62 = vmul.f32 %v11210_v26, %v11210_v26  ;;  %v9814_v43 = vpop.f32.mrb[43].mxu1  ;;  %v9819_v2 = vsel %vm3996_vm0, %v11211_v14, 0.0 }
 0x927   :  { %v9818_v1 = vadd.f32 %v9817_v44, %v9816_v49  ;;  %v9831_v10 = vsel %vm3996_vm0, %v9827_v18, 0.0  ;;  %v9830_v15 = vmul.f32 %v11212_v50, %v11212_v50  ;;  %v9821_v48 = vsel %vm3996_vm0, %v11212_v50, 0.0 }
 0x928   :  { %v9832_v28 = vsel %vm3996_vm0, %v9828_v62, 0.0  ;;  %v9834_v4 = vsel %vm3996_vm0, %v9829_v61, 0.0 }
 0x929   :  { %v9820_v27 = vadd.f32 %v9819_v2, %v9818_v1  ;;  %v9833_v9 = vadd.f32 %v9832_v28, %v9831_v10  ;;  %v9836_v11 = vsel %vm3996_vm0, %v9830_v15, 0.0 }
 0x92b   :  { %v9822_v36 = vadd.f32 %v9821_v48, %v9820_v27  ;;  %v9835_v13 = vadd.f32 %v9834_v4, %v9833_v9 }
 0x92d   :  { %9823 = vadd.xlane.f32.xlu0 %v9822_v36  ;;  %v9837_v6 = vadd.f32 %v9836_v11, %v9835_v13 }
 0x92f   :  { %9838 = vadd.xlane.f32.xlu1 %v9837_v6 }
 0x9ba   :  { %v9824_v59 = vpop.xlane.xlu0 %9823 }
 0x9bb   :  { %v9826_v34 = vmul.f32 0.001953125, %v9824_v59 }
 0x9bc   :  { %v9839_v3 = vpop.xlane.xlu1 %9838 }
 0x9bd   :  { %v9840_v21 = vmul.f32 0.001953125, %v9839_v3  ;;  %v9841_v22 = vmul.f32 %v9826_v34, %v9826_v34  ;;  %v9844_v23 = vsub.f32 %v11209_v60, %v9826_v34  ;;  %v9845_v8 = vsub.f32 %v11210_v26, %v9826_v34 }
 0x9be   :  { %v9846_v24 = vsub.f32 %v11211_v14, %v9826_v34  ;;  %v9847_v55 = vsub.f32 %v11212_v50, %v9826_v34 }
 0x9bf   :  { %v9842_v17 = vsub.f32 %v9840_v21, %v9841_v22 }
 0x9c1   :  { %v9843_v41 = vmax.f32 %v9842_v17, 0.0 }
 0x9c3   :  { %v9848_v58 = vadd.f32 1e-05, %v9843_v41 }
 0x9c5   :  { %11690 = vrsqrt.f32 %v9848_v58 }
 0x9cf   :  { %v11691_v30 = vpop.eup %11690 }
 0x9d0   :  { %v9850_v32 = vmul.f32 %v11691_v30, %v9844_v23  ;;  %v9851_v56 = vmul.f32 %v11691_v30, %v9845_v8  ;;  %v9852_v31 = vmul.f32 %v11691_v30, %v9846_v24  ;;  %v9853_v20 = vmul.f32 %v11691_v30, %v9847_v55 }
 0x9d2   :  { %v9854_v37 = vmax.f32 %v9850_v32, 0.0  ;;  %v9855_v38 = vmax.f32 %v9851_v56, 0.0  ;;  %v9856_v52 = vmax.f32 %v9852_v31, 0.0  ;;  %v9857_v33 = vmax.f32 %v9853_v20, 0.0 }
 0x9d4   :  { %v9880_v5 = vmul.f32 %v9863_v7, %v9854_v37  ;;  %v9881_v25 = vmul.f32 %v9867_v29, %v9855_v38  ;;  %v9882_v57 = vmul.f32 %v9871_v54, %v9856_v52  ;;  %v9883_v40 = vmul.f32 %v9875_v16, %v9857_v33 }
 0x9d6   :  { %v9884_v46 = vsel %vm3996_vm0, %v9880_v5, 0.0  ;;  %v9885_v47 = vsel %vm3996_vm0, %v9881_v25, 0.0  ;;  %v9887_v53 = vsel %vm3996_vm0, %v9882_v57, 0.0  ;;  %v9889_v45 = vsel %vm3996_vm0, %v9883_v40, 0.0 }
 0x9d7   :  { %v9886_v0 = vadd.f32 %v9885_v47, %v9884_v46 }
 0x9d9   :  { %v9888_v60 = vadd.f32 %v9887_v53, %v9886_v0 }
 0x9db   :  { %v9890_v12 = vadd.f32 %v9889_v45, %v9888_v60 }
 0x9dd   :  { %9891 = vadd.xlane.f32.xlu0 %v9890_v12 }
 0xa6a   :  { %v9892_v14 = vpop.xlane.xlu0 %9891 }
 0xa6b   :  { %v9900_v26 = vadd.f32 %v11199_v51, %v9892_v14 }
 0xa6d   :  { %v11200_v19 = vmul.f32 -1.442695, %v9900_v26 }
 0xa6f   :  { %11692 = vpow2.f32 %v11200_v19 }
 0xa79   :  { %v11693_v42 = vpop.eup %11692 }
 0xa7a   :  { %v9904_v49 = vadd.f32 1.0, %v11693_v42 }
 0xa7c   :  { %11694 = vrcp.f32 %v9904_v49 }
 0xa86   :  { %v11695_v18 = vpop.eup %11694 }
 0xa87   :  { %9908 = vst.msk [vmem:[%s12551_s11] sm:$0x3] %vm9907_vm1, %v11695_v18 }
 0xa88   :  { %9913 = vsyncpa [#allocation4], 1 }
 0xa89   :  { %9914 = vsyncpa [#allocation6], 1 }
 0xa8a   :  { %9915 = vsyncpa [#allocation9], 1 }
 0xa8b   :  { %9916 = vsyncpa [#allocation12], 1 }
 0xa8c   :  { %9917 = vsyncpa [#allocation15], 1 }
 0xa8d   :  { %9918 = vsyncpa [#allocation18], 1 }

</bundles_post_ra>
